<compile_context>
chip_gen: v5e
topology: v5e:2x2
jax: 0.10.0
libtpu: 0.0.40
codegen_flags: <defaults>
</compile_context>

<pallas_src>
import math

import jax
import jax.numpy as jnp
from jax.experimental import pallas as pl
from jax.experimental.pallas import tpu as pltpu


_LANE_QUANTUM = 256            # keep full 256-lane MXU passes on v6e/v7x
_MAX_ROW_TILE = 16384          # VMEM cap (v7x: 64 MiB physical / 32 MiB scoped)
_VMEM_LIMIT_BYTES = 32 * 1024 * 1024   # explicit: v5e scoped default is 16 MiB


# ----------------------------- fast f32 sine ---------------------------------
_INV_PI = 0.3183098861837907
_PI_HI = 3.140625                    # short head: k*_PI_HI exact for |k| << 2^15
_PI_LO = 9.676535897932384e-4        # pi - _PI_HI


def _fast_sin(x):
    """sin(x) in f32 for moderate |x| (<~1e3).

    Cody-Waite reduction to [-pi/2, pi/2] + odd degree-11 polynomial.  Max abs
    error vs exact sin ~5e-7 (same order as jnp.sin's own f32 error) with roughly
    half the VPU ops of the XLA sin lowering -- the VALU is the binding slot here.
    """
    k = jnp.floor(x * _INV_PI + 0.5)          # nearest integer multiple of pi
    r = x - k * _PI_HI
    r = r - k * _PI_LO                        # r in [-pi/2, pi/2]
    # sin(x) = (-1)^k * sin(r) = sin((-1)^k * r)   (sin is odd)
    parity = k - 2.0 * jnp.floor(k * 0.5)     # 0.0 or 1.0 (exact for small ints)
    r = jnp.where(parity > 0.5, -r, r)
    r2 = r * r
    p = -2.5052108385441718e-08
    p = p * r2 + 2.7557319223985893e-06
    p = p * r2 - 1.9841269841269841e-04
    p = p * r2 + 8.3333333333333333e-03
    p = p * r2 - 1.6666666666666666e-01
    return r + r * (r2 * p)


# ------------------------------- kernel ---------------------------------------
def _make_siren_kernel(num_layers, last_is_linear):
    """Kernel computing the full SIREN stack on one lane-dense column tile.

    x_ref: (in_f, row_tile) -- samples on the lane axis.
    refs:  (w0, b0, w1, b1, ..., out_ref) with w_l: (out_f_l, in_f_l),
           b_l: (out_f_l, 1).  omega is already folded into w_l / b_l.
    """

    def kernel(x_ref, *refs):
        out_ref = refs[-1]
        h = x_ref[...].astype(jnp.float32)                  # (in_f, row_tile)
        for l in range(num_layers):
            w = refs[2 * l][...]                            # (out_f_l, in_f_l)
            b = refs[2 * l + 1][...]                        # (out_f_l, 1)
            h = jnp.dot(w, h, preferred_element_type=jnp.float32) + b
            if not (last_is_linear and l == num_layers - 1):
                h = _fast_sin(h)                            # omega pre-folded
        out_ref[...] = h.astype(out_ref.dtype)

    return kernel


# ------------------------------ parameters ------------------------------------
def siren_init_params(key, in_features, hidden_features, hidden_layers,
                      out_features, outermost_linear=False,
                      first_omega_0=30.0, hidden_omega_0=30.0):
    """Deterministic init matching the PyTorch SineLayer / Siren scheme.

    Returns a list of (weight[out_f, in_f], bias[out_f], omega, is_linear).
    """
    dims = [in_features] + [hidden_features] * (hidden_layers + 1) + [out_features]
    params = []
    n_layers = len(dims) - 1
    for l in range(n_layers):
        fan_in, fan_out = dims[l], dims[l + 1]
        key, kw, kb = jax.random.split(key, 3)
        is_first = (l == 0)
        is_last = (l == n_layers - 1)
        omega = first_omega_0 if is_first else hidden_omega_0
        if is_first:
            w_bound = 1.0 / fan_in
        else:
            w_bound = math.sqrt(6.0 / fan_in) / hidden_omega_0
        b_bound = 1.0 / math.sqrt(fan_in)   # nn.Linear default bias init
        w = jax.random.uniform(kw, (fan_out, fan_in), jnp.float32,
                               minval=-w_bound, maxval=w_bound)
        b = jax.random.uniform(kb, (fan_out,), jnp.float32,
                               minval=-b_bound, maxval=b_bound)
        is_linear = is_last and outermost_linear
        params.append((w, b, float(omega), is_linear))
    return params


# ------------------------------ tiling helpers ---------------------------------
def _round_up(x, m):
    return ((x + m - 1) // m) * m


def _choose_tile(n, row_tile):
    n_min = _round_up(n, _LANE_QUANTUM)
    tile = min(_round_up(max(row_tile, _LANE_QUANTUM), _LANE_QUANTUM),
               _MAX_ROW_TILE, n_min)
    # Keep grid >= 2 whenever possible so dimension_semantics=("parallel",)
    # shards the row axis across both v7x TensorCores (harmless on v5e/v6e).
    if tile >= n_min and n_min > _LANE_QUANTUM:
        tile = _round_up((n + 1) // 2, _LANE_QUANTUM)
    return tile


# ------------------------------ forward wrapper --------------------------------
def siren_forward(coords, params, row_tile=4096,
                  coords_channels_first=False, out_channels_first=False):
    """Runs the full SIREN network with a single fused pallas_call.

    coords: (N, in_f) float32 (or (in_f, N) if coords_channels_first=True).
    Returns (output, coords) like the PyTorch module; output is (N, out_f)
    (or (out_f, N) if out_channels_first=True).
    """
    if coords_channels_first:
        in_f, N = coords.shape
    else:
        N, in_f = coords.shape
    num_layers = len(params)
    last_is_linear = params[-1][3]
    out_f = params[-1][0].shape[0]

    tile = _choose_tile(N, row_tile)
    n_pad = _round_up(N, tile)
    grid = (n_pad // tile,)

    # Lane-dense coords [in_f, N]; transpose skipped entirely when the caller
    # already keeps channels-first layout, pad skipped when N % tile == 0.
    coords_t = coords if coords_channels_first else coords.T
    coords_t = coords_t.astype(jnp.float32)
    if n_pad != N:
        coords_t = jnp.pad(coords_t, ((0, 0), (0, n_pad - N)))

    # Fold omega into weights/biases: omega*(xW+b) == x(omega*W) + (omega*b).
    scaled = []
    operands = [coords_t]
    flops = 0
    transcendentals = 0
    for (w, b, omega, is_linear) in params:
        s = 1.0 if is_linear else float(omega)
        w_s = (s * w).astype(jnp.float32)                   # (out, in)
        b_s = (s * b).reshape(-1, 1).astype(jnp.float32)    # (out, 1)
        scaled.append((w_s, b_s))
        operands.append(w_s)
        operands.append(b_s)
        o, i = w_s.shape
        flops += 2 * n_pad * o * i + n_pad * o
        if not is_linear:
            transcendentals += n_pad * o

    bytes_accessed = 4 * (coords_t.size + out_f * n_pad
                          + sum(w.size + b.size for (w, b) in scaled))
    cost = pl.CostEstimate(flops=int(flops),
                           transcendentals=int(transcendentals),
                           bytes_accessed=int(bytes_accessed))

    kernel = _make_siren_kernel(num_layers, last_is_linear)

    def build(single_buffer_weights):
        in_specs = [pl.BlockSpec((in_f, tile), lambda i: (0, i))]
        for (w_s, b_s) in scaled:
            if single_buffer_weights:
                # Constant index_map + single buffer: weights/biases stay
                # VMEM-resident with no pointless second buffer.
                in_specs.append(pl.BlockSpec(w_s.shape, lambda i: (0, 0),
                                             pipeline_mode=pl.Buffered(1)))
                in_specs.append(pl.BlockSpec(b_s.shape, lambda i: (0, 0),
                                             pipeline_mode=pl.Buffered(1)))
            else:
                in_specs.append(pl.BlockSpec(w_s.shape, lambda i: (0, 0)))
                in_specs.append(pl.BlockSpec(b_s.shape, lambda i: (0, 0)))
        return pl.pallas_call(
            kernel,
            out_shape=jax.ShapeDtypeStruct((out_f, n_pad), coords.dtype),
            grid_spec=pltpu.PrefetchScalarGridSpec(
                num_scalar_prefetch=0,
                grid=grid,
                in_specs=in_specs,
                out_specs=pl.BlockSpec((out_f, tile), lambda i: (0, i)),
            ),
            compiler_params=pltpu.CompilerParams(
                dimension_semantics=("parallel",),
                vmem_limit_bytes=_VMEM_LIMIT_BYTES),
            cost_estimate=cost,
        )

    try:
        out_t = build(True)(*operands)
    except Exception:
        # Fallback if this Pallas version rejects pipeline_mode=pl.Buffered(1).
        out_t = build(False)(*operands)

    if out_channels_first:
        out = out_t[:, :N]
    elif out_f == 1:
        out = out_t[:, :N].reshape(N, 1)   # (1, N) -> (N, 1): pure reshape, no copy
    else:
        out = out_t[:, :N].T

    # TODO(synk): PyTorch's coords.clone().detach().requires_grad_(True) is
    # autograd bookkeeping only; we return coords unchanged.
    return out, coords


# ------------------------------ pure-JAX reference -----------------------------
def siren_reference(coords, params):
    h = coords.astype(jnp.float32)
    for (w, b, omega, is_linear) in params:
        h = h @ w.T + b
        if not is_linear:
            h = jnp.sin(omega * h)
    return h.astype(coords.dtype)


if __name__ == "__main__":
    key = jax.random.PRNGKey(0)
    in_features, hidden_features, hidden_layers = 2, 32, 2
    kp1, kp2, kx1, kx2 = jax.random.split(key, 4)

    # Config 1: default Siren (sine output layer), out_features=1.
    # N not a multiple of the tile -> exercises padding + 2-step parallel grid.
    N1 = 2000
    coords1 = jax.random.uniform(kx1, (N1, in_features), jnp.float32,
                                 minval=-1.0, maxval=1.0)
    params_sine = siren_init_params(kp1, in_features, hidden_features,
                                    hidden_layers, out_features=1,
                                    outermost_linear=False,
                                    first_omega_0=30.0, hidden_omega_0=30.0)
    out1, coords_out = siren_forward(coords1, params_sine)
    out1 = jax.block_until_ready(out1)
    ref1 = siren_reference(coords1, params_sine)
    assert out1.shape == (N1, 1)
    assert coords_out.shape == coords1.shape
    err1 = float(jnp.max(jnp.abs(out1 - ref1)))
    assert err1 < 1e-3, f"sine-out max abs err {err1}"

    # Config 2: outermost_linear=True, out_features=3, channels-first I/O path
    # (caller keeps the lane-dense [features, N] layout -> no wrapper transposes).
    N2 = 1024
    coords2_cf = jax.random.uniform(kx2, (in_features, N2), jnp.float32,
                                    minval=-1.0, maxval=1.0)
    params_lin = siren_init_params(kp2, in_features, hidden_features,
                                   hidden_layers, out_features=3,
                                   outermost_linear=True,
                                   first_omega_0=30.0, hidden_omega_0=30.0)
    out2_cf, _ = siren_forward(coords2_cf, params_lin,
                               coords_channels_first=True,
                               out_channels_first=True)
    out2_cf = jax.block_until_ready(out2_cf)
    ref2 = siren_reference(coords2_cf.T, params_lin)
    assert out2_cf.shape == (3, N2)
    err2 = float(jnp.max(jnp.abs(out2_cf.T - ref2)))
    assert err2 < 1e-3, f"linear-out max abs err {err2}"

    print("KERNEL_OK")
</pallas_src>

<mosaic_0001>
module attributes {stable_mosaic.version = 11 : i64} {
  func.func @kernel(%arg0: i32, %arg1: memref<2x1024xf32, #tpu.memory_space<vmem>>, %arg2: memref<32x2xf32, #tpu.memory_space<vmem>>, %arg3: memref<32x1xf32, #tpu.memory_space<vmem>>, %arg4: memref<32x32xf32, #tpu.memory_space<vmem>>, %arg5: memref<32x1xf32, #tpu.memory_space<vmem>>, %arg6: memref<32x32xf32, #tpu.memory_space<vmem>>, %arg7: memref<32x1xf32, #tpu.memory_space<vmem>>, %arg8: memref<1x32xf32, #tpu.memory_space<vmem>>, %arg9: memref<1x1xf32, #tpu.memory_space<vmem>>, %arg10: memref<1x1024xf32, #tpu.memory_space<vmem>>) attributes {dimension_semantics = [#tpu.dimension_semantics<parallel>], iteration_bounds = array<i64: 2>, scalar_prefetch = 0 : i64, scratch_operands = 0 : i64, tpu.core_type = #tpu.core_type<tc>, window_params = [{transform_indices = @transform_0, window_bounds = array<i64: 2, 1024>}, {pipeline_mode = #tpu.pipeline_mode<synchronous>, transform_indices = @transform_1, window_bounds = array<i64: 32, 2>}, {pipeline_mode = #tpu.pipeline_mode<synchronous>, transform_indices = @transform_2, window_bounds = array<i64: 32, 1>}, {pipeline_mode = #tpu.pipeline_mode<synchronous>, transform_indices = @transform_3, window_bounds = array<i64: 32, 32>}, {pipeline_mode = #tpu.pipeline_mode<synchronous>, transform_indices = @transform_4, window_bounds = array<i64: 32, 1>}, {pipeline_mode = #tpu.pipeline_mode<synchronous>, transform_indices = @transform_5, window_bounds = array<i64: 32, 32>}, {pipeline_mode = #tpu.pipeline_mode<synchronous>, transform_indices = @transform_6, window_bounds = array<i64: 32, 1>}, {pipeline_mode = #tpu.pipeline_mode<synchronous>, transform_indices = @transform_7, window_bounds = array<i64: 1, 32>}, {pipeline_mode = #tpu.pipeline_mode<synchronous>, transform_indices = @transform_8, window_bounds = array<i64: 1, 1>}, {transform_indices = @transform_9, window_bounds = array<i64: 1, 1024>}]} {
    %c0 = arith.constant 0 : index
    %c0_0 = arith.constant 0 : index
    %0 = vector.load %arg1[%c0, %c0_0] : memref<2x1024xf32, #tpu.memory_space<vmem>>, vector<2x1024xf32>
    %c0_1 = arith.constant 0 : index
    %c0_2 = arith.constant 0 : index
    %1 = vector.load %arg2[%c0_1, %c0_2] : memref<32x2xf32, #tpu.memory_space<vmem>>, vector<32x2xf32>
    %c0_3 = arith.constant 0 : index
    %c0_4 = arith.constant 0 : index
    %2 = vector.load %arg3[%c0_3, %c0_4] : memref<32x1xf32, #tpu.memory_space<vmem>>, vector<32x1xf32>
    %cst = arith.constant dense<0.000000e+00> : vector<32x1024xf32>
    %3 = tpu.matmul %1, %0, %cst {dimension_numbers = #tpu.dot_dimension_numbers<[1], [0], [0], [1], [0, 0, 1, 1], [], []>} : vector<32x2xf32>, vector<2x1024xf32>, vector<32x1024xf32> -> vector<32x1024xf32>
    %4 = vector.broadcast %2 : vector<32x1xf32> to vector<32x1024xf32>
    %5 = arith.addf %3, %4 : vector<32x1024xf32>
    %cst_5 = arith.constant 0.318309873 : f32
    %6 = vector.broadcast %cst_5 : f32 to vector<32x1024xf32>
    %7 = arith.mulf %5, %6 : vector<32x1024xf32>
    %cst_6 = arith.constant 5.000000e-01 : f32
    %8 = vector.broadcast %cst_6 : f32 to vector<32x1024xf32>
    %9 = arith.addf %7, %8 : vector<32x1024xf32>
    %10 = math.floor %9 : vector<32x1024xf32>
    %cst_7 = arith.constant 3.140625 : f32
    %11 = vector.broadcast %cst_7 : f32 to vector<32x1024xf32>
    %12 = arith.mulf %10, %11 : vector<32x1024xf32>
    %13 = arith.subf %5, %12 : vector<32x1024xf32>
    %cst_8 = arith.constant 9.67653584E-4 : f32
    %14 = vector.broadcast %cst_8 : f32 to vector<32x1024xf32>
    %15 = arith.mulf %10, %14 : vector<32x1024xf32>
    %16 = arith.subf %13, %15 : vector<32x1024xf32>
    %cst_9 = arith.constant 5.000000e-01 : f32
    %17 = vector.broadcast %cst_9 : f32 to vector<32x1024xf32>
    %18 = arith.mulf %10, %17 : vector<32x1024xf32>
    %19 = math.floor %18 : vector<32x1024xf32>
    %cst_10 = arith.constant 2.000000e+00 : f32
    %20 = vector.broadcast %cst_10 : f32 to vector<32x1024xf32>
    %21 = arith.mulf %20, %19 : vector<32x1024xf32>
    %22 = arith.subf %10, %21 : vector<32x1024xf32>
    %cst_11 = arith.constant 5.000000e-01 : f32
    %23 = vector.broadcast %cst_11 : f32 to vector<32x1024xf32>
    %24 = arith.cmpf ogt, %22, %23 : vector<32x1024xf32>
    %cst_12 = arith.constant 0.000000e+00 : f32
    %25 = vector.broadcast %cst_12 : f32 to vector<32x1024xf32>
    %26 = arith.subf %25, %16 : vector<32x1024xf32>
    %27 = arith.select %24, %26, %16 : vector<32x1024xi1>, vector<32x1024xf32>
    %28 = arith.mulf %27, %27 : vector<32x1024xf32>
    %cst_13 = arith.constant -2.50521079E-8 : f32
    %29 = vector.broadcast %cst_13 : f32 to vector<32x1024xf32>
    %30 = arith.mulf %29, %28 : vector<32x1024xf32>
    %cst_14 = arith.constant 2.75573188E-6 : f32
    %31 = vector.broadcast %cst_14 : f32 to vector<32x1024xf32>
    %32 = arith.addf %30, %31 : vector<32x1024xf32>
    %33 = arith.mulf %32, %28 : vector<32x1024xf32>
    %cst_15 = arith.constant 1.98412701E-4 : f32
    %34 = vector.broadcast %cst_15 : f32 to vector<32x1024xf32>
    %35 = arith.subf %33, %34 : vector<32x1024xf32>
    %36 = arith.mulf %35, %28 : vector<32x1024xf32>
    %cst_16 = arith.constant 0.00833333377 : f32
    %37 = vector.broadcast %cst_16 : f32 to vector<32x1024xf32>
    %38 = arith.addf %36, %37 : vector<32x1024xf32>
    %39 = arith.mulf %38, %28 : vector<32x1024xf32>
    %cst_17 = arith.constant 0.166666672 : f32
    %40 = vector.broadcast %cst_17 : f32 to vector<32x1024xf32>
    %41 = arith.subf %39, %40 : vector<32x1024xf32>
    %42 = arith.mulf %28, %41 : vector<32x1024xf32>
    %43 = arith.mulf %27, %42 : vector<32x1024xf32>
    %44 = arith.addf %27, %43 : vector<32x1024xf32>
    %c0_18 = arith.constant 0 : index
    %c0_19 = arith.constant 0 : index
    %45 = vector.load %arg4[%c0_18, %c0_19] : memref<32x32xf32, #tpu.memory_space<vmem>>, vector<32x32xf32>
    %c0_20 = arith.constant 0 : index
    %c0_21 = arith.constant 0 : index
    %46 = vector.load %arg5[%c0_20, %c0_21] : memref<32x1xf32, #tpu.memory_space<vmem>>, vector<32x1xf32>
    %cst_22 = arith.constant dense<0.000000e+00> : vector<32x1024xf32>
    %47 = tpu.matmul %45, %44, %cst_22 {dimension_numbers = #tpu.dot_dimension_numbers<[1], [0], [0], [1], [0, 0, 1, 1], [], []>} : vector<32x32xf32>, vector<32x1024xf32>, vector<32x1024xf32> -> vector<32x1024xf32>
    %48 = vector.broadcast %46 : vector<32x1xf32> to vector<32x1024xf32>
    %49 = arith.addf %47, %48 : vector<32x1024xf32>
    %cst_23 = arith.constant 0.318309873 : f32
    %50 = vector.broadcast %cst_23 : f32 to vector<32x1024xf32>
    %51 = arith.mulf %49, %50 : vector<32x1024xf32>
    %cst_24 = arith.constant 5.000000e-01 : f32
    %52 = vector.broadcast %cst_24 : f32 to vector<32x1024xf32>
    %53 = arith.addf %51, %52 : vector<32x1024xf32>
    %54 = math.floor %53 : vector<32x1024xf32>
    %cst_25 = arith.constant 3.140625 : f32
    %55 = vector.broadcast %cst_25 : f32 to vector<32x1024xf32>
    %56 = arith.mulf %54, %55 : vector<32x1024xf32>
    %57 = arith.subf %49, %56 : vector<32x1024xf32>
    %cst_26 = arith.constant 9.67653584E-4 : f32
    %58 = vector.broadcast %cst_26 : f32 to vector<32x1024xf32>
    %59 = arith.mulf %54, %58 : vector<32x1024xf32>
    %60 = arith.subf %57, %59 : vector<32x1024xf32>
    %cst_27 = arith.constant 5.000000e-01 : f32
    %61 = vector.broadcast %cst_27 : f32 to vector<32x1024xf32>
    %62 = arith.mulf %54, %61 : vector<32x1024xf32>
    %63 = math.floor %62 : vector<32x1024xf32>
    %cst_28 = arith.constant 2.000000e+00 : f32
    %64 = vector.broadcast %cst_28 : f32 to vector<32x1024xf32>
    %65 = arith.mulf %64, %63 : vector<32x1024xf32>
    %66 = arith.subf %54, %65 : vector<32x1024xf32>
    %cst_29 = arith.constant 5.000000e-01 : f32
    %67 = vector.broadcast %cst_29 : f32 to vector<32x1024xf32>
    %68 = arith.cmpf ogt, %66, %67 : vector<32x1024xf32>
    %cst_30 = arith.constant 0.000000e+00 : f32
    %69 = vector.broadcast %cst_30 : f32 to vector<32x1024xf32>
    %70 = arith.subf %69, %60 : vector<32x1024xf32>
    %71 = arith.select %68, %70, %60 : vector<32x1024xi1>, vector<32x1024xf32>
    %72 = arith.mulf %71, %71 : vector<32x1024xf32>
    %cst_31 = arith.constant -2.50521079E-8 : f32
    %73 = vector.broadcast %cst_31 : f32 to vector<32x1024xf32>
    %74 = arith.mulf %73, %72 : vector<32x1024xf32>
    %cst_32 = arith.constant 2.75573188E-6 : f32
    %75 = vector.broadcast %cst_32 : f32 to vector<32x1024xf32>
    %76 = arith.addf %74, %75 : vector<32x1024xf32>
    %77 = arith.mulf %76, %72 : vector<32x1024xf32>
    %cst_33 = arith.constant 1.98412701E-4 : f32
    %78 = vector.broadcast %cst_33 : f32 to vector<32x1024xf32>
    %79 = arith.subf %77, %78 : vector<32x1024xf32>
    %80 = arith.mulf %79, %72 : vector<32x1024xf32>
    %cst_34 = arith.constant 0.00833333377 : f32
    %81 = vector.broadcast %cst_34 : f32 to vector<32x1024xf32>
    %82 = arith.addf %80, %81 : vector<32x1024xf32>
    %83 = arith.mulf %82, %72 : vector<32x1024xf32>
    %cst_35 = arith.constant 0.166666672 : f32
    %84 = vector.broadcast %cst_35 : f32 to vector<32x1024xf32>
    %85 = arith.subf %83, %84 : vector<32x1024xf32>
    %86 = arith.mulf %72, %85 : vector<32x1024xf32>
    %87 = arith.mulf %71, %86 : vector<32x1024xf32>
    %88 = arith.addf %71, %87 : vector<32x1024xf32>
    %c0_36 = arith.constant 0 : index
    %c0_37 = arith.constant 0 : index
    %89 = vector.load %arg6[%c0_36, %c0_37] : memref<32x32xf32, #tpu.memory_space<vmem>>, vector<32x32xf32>
    %c0_38 = arith.constant 0 : index
    %c0_39 = arith.constant 0 : index
    %90 = vector.load %arg7[%c0_38, %c0_39] : memref<32x1xf32, #tpu.memory_space<vmem>>, vector<32x1xf32>
    %cst_40 = arith.constant dense<0.000000e+00> : vector<32x1024xf32>
    %91 = tpu.matmul %89, %88, %cst_40 {dimension_numbers = #tpu.dot_dimension_numbers<[1], [0], [0], [1], [0, 0, 1, 1], [], []>} : vector<32x32xf32>, vector<32x1024xf32>, vector<32x1024xf32> -> vector<32x1024xf32>
    %92 = vector.broadcast %90 : vector<32x1xf32> to vector<32x1024xf32>
    %93 = arith.addf %91, %92 : vector<32x1024xf32>
    %cst_41 = arith.constant 0.318309873 : f32
    %94 = vector.broadcast %cst_41 : f32 to vector<32x1024xf32>
    %95 = arith.mulf %93, %94 : vector<32x1024xf32>
    %cst_42 = arith.constant 5.000000e-01 : f32
    %96 = vector.broadcast %cst_42 : f32 to vector<32x1024xf32>
    %97 = arith.addf %95, %96 : vector<32x1024xf32>
    %98 = math.floor %97 : vector<32x1024xf32>
    %cst_43 = arith.constant 3.140625 : f32
    %99 = vector.broadcast %cst_43 : f32 to vector<32x1024xf32>
    %100 = arith.mulf %98, %99 : vector<32x1024xf32>
    %101 = arith.subf %93, %100 : vector<32x1024xf32>
    %cst_44 = arith.constant 9.67653584E-4 : f32
    %102 = vector.broadcast %cst_44 : f32 to vector<32x1024xf32>
    %103 = arith.mulf %98, %102 : vector<32x1024xf32>
    %104 = arith.subf %101, %103 : vector<32x1024xf32>
    %cst_45 = arith.constant 5.000000e-01 : f32
    %105 = vector.broadcast %cst_45 : f32 to vector<32x1024xf32>
    %106 = arith.mulf %98, %105 : vector<32x1024xf32>
    %107 = math.floor %106 : vector<32x1024xf32>
    %cst_46 = arith.constant 2.000000e+00 : f32
    %108 = vector.broadcast %cst_46 : f32 to vector<32x1024xf32>
    %109 = arith.mulf %108, %107 : vector<32x1024xf32>
    %110 = arith.subf %98, %109 : vector<32x1024xf32>
    %cst_47 = arith.constant 5.000000e-01 : f32
    %111 = vector.broadcast %cst_47 : f32 to vector<32x1024xf32>
    %112 = arith.cmpf ogt, %110, %111 : vector<32x1024xf32>
    %cst_48 = arith.constant 0.000000e+00 : f32
    %113 = vector.broadcast %cst_48 : f32 to vector<32x1024xf32>
    %114 = arith.subf %113, %104 : vector<32x1024xf32>
    %115 = arith.select %112, %114, %104 : vector<32x1024xi1>, vector<32x1024xf32>
    %116 = arith.mulf %115, %115 : vector<32x1024xf32>
    %cst_49 = arith.constant -2.50521079E-8 : f32
    %117 = vector.broadcast %cst_49 : f32 to vector<32x1024xf32>
    %118 = arith.mulf %117, %116 : vector<32x1024xf32>
    %cst_50 = arith.constant 2.75573188E-6 : f32
    %119 = vector.broadcast %cst_50 : f32 to vector<32x1024xf32>
    %120 = arith.addf %118, %119 : vector<32x1024xf32>
    %121 = arith.mulf %120, %116 : vector<32x1024xf32>
    %cst_51 = arith.constant 1.98412701E-4 : f32
    %122 = vector.broadcast %cst_51 : f32 to vector<32x1024xf32>
    %123 = arith.subf %121, %122 : vector<32x1024xf32>
    %124 = arith.mulf %123, %116 : vector<32x1024xf32>
    %cst_52 = arith.constant 0.00833333377 : f32
    %125 = vector.broadcast %cst_52 : f32 to vector<32x1024xf32>
    %126 = arith.addf %124, %125 : vector<32x1024xf32>
    %127 = arith.mulf %126, %116 : vector<32x1024xf32>
    %cst_53 = arith.constant 0.166666672 : f32
    %128 = vector.broadcast %cst_53 : f32 to vector<32x1024xf32>
    %129 = arith.subf %127, %128 : vector<32x1024xf32>
    %130 = arith.mulf %116, %129 : vector<32x1024xf32>
    %131 = arith.mulf %115, %130 : vector<32x1024xf32>
    %132 = arith.addf %115, %131 : vector<32x1024xf32>
    %c0_54 = arith.constant 0 : index
    %c0_55 = arith.constant 0 : index
    %133 = vector.load %arg8[%c0_54, %c0_55] : memref<1x32xf32, #tpu.memory_space<vmem>>, vector<1x32xf32>
    %c0_56 = arith.constant 0 : index
    %c0_57 = arith.constant 0 : index
    %134 = vector.load %arg9[%c0_56, %c0_57] : memref<1x1xf32, #tpu.memory_space<vmem>>, vector<1x1xf32>
    %cst_58 = arith.constant dense<0.000000e+00> : vector<1x1024xf32>
    %135 = tpu.matmul %133, %132, %cst_58 {dimension_numbers = #tpu.dot_dimension_numbers<[1], [0], [0], [1], [0, 0, 1, 1], [], []>} : vector<1x32xf32>, vector<32x1024xf32>, vector<1x1024xf32> -> vector<1x1024xf32>
    %136 = vector.broadcast %134 : vector<1x1xf32> to vector<1x1024xf32>
    %137 = arith.addf %135, %136 : vector<1x1024xf32>
    %cst_59 = arith.constant 0.318309873 : f32
    %138 = vector.broadcast %cst_59 : f32 to vector<1x1024xf32>
    %139 = arith.mulf %137, %138 : vector<1x1024xf32>
    %cst_60 = arith.constant 5.000000e-01 : f32
    %140 = vector.broadcast %cst_60 : f32 to vector<1x1024xf32>
    %141 = arith.addf %139, %140 : vector<1x1024xf32>
    %142 = math.floor %141 : vector<1x1024xf32>
    %cst_61 = arith.constant 3.140625 : f32
    %143 = vector.broadcast %cst_61 : f32 to vector<1x1024xf32>
    %144 = arith.mulf %142, %143 : vector<1x1024xf32>
    %145 = arith.subf %137, %144 : vector<1x1024xf32>
    %cst_62 = arith.constant 9.67653584E-4 : f32
    %146 = vector.broadcast %cst_62 : f32 to vector<1x1024xf32>
    %147 = arith.mulf %142, %146 : vector<1x1024xf32>
    %148 = arith.subf %145, %147 : vector<1x1024xf32>
    %cst_63 = arith.constant 5.000000e-01 : f32
    %149 = vector.broadcast %cst_63 : f32 to vector<1x1024xf32>
    %150 = arith.mulf %142, %149 : vector<1x1024xf32>
    %151 = math.floor %150 : vector<1x1024xf32>
    %cst_64 = arith.constant 2.000000e+00 : f32
    %152 = vector.broadcast %cst_64 : f32 to vector<1x1024xf32>
    %153 = arith.mulf %152, %151 : vector<1x1024xf32>
    %154 = arith.subf %142, %153 : vector<1x1024xf32>
    %cst_65 = arith.constant 5.000000e-01 : f32
    %155 = vector.broadcast %cst_65 : f32 to vector<1x1024xf32>
    %156 = arith.cmpf ogt, %154, %155 : vector<1x1024xf32>
    %cst_66 = arith.constant 0.000000e+00 : f32
    %157 = vector.broadcast %cst_66 : f32 to vector<1x1024xf32>
    %158 = arith.subf %157, %148 : vector<1x1024xf32>
    %159 = arith.select %156, %158, %148 : vector<1x1024xi1>, vector<1x1024xf32>
    %160 = arith.mulf %159, %159 : vector<1x1024xf32>
    %cst_67 = arith.constant -2.50521079E-8 : f32
    %161 = vector.broadcast %cst_67 : f32 to vector<1x1024xf32>
    %162 = arith.mulf %161, %160 : vector<1x1024xf32>
    %cst_68 = arith.constant 2.75573188E-6 : f32
    %163 = vector.broadcast %cst_68 : f32 to vector<1x1024xf32>
    %164 = arith.addf %162, %163 : vector<1x1024xf32>
    %165 = arith.mulf %164, %160 : vector<1x1024xf32>
    %cst_69 = arith.constant 1.98412701E-4 : f32
    %166 = vector.broadcast %cst_69 : f32 to vector<1x1024xf32>
    %167 = arith.subf %165, %166 : vector<1x1024xf32>
    %168 = arith.mulf %167, %160 : vector<1x1024xf32>
    %cst_70 = arith.constant 0.00833333377 : f32
    %169 = vector.broadcast %cst_70 : f32 to vector<1x1024xf32>
    %170 = arith.addf %168, %169 : vector<1x1024xf32>
    %171 = arith.mulf %170, %160 : vector<1x1024xf32>
    %cst_71 = arith.constant 0.166666672 : f32
    %172 = vector.broadcast %cst_71 : f32 to vector<1x1024xf32>
    %173 = arith.subf %171, %172 : vector<1x1024xf32>
    %174 = arith.mulf %160, %173 : vector<1x1024xf32>
    %175 = arith.mulf %159, %174 : vector<1x1024xf32>
    %176 = arith.addf %159, %175 : vector<1x1024xf32>
    %c0_72 = arith.constant 0 : index
    %c0_73 = arith.constant 0 : index
    %177 = vector.load %arg10[%c0_72, %c0_73] : memref<1x1024xf32, #tpu.memory_space<vmem>>, vector<1x1024xf32>
    tpu.vector_store %arg10[%c0_72, %c0_73], %176 {strides = array<i32>} : memref<1x1024xf32, #tpu.memory_space<vmem>>, vector<1x1024xf32>,
    return
  }
  func.func @transform_0(%arg0: i32) -> (i32, i32) {
    %c0_i32 = arith.constant 0 : i32
    %c0_i32_0 = arith.constant 0 : i32
    return %c0_i32, %arg0 : i32, i32
  }
  func.func @transform_1(%arg0: i32) -> (i32, i32) {
    %c0_i32 = arith.constant 0 : i32
    %c0_i32_0 = arith.constant 0 : i32
    %c0_i32_1 = arith.constant 0 : i32
    return %c0_i32, %c0_i32_0 : i32, i32
  }
  func.func @transform_2(%arg0: i32) -> (i32, i32) {
    %c0_i32 = arith.constant 0 : i32
    %c0_i32_0 = arith.constant 0 : i32
    %c0_i32_1 = arith.constant 0 : i32
    return %c0_i32, %c0_i32_0 : i32, i32
  }
  func.func @transform_3(%arg0: i32) -> (i32, i32) {
    %c0_i32 = arith.constant 0 : i32
    %c0_i32_0 = arith.constant 0 : i32
    %c0_i32_1 = arith.constant 0 : i32
    return %c0_i32, %c0_i32_0 : i32, i32
  }
  func.func @transform_4(%arg0: i32) -> (i32, i32) {
    %c0_i32 = arith.constant 0 : i32
    %c0_i32_0 = arith.constant 0 : i32
    %c0_i32_1 = arith.constant 0 : i32
    return %c0_i32, %c0_i32_0 : i32, i32
  }
  func.func @transform_5(%arg0: i32) -> (i32, i32) {
    %c0_i32 = arith.constant 0 : i32
    %c0_i32_0 = arith.constant 0 : i32
    %c0_i32_1 = arith.constant 0 : i32
    return %c0_i32, %c0_i32_0 : i32, i32
  }
  func.func @transform_6(%arg0: i32) -> (i32, i32) {
    %c0_i32 = arith.constant 0 : i32
    %c0_i32_0 = arith.constant 0 : i32
    %c0_i32_1 = arith.constant 0 : i32
    return %c0_i32, %c0_i32_0 : i32, i32
  }
  func.func @transform_7(%arg0: i32) -> (i32, i32) {
    %c0_i32 = arith.constant 0 : i32
    %c0_i32_0 = arith.constant 0 : i32
    %c0_i32_1 = arith.constant 0 : i32
    return %c0_i32, %c0_i32_0 : i32, i32
  }
  func.func @transform_8(%arg0: i32) -> (i32, i32) {
    %c0_i32 = arith.constant 0 : i32
    %c0_i32_0 = arith.constant 0 : i32
    %c0_i32_1 = arith.constant 0 : i32
    return %c0_i32, %c0_i32_0 : i32, i32
  }
  func.func @transform_9(%arg0: i32) -> (i32, i32) {
    %c0_i32 = arith.constant 0 : i32
    %c0_i32_0 = arith.constant 0 : i32
    return %c0_i32, %arg0 : i32, i32
  }
}

module attributes {stable_mosaic.version = 11 : i64} {
  func.func @kernel(%arg0: i32, %arg1: memref<2x1024xf32, #tpu.memory_space<vmem>>, %arg2: memref<32x2xf32, #tpu.memory_space<vmem>>, %arg3: memref<32x1xf32, #tpu.memory_space<vmem>>, %arg4: memref<32x32xf32, #tpu.memory_space<vmem>>, %arg5: memref<32x1xf32, #tpu.memory_space<vmem>>, %arg6: memref<32x32xf32, #tpu.memory_space<vmem>>, %arg7: memref<32x1xf32, #tpu.memory_space<vmem>>, %arg8: memref<1x32xf32, #tpu.memory_space<vmem>>, %arg9: memref<1x1xf32, #tpu.memory_space<vmem>>, %arg10: memref<1x1024xf32, #tpu.memory_space<vmem>>) attributes {dimension_semantics = [#tpu.dimension_semantics<parallel>], iteration_bounds = array<i64: 2>, scalar_prefetch = 0 : i64, scratch_operands = 0 : i64, tpu.core_type = #tpu.core_type<tc>, window_params = [{transform_indices = @transform_0, window_bounds = array<i64: 2, 1024>}, {pipeline_mode = #tpu.pipeline_mode<synchronous>, transform_indices = @transform_1, window_bounds = array<i64: 32, 2>}, {pipeline_mode = #tpu.pipeline_mode<synchronous>, transform_indices = @transform_2, window_bounds = array<i64: 32, 1>}, {pipeline_mode = #tpu.pipeline_mode<synchronous>, transform_indices = @transform_3, window_bounds = array<i64: 32, 32>}, {pipeline_mode = #tpu.pipeline_mode<synchronous>, transform_indices = @transform_4, window_bounds = array<i64: 32, 1>}, {pipeline_mode = #tpu.pipeline_mode<synchronous>, transform_indices = @transform_5, window_bounds = array<i64: 32, 32>}, {pipeline_mode = #tpu.pipeline_mode<synchronous>, transform_indices = @transform_6, window_bounds = array<i64: 32, 1>}, {pipeline_mode = #tpu.pipeline_mode<synchronous>, transform_indices = @transform_7, window_bounds = array<i64: 1, 32>}, {pipeline_mode = #tpu.pipeline_mode<synchronous>, transform_indices = @transform_8, window_bounds = array<i64: 1, 1>}, {transform_indices = @transform_9, window_bounds = array<i64: 1, 1024>}]} {
    %c0 = arith.constant 0 : index
    %c0_0 = arith.constant 0 : index
    %0 = vector.load %arg1[%c0, %c0_0] : memref<2x1024xf32, #tpu.memory_space<vmem>>, vector<2x1024xf32>
    %c0_1 = arith.constant 0 : index
    %c0_2 = arith.constant 0 : index
    %1 = vector.load %arg2[%c0_1, %c0_2] : memref<32x2xf32, #tpu.memory_space<vmem>>, vector<32x2xf32>
    %c0_3 = arith.constant 0 : index
    %c0_4 = arith.constant 0 : index
    %2 = vector.load %arg3[%c0_3, %c0_4] : memref<32x1xf32, #tpu.memory_space<vmem>>, vector<32x1xf32>
    %cst = arith.constant dense<0.000000e+00> : vector<32x1024xf32>
    %3 = tpu.matmul %1, %0, %cst {dimension_numbers = #tpu.dot_dimension_numbers<[1], [0], [0], [1], [0, 0, 1, 1], [], []>} : vector<32x2xf32>, vector<2x1024xf32>, vector<32x1024xf32> -> vector<32x1024xf32>
    %4 = vector.broadcast %2 : vector<32x1xf32> to vector<32x1024xf32>
    %5 = arith.addf %3, %4 : vector<32x1024xf32>
    %cst_5 = arith.constant 0.318309873 : f32
    %6 = vector.broadcast %cst_5 : f32 to vector<32x1024xf32>
    %7 = arith.mulf %5, %6 : vector<32x1024xf32>
    %cst_6 = arith.constant 5.000000e-01 : f32
    %8 = vector.broadcast %cst_6 : f32 to vector<32x1024xf32>
    %9 = arith.addf %7, %8 : vector<32x1024xf32>
    %10 = math.floor %9 : vector<32x1024xf32>
    %cst_7 = arith.constant 3.140625 : f32
    %11 = vector.broadcast %cst_7 : f32 to vector<32x1024xf32>
    %12 = arith.mulf %10, %11 : vector<32x1024xf32>
    %13 = arith.subf %5, %12 : vector<32x1024xf32>
    %cst_8 = arith.constant 9.67653584E-4 : f32
    %14 = vector.broadcast %cst_8 : f32 to vector<32x1024xf32>
    %15 = arith.mulf %10, %14 : vector<32x1024xf32>
    %16 = arith.subf %13, %15 : vector<32x1024xf32>
    %cst_9 = arith.constant 5.000000e-01 : f32
    %17 = vector.broadcast %cst_9 : f32 to vector<32x1024xf32>
    %18 = arith.mulf %10, %17 : vector<32x1024xf32>
    %19 = math.floor %18 : vector<32x1024xf32>
    %cst_10 = arith.constant 2.000000e+00 : f32
    %20 = vector.broadcast %cst_10 : f32 to vector<32x1024xf32>
    %21 = arith.mulf %20, %19 : vector<32x1024xf32>
    %22 = arith.subf %10, %21 : vector<32x1024xf32>
    %cst_11 = arith.constant 5.000000e-01 : f32
    %23 = vector.broadcast %cst_11 : f32 to vector<32x1024xf32>
    %24 = arith.cmpf ogt, %22, %23 : vector<32x1024xf32>
    %cst_12 = arith.constant 0.000000e+00 : f32
    %25 = vector.broadcast %cst_12 : f32 to vector<32x1024xf32>
    %26 = arith.subf %25, %16 : vector<32x1024xf32>
    %27 = arith.select %24, %26, %16 : vector<32x1024xi1>, vector<32x1024xf32>
    %28 = arith.mulf %27, %27 : vector<32x1024xf32>
    %cst_13 = arith.constant -2.50521079E-8 : f32
    %29 = vector.broadcast %cst_13 : f32 to vector<32x1024xf32>
    %30 = arith.mulf %29, %28 : vector<32x1024xf32>
    %cst_14 = arith.constant 2.75573188E-6 : f32
    %31 = vector.broadcast %cst_14 : f32 to vector<32x1024xf32>
    %32 = arith.addf %30, %31 : vector<32x1024xf32>
    %33 = arith.mulf %32, %28 : vector<32x1024xf32>
    %cst_15 = arith.constant 1.98412701E-4 : f32
    %34 = vector.broadcast %cst_15 : f32 to vector<32x1024xf32>
    %35 = arith.subf %33, %34 : vector<32x1024xf32>
    %36 = arith.mulf %35, %28 : vector<32x1024xf32>
    %cst_16 = arith.constant 0.00833333377 : f32
    %37 = vector.broadcast %cst_16 : f32 to vector<32x1024xf32>
    %38 = arith.addf %36, %37 : vector<32x1024xf32>
    %39 = arith.mulf %38, %28 : vector<32x1024xf32>
    %cst_17 = arith.constant 0.166666672 : f32
    %40 = vector.broadcast %cst_17 : f32 to vector<32x1024xf32>
    %41 = arith.subf %39, %40 : vector<32x1024xf32>
    %42 = arith.mulf %28, %41 : vector<32x1024xf32>
    %43 = arith.mulf %27, %42 : vector<32x1024xf32>
    %44 = arith.addf %27, %43 : vector<32x1024xf32>
    %c0_18 = arith.constant 0 : index
    %c0_19 = arith.constant 0 : index
    %45 = vector.load %arg4[%c0_18, %c0_19] : memref<32x32xf32, #tpu.memory_space<vmem>>, vector<32x32xf32>
    %c0_20 = arith.constant 0 : index
    %c0_21 = arith.constant 0 : index
    %46 = vector.load %arg5[%c0_20, %c0_21] : memref<32x1xf32, #tpu.memory_space<vmem>>, vector<32x1xf32>
    %cst_22 = arith.constant dense<0.000000e+00> : vector<32x1024xf32>
    %47 = tpu.matmul %45, %44, %cst_22 {dimension_numbers = #tpu.dot_dimension_numbers<[1], [0], [0], [1], [0, 0, 1, 1], [], []>} : vector<32x32xf32>, vector<32x1024xf32>, vector<32x1024xf32> -> vector<32x1024xf32>
    %48 = vector.broadcast %46 : vector<32x1xf32> to vector<32x1024xf32>
    %49 = arith.addf %47, %48 : vector<32x1024xf32>
    %cst_23 = arith.constant 0.318309873 : f32
    %50 = vector.broadcast %cst_23 : f32 to vector<32x1024xf32>
    %51 = arith.mulf %49, %50 : vector<32x1024xf32>
    %cst_24 = arith.constant 5.000000e-01 : f32
    %52 = vector.broadcast %cst_24 : f32 to vector<32x1024xf32>
    %53 = arith.addf %51, %52 : vector<32x1024xf32>
    %54 = math.floor %53 : vector<32x1024xf32>
    %cst_25 = arith.constant 3.140625 : f32
    %55 = vector.broadcast %cst_25 : f32 to vector<32x1024xf32>
    %56 = arith.mulf %54, %55 : vector<32x1024xf32>
    %57 = arith.subf %49, %56 : vector<32x1024xf32>
    %cst_26 = arith.constant 9.67653584E-4 : f32
    %58 = vector.broadcast %cst_26 : f32 to vector<32x1024xf32>
    %59 = arith.mulf %54, %58 : vector<32x1024xf32>
    %60 = arith.subf %57, %59 : vector<32x1024xf32>
    %cst_27 = arith.constant 5.000000e-01 : f32
    %61 = vector.broadcast %cst_27 : f32 to vector<32x1024xf32>
    %62 = arith.mulf %54, %61 : vector<32x1024xf32>
    %63 = math.floor %62 : vector<32x1024xf32>
    %cst_28 = arith.constant 2.000000e+00 : f32
    %64 = vector.broadcast %cst_28 : f32 to vector<32x1024xf32>
    %65 = arith.mulf %64, %63 : vector<32x1024xf32>
    %66 = arith.subf %54, %65 : vector<32x1024xf32>
    %cst_29 = arith.constant 5.000000e-01 : f32
    %67 = vector.broadcast %cst_29 : f32 to vector<32x1024xf32>
    %68 = arith.cmpf ogt, %66, %67 : vector<32x1024xf32>
    %cst_30 = arith.constant 0.000000e+00 : f32
    %69 = vector.broadcast %cst_30 : f32 to vector<32x1024xf32>
    %70 = arith.subf %69, %60 : vector<32x1024xf32>
    %71 = arith.select %68, %70, %60 : vector<32x1024xi1>, vector<32x1024xf32>
    %72 = arith.mulf %71, %71 : vector<32x1024xf32>
    %cst_31 = arith.constant -2.50521079E-8 : f32
    %73 = vector.broadcast %cst_31 : f32 to vector<32x1024xf32>
    %74 = arith.mulf %73, %72 : vector<32x1024xf32>
    %cst_32 = arith.constant 2.75573188E-6 : f32
    %75 = vector.broadcast %cst_32 : f32 to vector<32x1024xf32>
    %76 = arith.addf %74, %75 : vector<32x1024xf32>
    %77 = arith.mulf %76, %72 : vector<32x1024xf32>
    %cst_33 = arith.constant 1.98412701E-4 : f32
    %78 = vector.broadcast %cst_33 : f32 to vector<32x1024xf32>
    %79 = arith.subf %77, %78 : vector<32x1024xf32>
    %80 = arith.mulf %79, %72 : vector<32x1024xf32>
    %cst_34 = arith.constant 0.00833333377 : f32
    %81 = vector.broadcast %cst_34 : f32 to vector<32x1024xf32>
    %82 = arith.addf %80, %81 : vector<32x1024xf32>
    %83 = arith.mulf %82, %72 : vector<32x1024xf32>
    %cst_35 = arith.constant 0.166666672 : f32
    %84 = vector.broadcast %cst_35 : f32 to vector<32x1024xf32>
    %85 = arith.subf %83, %84 : vector<32x1024xf32>
    %86 = arith.mulf %72, %85 : vector<32x1024xf32>
    %87 = arith.mulf %71, %86 : vector<32x1024xf32>
    %88 = arith.addf %71, %87 : vector<32x1024xf32>
    %c0_36 = arith.constant 0 : index
    %c0_37 = arith.constant 0 : index
    %89 = vector.load %arg6[%c0_36, %c0_37] : memref<32x32xf32, #tpu.memory_space<vmem>>, vector<32x32xf32>
    %c0_38 = arith.constant 0 : index
    %c0_39 = arith.constant 0 : index
    %90 = vector.load %arg7[%c0_38, %c0_39] : memref<32x1xf32, #tpu.memory_space<vmem>>, vector<32x1xf32>
    %cst_40 = arith.constant dense<0.000000e+00> : vector<32x1024xf32>
    %91 = tpu.matmul %89, %88, %cst_40 {dimension_numbers = #tpu.dot_dimension_numbers<[1], [0], [0], [1], [0, 0, 1, 1], [], []>} : vector<32x32xf32>, vector<32x1024xf32>, vector<32x1024xf32> -> vector<32x1024xf32>
    %92 = vector.broadcast %90 : vector<32x1xf32> to vector<32x1024xf32>
    %93 = arith.addf %91, %92 : vector<32x1024xf32>
    %cst_41 = arith.constant 0.318309873 : f32
    %94 = vector.broadcast %cst_41 : f32 to vector<32x1024xf32>
    %95 = arith.mulf %93, %94 : vector<32x1024xf32>
    %cst_42 = arith.constant 5.000000e-01 : f32
    %96 = vector.broadcast %cst_42 : f32 to vector<32x1024xf32>
    %97 = arith.addf %95, %96 : vector<32x1024xf32>
    %98 = math.floor %97 : vector<32x1024xf32>
    %cst_43 = arith.constant 3.140625 : f32
    %99 = vector.broadcast %cst_43 : f32 to vector<32x1024xf32>
    %100 = arith.mulf %98, %99 : vector<32x1024xf32>
    %101 = arith.subf %93, %100 : vector<32x1024xf32>
    %cst_44 = arith.constant 9.67653584E-4 : f32
    %102 = vector.broadcast %cst_44 : f32 to vector<32x1024xf32>
    %103 = arith.mulf %98, %102 : vector<32x1024xf32>
    %104 = arith.subf %101, %103 : vector<32x1024xf32>
    %cst_45 = arith.constant 5.000000e-01 : f32
    %105 = vector.broadcast %cst_45 : f32 to vector<32x1024xf32>
    %106 = arith.mulf %98, %105 : vector<32x1024xf32>
    %107 = math.floor %106 : vector<32x1024xf32>
    %cst_46 = arith.constant 2.000000e+00 : f32
    %108 = vector.broadcast %cst_46 : f32 to vector<32x1024xf32>
    %109 = arith.mulf %108, %107 : vector<32x1024xf32>
    %110 = arith.subf %98, %109 : vector<32x1024xf32>
    %cst_47 = arith.constant 5.000000e-01 : f32
    %111 = vector.broadcast %cst_47 : f32 to vector<32x1024xf32>
    %112 = arith.cmpf ogt, %110, %111 : vector<32x1024xf32>
    %cst_48 = arith.constant 0.000000e+00 : f32
    %113 = vector.broadcast %cst_48 : f32 to vector<32x1024xf32>
    %114 = arith.subf %113, %104 : vector<32x1024xf32>
    %115 = arith.select %112, %114, %104 : vector<32x1024xi1>, vector<32x1024xf32>
    %116 = arith.mulf %115, %115 : vector<32x1024xf32>
    %cst_49 = arith.constant -2.50521079E-8 : f32
    %117 = vector.broadcast %cst_49 : f32 to vector<32x1024xf32>
    %118 = arith.mulf %117, %116 : vector<32x1024xf32>
    %cst_50 = arith.constant 2.75573188E-6 : f32
    %119 = vector.broadcast %cst_50 : f32 to vector<32x1024xf32>
    %120 = arith.addf %118, %119 : vector<32x1024xf32>
    %121 = arith.mulf %120, %116 : vector<32x1024xf32>
    %cst_51 = arith.constant 1.98412701E-4 : f32
    %122 = vector.broadcast %cst_51 : f32 to vector<32x1024xf32>
    %123 = arith.subf %121, %122 : vector<32x1024xf32>
    %124 = arith.mulf %123, %116 : vector<32x1024xf32>
    %cst_52 = arith.constant 0.00833333377 : f32
    %125 = vector.broadcast %cst_52 : f32 to vector<32x1024xf32>
    %126 = arith.addf %124, %125 : vector<32x1024xf32>
    %127 = arith.mulf %126, %116 : vector<32x1024xf32>
    %cst_53 = arith.constant 0.166666672 : f32
    %128 = vector.broadcast %cst_53 : f32 to vector<32x1024xf32>
    %129 = arith.subf %127, %128 : vector<32x1024xf32>
    %130 = arith.mulf %116, %129 : vector<32x1024xf32>
    %131 = arith.mulf %115, %130 : vector<32x1024xf32>
    %132 = arith.addf %115, %131 : vector<32x1024xf32>
    %c0_54 = arith.constant 0 : index
    %c0_55 = arith.constant 0 : index
    %133 = vector.load %arg8[%c0_54, %c0_55] : memref<1x32xf32, #tpu.memory_space<vmem>>, vector<1x32xf32>
    %c0_56 = arith.constant 0 : index
    %c0_57 = arith.constant 0 : index
    %134 = vector.load %arg9[%c0_56, %c0_57] : memref<1x1xf32, #tpu.memory_space<vmem>>, vector<1x1xf32>
    %cst_58 = arith.constant dense<0.000000e+00> : vector<1x1024xf32>
    %135 = tpu.matmul %133, %132, %cst_58 {dimension_numbers = #tpu.dot_dimension_numbers<[1], [0], [0], [1], [0, 0, 1, 1], [], []>} : vector<1x32xf32>, vector<32x1024xf32>, vector<1x1024xf32> -> vector<1x1024xf32>
    %136 = vector.broadcast %134 : vector<1x1xf32> to vector<1x1024xf32>
    %137 = arith.addf %135, %136 : vector<1x1024xf32>
    %cst_59 = arith.constant 0.318309873 : f32
    %138 = vector.broadcast %cst_59 : f32 to vector<1x1024xf32>
    %139 = arith.mulf %137, %138 : vector<1x1024xf32>
    %cst_60 = arith.constant 5.000000e-01 : f32
    %140 = vector.broadcast %cst_60 : f32 to vector<1x1024xf32>
    %141 = arith.addf %139, %140 : vector<1x1024xf32>
    %142 = math.floor %141 : vector<1x1024xf32>
    %cst_61 = arith.constant 3.140625 : f32
    %143 = vector.broadcast %cst_61 : f32 to vector<1x1024xf32>
    %144 = arith.mulf %142, %143 : vector<1x1024xf32>
    %145 = arith.subf %137, %144 : vector<1x1024xf32>
    %cst_62 = arith.constant 9.67653584E-4 : f32
    %146 = vector.broadcast %cst_62 : f32 to vector<1x1024xf32>
    %147 = arith.mulf %142, %146 : vector<1x1024xf32>
    %148 = arith.subf %145, %147 : vector<1x1024xf32>
    %cst_63 = arith.constant 5.000000e-01 : f32
    %149 = vector.broadcast %cst_63 : f32 to vector<1x1024xf32>
    %150 = arith.mulf %142, %149 : vector<1x1024xf32>
    %151 = math.floor %150 : vector<1x1024xf32>
    %cst_64 = arith.constant 2.000000e+00 : f32
    %152 = vector.broadcast %cst_64 : f32 to vector<1x1024xf32>
    %153 = arith.mulf %152, %151 : vector<1x1024xf32>
    %154 = arith.subf %142, %153 : vector<1x1024xf32>
    %cst_65 = arith.constant 5.000000e-01 : f32
    %155 = vector.broadcast %cst_65 : f32 to vector<1x1024xf32>
    %156 = arith.cmpf ogt, %154, %155 : vector<1x1024xf32>
    %cst_66 = arith.constant 0.000000e+00 : f32
    %157 = vector.broadcast %cst_66 : f32 to vector<1x1024xf32>
    %158 = arith.subf %157, %148 : vector<1x1024xf32>
    %159 = arith.select %156, %158, %148 : vector<1x1024xi1>, vector<1x1024xf32>
    %160 = arith.mulf %159, %159 : vector<1x1024xf32>
    %cst_67 = arith.constant -2.50521079E-8 : f32
    %161 = vector.broadcast %cst_67 : f32 to vector<1x1024xf32>
    %162 = arith.mulf %161, %160 : vector<1x1024xf32>
    %cst_68 = arith.constant 2.75573188E-6 : f32
    %163 = vector.broadcast %cst_68 : f32 to vector<1x1024xf32>
    %164 = arith.addf %162, %163 : vector<1x1024xf32>
    %165 = arith.mulf %164, %160 : vector<1x1024xf32>
    %cst_69 = arith.constant 1.98412701E-4 : f32
    %166 = vector.broadcast %cst_69 : f32 to vector<1x1024xf32>
    %167 = arith.subf %165, %166 : vector<1x1024xf32>
    %168 = arith.mulf %167, %160 : vector<1x1024xf32>
    %cst_70 = arith.constant 0.00833333377 : f32
    %169 = vector.broadcast %cst_70 : f32 to vector<1x1024xf32>
    %170 = arith.addf %168, %169 : vector<1x1024xf32>
    %171 = arith.mulf %170, %160 : vector<1x1024xf32>
    %cst_71 = arith.constant 0.166666672 : f32
    %172 = vector.broadcast %cst_71 : f32 to vector<1x1024xf32>
    %173 = arith.subf %171, %172 : vector<1x1024xf32>
    %174 = arith.mulf %160, %173 : vector<1x1024xf32>
    %175 = arith.mulf %159, %174 : vector<1x1024xf32>
    %176 = arith.addf %159, %175 : vector<1x1024xf32>
    %c0_72 = arith.constant 0 : index
    %c0_73 = arith.constant 0 : index
    %177 = vector.load %arg10[%c0_72, %c0_73] : memref<1x1024xf32, #tpu.memory_space<vmem>>, vector<1x1024xf32>
    tpu.vector_store %arg10[%c0_72, %c0_73], %176 {strides = array<i32>} : memref<1x1024xf32, #tpu.memory_space<vmem>>, vector<1x1024xf32>,
    return
  }
  func.func @transform_0(%arg0: i32) -> (i32, i32) {
    %c0_i32 = arith.constant 0 : i32
    %c0_i32_0 = arith.constant 0 : i32
    return %c0_i32, %arg0 : i32, i32
  }
  func.func @transform_1(%arg0: i32) -> (i32, i32) {
    %c0_i32 = arith.constant 0 : i32
    %c0_i32_0 = arith.constant 0 : i32
    %c0_i32_1 = arith.constant 0 : i32
    return %c0_i32, %c0_i32_0 : i32, i32
  }
  func.func @transform_2(%arg0: i32) -> (i32, i32) {
    %c0_i32 = arith.constant 0 : i32
    %c0_i32_0 = arith.constant 0 : i32
    %c0_i32_1 = arith.constant 0 : i32
    return %c0_i32, %c0_i32_0 : i32, i32
  }
  func.func @transform_3(%arg0: i32) -> (i32, i32) {
    %c0_i32 = arith.constant 0 : i32
    %c0_i32_0 = arith.constant 0 : i32
    %c0_i32_1 = arith.constant 0 : i32
    return %c0_i32, %c0_i32_0 : i32, i32
  }
  func.func @transform_4(%arg0: i32) -> (i32, i32) {
    %c0_i32 = arith.constant 0 : i32
    %c0_i32_0 = arith.constant 0 : i32
    %c0_i32_1 = arith.constant 0 : i32
    return %c0_i32, %c0_i32_0 : i32, i32
  }
  func.func @transform_5(%arg0: i32) -> (i32, i32) {
    %c0_i32 = arith.constant 0 : i32
    %c0_i32_0 = arith.constant 0 : i32
    %c0_i32_1 = arith.constant 0 : i32
    return %c0_i32, %c0_i32_0 : i32, i32
  }
  func.func @transform_6(%arg0: i32) -> (i32, i32) {
    %c0_i32 = arith.constant 0 : i32
    %c0_i32_0 = arith.constant 0 : i32
    %c0_i32_1 = arith.constant 0 : i32
    return %c0_i32, %c0_i32_0 : i32, i32
  }
  func.func @transform_7(%arg0: i32) -> (i32, i32) {
    %c0_i32 = arith.constant 0 : i32
    %c0_i32_0 = arith.constant 0 : i32
    %c0_i32_1 = arith.constant 0 : i32
    return %c0_i32, %c0_i32_0 : i32, i32
  }
  func.func @transform_8(%arg0: i32) -> (i32, i32) {
    %c0_i32 = arith.constant 0 : i32
    %c0_i32_0 = arith.constant 0 : i32
    %c0_i32_1 = arith.constant 0 : i32
    return %c0_i32, %c0_i32_0 : i32, i32
  }
  func.func @transform_9(%arg0: i32) -> (i32, i32) {
    %c0_i32 = arith.constant 0 : i32
    %c0_i32_0 = arith.constant 0 : i32
    return %c0_i32, %arg0 : i32, i32
  }
}

</mosaic_0001>

<bundles_post_ra>
// kernel: tpu_custom_call.1
= control target key start
LH: loop header
LB: loop body
LE: loop exit
PB: predicated region body
PF: predicated region fallthrough
CT: control target
= control target key end

     0   :  { %s7665_s0 = inlined_call_operand.vmem [shape: f32[2,2048], index: 0, kind: input, shape index: {}]   ;;  %s7666_s1 = inlined_call_operand.vmem [shape: f32[32,2], index: 1, kind: input, shape index: {}]   ;;  %s7667_s2 = inlined_call_operand.vmem [shape: f32[32,1], index: 2, kind: input, shape index: {}]   ;;  %s7668_s3 = inlined_call_operand.vmem [shape: f32[32,32], index: 3, kind: input, shape index: {}]   ;;  %s7669_s4 = inlined_call_operand.vmem [shape: f32[32,1], index: 4, kind: input, shape index: {}]   ;;  %s7670_s5 = inlined_call_operand.vmem [shape: f32[32,32], index: 5, kind: input, shape index: {}]   ;;  %s7671_s6 = inlined_call_operand.vmem [shape: f32[32,1], index: 6, kind: input, shape index: {}]   ;;  %s7672_s7 = inlined_call_operand.vmem [shape: f32[1,32], index: 7, kind: input, shape index: {}]   ;;  %s7673_s8 = inlined_call_operand.<no memory space> [shape: f32[1,1], index: 8, kind: input, shape index: {}]   ;;  %s7674_s9 = inlined_call_operand.hbm [shape: f32[1,2048], index: 9, kind: output, shape index: {}]  }
   0x1   :  { %v14_v0 = vstv %s7673_s8 }
   0x2   :  { %15 = vst [vmem:[#allocation2] sm:$0x1] %v14_v0 }
   0x3   :  { %16 = vsyncpa [#allocation4], 0 }
   0x4   :  { %18 = vsyncpa [#allocation4 + $0x1], 0  ;;  %s4658_s11 = smov 0   ;;  %s4660_s12 = smov 0  }
   0x5   :  { %s4662_s13 = smov 0   ;;  %s4664_s14 = smov 0  }
   0x6 LB: > { %s4165_s8 = sadd.s32 4294967295, %s4602_s14   ;;  %s4166_s15 = sadd.s32 4294967294, %s4602_s14   ;;  %s4602_s14 = sphi %s4664_s14, %s8110_s14   ;;  %s4598_s13 = sphi %s4662_s13, %s8109_s13   ;;  %s4594_s12 = sphi %s4660_s12, %s8108_s12   ;;  %s4590_s11 = sphi %s4658_s11, %s8107_s11  }
   0x7   : > { %s4681_s16 = sadd.s32 1, %s4602_s14   ;;  %s225_s17 = sadd.s32 1, %s4598_s13 }
   0x8   : > { %s222_s18 = ssub.s32 %s4602_s14, %s4681_s16  ;;  %p235_p0 = scmp.ne.s32.totalorder %s4598_s13, %s4594_s12 }
   0x9   : > { %p223_p1 = scmp.eq.s32.totalorder %s222_s18, 0  ;;  %p236_p2 = scmp.eq.s32.totalorder %s4165_s8, 1 }
   0xa   : > { %p241_p3 = scmp.ne.s32.totalorder %s4594_s12, %s4590_s11  ;;  %p242_p4 = scmp.eq.s32.totalorder %s4166_s15, 1 }
   0xb   : > { %s4691_s19 = scalar_select %p223_p1, %s4598_s13, %s225_s17  }
   0xc   : > { %p4693_p5 = por %p236_p2, %p235_p0  ;;  %p4697_p6 = por %p242_p4, %p241_p3 }
   0xd   : > { %p4169_p7 = scmp.ge.s32.totalorder %s4602_s14, 1  ;;  %p293_p8 = scmp.lt.s32.totalorder %s4602_s14, 3 }
   0xf   : > { %p294_p9 = pnand %p4169_p7, %p293_p8 }
  0x11   : > { %297 = sbr.rel (%p294_p9) target bundleno = 1177 (0x499), region = 56 }
  0x16   : > { %s4703_s22 = sshll.u32 %s4165_s8, 3  ;;  %v345_v1 = vld [vmem:[%s7667_s2 + $0x18] sm:$0xff]  ;;  %v4604_v2 = vmov 0   ;;  %v343_v3 = vld [vmem:[%s7667_s2 + $0x8] sm:$0xff]  ;;  %v344_v5 = vld [vmem:[%s7667_s2 + $0x10] sm:$0xff]  ;;  %vm392_vm0 = vcmask 1041408  }
  0x17   : > { %p330_p10 = scmp.lt.s32.totalorder %s4703_s22, 15  ;;  %4538 = vset.pattern.permute.xlu1 %v4604_v2  ;;  %4537 = vset.pattern.permute.xlu0 %v4604_v2  ;;  %v342_v6 = vld [vmem:[%s7667_s2] sm:$0xff]  ;;  %vm379_vm1 = vcmask 15360   ;;  %v1478_v13 = vld [vmem:[%s7669_s4 + $0x8] sm:$0xff]  ;;  %v2584_v20 = vld [vmem:[%s7671_s6 + $0x10] sm:$0xff]  ;;  %s326_s26 = sand.u32 1, %s4594_s12  }
  0x18   : > { %363 = vperm.xlu0 %4537, %v345_v1   ;;  %353 = vperm.xlu1 %4538, %v343_v3   ;;  %v338_v8 = vld [vmem:[%s7666_s1] sm:$0xff]  ;;  %v339_v19 = vld [vmem:[%s7666_s1 + $0x8] sm:$0xff]  ;;  %v340_v22 = vld [vmem:[%s7666_s1 + $0x10] sm:$0xff]  ;;  %s4102_s30 = scalar_lea.hbm %s7674_s9, %s4703_s22  ;;  %s4560_s25 = scalar_lea.hbm %s7674_s9, 16 }
  0x19   : > { %s331_s27 = scalar_select %p330_p10, %s4703_s22, 15  ;;  %4539 = vset.pattern.permute.xlu2 %v4604_v2  ;;  %v1477_v16 = vld [vmem:[%s7669_s4] sm:$0xff]  ;;  %v2583_v21 = vld [vmem:[%s7671_s6 + $0x8] sm:$0xff]  ;;  %v341_v24 = vld [vmem:[%s7666_s1 + $0x18] sm:$0xff] }
  0x1a   : > { %v3683_v23 = vld [vmem:[#allocation2] sm:$0x1]  ;;  %s4106_s15 = sshll.u32 %s4102_s30, 4  ;;  %s4092_s22 = scalar_lea.sflag [#allocation4], %s326_s26  ;;  %s4107_s15 = int_to_ptr.hbm [resolvable:$true] %s4106_s15 }
  0x1b   : > { %s4172_s28 = sshll.u32 %s331_s27, 1  ;;  %s7626_s27 = sshll.u32 %s326_s26, 3 }
  0x1c   : > { %s333_s10 = scalar_lea.vmem %s7665_s0, %s4172_s28  ;;  %s4554_s17 = sshra.s32 %s4107_s15, 4  ;;  %s4555_s17 = int_to_ptr.hbm [resolvable:$true] %s4554_s17 }
  0x1d   : > { %v336_v4 = vld [vmem:[%s333_s10] sm:$0xff]  ;;  %v337_v7 = vld [vmem:[%s333_s10 + $0x8] sm:$0xff]  ;;  %s328_s10 = scalar_lea.vmem [#allocation3], %s7626_s27  ;;  %s4556_s18 = scalar_lea.hbm %s4555_s17, 8 }
  0x1e   : > { %368 = vst [vmem:[#allocation1] ss:$4 sm:$0xff] %v336_v4  ;;  %s4104_s8 = sshll.u32 %s328_s10, 4  ;;  %p4557_p11 = scmp.ne.s32.totalorder %s4555_s17, %s4556_s18  ;;  %s4105_s8 = int_to_ptr.vmem [resolvable:$true] %s4104_s8 }
  0x1f   : > { %370 = vst [vmem:[#allocation1 + $0x20] ss:$4 sm:$0xff] %v337_v7  ;;  %p4561_p0 = scmp.lt.s32.totalorder %s4555_s17, %s7674_s9  ;;  %p4562_p1 = scmp.lt.s32.totalorder %s4560_s25, %s4556_s18 }
  0x20   : > { %358 = vperm.xlu0 %4537, %v344_v5   ;;  %348 = vperm.xlu1 %4538, %v342_v6   ;;  %p4558_p12 = pnand %p4557_p11, %p4693_p5 }
  0x21   : > { %p4563_p2 = por %p4562_p1, %p4561_p0 }
  0x22   : > { %p4559_p13 = pneg %p4558_p12 }
  0x24   : > { %p4564_p3 = pnand %p4563_p2, %p4559_p13 }
  0x25   : > { %v371_v9 = vld.sshfl [vmem:[#allocation1] sm:$0xff pattern:$0x73625140]  ;;  %v372_v10 = vld.sshfl [vmem:[#allocation1 + $0x8] sm:$0xff pattern:$0x73625140] }
  0x26   : > { %4173 = vmatpush.msk.msra.mxu0 %vm392_vm0, %v371_v9  ;;  %4178 = vmatpush.msk.msra.mxu1 %vm392_vm0, %v372_v10  ;;  %v373_v11 = vld.sshfl [vmem:[#allocation1 + $0x10] sm:$0xff pattern:$0x73625140]  ;;  %v374_v12 = vld.sshfl [vmem:[#allocation1 + $0x18] sm:$0xff pattern:$0x73625140] }
  0x27   : > { %4183 = vmatpush.msk.msra.mxu2 %vm392_vm0, %v373_v11  ;;  %4188 = vmatpush.msk.msra.mxu3 %vm392_vm0, %v374_v12  ;;  %v377_v14 = vld.sshfl [vmem:[#allocation1 + $0x30] sm:$0xff pattern:$0x73625140]  ;;  %v378_v15 = vld.sshfl [vmem:[#allocation1 + $0x38] sm:$0xff pattern:$0x73625140] }
  0x28   : > { %4174 = vmatmul.msk.f32.vlgmr.msra.gmra.mxu0 %vm379_vm1, %v338_v8  ;;  %4179 = vmatmul.msk.f32.vlgmr.msra.gmra.mxu1 %vm379_vm1, %v338_v8  ;;  %v375_v17 = vld.sshfl [vmem:[#allocation1 + $0x20] sm:$0xff pattern:$0x73625140]  ;;  %v376_v18 = vld.sshfl [vmem:[#allocation1 + $0x28] sm:$0xff pattern:$0x73625140] }
  0x29   : > { %4184 = vmatmul.msk.f32.vlgmr.msra.gmra.mxu2 %vm379_vm1, %v338_v8  ;;  %4189 = vmatmul.msk.f32.vlgmr.msra.gmra.mxu3 %vm379_vm1, %v338_v8 }
  0x2a   : > { %1488 = vperm.xlu0 %4537, %v1478_v13   ;;  %4203 = vmatpush.msk.msrb.mxu2 %vm392_vm0, %v377_v14 }
  0x2b   : > { %4208 = vmatpush.msk.msrb.mxu3 %vm392_vm0, %v378_v15  ;;  %1483 = vperm.xlu1 %4538, %v1477_v16  }
  0x2c   : > { %4193 = vmatpush.msk.msrb.mxu0 %vm392_vm0, %v375_v17  ;;  %4198 = vmatpush.msk.msrb.mxu1 %vm392_vm0, %v376_v18 }
  0x30   : > { %4175 = vmatmul.msk.f32.gmra.mxu0 %vm379_vm1, %v339_v19  ;;  %4180 = vmatmul.msk.f32.gmra.mxu1 %vm379_vm1, %v339_v19 }
  0x31   : > { %4185 = vmatmul.msk.f32.gmra.mxu2 %vm379_vm1, %v339_v19  ;;  %4190 = vmatmul.msk.f32.gmra.mxu3 %vm379_vm1, %v339_v19 }
  0x32   : > { %2598 = vperm.xlu0 %4537, %v2584_v20  }
  0x33   : > { %2593 = vperm.xlu1 %4538, %v2583_v21  }
  0x38   : > { %4176 = vmatmul.msk.f32.gmra.mxu0 %vm379_vm1, %v340_v22  ;;  %4181 = vmatmul.msk.f32.gmra.mxu1 %vm379_vm1, %v340_v22 }
  0x39   : > { %4186 = vmatmul.msk.f32.gmra.mxu2 %vm379_vm1, %v340_v22  ;;  %4191 = vmatmul.msk.f32.gmra.mxu3 %vm379_vm1, %v340_v22 }
  0x3a   : > { %3686 = vperm.xlu0 %4537, %v3683_v23  }
  0x40   : > { %4177 = vmatmul.msk.f32.gmra.mxu0 %vm379_vm1, %v341_v24  ;;  %4182 = vmatmul.msk.f32.gmra.mxu1 %vm379_vm1, %v341_v24 }
  0x41   : > { %4187 = vmatmul.msk.f32.gmra.mxu2 %vm379_vm1, %v341_v24  ;;  %4192 = vmatmul.msk.f32.gmra.mxu3 %vm379_vm1, %v341_v24 }
  0x48   : > { %4194 = vmatmul.msk.f32.vlgmr.msrb.gmra.mxu0 %vm379_vm1, %v338_v8  ;;  %4199 = vmatmul.msk.f32.vlgmr.msrb.gmra.mxu1 %vm379_vm1, %v338_v8 }
  0x49   : > { %4204 = vmatmul.msk.f32.vlgmr.msrb.gmra.mxu2 %vm379_vm1, %v338_v8  ;;  %4209 = vmatmul.msk.f32.vlgmr.msrb.gmra.mxu3 %vm379_vm1, %v338_v8 }
  0x50   : > { %4195 = vmatmul.msk.f32.gmra.mxu0 %vm379_vm1, %v339_v19  ;;  %4200 = vmatmul.msk.f32.gmra.mxu1 %vm379_vm1, %v339_v19 }
  0x51   : > { %4205 = vmatmul.msk.f32.gmra.mxu2 %vm379_vm1, %v339_v19  ;;  %4210 = vmatmul.msk.f32.gmra.mxu3 %vm379_vm1, %v339_v19 }
  0x58   : > { %4196 = vmatmul.msk.f32.gmra.mxu0 %vm379_vm1, %v340_v22  ;;  %4201 = vmatmul.msk.f32.gmra.mxu1 %vm379_vm1, %v340_v22 }
  0x59   : > { %4206 = vmatmul.msk.f32.gmra.mxu2 %vm379_vm1, %v340_v22  ;;  %4211 = vmatmul.msk.f32.gmra.mxu3 %vm379_vm1, %v340_v22 }
  0x60   : > { %4197 = vmatmul.msk.f32.gmra.mxu0 %vm379_vm1, %v341_v24  ;;  %4202 = vmatmul.msk.f32.gmra.mxu1 %vm379_vm1, %v341_v24 }
  0x61   : > { %4207 = vmatmul.msk.f32.gmra.mxu2 %vm379_vm1, %v341_v24  ;;  %4212 = vmatmul.msk.f32.gmra.mxu3 %vm379_vm1, %v341_v24  ;;  %vm1501_vm1 = vcmask 261120  }
  0x8a   : > { %v4786_v25 = vpop.permute.xlu1 %353  ;;  %v4792_v35 = vpop.permute.xlu0 %363 }
  0x92   : > { %v4788_v26 = vpop.permute.xlu1 %348  ;;  %v4819_v7 = vpop.permute.xlu0 %358 }
  0xa5   : > { %v426_v27 = vpop.f32.mrf.mxu0  ;;  %v455_v28 = vpop.f32.mrf.mxu1 }
  0xa6   : > { %v427_v29 = vadd.f32 %v426_v27, %v4788_v26  ;;  %v456_v30 = vadd.f32 %v455_v28, %v4788_v26 }
  0xa8   : > { %v641_v31 = vmul.f32 0.31830987, %v427_v29  ;;  %v642_v32 = vmul.f32 0.31830987, %v456_v30 }
  0xaa   : > { %v673_v33 = vadd.f32 0.5, %v641_v31  ;;  %v674_v34 = vadd.f32 0.5, %v642_v32 }
  0xac   : > { %v4794_v36 = vfloor.f32 %v673_v33  ;;  %v4796_v37 = vfloor.f32 %v674_v34  ;;  %v484_v38 = vpop.f32.mrf.mxu2  ;;  %v513_v39 = vpop.f32.mrf.mxu3 }
  0xad   : > { %v485_v40 = vadd.f32 %v484_v38, %v4788_v26  ;;  %v514_v41 = vadd.f32 %v513_v39, %v4788_v26  ;;  %v429_v42 = vpop.f32.mrf.mxu0  ;;  %v458_v43 = vpop.f32.mrf.mxu1 }
  0xae   : > { %v737_v44 = vmul.f32 3.140625, %v4794_v36  ;;  %v430_v47 = vadd.f32 %v429_v42, %v4786_v25  ;;  %v4803_v48 = vadd.f32 %v458_v43, %v4786_v25  ;;  %v801_v50 = vmul.f32 0.0009676536, %v4794_v36 }
  0xaf   : > { %v643_v45 = vmul.f32 0.31830987, %v485_v40  ;;  %v644_v46 = vmul.f32 0.31830987, %v514_v41  ;;  %v738_v51 = vmul.f32 3.140625, %v4796_v37 }
  0xb0   : > { %v769_v49 = vsub.f32 %v427_v29, %v737_v44  ;;  %v649_v54 = vmul.f32 0.31830987, %v430_v47  ;;  %v650_v55 = vmul.f32 0.31830987, %v4803_v48  ;;  %v802_v62 = vmul.f32 0.0009676536, %v4796_v37 }
  0xb1   : > { %v675_v52 = vadd.f32 0.5, %v643_v45  ;;  %v676_v53 = vadd.f32 0.5, %v644_v46  ;;  %v770_v61 = vsub.f32 %v456_v30, %v738_v51 }
  0xb2   : > { %v681_v58 = vadd.f32 0.5, %v649_v54  ;;  %v682_v59 = vadd.f32 0.5, %v650_v55  ;;  %v4812_v60 = vsub.f32 %v769_v49, %v801_v50 }
  0xb3   : > { %v4808_v56 = vfloor.f32 %v675_v52  ;;  %v4810_v57 = vfloor.f32 %v676_v53  ;;  %v4829_v16 = vsub.f32 %v770_v61, %v802_v62 }
  0xb4   : > { %v487_v63 = vpop.f32.mrf.mxu2  ;;  %v516_v0 = vpop.f32.mrf.mxu3  ;;  %v4821_v8 = vfloor.f32 %v681_v58  ;;  %v4823_v9 = vfloor.f32 %v682_v59 }
  0xb5   : > { %7805 = vst [vmem:[#allocation6_spill] sm:$0xff] %v4810_v57  ;;  %v739_v1 = vmul.f32 3.140625, %v4808_v56  ;;  %v803_v2 = vmul.f32 0.0009676536, %v4808_v56  ;;  %v740_v3 = vmul.f32 3.140625, %v4810_v57  ;;  %v432_v5 = vpop.f32.mrf.mxu0  ;;  %v461_v6 = vpop.f32.mrf.mxu1  ;;  %v488_v10 = vadd.f32 %v487_v63, %v4786_v25 }
  0xb6   : > { %v804_v4 = vmul.f32 0.0009676536, %v4810_v57  ;;  %v517_v11 = vadd.f32 %v516_v0, %v4786_v25  ;;  %v433_v14 = vadd.f32 %v432_v5, %v4819_v7  ;;  %v462_v15 = vadd.f32 %v461_v6, %v4819_v7 }
  0xb7   : > { %v771_v12 = vsub.f32 %v485_v40, %v739_v1  ;;  %v772_v13 = vsub.f32 %v514_v41, %v740_v3  ;;  %v745_v17 = vmul.f32 3.140625, %v4821_v8  ;;  %v809_v18 = vmul.f32 0.0009676536, %v4821_v8 }
  0xb8   : > { %v746_v19 = vmul.f32 3.140625, %v4823_v9  ;;  %v651_v22 = vmul.f32 0.31830987, %v488_v10  ;;  %v652_v23 = vmul.f32 0.31830987, %v517_v11 }
  0xb9   : > { %v4834_v20 = vsub.f32 %v771_v12, %v803_v2  ;;  %v4836_v21 = vsub.f32 %v772_v13, %v804_v4  ;;  %v777_v27 = vsub.f32 %v430_v47, %v745_v17  ;;  %v657_v28 = vmul.f32 0.31830987, %v433_v14 }
  0xba   : > { %v658_v29 = vmul.f32 0.31830987, %v462_v15  ;;  %v778_v30 = vsub.f32 %v4803_v48, %v746_v19  ;;  %v810_v31 = vmul.f32 0.0009676536, %v4823_v9  ;;  %v683_v32 = vadd.f32 0.5, %v651_v22 }
  0xbb   : > { %7806 = vst [vmem:[#allocation7_spill] sm:$0xff] %v4834_v20  ;;  %v684_v33 = vadd.f32 0.5, %v652_v23  ;;  %v4842_v38 = vsub.f32 %v777_v27, %v809_v18  ;;  %v689_v39 = vadd.f32 0.5, %v657_v28 }
  0xbc   : > { %7807 = vst [vmem:[#allocation8_spill] sm:$0xff] %v4836_v21  ;;  %v690_v40 = vadd.f32 0.5, %v658_v29  ;;  %v490_v41 = vpop.f32.mrf.mxu2  ;;  %v519_v42 = vpop.f32.mrf.mxu3  ;;  %v4846_v45 = vfloor.f32 %v683_v32  ;;  %v4861_v52 = vsub.f32 %v778_v30, %v810_v31 }
  0xbd   : > { %v4848_v46 = vfloor.f32 %v684_v33  ;;  %v4850_v47 = vfloor.f32 %v689_v39  ;;  %v4855_v49 = vadd.f32 %v490_v41, %v4819_v7  ;;  %v4858_v50 = vadd.f32 %v519_v42, %v4819_v7  ;;  %v435_v62 = vpop.f32.mrf.mxu0  ;;  %v464_v63 = vpop.f32.mrf.mxu1 }
  0xbe   : > { %v4852_v48 = vfloor.f32 %v690_v40  ;;  %v747_v53 = vmul.f32 3.140625, %v4846_v45  ;;  %v811_v55 = vmul.f32 0.0009676536, %v4846_v45  ;;  %v436_v18 = vadd.f32 %v435_v62, %v4792_v35 }
  0xbf   : > { %v748_v54 = vmul.f32 3.140625, %v4848_v46  ;;  %v753_v58 = vmul.f32 3.140625, %v4850_v47  ;;  %v817_v59 = vmul.f32 0.0009676536, %v4850_v47  ;;  %v812_v2 = vmul.f32 0.0009676536, %v4848_v46 }
  0xc0   : > { %v754_v61 = vmul.f32 3.140625, %v4852_v48  ;;  %v779_v0 = vsub.f32 %v488_v10, %v747_v53  ;;  %v818_v3 = vmul.f32 0.0009676536, %v4852_v48  ;;  %v659_v6 = vmul.f32 0.31830987, %v4855_v49 }
  0xc1   : > { %v780_v1 = vsub.f32 %v517_v11, %v748_v54  ;;  %v785_v4 = vsub.f32 %v433_v14, %v753_v58  ;;  %v660_v12 = vmul.f32 0.31830987, %v4858_v50  ;;  %v465_v19 = vadd.f32 %v464_v63, %v4792_v35 }
  0xc2   : > { %v786_v5 = vsub.f32 %v462_v15, %v754_v61  ;;  %v4874_v17 = vsub.f32 %v779_v0, %v811_v55  ;;  %v691_v22 = vadd.f32 0.5, %v659_v6  ;;  %v4883_v27 = vmul.f32 0.5, %v4850_v47 }
  0xc3   : > { %v4878_v10 = vsub.f32 %v780_v1, %v812_v2  ;;  %v4880_v11 = vsub.f32 %v785_v4, %v817_v59  ;;  %v692_v23 = vadd.f32 0.5, %v660_v12  ;;  %v665_v29 = vmul.f32 0.31830987, %v436_v18 }
  0xc4   : > { %7808 = vst [vmem:[#allocation9_spill] sm:$0xff] %v4874_v17  ;;  %v493_v14 = vpop.f32.mrf.mxu2  ;;  %v522_v15 = vpop.f32.mrf.mxu3  ;;  %v4885_v28 = vsub.f32 %v786_v5, %v818_v3  ;;  %v666_v30 = vmul.f32 0.31830987, %v465_v19  ;;  %v4889_v32 = vmul.f32 0.5, %v4852_v48  ;;  %v4891_v33 = vfloor.f32 %v691_v22 }
  0xc5   : > { %7809 = vst [vmem:[#allocation10_spill] sm:$0xff] %v4878_v10  ;;  %v4893_v39 = vfloor.f32 %v692_v23  ;;  %v697_v40 = vadd.f32 0.5, %v665_v29  ;;  %v494_v42 = vadd.f32 %v493_v14, %v4792_v35  ;;  %v4897_v53 = vadd.f32 %v522_v15, %v4792_v35  ;;  %v571_v44 = vpop.f32.mrf.mxu1 }
  0xc6   : > { %v698_v41 = vadd.f32 0.5, %v666_v30  ;;  %v755_v58 = vmul.f32 3.140625, %v4891_v33  ;;  %v819_v62 = vmul.f32 0.0009676536, %v4891_v33  ;;  %v4907_v2 = vmul.f32 0.5, %v4891_v33  ;;  %v542_v30 = vpop.f32.mrf.mxu0 }
  0xc7   : > { %v756_v59 = vmul.f32 3.140625, %v4893_v39  ;;  %v729_v63 = vfloor.f32 %v697_v40  ;;  %v667_v3 = vmul.f32 0.31830987, %v494_v42  ;;  %v668_v4 = vmul.f32 0.31830987, %v4897_v53 }
  0xc8   : > { %v730_v0 = vfloor.f32 %v698_v41  ;;  %v787_v1 = vsub.f32 %v4855_v49, %v755_v58  ;;  %v820_v5 = vmul.f32 0.0009676536, %v4893_v39  ;;  %v4915_v54 = vmul.f32 0.5, %v4893_v39 }
  0xc9   : > { %v761_v6 = vmul.f32 3.140625, %v729_v63  ;;  %v889_v12 = vmul.f32 0.5, %v729_v63  ;;  %v788_v23 = vsub.f32 %v4858_v50, %v756_v59  ;;  %v825_v14 = vmul.f32 0.0009676536, %v729_v63 }
  0xca   : > { %v762_v22 = vmul.f32 3.140625, %v730_v0  ;;  %v826_v15 = vmul.f32 0.0009676536, %v730_v0  ;;  %v890_v29 = vmul.f32 0.5, %v730_v0  ;;  %v699_v58 = vadd.f32 0.5, %v667_v3 }
  0xcb   : > { %v793_v40 = vsub.f32 %v436_v18, %v761_v6  ;;  %v921_v41 = vfloor.f32 %v889_v12  ;;  %v4912_v43 = vsub.f32 %v787_v1, %v819_v62  ;;  %v700_v34 = vadd.f32 0.5, %v668_v4 }
  0xcc   : > { %v794_v49 = vsub.f32 %v465_v19, %v762_v22  ;;  %v922_v31 = vfloor.f32 %v890_v29  ;;  %v731_v50 = vfloor.f32 %v699_v58  ;;  %v4917_v59 = vsub.f32 %v788_v23, %v820_v5 }
  0xcd   : > { %7810 = vst [vmem:[#allocation11_spill] sm:$0xff] %v4912_v43  ;;  %v857_v24 = vsub.f32 %v793_v40, %v825_v14  ;;  %v953_v13 = vmul.f32 2.0, %v921_v41  ;;  %v732_v55 = vfloor.f32 %v700_v34  ;;  %v4920_v18 = vadd.f32 %v542_v30, %v4788_v26  ;;  %v600_v14 = vpop.f32.mrf.mxu2 }
  0xce   : > { %v858_v51 = vsub.f32 %v794_v49, %v826_v15  ;;  %7811 = vst [vmem:[#allocation12_spill] sm:$0xff] %v4917_v59  ;;  %v954_v61 = vmul.f32 2.0, %v922_v31  ;;  %v763_v62 = vmul.f32 3.140625, %v731_v50  ;;  %v4923_v1 = vadd.f32 %v571_v44, %v4788_v26  ;;  %v545_v49 = vpop.f32.mrf.mxu0 }
  0xcf   : > { %v985_v19 = vsub.f32 %v729_v63, %v953_v13  ;;  %v1049_v3 = vsub.f32 0.0, %v857_v24  ;;  %v891_v4 = vmul.f32 0.5, %v731_v50  ;;  %v764_v22 = vmul.f32 3.140625, %v732_v55 }
  0xd0   : > { %v986_v6 = vsub.f32 %v730_v0, %v954_v61  ;;  %v1050_v12 = vsub.f32 0.0, %v858_v51  ;;  %v795_v15 = vsub.f32 %v494_v42, %v763_v62  ;;  %v827_v5 = vmul.f32 0.0009676536, %v731_v50  ;;  %v629_v61 = vpop.f32.mrf.mxu3 }
  0xd1   : > { %vm1017_vm2 = vcmp.gt.f32.partialorder %v985_v19, 0.5  ;;  %v892_v23 = vmul.f32 0.5, %v732_v55  ;;  %v923_v34 = vfloor.f32 %v891_v4  ;;  %v796_v31 = vsub.f32 %v4897_v53, %v764_v22 }
  0xd2   : > { %vm1018_vm3 = vcmp.gt.f32.partialorder %v986_v6, 0.5  ;;  %v828_v29 = vmul.f32 0.0009676536, %v732_v55  ;;  %v4927_v63 = vsel %vm1017_vm2, %v1049_v3, %v857_v24  ;;  %v859_v44 = vsub.f32 %v795_v15, %v827_v5  ;;  %v574_v6 = vpop.f32.mrf.mxu1 }
  0xd3   : > { %v924_v30 = vfloor.f32 %v892_v23  ;;  %v4929_v0 = vsel %vm1018_vm3, %v1050_v12, %v858_v51  ;;  %v955_v40 = vmul.f32 2.0, %v923_v34  ;;  %v645_v42 = vmul.f32 0.31830987, %v4920_v18 }
  0xd4   : > { %v860_v41 = vsub.f32 %v796_v31, %v828_v29  ;;  %v1051_v58 = vsub.f32 0.0, %v859_v44  ;;  %v646_v62 = vmul.f32 0.31830987, %v4923_v1  ;;  %v4934_v53 = vadd.f32 %v600_v14, %v4788_v26 }
  0xd5   : > { %v956_v19 = vmul.f32 2.0, %v924_v30  ;;  %v987_v24 = vsub.f32 %v731_v50, %v955_v40  ;;  %v677_v4 = vadd.f32 0.5, %v645_v42  ;;  %v4937_v22 = vadd.f32 %v629_v61, %v4788_v26  ;;  %v603_v40 = vpop.f32.mrf.mxu2 }
  0xd6   : > { %v1052_v3 = vsub.f32 0.0, %v860_v41  ;;  %v678_v12 = vadd.f32 0.5, %v646_v62  ;;  %v647_v15 = vmul.f32 0.31830987, %v4934_v53  ;;  %v4941_v5 = vadd.f32 %v545_v49, %v4786_v25 }
  0xd7   : > { %v988_v51 = vsub.f32 %v732_v55, %v956_v19  ;;  %vm1019_vm4 = vcmp.gt.f32.partialorder %v987_v24, 0.5  ;;  %v4943_v23 = vfloor.f32 %v677_v4  ;;  %v648_v14 = vmul.f32 0.31830987, %v4937_v22 }
  0xd8   : > { %v4947_v34 = vadd.f32 %v574_v6, %v4786_v25  ;;  %v4949_v50 = vsel %vm1019_vm4, %v1051_v58, %v859_v44  ;;  %v4951_v26 = vfloor.f32 %v678_v12  ;;  %v679_v55 = vadd.f32 0.5, %v647_v15  ;;  %v632_v12 = vpop.f32.mrf.mxu3 }
  0xd9   : > { %7812 = vst [vmem:[#allocation13_spill] sm:$0xff] %v4943_v23  ;;  %vm1020_vm5 = vcmp.gt.f32.partialorder %v988_v51, 0.5  ;;  %v4956_v29 = vmul.f32 %v4927_v63, %v4927_v63  ;;  %v741_v61 = vmul.f32 3.140625, %v4943_v23  ;;  %v4963_v42 = vmul.f32 %v4929_v0, %v4929_v0 }
  0xda   : > { %7813 = vst [vmem:[#allocation14_spill] sm:$0xff] %v4951_v26  ;;  %v4958_v30 = vsel %vm1020_vm5, %v1052_v3, %v860_v41  ;;  %v4967_v44 = vmul.f32 %v4949_v50, %v4949_v50  ;;  %v805_v49 = vmul.f32 0.0009676536, %v4943_v23  ;;  %v742_v58 = vmul.f32 3.140625, %v4951_v26  ;;  %v577_v21 = vpop.f32.mrf.mxu1 }
  0xdb   : > { %v4973_v19 = vmul.f32 %v4958_v30, %v4958_v30  ;;  %v773_v41 = vsub.f32 %v4920_v18, %v741_v61  ;;  %v4976_v62 = vfloor.f32 %v679_v55  ;;  %v680_v6 = vadd.f32 0.5, %v648_v14 }
  0xdc   : > { %v774_v24 = vsub.f32 %v4923_v1, %v742_v58  ;;  %v653_v3 = vmul.f32 0.31830987, %v4941_v5  ;;  %v654_v4 = vmul.f32 0.31830987, %v4947_v34  ;;  %v4982_v51 = vadd.f32 %v603_v40, %v4786_v25 }
  0xdd   : > { %7814 = vst [vmem:[#allocation15_spill] sm:$0xff] %v4976_v62  ;;  %v4984_v15 = vsub.f32 %v773_v41, %v805_v49  ;;  %v4987_v31 = vmul.f32 0.5, %v4943_v23  ;;  %v806_v18 = vmul.f32 0.0009676536, %v4951_v26  ;;  %v743_v55 = vmul.f32 3.140625, %v4976_v62  ;;  %v548_v23 = vpop.f32.mrf.mxu0 }
  0xde   : > { %v4992_v14 = vmul.f32 0.5, %v4951_v26  ;;  %v4994_v1 = vfloor.f32 %v680_v6  ;;  %v685_v61 = vadd.f32 0.5, %v653_v3  ;;  %v686_v58 = vadd.f32 0.5, %v654_v4 }
  0xdf   : > { %7815 = vst [vmem:[#allocation16_spill] sm:$0xff] %v4984_v15  ;;  %v4996_v13 = vsub.f32 %v774_v24, %v806_v18  ;;  %v775_v40 = vsub.f32 %v4934_v53, %v743_v55  ;;  %v655_v49 = vmul.f32 0.31830987, %v4982_v51  ;;  %v5001_v41 = vadd.f32 %v632_v12, %v4786_v25 }
  0xe0   : > { %7816 = vst [vmem:[#allocation17_spill] sm:$0xff] %v4987_v31  ;;  %v807_v26 = vmul.f32 0.0009676536, %v4976_v62  ;;  %v5006_v6 = vmul.f32 0.5, %v4976_v62  ;;  %v744_v3 = vmul.f32 3.140625, %v4994_v1  ;;  %v5010_v4 = vfloor.f32 %v685_v61 }
  0xe1   : > { %7817 = vst [vmem:[#allocation18_spill] sm:$0xff] %v4992_v14  ;;  %v808_v24 = vmul.f32 0.0009676536, %v4994_v1  ;;  %v5012_v53 = vfloor.f32 %v686_v58  ;;  %v687_v18 = vadd.f32 0.5, %v655_v49  ;;  %v656_v12 = vmul.f32 0.31830987, %v5001_v41  ;;  %v606_v49 = vpop.f32.mrf.mxu2 }
  0xe2   : > { %7818 = vst [vmem:[#allocation19_spill] sm:$0xff] %v4994_v1  ;;  %v776_v25 = vsub.f32 %v4937_v22, %v744_v3  ;;  %v5017_v55 = vadd.f32 %v548_v23, %v4819_v7  ;;  %v5020_v20 = vadd.f32 %v577_v21, %v4819_v7  ;;  %v5026_v61 = vmul.f32 0.5, %v4994_v1 }
  0xe3   : > { %7819 = vst [vmem:[#allocation20_spill] sm:$0xff] %v4996_v13  ;;  %v749_v58 = vmul.f32 3.140625, %v5010_v4  ;;  %v813_v22 = vmul.f32 0.0009676536, %v5010_v4  ;;  %v5033_v23 = vmul.f32 0.5, %v5010_v4  ;;  %v750_v21 = vmul.f32 3.140625, %v5012_v53 }
  0xe4   : > { %7820 = vst [vmem:[#allocation21_spill] sm:$0xff] %v5006_v6  ;;  %v5023_v6 = vsub.f32 %v775_v40, %v807_v26  ;;  %v5029_v15 = vsub.f32 %v776_v25, %v808_v24  ;;  %v5037_v62 = vfloor.f32 %v687_v18  ;;  %v688_v26 = vadd.f32 0.5, %v656_v12 }
  0xe5   : > { %7821 = vst [vmem:[#allocation22_spill] sm:$0xff] %v5010_v4  ;;  %v781_v3 = vsub.f32 %v4941_v5, %v749_v58  ;;  %v661_v40 = vmul.f32 0.31830987, %v5017_v55  ;;  %v782_v1 = vsub.f32 %v4947_v34, %v750_v21  ;;  %v662_v24 = vmul.f32 0.31830987, %v5020_v20 }
  0xe6   : > { %7822 = vst [vmem:[#allocation23_spill] sm:$0xff] %v5012_v53  ;;  %v5044_v25 = vadd.f32 %v606_v49, %v4819_v7  ;;  %v5049_v13 = vmul.f32 0.5, %v5012_v53  ;;  %v751_v5 = vmul.f32 3.140625, %v5037_v62  ;;  %v815_v18 = vmul.f32 0.0009676536, %v5037_v62 }
  0xe7   : > { %7823 = vst [vmem:[#allocation24_spill] sm:$0xff] %v5023_v6  ;;  %v814_v6 = vmul.f32 0.0009676536, %v5012_v53  ;;  %v5055_v34 = vfloor.f32 %v688_v26  ;;  %v693_v58 = vadd.f32 0.5, %v661_v40  ;;  %v694_v21 = vadd.f32 0.5, %v662_v24  ;;  %v551_v53 = vpop.f32.mrf.mxu0 }
  0xe8   : > { %7824 = vst [vmem:[#allocation25_spill] sm:$0xff] %v5026_v61  ;;  %v5046_v61 = vsub.f32 %v781_v3, %v813_v22  ;;  %v783_v4 = vsub.f32 %v4982_v51, %v751_v5  ;;  %v5059_v49 = vmul.f32 0.5, %v5037_v62  ;;  %v663_v22 = vmul.f32 0.31830987, %v5044_v25 }
  0xe9   : > { %7825 = vst [vmem:[#allocation26_spill] sm:$0xff] %v5029_v15  ;;  %v635_v15 = vpop.f32.mrf.mxu3  ;;  %v5053_v12 = vsub.f32 %v782_v1, %v814_v6  ;;  %v752_v6 = vmul.f32 3.140625, %v5055_v34  ;;  %v816_v26 = vmul.f32 0.0009676536, %v5055_v34  ;;  %v5069_v51 = vfloor.f32 %v693_v58  ;;  %v609_v58 = vpop.f32.mrf.mxu2 }
  0xea   : > { %7826 = vst [vmem:[#allocation27_spill] sm:$0xff] %v5033_v23  ;;  %v636_v3 = vadd.f32 %v635_v15, %v4819_v7  ;;  %v5067_v40 = vsub.f32 %v783_v4, %v815_v18  ;;  %v5071_v24 = vfloor.f32 %v694_v21  ;;  %v695_v5 = vadd.f32 0.5, %v663_v22 }
  0xeb   : > { %7827 = vst [vmem:[#allocation28_spill] sm:$0xff] %v5037_v62  ;;  %v784_v62 = vsub.f32 %v5001_v41, %v752_v6  ;;  %v552_v15 = vadd.f32 %v551_v53, %v4792_v35  ;;  %v757_v4 = vmul.f32 3.140625, %v5069_v51  ;;  %v821_v18 = vmul.f32 0.0009676536, %v5069_v51 }
  0xec   : > { %7828 = vst [vmem:[#allocation29_spill] sm:$0xff] %v5046_v61  ;;  %v664_v7 = vmul.f32 0.31830987, %v636_v3  ;;  %v5087_v41 = vmul.f32 0.5, %v5069_v51  ;;  %v758_v53 = vmul.f32 3.140625, %v5071_v24  ;;  %v5092_v6 = vfloor.f32 %v695_v5 }
  0xed   : > { %7829 = vst [vmem:[#allocation30_spill] sm:$0xff] %v5049_v13  ;;  %v580_v13 = vpop.f32.mrf.mxu1  ;;  %v5084_v21 = vsub.f32 %v784_v62, %v816_v26  ;;  %v789_v22 = vsub.f32 %v5017_v55, %v757_v4  ;;  %v610_v26 = vadd.f32 %v609_v58, %v4792_v35 }
  0xee   : > { %7830 = vst [vmem:[#allocation31_spill] sm:$0xff] %v5053_v12  ;;  %v5076_v10 = vadd.f32 %v580_v13, %v4792_v35  ;;  %v822_v13 = vmul.f32 0.0009676536, %v5071_v24  ;;  %v696_v1 = vadd.f32 0.5, %v664_v7  ;;  %v759_v55 = vmul.f32 3.140625, %v5092_v6 }
  0xef   : > { %7831 = vst [vmem:[#allocation32_spill] sm:$0xff] %v5055_v34  ;;  %v823_v5 = vmul.f32 0.0009676536, %v5092_v6  ;;  %v671_v58 = vmul.f32 0.31830987, %v610_v26 }
  0xf0   : > { %7832 = vst [vmem:[#allocation33_spill] sm:$0xff] %v5059_v49  ;;  %v5080_v49 = vmul.f32 0.5, %v5055_v34  ;;  %v790_v34 = vsub.f32 %v5020_v20, %v758_v53  ;;  %v670_v62 = vmul.f32 0.31830987, %v5076_v10  ;;  %v5107_v4 = vfloor.f32 %v696_v1 }
  0xf1   : > { %7833 = vst [vmem:[#allocation34_spill] sm:$0xff] %v5067_v40  ;;  %v669_v40 = vmul.f32 0.31830987, %v552_v15  ;;  %v638_v12 = vpop.f32.mrf.mxu3 }
  0xf2   : > { %7834 = vst [vmem:[#allocation35_spill] sm:$0xff] %v5069_v51  ;;  %v5101_v51 = vsub.f32 %v789_v22, %v821_v18  ;;  %v5105_v7 = vsub.f32 %v790_v34, %v822_v13  ;;  %v702_v53 = vadd.f32 0.5, %v670_v62  ;;  %v639_v61 = vadd.f32 %v638_v12, %v4792_v35 }
  0xf3   : > { %7835 = vst [vmem:[#allocation36_spill] sm:$0xff] %v5071_v24  ;;  %v701_v20 = vadd.f32 0.5, %v669_v40  ;;  %v824_v34 = vmul.f32 0.0009676536, %v5107_v4  ;;  %v703_v62 = vadd.f32 0.5, %v671_v58 }
  0xf4   : > { %7836 = vst [vmem:[#allocation37_spill] sm:$0xff] %v5080_v49  ;;  %v5096_v49 = vmul.f32 0.5, %v5071_v24  ;;  %v791_v24 = vsub.f32 %v5044_v25, %v759_v55  ;;  %v734_v13 = vfloor.f32 %v702_v53  ;;  %v5121_v55 = vmul.f32 0.5, %v5107_v4 }
  0xf5   : > { %7837 = vst [vmem:[#allocation38_spill] sm:$0xff] %v5084_v21  ;;  %v760_v21 = vmul.f32 3.140625, %v5107_v4  ;;  %v733_v40 = vfloor.f32 %v701_v20  ;;  %v1145_v35 = vmul.f32 -2.5052108e-08, %v4956_v29 }
  0xf6   : > { %7838 = vst [vmem:[#allocation39_spill] sm:$0xff] %v5087_v41  ;;  %v5118_v1 = vsub.f32 %v791_v24, %v823_v5  ;;  %v766_v5 = vmul.f32 3.140625, %v734_v13  ;;  %v894_v20 = vmul.f32 0.5, %v734_v13 }
  0xf7   : > { %7839 = vst [vmem:[#allocation40_spill] sm:$0xff] %v5092_v6  ;;  %v792_v25 = vsub.f32 %v636_v3, %v760_v21  ;;  %v765_v18 = vmul.f32 3.140625, %v733_v40  ;;  %v893_v22 = vmul.f32 0.5, %v733_v40  ;;  %v829_v24 = vmul.f32 0.0009676536, %v733_v40 }
  0xf8   : > { %7840 = vst [vmem:[#allocation41_spill] sm:$0xff] %v5096_v49  ;;  %v5111_v49 = vmul.f32 0.5, %v5092_v6  ;;  %v672_v6 = vmul.f32 0.31830987, %v639_v61  ;;  %v735_v3 = vfloor.f32 %v703_v62  ;;  %v1177_v41 = vadd.f32 2.7557319e-06, %v1145_v35 }
  0xf9   : > { %7841 = vst [vmem:[#allocation42_spill] sm:$0xff] %v5101_v51  ;;  %v797_v53 = vsub.f32 %v552_v15, %v765_v18  ;;  %v925_v58 = vfloor.f32 %v893_v22  ;;  %v926_v51 = vfloor.f32 %v894_v20  ;;  %v873_v20 = vmul.f32 0.5, %v4821_v8 }
  0xfa   : > { %7842 = vst [vmem:[#allocation43_spill] sm:$0xff] %v5105_v7  ;;  %v5126_v7 = vsub.f32 %v792_v25, %v824_v34  ;;  %v704_v21 = vadd.f32 0.5, %v672_v6  ;;  %v831_v14 = vmul.f32 0.0009676536, %v735_v3  ;;  %v895_v34 = vmul.f32 0.5, %v735_v3 }
  0xfb   : > { %7843 = vst [vmem:[#allocation44_spill] sm:$0xff] %v5107_v4  ;;  %v798_v4 = vsub.f32 %v5076_v10, %v766_v5  ;;  %v861_v23 = vsub.f32 %v797_v53, %v829_v24  ;;  %v957_v12 = vmul.f32 2.0, %v925_v58  ;;  %v958_v57 = vmul.f32 2.0, %v926_v51 }
  0xfc   : > { %7844 = vst [vmem:[#allocation45_spill] sm:$0xff] %v5111_v49  ;;  %v1146_v49 = vmul.f32 -2.5052108e-08, %v4963_v42  ;;  %v736_v25 = vfloor.f32 %v704_v21  ;;  %v1209_v15 = vmul.f32 %v1177_v41, %v4956_v29  ;;  %v927_v22 = vfloor.f32 %v895_v34 }
  0xfd   : > { %7845 = vst [vmem:[#allocation46_spill] sm:$0xff] %v5118_v1  ;;  %v767_v1 = vmul.f32 3.140625, %v735_v3  ;;  %v989_v17 = vsub.f32 %v733_v40, %v957_v12  ;;  %v1053_v59 = vsub.f32 0.0, %v861_v23  ;;  %v990_v18 = vsub.f32 %v734_v13, %v958_v57 }
  0xfe   : > { %7846 = vst [vmem:[#allocation47_spill] sm:$0xff] %v5121_v55  ;;  %v830_v55 = vmul.f32 0.0009676536, %v734_v13  ;;  %v768_v10 = vmul.f32 3.140625, %v736_v25  ;;  %v832_v35 = vmul.f32 0.0009676536, %v736_v25  ;;  %v905_v34 = vfloor.f32 %v873_v20 }
  0xff   : > { %v799_v43 = vsub.f32 %v610_v26, %v767_v1  ;;  %vm1021_vm6 = vcmp.gt.f32.partialorder %v989_v17, 0.5  ;;  %v896_v24 = vmul.f32 0.5, %v736_v25  ;;  %vm1022_vm7 = vcmp.gt.f32.partialorder %v990_v18, 0.5 }
 0x100   : > { %v862_v31 = vsub.f32 %v798_v4, %v830_v55  ;;  %v5130_v5 = vsel %vm1021_vm6, %v1053_v59, %v861_v23  ;;  %v959_v4 = vmul.f32 2.0, %v927_v22  ;;  %v800_v51 = vsub.f32 %v639_v61, %v768_v10 }
 0x101   : > { %v863_v62 = vsub.f32 %v799_v43, %v831_v14  ;;  %v1048_v55 = vsub.f32 0.0, %v5126_v7  ;;  %v5135_v26 = vmul.f32 %v5130_v5, %v5130_v5  ;;  %v928_v57 = vfloor.f32 %v896_v24 }
 0x102   : > { %v1054_v6 = vsub.f32 0.0, %v862_v31  ;;  %v991_v40 = vsub.f32 %v735_v3, %v959_v4  ;;  %v864_v17 = vsub.f32 %v800_v51, %v832_v35  ;;  %v4237_v43 = vadd.f32 -0.0001984127, %v1209_v15 }
 0x103   : > { %v1055_v41 = vsub.f32 0.0, %v863_v62  ;;  %v960_v14 = vmul.f32 2.0, %v928_v57  ;;  %v1178_v13 = vadd.f32 2.7557319e-06, %v1146_v49  ;;  %v913_v59 = vfloor.f32 %v4883_v27 }
 0x104   : > { %v5137_v1 = vsel %vm1022_vm7, %v1054_v6, %v862_v31  ;;  %v914_v23 = vfloor.f32 %v4889_v32  ;;  %vm1023_vm8 = vcmp.gt.f32.partialorder %v991_v40, 0.5  ;;  %v1056_v61 = vsub.f32 0.0, %v864_v17 }
 0x105   : > { %v1273_v12 = vmul.f32 %v4237_v43, %v4956_v29  ;;  %v5143_v53 = vsel %vm1023_vm8, %v1055_v41, %v863_v62  ;;  %v992_v58 = vsub.f32 %v736_v25, %v960_v14  ;;  %v1210_v31 = vmul.f32 %v1178_v13, %v4963_v42 }
 0x106   : > { %v945_v3 = vmul.f32 2.0, %v913_v59  ;;  %v5148_v21 = vmul.f32 %v5137_v1, %v5137_v1  ;;  %v946_v27 = vmul.f32 2.0, %v914_v23  ;;  %v874_v18 = vmul.f32 0.5, %v4823_v9 }
 0x107   : > { %v1305_v49 = vadd.f32 0.008333334, %v1273_v12  ;;  %vm1024_vm9 = vcmp.gt.f32.partialorder %v992_v58, 0.5  ;;  %v4238_v32 = vadd.f32 -0.0001984127, %v1210_v31  ;;  %v5154_v6 = vmul.f32 %v5143_v53, %v5143_v53 }
 0x108   : > { %v977_v15 = vsub.f32 %v4850_v47, %v945_v3  ;;  %v978_v22 = vsub.f32 %v4852_v48, %v946_v27  ;;  %v937_v10 = vmul.f32 2.0, %v905_v34  ;;  %v5158_v62 = vsel %vm1024_vm9, %v1056_v61, %v864_v17 }
 0x109   : > { %v1337_v25 = vmul.f32 %v1305_v49, %v4956_v29  ;;  %v1274_v35 = vmul.f32 %v4238_v32, %v4963_v42  ;;  %v906_v24 = vfloor.f32 %v874_v18  ;;  %v7847_v47 = vsub.f32 0.0, %v4880_v11 }
 0x10a   : > { %vm1009_vm10 = vcmp.gt.f32.partialorder %v977_v15, 0.5  ;;  %vm1010_vm11 = vcmp.gt.f32.partialorder %v978_v22, 0.5  ;;  %v969_v41 = vsub.f32 %v4821_v8, %v937_v10  ;;  %v7848_v40 = vsub.f32 0.0, %v4885_v28 }
 0x10b   : > { %v4269_v4 = vadd.f32 -0.16666667, %v1337_v25  ;;  %v5164_v51 = vsel %vm1009_vm10, %v7847_v47, %v4880_v11  ;;  %v1306_v57 = vadd.f32 0.008333334, %v1274_v35  ;;  %v938_v43 = vmul.f32 2.0, %v906_v24 }
 0x10c   : > { %v5169_v48 = vmul.f32 %v5164_v51, %v5164_v51  ;;  %v5174_v17 = vsel %vm1010_vm11, %v7848_v40, %v4885_v28  ;;  %vm1001_vm12 = vcmp.gt.f32.partialorder %v969_v41, 0.5  ;;  %v865_v8 = vmul.f32 0.5, %v4794_v36 }
 0x10d   : > { %v1401_v14 = vmul.f32 %v4269_v4, %v4956_v29  ;;  %v5179_v11 = vmul.f32 %v5174_v17, %v5174_v17  ;;  %v1338_v13 = vmul.f32 %v1306_v57, %v4963_v42  ;;  %v7849_v23 = vsub.f32 0.0, %v4842_v38 }
 0x10e   : > { %v1137_v59 = vmul.f32 -2.5052108e-08, %v5169_v48  ;;  %v970_v28 = vsub.f32 %v4823_v9, %v938_v43  ;;  %v897_v58 = vfloor.f32 %v865_v8  ;;  %v866_v49 = vmul.f32 0.5, %v4796_v37 }
 0x10f   : > { %v5187_v61 = vsel %vm1001_vm12, %v7849_v23, %v4842_v38  ;;  %v1433_v29 = vmul.f32 %v1401_v14, %v4927_v63  ;;  %v1138_v12 = vmul.f32 -2.5052108e-08, %v5179_v11  ;;  %v4270_v31 = vadd.f32 -0.16666667, %v1338_v13 }
 0x110   : > { %v5194_v20 = vmul.f32 %v5187_v61, %v5187_v61  ;;  %v1169_v3 = vadd.f32 2.7557319e-06, %v1137_v59  ;;  %vm1002_vm13 = vcmp.gt.f32.partialorder %v970_v28, 0.5  ;;  %v7850_v9 = vsub.f32 0.0, %v4861_v52 }
 0x111   : > { %v1465_v27 = vadd.f32 %v1433_v29, %v4927_v63  ;;  %v1170_v38 = vadd.f32 2.7557319e-06, %v1138_v12  ;;  %v1402_v15 = vmul.f32 %v4270_v31, %v4963_v42  ;;  %v929_v22 = vmul.f32 2.0, %v897_v58 }
 0x112   : > { %v1129_v34 = vmul.f32 -2.5052108e-08, %v5194_v20  ;;  %v5202_v32 = vsel %vm1002_vm13, %v7850_v9, %v4861_v52  ;;  %v1201_v18 = vmul.f32 %v1169_v3, %v5169_v48  ;;  %v898_v35 = vfloor.f32 %v866_v49 }
 0x113   : > { %v5208_v25 = vmul.f32 %v5202_v32, %v5202_v32  ;;  %1526 = vmatpush.msra.mxu0 %v1465_v27  ;;  %v1202_v63 = vmul.f32 %v1170_v38, %v5179_v11  ;;  %v1147_v24 = vmul.f32 -2.5052108e-08, %v4967_v44  ;;  %v1434_v4 = vmul.f32 %v1402_v15, %v4929_v0 }
 0x114   : > { %v1161_v10 = vadd.f32 2.7557319e-06, %v1129_v34  ;;  %v4229_v52 = vadd.f32 -0.0001984127, %v1201_v18  ;;  %v961_v42 = vsub.f32 %v4794_v36, %v929_v22  ;;  %v930_v40 = vmul.f32 2.0, %v898_v35 }
 0x115   : > { %v1130_v47 = vmul.f32 -2.5052108e-08, %v5208_v25  ;;  %v4230_v41 = vadd.f32 -0.0001984127, %v1202_v63  ;;  %v1179_v43 = vadd.f32 2.7557319e-06, %v1147_v24  ;;  %v1466_v14 = vadd.f32 %v1434_v4, %v4929_v0 }
 0x116   : > { %v1193_v57 = vmul.f32 %v1161_v10, %v5194_v20  ;;  %v1265_v8 = vmul.f32 %v4229_v52, %v5169_v48  ;;  %vm993_vm14 = vcmp.gt.f32.partialorder %v961_v42, 0.5  ;;  %v7851_v28 = vsub.f32 0.0, %v4812_v60 }
 0x117   : > { %v1162_v13 = vadd.f32 2.7557319e-06, %v1130_v47  ;;  %v1266_v59 = vmul.f32 %v4230_v41, %v5179_v11  ;;  %v962_v36 = vsub.f32 %v4796_v37, %v930_v40  ;;  %1555 = vmatpush.msra.mxu1 %v1466_v14  ;;  %v1211_v31 = vmul.f32 %v1179_v43, %v4967_v44 }
 0x118   : > { %v4221_v23 = vadd.f32 -0.0001984127, %v1193_v57  ;;  %v5222_v29 = vsel %vm993_vm14, %v7851_v28, %v4812_v60  ;;  %v1297_v12 = vadd.f32 0.008333334, %v1265_v8  ;;  %v1148_v27 = vmul.f32 -2.5052108e-08, %v4973_v19 }
 0x119   : > { %v1194_v58 = vmul.f32 %v1162_v13, %v5208_v25  ;;  %v5228_v0 = vmul.f32 %v5222_v29, %v5222_v29  ;;  %v1298_v3 = vadd.f32 0.008333334, %v1266_v59  ;;  %vm994_vm15 = vcmp.gt.f32.partialorder %v962_v36, 0.5 }
 0x11a   : > { %v1257_v49 = vmul.f32 %v4221_v23, %v5194_v20  ;;  %v1329_v60 = vmul.f32 %v1297_v12, %v5169_v48  ;;  %v7852_v34 = vsub.f32 0.0, %v4829_v16  ;;  %v4239_v63 = vadd.f32 -0.0001984127, %v1211_v31 }
 0x11b   : > { %v4222_v38 = vadd.f32 -0.0001984127, %v1194_v58  ;;  %v1121_v37 = vmul.f32 -2.5052108e-08, %v5228_v0  ;;  %v1330_v15 = vmul.f32 %v1298_v3, %v5179_v11  ;;  %v1180_v4 = vadd.f32 2.7557319e-06, %v1148_v27 }
 0x11c   : > { %v5238_v9 = vsel %vm994_vm15, %v7852_v34, %v4829_v16  ;;  %v1289_v18 = vadd.f32 0.008333334, %v1257_v49  ;;  %v4261_v10 = vadd.f32 -0.16666667, %v1329_v60  ;;  %v1275_v16 = vmul.f32 %v4239_v63, %v4967_v44 }
 0x11d   : > { %v5243_v22 = vmul.f32 %v5238_v9, %v5238_v9  ;;  %v1258_v35 = vmul.f32 %v4222_v38, %v5208_v25  ;;  %v1153_v24 = vadd.f32 2.7557319e-06, %v1121_v37  ;;  %v4262_v52 = vadd.f32 -0.16666667, %v1330_v15 }
 0x11e   : > { %v1321_v47 = vmul.f32 %v1289_v18, %v5194_v20  ;;  %v1393_v41 = vmul.f32 %v4261_v10, %v5169_v48  ;;  %v1212_v43 = vmul.f32 %v1180_v4, %v4973_v19  ;;  %v1307_v59 = vadd.f32 0.008333334, %v1275_v16 }
 0x11f   : > { %v1122_v42 = vmul.f32 -2.5052108e-08, %v5243_v22  ;;  %v1290_v57 = vadd.f32 0.008333334, %v1258_v35  ;;  %v1185_v40 = vmul.f32 %v1153_v24, %v5228_v0  ;;  %v1394_v14 = vmul.f32 %v4262_v52, %v5179_v11 }
 0x120   : > { %v4253_v8 = vadd.f32 -0.16666667, %v1321_v47  ;;  %v1425_v23 = vmul.f32 %v1393_v41, %v5164_v51  ;;  %v4240_v12 = vadd.f32 -0.0001984127, %v1212_v43  ;;  %v1339_v3 = vmul.f32 %v1307_v59, %v4967_v44 }
 0x121   : > { %v1154_v13 = vadd.f32 2.7557319e-06, %v1122_v42  ;;  %v1322_v28 = vmul.f32 %v1290_v57, %v5208_v25  ;;  %v4213_v36 = vadd.f32 -0.0001984127, %v1185_v40  ;;  %v1426_v58 = vmul.f32 %v1394_v14, %v5174_v17 }
 0x122   : > { %v1385_v48 = vmul.f32 %v4253_v8, %v5194_v20  ;;  %v1457_v49 = vadd.f32 %v1425_v23, %v5164_v51  ;;  %v1276_v60 = vmul.f32 %v4240_v12, %v4973_v19  ;;  %v4271_v15 = vadd.f32 -0.16666667, %v1339_v3 }
 0x123   : > { %v1186_v31 = vmul.f32 %v1154_v13, %v5243_v22  ;;  %v4254_v11 = vadd.f32 -0.16666667, %v1322_v28  ;;  %v1249_v27 = vmul.f32 %v4213_v36, %v5228_v0  ;;  %v1458_v38 = vadd.f32 %v1426_v58, %v5174_v17  ;;  %v7853_v58 = vld [vmem:[#allocation11_spill] sm:$0xff] }
 0x124   : > { %v1417_v37 = vmul.f32 %v1385_v48, %v5187_v61  ;;  %v5266_v20 = vmul.f32 %v5158_v62, %v5158_v62  ;;  %1527 = vmatpush.msra.mxu0 %v1457_v49  ;;  %v1308_v51 = vadd.f32 0.008333334, %v1276_v60  ;;  %v1403_v17 = vmul.f32 %v4271_v15, %v4967_v44 }
 0x125   : > { %v4214_v34 = vadd.f32 -0.0001984127, %v1186_v31  ;;  %v1386_v18 = vmul.f32 %v4254_v11, %v5208_v25  ;;  %v1281_v63 = vadd.f32 0.008333334, %v1249_v27  ;;  %1556 = vmatpush.msra.mxu1 %v1458_v38  ;;  %v915_v24 = vfloor.f32 %v4907_v2  ;;  %v7855_v31 = vld [vmem:[#allocation12_spill] sm:$0xff]  ;;  %v5311_v38 = vld [vmem:[%s7668_s3] sm:$0xff] }
 0x126   : > { %v1449_v10 = vadd.f32 %v1417_v37, %v5187_v61  ;;  %v1340_v47 = vmul.f32 %v1308_v51, %v4973_v19  ;;  %v916_v25 = vfloor.f32 %v4915_v54  ;;  %v1435_v16 = vmul.f32 %v1403_v17, %v4949_v50 }
 0x127   : > { %v1250_v35 = vmul.f32 %v4214_v34, %v5243_v22  ;;  %v1418_v4 = vmul.f32 %v1386_v18, %v5202_v32  ;;  %v1313_v52 = vmul.f32 %v1281_v63, %v5228_v0  ;;  %v947_v61 = vmul.f32 2.0, %v915_v24 }
 0x128   : > { %1528 = vmatpush.msra.mxu0 %v1449_v10  ;;  %v875_v41 = vmul.f32 0.5, %v4846_v45  ;;  %v4272_v2 = vadd.f32 -0.16666667, %v1340_v47  ;;  %v948_v40 = vmul.f32 2.0, %v916_v25  ;;  %v1467_v14 = vadd.f32 %v1435_v16, %v4949_v50  ;;  %v7859_v10 = vld [vmem:[#allocation6_spill] sm:$0xff]  ;;  %v7860_v16 = vld [vmem:[#allocation17_spill] sm:$0xff] }
 0x129   : > { %v1282_v42 = vadd.f32 0.008333334, %v1250_v35  ;;  %v1450_v44 = vadd.f32 %v1418_v4, %v5202_v32  ;;  %v4245_v57 = vadd.f32 -0.16666667, %v1313_v52  ;;  %v979_v8 = vsub.f32 %v4891_v33, %v947_v61 }
 0x12a   : > { %v907_v13 = vfloor.f32 %v875_v41  ;;  %v1404_v59 = vmul.f32 %v4272_v2, %v4973_v19  ;;  %v980_v23 = vsub.f32 %v4893_v39, %v948_v40  ;;  %v876_v28 = vmul.f32 0.5, %v4848_v46  ;;  %1584 = vmatpush.msra.mxu2 %v1467_v14 }
 0x12b   : > { %v1314_v43 = vmul.f32 %v1282_v42, %v5243_v22  ;;  %1557 = vmatpush.msra.mxu1 %v1450_v44  ;;  %v1377_v54 = vmul.f32 %v4245_v57, %v5228_v0  ;;  %vm1011_vm2 = vcmp.gt.f32.partialorder %v979_v8, 0.5  ;;  %v867_v12 = vmul.f32 0.5, %v4808_v56  ;;  %v7861_v57 = vld [vmem:[#allocation18_spill] sm:$0xff] }
 0x12c   : > { %v939_v36 = vmul.f32 2.0, %v907_v13  ;;  %v1436_v33 = vmul.f32 %v1404_v59, %v4958_v30  ;;  %v7854_v48 = vsub.f32 0.0, %v7853_v58  ;;  %vm1012_vm3 = vcmp.gt.f32.partialorder %v980_v23, 0.5 }
 0x12d   : > { %v4246_v32 = vadd.f32 -0.16666667, %v1314_v43  ;;  %v1409_v50 = vmul.f32 %v1377_v54, %v5222_v29  ;;  %v7856_v3 = vsub.f32 0.0, %v7855_v31  ;;  %v908_v37 = vfloor.f32 %v876_v28  ;;  %v7863_v54 = vld [vmem:[#allocation10_spill] sm:$0xff] }
 0x12e   : > { %v5293_v0 = vsel %vm1011_vm2, %v7854_v48, %v7853_v58  ;;  %v971_v11 = vsub.f32 %v4846_v45, %v939_v36  ;;  %v1468_v60 = vadd.f32 %v1436_v33, %v4958_v30  ;;  %v899_v45 = vfloor.f32 %v867_v12  ;;  %v5361_v33 = vld [vmem:[%s7668_s3 + $0x8] sm:$0xff] }
 0x12f   : > { %v1378_v39 = vmul.f32 %v4246_v32, %v5243_v22  ;;  %v5298_v19 = vmul.f32 %v5293_v0, %v5293_v0  ;;  %v5303_v49 = vsel %vm1012_vm3, %v7856_v3, %v7855_v31  ;;  %v1441_v27 = vadd.f32 %v1409_v50, %v5222_v29  ;;  %v7857_v29 = vld [vmem:[#allocation9_spill] sm:$0xff]  ;;  %v7865_v32 = vld [vmem:[#allocation7_spill] sm:$0xff] }
 0x130   : > { %v5315_v22 = vmul.f32 %v5303_v49, %v5303_v49  ;;  %vm1003_vm4 = vcmp.gt.f32.partialorder %v971_v11, 0.5  ;;  %1613 = vmatpush.msra.mxu3 %v1468_v60  ;;  %v7858_v18 = vsub.f32 0.0, %v7857_v29  ;;  %v940_v51 = vmul.f32 2.0, %v908_v37 }
 0x131   : > { %v1410_v34 = vmul.f32 %v1378_v39, %v5238_v9  ;;  %v1139_v15 = vmul.f32 -2.5052108e-08, %v5298_v19  ;;  %1529 = vmatpush.msra.mxu0 %v1441_v27  ;;  %v868_v35 = vmul.f32 0.5, %v7859_v10  ;;  %v931_v52 = vmul.f32 2.0, %v899_v45  ;;  %v7867_v27 = vld [vmem:[#allocation30_spill] sm:$0xff]  ;;  %v7868_v45 = vld [vmem:[#allocation8_spill] sm:$0xff] }
 0x132   : > { %v1140_v30 = vmul.f32 -2.5052108e-08, %v5315_v22  ;;  %v5323_v63 = vsel %vm1003_vm4, %v7858_v18, %v7857_v29  ;;  %4277 = vmatmul.msk.f32.vlgmr.msra.gmra.mxu0 %vm1501_vm1, %v5311_v38  ;;  %v972_v25 = vsub.f32 %v4848_v46, %v940_v51  ;;  %v901_v61 = vfloor.f32 %v7860_v16  ;;  %v7862_v46 = vld [vmem:[#allocation27_spill] sm:$0xff]  ;;  %v7884_v16 = vld [vmem:[#allocation13_spill] sm:$0xff] }
 0x133   : > { %v1442_v17 = vadd.f32 %v1410_v34, %v5238_v9  ;;  %v1171_v24 = vadd.f32 2.7557319e-06, %v1139_v15  ;;  %v5331_v4 = vmul.f32 %v5323_v63, %v5323_v63  ;;  %v900_v42 = vfloor.f32 %v868_v35  ;;  %v7870_v35 = vld [vmem:[#allocation22_spill] sm:$0xff] }
 0x134   : > { %v1172_v47 = vadd.f32 2.7557319e-06, %v1140_v30  ;;  %v963_v44 = vsub.f32 %v4808_v56, %v931_v52  ;;  %v902_v2 = vfloor.f32 %v7861_v57  ;;  %vm1004_vm5 = vcmp.gt.f32.partialorder %v972_v25, 0.5 }
 0x135   : > { %1558 = vmatpush.msra.mxu1 %v1442_v17  ;;  %v1203_v41 = vmul.f32 %v1171_v24, %v5298_v19  ;;  %v1131_v9 = vmul.f32 -2.5052108e-08, %v5331_v4  ;;  %v932_v43 = vmul.f32 2.0, %v900_v42  ;;  %v909_v14 = vfloor.f32 %v7862_v46 }
 0x136   : > { %4281 = vmatmul.msk.f32.vlgmr.msra.gmra.mxu1 %vm1501_vm1, %v5311_v38  ;;  %v1204_v40 = vmul.f32 %v1172_v47, %v5315_v22  ;;  %v7864_v59 = vsub.f32 0.0, %v7863_v54  ;;  %vm995_vm6 = vcmp.gt.f32.partialorder %v963_v44, 0.5  ;;  %v7866_v36 = vsub.f32 0.0, %v7865_v32  ;;  %v7871_v44 = vld [vmem:[#allocation39_spill] sm:$0xff] }
 0x137   : > { %v4231_v8 = vadd.f32 -0.0001984127, %v1203_v41  ;;  %v1163_v13 = vadd.f32 2.7557319e-06, %v1131_v9  ;;  %v964_v50 = vsub.f32 %v7859_v10, %v932_v43  ;;  %v5369_v31 = vmul.f32 2.0, %v909_v14 }
 0x138   : > { %v5346_v23 = vsel %vm1004_vm5, %v7864_v59, %v7863_v54  ;;  %v4232_v56 = vadd.f32 -0.0001984127, %v1204_v40  ;;  %v5355_v12 = vsel %vm995_vm6, %v7866_v36, %v7865_v32  ;;  %v910_v60 = vfloor.f32 %v7867_v27  ;;  %v7873_v36 = vld [vmem:[#allocation23_spill] sm:$0xff] }
 0x139   : > { %v5350_v28 = vmul.f32 %v5346_v23, %v5346_v23  ;;  %v1267_v58 = vmul.f32 %v4231_v8, %v5298_v19  ;;  %v1195_v48 = vmul.f32 %v1163_v13, %v5331_v4  ;;  %v5367_v39 = vmul.f32 %v5355_v12, %v5355_v12  ;;  %v5402_v8 = vld [vmem:[%s7668_s3 + $0x10] sm:$0xff] }
 0x13a   : > { %v1268_v3 = vmul.f32 %v4232_v56, %v5315_v22  ;;  %vm996_vm7 = vcmp.gt.f32.partialorder %v964_v50, 0.5  ;;  %v7869_v30 = vsub.f32 0.0, %v7868_v45  ;;  %4278 = vmatmul.msk.f32.gmra.mxu0 %vm1501_vm1, %v5361_v33  ;;  %v973_v17 = vsub.f32 %v7870_v35, %v5369_v31  ;;  %v7872_v13 = vld [vmem:[#allocation41_spill] sm:$0xff] }
 0x13b   : > { %v1132_v11 = vmul.f32 -2.5052108e-08, %v5350_v28  ;;  %v1299_v37 = vadd.f32 0.008333334, %v1267_v58  ;;  %v4223_v34 = vadd.f32 -0.0001984127, %v1195_v48  ;;  %v917_v40 = vfloor.f32 %v7871_v44 }
 0x13c   : > { %v1123_v15 = vmul.f32 -2.5052108e-08, %v5367_v39  ;;  %v5378_v29 = vsel %vm996_vm7, %v7869_v30, %v7868_v45  ;;  %v1300_v18 = vadd.f32 0.008333334, %v1268_v3  ;;  %v5390_v25 = vmul.f32 2.0, %v910_v60 }
 0x13d   : > { %v1164_v51 = vadd.f32 2.7557319e-06, %v1132_v11  ;;  %v5384_v10 = vmul.f32 %v5378_v29, %v5378_v29  ;;  %v1331_v24 = vmul.f32 %v1299_v37, %v5298_v19  ;;  %v1259_v52 = vmul.f32 %v4223_v34, %v5331_v4 }
 0x13e   : > { %v1155_v47 = vadd.f32 2.7557319e-06, %v1123_v15  ;;  %v1332_v42 = vmul.f32 %v1300_v18, %v5315_v22  ;;  %4282 = vmatmul.msk.f32.gmra.mxu1 %vm1501_vm1, %v5361_v33  ;;  %v918_v54 = vfloor.f32 %v7872_v13  ;;  %v974_v50 = vsub.f32 %v7873_v36, %v5390_v25 }
 0x13f   : > { %v1196_v41 = vmul.f32 %v1164_v51, %v5350_v28  ;;  %v1124_v9 = vmul.f32 -2.5052108e-08, %v5384_v10  ;;  %v4263_v43 = vadd.f32 -0.16666667, %v1331_v24  ;;  %v1291_v46 = vadd.f32 0.008333334, %v1259_v52 }
 0x140   : > { %v1187_v14 = vmul.f32 %v1155_v47, %v5367_v39  ;;  %v4264_v59 = vadd.f32 -0.16666667, %v1332_v42  ;;  %v949_v11 = vmul.f32 2.0, %v917_v40  ;;  %v950_v34 = vmul.f32 2.0, %v918_v54 }
 0x141   : > { %v4224_v56 = vadd.f32 -0.0001984127, %v1196_v41  ;;  %v1156_v32 = vadd.f32 2.7557319e-06, %v1124_v9  ;;  %v1395_v58 = vmul.f32 %v4263_v43, %v5298_v19  ;;  %v1323_v48 = vmul.f32 %v1291_v46, %v5331_v4  ;;  %v7874_v19 = vld [vmem:[#allocation35_spill] sm:$0xff] }
 0x142   : > { %v4215_v3 = vadd.f32 -0.0001984127, %v1187_v14  ;;  %v1396_v27 = vmul.f32 %v4264_v59, %v5315_v22  ;;  %4279 = vmatmul.msk.f32.gmra.mxu0 %vm1501_vm1, %v5402_v8  ;;  %v981_v18 = vsub.f32 %v7874_v19, %v949_v11  ;;  %v7875_v22 = vld [vmem:[#allocation36_spill] sm:$0xff]  ;;  %v1149_v44 = vmul.f32 -2.5052108e-08, %v5135_v26  ;;  %v7878_v19 = vld [vmem:[#allocation43_spill] sm:$0xff] }
 0x143   : > { %v1260_v60 = vmul.f32 %v4224_v56, %v5350_v28  ;;  %v1188_v37 = vmul.f32 %v1156_v32, %v5384_v10  ;;  %v1427_v15 = vmul.f32 %v1395_v58, %v5293_v0  ;;  %v4255_v45 = vadd.f32 -0.16666667, %v1323_v48  ;;  %v7876_v32 = vld [vmem:[#allocation42_spill] sm:$0xff] }
 0x144   : > { %v1251_v30 = vmul.f32 %v4215_v3, %v5367_v39  ;;  %v1428_v51 = vmul.f32 %v1396_v27, %v5303_v49  ;;  %v982_v47 = vsub.f32 %v7875_v22, %v950_v34  ;;  %v1150_v14 = vmul.f32 -2.5052108e-08, %v5148_v21 }
 0x145   : > { %v1292_v24 = vadd.f32 0.008333334, %v1260_v60  ;;  %v4216_v52 = vadd.f32 -0.0001984127, %v1188_v37  ;;  %v1459_v42 = vadd.f32 %v1427_v15, %v5293_v0  ;;  %v1387_v41 = vmul.f32 %v4255_v45, %v5331_v4  ;;  %v5433_v4 = vld [vmem:[%s7668_s3 + $0x18] sm:$0xff] }
 0x146   : > { %v1283_v9 = vadd.f32 0.008333334, %v1251_v30  ;;  %v1460_v40 = vadd.f32 %v1428_v51, %v5303_v49  ;;  %4283 = vmatmul.msk.f32.gmra.mxu1 %vm1501_vm1, %v5402_v8  ;;  %v1181_v49 = vadd.f32 2.7557319e-06, %v1149_v44  ;;  %vm1013_vm8 = vcmp.gt.f32.partialorder %v981_v18, 0.5 }
 0x147   : > { %v1324_v43 = vmul.f32 %v1292_v24, %v5350_v28  ;;  %v1252_v46 = vmul.f32 %v4216_v52, %v5384_v10  ;;  %1585 = vmatpush.msra.mxu2 %v1459_v42  ;;  %v1419_v13 = vmul.f32 %v1387_v41, %v5323_v63  ;;  %v1182_v56 = vadd.f32 2.7557319e-06, %v1150_v14 }
 0x148   : > { %v1315_v0 = vmul.f32 %v1283_v9, %v5367_v39  ;;  %1614 = vmatpush.msra.mxu3 %v1460_v40  ;;  %v7877_v58 = vsub.f32 0.0, %v7876_v32  ;;  %v1213_v27 = vmul.f32 %v1181_v49, %v5135_v26  ;;  %vm1014_vm9 = vcmp.gt.f32.partialorder %v982_v47, 0.5 }
 0x149   : > { %v4256_v54 = vadd.f32 -0.16666667, %v1324_v43  ;;  %v1284_v59 = vadd.f32 0.008333334, %v1252_v46  ;;  %v1451_v3 = vadd.f32 %v1419_v13, %v5323_v63  ;;  %v1214_v15 = vmul.f32 %v1182_v56, %v5148_v21  ;;  %v7880_v13 = vld [vmem:[#allocation29_spill] sm:$0xff] }
 0x14a   : > { %v5438_v48 = vsel %vm1013_vm8, %v7877_v58, %v7876_v32  ;;  %v4247_v11 = vadd.f32 -0.16666667, %v1315_v0  ;;  %4280 = vmatmul.msk.f32.gmra.mxu0 %vm1501_vm1, %v5433_v4  ;;  %v4241_v63 = vadd.f32 -0.0001984127, %v1213_v27  ;;  %v7879_v18 = vsub.f32 0.0, %v7878_v19  ;;  %v7882_v27 = vld [vmem:[#allocation31_spill] sm:$0xff] }
 0x14b   : > { %v5444_v60 = vmul.f32 %v5438_v48, %v5438_v48  ;;  %v1388_v37 = vmul.f32 %v4256_v54, %v5350_v28  ;;  %v1316_v34 = vmul.f32 %v1284_v59, %v5384_v10  ;;  %1586 = vmatpush.msra.mxu2 %v1451_v3  ;;  %v4242_v52 = vadd.f32 -0.0001984127, %v1214_v15 }
 0x14c   : > { %v1379_v45 = vmul.f32 %v4247_v11, %v5367_v39  ;;  %v5456_v51 = vsel %vm1014_vm9, %v7879_v18, %v7878_v19  ;;  %v1277_v47 = vmul.f32 %v4241_v63, %v5135_v26  ;;  %vm1005_vm10 = vcmp.gt.f32.partialorder %v973_v17, 0.5 }
 0x14d   : > { %v1141_v30 = vmul.f32 -2.5052108e-08, %v5444_v60  ;;  %v1420_v28 = vmul.f32 %v1388_v37, %v5346_v23  ;;  %v4248_v24 = vadd.f32 -0.16666667, %v1316_v34  ;;  %v5461_v22 = vmul.f32 %v5456_v51, %v5456_v51 }
 0x14e   : > { %v1411_v39 = vmul.f32 %v1379_v45, %v5355_v12  ;;  %4284 = vmatmul.msk.f32.gmra.mxu1 %vm1501_vm1, %v5433_v4  ;;  %v1278_v44 = vmul.f32 %v4242_v52, %v5148_v21  ;;  %v1309_v46 = vadd.f32 0.008333334, %v1277_v47  ;;  %v7881_v31 = vsub.f32 0.0, %v7880_v13 }
 0x14f   : > { %v1173_v42 = vadd.f32 2.7557319e-06, %v1141_v30  ;;  %v1452_v41 = vadd.f32 %v1420_v28, %v5346_v23  ;;  %v1380_v9 = vmul.f32 %v4248_v24, %v5384_v10  ;;  %v1142_v40 = vmul.f32 -2.5052108e-08, %v5461_v22 }
 0x150   : > { %v1443_v43 = vadd.f32 %v1411_v39, %v5355_v12  ;;  %v5479_v35 = vsel %vm1005_vm10, %v7881_v31, %v7880_v13  ;;  %v1310_v10 = vadd.f32 0.008333334, %v1278_v44  ;;  %v1341_v12 = vmul.f32 %v1309_v46, %v5135_v26  ;;  %v7885_v39 = vld [vmem:[#allocation16_spill] sm:$0xff] }
 0x151   : > { %v1205_v14 = vmul.f32 %v1173_v42, %v5444_v60  ;;  %1615 = vmatpush.msra.mxu3 %v1452_v41  ;;  %v1412_v23 = vmul.f32 %v1380_v9, %v5378_v29  ;;  %v1174_v17 = vadd.f32 2.7557319e-06, %v1142_v40  ;;  %v5484_v0 = vmul.f32 %v5479_v35, %v5479_v35  ;;  %v7887_v42 = vld [vmem:[#allocation14_spill] sm:$0xff] }
 0x152   : > { %1587 = vmatpush.msra.mxu2 %v1443_v43  ;;  %vm1006_vm11 = vcmp.gt.f32.partialorder %v974_v50, 0.5  ;;  %v933_v54 = vmul.f32 2.0, %v901_v61  ;;  %v1342_v56 = vmul.f32 %v1310_v10, %v5148_v21  ;;  %v4273_v3 = vadd.f32 -0.16666667, %v1341_v12  ;;  %v7888_v10 = vld [vmem:[#allocation20_spill] sm:$0xff] }
 0x153   : > { %v4233_v49 = vadd.f32 -0.0001984127, %v1205_v14  ;;  %v1444_v59 = vadd.f32 %v1412_v23, %v5378_v29  ;;  %4285 = vmatmul.msk.f32.vlgmr.msra.gmra.mxu2 %vm1501_vm1, %v5311_v38  ;;  %v1206_v32 = vmul.f32 %v1174_v17, %v5461_v22  ;;  %v1133_v58 = vmul.f32 -2.5052108e-08, %v5484_v0 }
 0x154   : > { %v7883_v25 = vsub.f32 0.0, %v7882_v27  ;;  %v965_v61 = vsub.f32 %v7884_v16, %v933_v54  ;;  %v4274_v29 = vadd.f32 -0.16666667, %v1342_v56  ;;  %v1405_v15 = vmul.f32 %v4273_v3, %v5135_v26 }
 0x155   : > { %v1269_v11 = vmul.f32 %v4233_v49, %v5444_v60  ;;  %1616 = vmatpush.msra.mxu3 %v1444_v59  ;;  %v4234_v50 = vadd.f32 -0.0001984127, %v1206_v32  ;;  %v1165_v37 = vadd.f32 2.7557319e-06, %v1133_v58  ;;  %v934_v63 = vmul.f32 2.0, %v902_v2 }
 0x156   : > { %v5502_v36 = vsel %vm1006_vm11, %v7883_v25, %v7882_v27  ;;  %4289 = vmatmul.msk.f32.vlgmr.msra.gmra.mxu3 %vm1501_vm1, %v5311_v38  ;;  %vm997_vm12 = vcmp.gt.f32.partialorder %v965_v61, 0.5  ;;  %v1406_v30 = vmul.f32 %v4274_v29, %v5148_v21  ;;  %v1437_v24 = vmul.f32 %v1405_v15, %v5130_v5 }
 0x157   : > { %v5507_v34 = vmul.f32 %v5502_v36, %v5502_v36  ;;  %v1301_v45 = vadd.f32 0.008333334, %v1269_v11  ;;  %v1270_v19 = vmul.f32 %v4234_v50, %v5461_v22  ;;  %v1197_v18 = vmul.f32 %v1165_v37, %v5484_v0 }
 0x158   : > { %v7886_v26 = vsub.f32 0.0, %v7885_v39  ;;  %v966_v57 = vsub.f32 %v7887_v42, %v934_v63  ;;  %v1438_v2 = vmul.f32 %v1406_v30, %v5137_v1  ;;  %v1469_v44 = vadd.f32 %v1437_v24, %v5130_v5 }
 0x159   : > { %v1134_v28 = vmul.f32 -2.5052108e-08, %v5507_v34  ;;  %v1333_v52 = vmul.f32 %v1301_v45, %v5444_v60  ;;  %v1302_v21 = vadd.f32 0.008333334, %v1270_v19  ;;  %v4225_v41 = vadd.f32 -0.0001984127, %v1197_v18 }
 0x15a   : > { %v5523_v47 = vsel %vm997_vm12, %v7886_v26, %v7885_v39  ;;  %vm998_vm13 = vcmp.gt.f32.partialorder %v966_v57, 0.5  ;;  %v1470_v46 = vadd.f32 %v1438_v2, %v5137_v1  ;;  %1642 = vmatpush.msrb.mxu0 %v1469_v44  ;;  %v7889_v17 = vsub.f32 0.0, %v7888_v10 }
 0x15b   : > { %v1166_v9 = vadd.f32 2.7557319e-06, %v1134_v28  ;;  %v4265_v40 = vadd.f32 -0.16666667, %v1333_v52  ;;  %v5530_v43 = vmul.f32 %v5523_v47, %v5523_v47  ;;  %4286 = vmatmul.msk.f32.gmra.mxu2 %vm1501_vm1, %v5361_v33  ;;  %v1334_v14 = vmul.f32 %v1302_v21, %v5461_v22  ;;  %v7890_v28 = vld [vmem:[#allocation45_spill] sm:$0xff] }
 0x15c   : > { %v1261_v13 = vmul.f32 %v4225_v41, %v5484_v0  ;;  %v5543_v12 = vsel %vm998_vm13, %v7889_v17, %v7888_v10  ;;  %v1151_v49 = vmul.f32 -2.5052108e-08, %v5154_v6  ;;  %1671 = vmatpush.msrb.mxu1 %v1470_v46  ;;  %v1152_v3 = vmul.f32 -2.5052108e-08, %v5266_v20 }
 0x15d   : > { %v1198_v31 = vmul.f32 %v1166_v9, %v5507_v34  ;;  %v1397_v5 = vmul.f32 %v4265_v40, %v5444_v60  ;;  %v1125_v23 = vmul.f32 -2.5052108e-08, %v5530_v43  ;;  %v4266_v1 = vadd.f32 -0.16666667, %v1334_v14  ;;  %v7891_v40 = vld [vmem:[#allocation47_spill] sm:$0xff] }
 0x15e   : > { %v1293_v54 = vadd.f32 0.008333334, %v1261_v13  ;;  %v5548_v56 = vmul.f32 %v5543_v12, %v5543_v12  ;;  %4290 = vmatmul.msk.f32.gmra.mxu3 %vm1501_vm1, %v5361_v33  ;;  %v1183_v58 = vadd.f32 2.7557319e-06, %v1151_v49  ;;  %v1184_v37 = vadd.f32 2.7557319e-06, %v1152_v3 }
 0x15f   : > { %v4226_v59 = vadd.f32 -0.0001984127, %v1198_v31  ;;  %v1429_v60 = vmul.f32 %v1397_v5, %v5438_v48  ;;  %v1157_v32 = vadd.f32 2.7557319e-06, %v1125_v23  ;;  %v1398_v11 = vmul.f32 %v4266_v1, %v5461_v22  ;;  %v7892_v13 = vld [vmem:[#allocation40_spill] sm:$0xff] }
 0x160   : > { %v1325_v27 = vmul.f32 %v1293_v54, %v5484_v0  ;;  %v1126_v16 = vmul.f32 -2.5052108e-08, %v5548_v56  ;;  %v1215_v50 = vmul.f32 %v1183_v58, %v5154_v6  ;;  %v1216_v18 = vmul.f32 %v1184_v37, %v5266_v20 }
 0x161   : > { %v1262_v25 = vmul.f32 %v4226_v59, %v5507_v34  ;;  %v1461_v61 = vadd.f32 %v1429_v60, %v5438_v48  ;;  %v1189_v29 = vmul.f32 %v1157_v32, %v5530_v43  ;;  %v1430_v15 = vmul.f32 %v1398_v11, %v5456_v51  ;;  %v7893_v32 = vld [vmem:[#allocation46_spill] sm:$0xff] }
 0x162   : > { %v4257_v45 = vadd.f32 -0.16666667, %v1325_v27  ;;  %v1158_v30 = vadd.f32 2.7557319e-06, %v1126_v16  ;;  %v4243_v19 = vadd.f32 -0.0001984127, %v1215_v50  ;;  %v919_v24 = vfloor.f32 %v7890_v28 }
 0x163   : > { %v1294_v63 = vadd.f32 0.008333334, %v1262_v25  ;;  %1643 = vmatpush.msrb.mxu0 %v1461_v61  ;;  %v4217_v22 = vadd.f32 -0.0001984127, %v1189_v29  ;;  %4287 = vmatmul.msk.f32.gmra.mxu2 %vm1501_vm1, %v5402_v8  ;;  %v1462_v48 = vadd.f32 %v1430_v15, %v5456_v51  ;;  %v4244_v2 = vadd.f32 -0.0001984127, %v1216_v18 }
 0x164   : > { %v1389_v52 = vmul.f32 %v4257_v45, %v5484_v0  ;;  %v1190_v26 = vmul.f32 %v1158_v30, %v5548_v56  ;;  %v1279_v57 = vmul.f32 %v4243_v19, %v5154_v6  ;;  %v951_v21 = vmul.f32 2.0, %v919_v24  ;;  %v7896_v50 = vld [vmem:[#allocation33_spill] sm:$0xff] }
 0x165   : > { %v1326_v39 = vmul.f32 %v1294_v63, %v5507_v34  ;;  %v1253_v42 = vmul.f32 %v4217_v22, %v5530_v43  ;;  %1672 = vmatpush.msrb.mxu1 %v1462_v48  ;;  %v920_v46 = vfloor.f32 %v7891_v40  ;;  %v1280_v14 = vmul.f32 %v4244_v2, %v5266_v20  ;;  %v7897_v18 = vld [vmem:[#allocation37_spill] sm:$0xff] }
 0x166   : > { %v1421_v41 = vmul.f32 %v1389_v52, %v5479_v35  ;;  %v4218_v44 = vadd.f32 -0.0001984127, %v1190_v26  ;;  %4291 = vmatmul.msk.f32.gmra.mxu3 %vm1501_vm1, %v5402_v8  ;;  %v1311_v0 = vadd.f32 0.008333334, %v1279_v57  ;;  %v983_v31 = vsub.f32 %v7892_v13, %v951_v21 }
 0x167   : > { %v4258_v9 = vadd.f32 -0.16666667, %v1326_v39  ;;  %v1285_v51 = vadd.f32 0.008333334, %v1253_v42  ;;  %v952_v17 = vmul.f32 2.0, %v920_v46  ;;  %v7894_v58 = vsub.f32 0.0, %v7893_v32 }
 0x168   : > { %v1453_v5 = vadd.f32 %v1421_v41, %v5479_v35  ;;  %v1254_v10 = vmul.f32 %v4218_v44, %v5548_v56  ;;  %v1343_v1 = vmul.f32 %v1311_v0, %v5154_v6  ;;  %v1312_v54 = vadd.f32 0.008333334, %v1280_v14  ;;  %v7895_v35 = vld [vmem:[#allocation44_spill] sm:$0xff]  ;;  %v7900_v46 = vld [vmem:[#allocation34_spill] sm:$0xff] }
 0x169   : > { %v1390_v23 = vmul.f32 %v4258_v9, %v5507_v34  ;;  %v1317_v49 = vmul.f32 %v1285_v51, %v5530_v43  ;;  %vm1015_vm14 = vcmp.gt.f32.partialorder %v983_v31, 0.5  ;;  %v984_v34 = vsub.f32 %v7895_v35, %v952_v17  ;;  %v7902_v51 = vld [vmem:[#allocation21_spill] sm:$0xff]  ;;  %v7907_v35 = vld [vmem:[#allocation26_spill] sm:$0xff] }
 0x16a   : > { %1644 = vmatpush.msrb.mxu0 %v1453_v5  ;;  %v1286_v60 = vadd.f32 0.008333334, %v1254_v10  ;;  %v5587_v3 = vsel %vm1015_vm14, %v7894_v58, %v7893_v32  ;;  %v4275_v27 = vadd.f32 -0.16666667, %v1343_v1  ;;  %v1344_v25 = vmul.f32 %v1312_v54, %v5266_v20  ;;  %v7903_v5 = vld [vmem:[#allocation38_spill] sm:$0xff]  ;;  %v7906_v1 = vld [vmem:[#allocation24_spill] sm:$0xff] }
 0x16b   : > { %v1422_v59 = vmul.f32 %v1390_v23, %v5502_v36  ;;  %v4249_v11 = vadd.f32 -0.16666667, %v1317_v49  ;;  %v5593_v16 = vmul.f32 %v5587_v3, %v5587_v3  ;;  %4288 = vmatmul.msk.f32.gmra.mxu2 %vm1501_vm1, %v5433_v4  ;;  %vm1016_vm15 = vcmp.gt.f32.partialorder %v984_v34, 0.5  ;;  %v7905_v49 = vld [vmem:[#allocation25_spill] sm:$0xff] }
 0x16c   : > { %v1318_v29 = vmul.f32 %v1286_v60, %v5548_v56  ;;  %v911_v37 = vfloor.f32 %v7896_v50  ;;  %v1407_v45 = vmul.f32 %v4275_v27, %v5154_v6  ;;  %v4276_v63 = vadd.f32 -0.16666667, %v1344_v25  ;;  %v1480_v58 = vld [vmem:[%s7669_s4 + $0x18] sm:$0xff]  ;;  %v7908_v27 = vld [vmem:[#allocation15_spill] sm:$0xff] }
 0x16d   : > { %v1454_v61 = vadd.f32 %v1422_v59, %v5502_v36  ;;  %v1381_v15 = vmul.f32 %v4249_v11, %v5530_v43  ;;  %v1143_v30 = vmul.f32 -2.5052108e-08, %v5593_v16  ;;  %v5606_v36 = vsel %vm1016_vm15, %v1048_v55, %v5126_v7  ;;  %v7898_v7 = vld [vmem:[#allocation28_spill] sm:$0xff]  ;;  %1498 = vperm.xlu2 %4539, %v1480_v58  }
 0x16e   : > { %v4250_v22 = vadd.f32 -0.16666667, %v1318_v29  ;;  %v943_v19 = vmul.f32 2.0, %v911_v37  ;;  %v912_v28 = vfloor.f32 %v7897_v18  ;;  %4292 = vmatmul.msk.f32.gmra.mxu3 %vm1501_vm1, %v5433_v4  ;;  %v1439_v6 = vmul.f32 %v1407_v45, %v5143_v53  ;;  %v7909_v45 = vld [vmem:[#allocation19_spill] sm:$0xff] }
 0x16f   : > { %1673 = vmatpush.msrb.mxu1 %v1454_v61  ;;  %v1413_v43 = vmul.f32 %v1381_v15, %v5523_v47  ;;  %v1408_v24 = vmul.f32 %v4276_v63, %v5266_v20  ;;  %v1175_v48 = vadd.f32 2.7557319e-06, %v1143_v30  ;;  %v5617_v39 = vmul.f32 %v5606_v36, %v5606_v36 }
 0x170   : > { %v1382_v52 = vmul.f32 %v4250_v22, %v5548_v56  ;;  %v975_v55 = vsub.f32 %v7898_v7, %v943_v19  ;;  %v944_v26 = vmul.f32 2.0, %v912_v28  ;;  %v1471_v57 = vadd.f32 %v1439_v6, %v5143_v53  ;;  %v7899_v56 = vld [vmem:[#allocation32_spill] sm:$0xff] }
 0x171   : > { %v1445_v42 = vadd.f32 %v1413_v43, %v5523_v47  ;;  %v1440_v2 = vmul.f32 %v1408_v24, %v5158_v62  ;;  %v1207_v21 = vmul.f32 %v1175_v48, %v5593_v16  ;;  %v1144_v41 = vmul.f32 -2.5052108e-08, %v5617_v39 }
 0x172   : > { %v1414_v20 = vmul.f32 %v1382_v52, %v5543_v12  ;;  %vm1007_vm2 = vcmp.gt.f32.partialorder %v975_v55, 0.5  ;;  %v976_v9 = vsub.f32 %v7899_v56, %v944_v26  ;;  %1700 = vmatpush.msrb.mxu2 %v1471_v57  ;;  %v7901_v47 = vsub.f32 0.0, %v7900_v46 }
 0x173   : > { %1645 = vmatpush.msrb.mxu0 %v1445_v42  ;;  %v1472_v44 = vadd.f32 %v1440_v2, %v5158_v62  ;;  %v4235_v40 = vadd.f32 -0.0001984127, %v1207_v21  ;;  %v903_v0 = vfloor.f32 %v7902_v51  ;;  %v1176_v13 = vadd.f32 2.7557319e-06, %v1144_v41  ;;  %v1479_v21 = vld [vmem:[%s7669_s4 + $0x10] sm:$0xff] }
 0x174   : > { %v5631_v53 = vsel %vm1007_vm2, %v7901_v47, %v7900_v46  ;;  %v1446_v14 = vadd.f32 %v1414_v20, %v5543_v12  ;;  %4293 = vmatmul.msk.f32.vlgmr.msrb.gmra.mxu0 %vm1501_vm1, %v5311_v38  ;;  %vm1008_vm3 = vcmp.gt.f32.partialorder %v976_v9, 0.5  ;;  %v7904_v23 = vsub.f32 0.0, %v7903_v5 }
 0x175   : > { %v5639_v31 = vmul.f32 %v5631_v53, %v5631_v53  ;;  %1729 = vmatpush.msrb.mxu3 %v1472_v44  ;;  %v1271_v62 = vmul.f32 %v4235_v40, %v5593_v16  ;;  %v935_v17 = vmul.f32 2.0, %v903_v0  ;;  %v904_v12 = vfloor.f32 %v7905_v49  ;;  %1493 = vperm.xlu2 %4539, %v1479_v21  }
 0x176   : > { %v5645_v10 = vsel %vm1008_vm3, %v7904_v23, %v7903_v5  ;;  %v1031_v54 = vsub.f32 0.0, %v7906_v1  ;;  %1674 = vmatpush.msrb.mxu1 %v1446_v14  ;;  %v1208_v59 = vmul.f32 %v1176_v13, %v5617_v39  ;;  %v1032_v34 = vsub.f32 0.0, %v7907_v35 }
 0x177   : > { %v1135_v60 = vmul.f32 -2.5052108e-08, %v5639_v31  ;;  %v5653_v32 = vmul.f32 %v5645_v10, %v5645_v10  ;;  %4297 = vmatmul.msk.f32.vlgmr.msrb.gmra.mxu1 %vm1501_vm1, %v5311_v38  ;;  %v1303_v11 = vadd.f32 0.008333334, %v1271_v62  ;;  %v967_v25 = vsub.f32 %v7908_v27, %v935_v17 }
 0x178   : > { %v936_v61 = vmul.f32 2.0, %v904_v12  ;;  %v4236_v29 = vadd.f32 -0.0001984127, %v1208_v59 }
 0x179   : > { %v1167_v50 = vadd.f32 2.7557319e-06, %v1135_v60  ;;  %v1136_v37 = vmul.f32 -2.5052108e-08, %v5653_v32  ;;  %v1335_v15 = vmul.f32 %v1303_v11, %v5593_v16  ;;  %vm999_vm4 = vcmp.gt.f32.partialorder %v967_v25, 0.5 }
 0x17a   : > { %v968_v63 = vsub.f32 %v7909_v45, %v936_v61  ;;  %v1272_v30 = vmul.f32 %v4236_v29, %v5617_v39  ;;  %v5668_v18 = vsel %vm999_vm4, %v1031_v54, %v7906_v1  ;;  %v2582_v45 = vld [vmem:[%s7671_s6] sm:$0xff] }
 0x17b   : > { %v1199_v22 = vmul.f32 %v1167_v50, %v5639_v31  ;;  %v1168_v19 = vadd.f32 2.7557319e-06, %v1136_v37  ;;  %v4267_v28 = vadd.f32 -0.16666667, %v1335_v15  ;;  %v1095_v43 = vmul.f32 %v5668_v18, %v5668_v18 }
 0x17c   : > { %vm1000_vm5 = vcmp.gt.f32.partialorder %v968_v63, 0.5  ;;  %v1304_v6 = vadd.f32 0.008333334, %v1272_v30  ;;  %4294 = vmatmul.msk.f32.gmra.mxu0 %vm1501_vm1, %v5361_v33 }
 0x17d   : > { %v4227_v24 = vadd.f32 -0.0001984127, %v1199_v22  ;;  %v1200_v48 = vmul.f32 %v1168_v19, %v5653_v32  ;;  %v1064_v52 = vsel %vm1000_vm5, %v1032_v34, %v7907_v35  ;;  %v1399_v7 = vmul.f32 %v4267_v28, %v5593_v16  ;;  %v5730_v19 = vpop.permute.xlu1 %1483 }
 0x17e   : > { %v1127_v55 = vmul.f32 -2.5052108e-08, %v1095_v43  ;;  %v1096_v26 = vmul.f32 %v1064_v52, %v1064_v52  ;;  %v1336_v42 = vmul.f32 %v1304_v6, %v5617_v39 }
 0x17f   : > { %v1263_v57 = vmul.f32 %v4227_v24, %v5639_v31  ;;  %v4228_v2 = vadd.f32 -0.0001984127, %v1200_v48  ;;  %v1431_v20 = vmul.f32 %v1399_v7, %v5587_v3  ;;  %4298 = vmatmul.msk.f32.gmra.mxu1 %vm1501_vm1, %v5361_v33 }
 0x180   : > { %v1159_v41 = vadd.f32 2.7557319e-06, %v1127_v55  ;;  %v1128_v56 = vmul.f32 -2.5052108e-08, %v1096_v26  ;;  %v4268_v16 = vadd.f32 -0.16666667, %v1336_v42 }
 0x181   : > { %v1295_v9 = vadd.f32 0.008333334, %v1263_v57  ;;  %v1264_v44 = vmul.f32 %v4228_v2, %v5653_v32  ;;  %v1463_v40 = vadd.f32 %v1431_v20, %v5587_v3 }
 0x182   : > { %v1191_v46 = vmul.f32 %v1159_v41, %v1095_v43  ;;  %v1160_v47 = vadd.f32 2.7557319e-06, %v1128_v56  ;;  %v1400_v51 = vmul.f32 %v4268_v16, %v5617_v39 }
 0x183   : > { %v1327_v0 = vmul.f32 %v1295_v9, %v5639_v31  ;;  %v1296_v14 = vadd.f32 0.008333334, %v1264_v44  ;;  %1701 = vmatpush.msrb.mxu2 %v1463_v40 }
 0x184   : > { %v4219_v13 = vadd.f32 -0.0001984127, %v1191_v46  ;;  %v1192_v62 = vmul.f32 %v1160_v47, %v1096_v26  ;;  %v1432_v5 = vmul.f32 %v1400_v51, %v5606_v36  ;;  %4295 = vmatmul.msk.f32.gmra.mxu0 %vm1501_vm1, %v5402_v8 }
 0x185   : > { %v4259_v23 = vadd.f32 -0.16666667, %v1327_v0  ;;  %v1328_v17 = vmul.f32 %v1296_v14, %v5653_v32 }
 0x186   : > { %v1255_v49 = vmul.f32 %v4219_v13, %v1095_v43  ;;  %v4220_v3 = vadd.f32 -0.0001984127, %v1192_v62  ;;  %v1464_v12 = vadd.f32 %v1432_v5, %v5606_v36 }
 0x187   : > { %v1391_v39 = vmul.f32 %v4259_v23, %v5639_v31  ;;  %v4260_v1 = vadd.f32 -0.16666667, %v1328_v17  ;;  %4299 = vmatmul.msk.f32.gmra.mxu1 %vm1501_vm1, %v5402_v8 }
 0x188   : > { %v1287_v54 = vadd.f32 0.008333334, %v1255_v49  ;;  %v1256_v59 = vmul.f32 %v4220_v3, %v1096_v26  ;;  %1730 = vmatpush.msrb.mxu3 %v1464_v12 }
 0x189   : > { %v1423_v60 = vmul.f32 %v1391_v39, %v5631_v53  ;;  %v1392_v58 = vmul.f32 %v4260_v1, %v5653_v32  ;;  %v2585_v32 = vld [vmem:[%s7671_s6 + $0x18] sm:$0xff] }
 0x18a   : > { %v1319_v35 = vmul.f32 %v1287_v54, %v1095_v43  ;;  %v1288_v34 = vadd.f32 0.008333334, %v1256_v59  ;;  %2603 = vperm.xlu2 %4539, %v2585_v32  }
 0x18b   : > { %v1455_v11 = vadd.f32 %v1423_v60, %v5631_v53  ;;  %v1424_v27 = vmul.f32 %v1392_v58, %v5645_v10 }
 0x18c   : > { %v4251_v36 = vadd.f32 -0.16666667, %v1319_v35  ;;  %v1320_v25 = vmul.f32 %v1288_v34, %v1096_v26  ;;  %4296 = vmatmul.msk.f32.gmra.mxu0 %vm1501_vm1, %v5433_v4 }
 0x18d   : > { %1702 = vmatpush.msrb.mxu2 %v1455_v11  ;;  %v1456_v31 = vadd.f32 %v1424_v27, %v5645_v10 }
 0x18e   : > { %v1383_v61 = vmul.f32 %v4251_v36, %v1095_v43  ;;  %v4252_v29 = vadd.f32 -0.16666667, %v1320_v25  ;;  %v5734_v43 = vpop.permute.xlu0 %1488 }
 0x18f   : > { %1731 = vmatpush.msrb.mxu3 %v1456_v31  ;;  %4300 = vmatmul.msk.f32.gmra.mxu1 %vm1501_vm1, %v5433_v4 }
 0x190   : > { %v1415_v50 = vmul.f32 %v1383_v61, %v5668_v18  ;;  %v1384_v53 = vmul.f32 %v4252_v29, %v1096_v26 }
 0x192   : > { %v1447_v37 = vadd.f32 %v1415_v50, %v5668_v18  ;;  %v1416_v10 = vmul.f32 %v1384_v53, %v1064_v52  ;;  %2588 = vperm.xlu2 %4539, %v2582_v45  }
 0x194   : > { %1703 = vmatpush.msrb.mxu2 %v1447_v37  ;;  %v1448_v15 = vadd.f32 %v1416_v10, %v1064_v52 }
 0x195   : > { %4301 = vmatmul.msk.f32.vlgmr.msrb.gmra.mxu2 %vm1501_vm1, %v5311_v38 }
 0x196   : > { %1732 = vmatpush.msrb.mxu3 %v1448_v15 }
 0x197   : > { %4305 = vmatmul.msk.f32.vlgmr.msrb.gmra.mxu3 %vm1501_vm1, %v5311_v38 }
 0x19d   : > { %4302 = vmatmul.msk.f32.gmra.mxu2 %vm1501_vm1, %v5361_v33 }
 0x19f   : > { %4306 = vmatmul.msk.f32.gmra.mxu3 %vm1501_vm1, %v5361_v33 }
 0x1a5   : > { %4303 = vmatmul.msk.f32.gmra.mxu2 %vm1501_vm1, %v5402_v8 }
 0x1a7   : > { %4307 = vmatmul.msk.f32.gmra.mxu3 %vm1501_vm1, %v5402_v8 }
 0x1ad   : > { %4304 = vmatmul.msk.f32.gmra.mxu2 %vm1501_vm1, %v5433_v4 }
 0x1af   : > { %4308 = vmatmul.msk.f32.gmra.mxu3 %vm1501_vm1, %v5433_v4  ;;  %v1531_v38 = vpop.f32.mrf.mxu0 }
 0x1b0   : > { %v1532_v33 = vadd.f32 %v1531_v38, %v5730_v19 }
 0x1b2   : > { %v1746_v18 = vmul.f32 0.31830987, %v1532_v33 }
 0x1b3   : > { %v1560_v63 = vpop.f32.mrf.mxu1 }
 0x1b4   : > { %v1561_v28 = vadd.f32 %v1560_v63, %v5730_v19  ;;  %v1778_v24 = vadd.f32 0.5, %v1746_v18 }
 0x1b6   : > { %v1747_v4 = vmul.f32 0.31830987, %v1561_v28  ;;  %v5741_v26 = vfloor.f32 %v1778_v24 }
 0x1b7   : > { %v1534_v30 = vpop.f32.mrf.mxu0 }
 0x1b8   : > { %v1535_v8 = vadd.f32 %v1534_v30, %v5734_v43  ;;  %v1779_v42 = vadd.f32 0.5, %v1747_v4  ;;  %v1842_v21 = vmul.f32 3.140625, %v5741_v26  ;;  %v1906_v13 = vmul.f32 0.0009676536, %v5741_v26 }
 0x1b9   : > { %v5770_v39 = vmul.f32 0.5, %v5741_v26 }
 0x1ba   : > { %v1754_v7 = vmul.f32 0.31830987, %v1535_v8  ;;  %v5744_v20 = vfloor.f32 %v1779_v42  ;;  %v1874_v47 = vsub.f32 %v1532_v33, %v1842_v21 }
 0x1bb   : > { %v1563_v22 = vpop.f32.mrf.mxu1 }
 0x1bc   : > { %v5738_v6 = vadd.f32 %v1563_v22, %v5734_v43  ;;  %v1786_v57 = vadd.f32 0.5, %v1754_v7  ;;  %v1843_v51 = vmul.f32 3.140625, %v5744_v20  ;;  %v5767_v12 = vsub.f32 %v1874_v47, %v1906_v13 }
 0x1bd   : > { %v1907_v54 = vmul.f32 0.0009676536, %v5744_v20  ;;  %v5803_v33 = vmul.f32 0.5, %v5744_v20 }
 0x1be   : > { %v1755_v55 = vmul.f32 0.31830987, %v5738_v6  ;;  %v5748_v56 = vfloor.f32 %v1786_v57  ;;  %v1875_v1 = vsub.f32 %v1561_v28, %v1843_v51 }
 0x1bf   : > { %v1537_v48 = vpop.f32.mrf.mxu0 }
 0x1c0   : > { %v1787_v2 = vadd.f32 0.5, %v1755_v55  ;;  %v1850_v62 = vmul.f32 3.140625, %v5748_v56  ;;  %v1914_v36 = vmul.f32 0.0009676536, %v5748_v56  ;;  %v5793_v53 = vsub.f32 %v1875_v1, %v1907_v54 }
 0x1c2   : > { %v5750_v16 = vfloor.f32 %v1787_v2  ;;  %v1882_v27 = vsub.f32 %v1535_v8, %v1850_v62 }
 0x1c3   : > { %v1566_v52 = vpop.f32.mrf.mxu1 }
 0x1c4   : > { %v1851_v5 = vmul.f32 3.140625, %v5750_v16  ;;  %v1915_v37 = vmul.f32 0.0009676536, %v5750_v16  ;;  %v5805_v18 = vsub.f32 %v1882_v27, %v1914_v36  ;;  %v5828_v51 = vmul.f32 0.5, %v5750_v16 }
 0x1c6   : > { %v1883_v25 = vsub.f32 %v5738_v6, %v1851_v5  ;;  %v5808_v6 = vmul.f32 0.5, %v5748_v56 }
 0x1c7   : > { %v5746_v41 = vpop.permute.xlu2 %1498  ;;  %v1540_v9 = vpop.f32.mrf.mxu0 }
 0x1c8   : > { %v5753_v40 = vadd.f32 %v1540_v9, %v5746_v41  ;;  %v5810_v24 = vsub.f32 %v1883_v25, %v1915_v37 }
 0x1ca   : > { %v1770_v0 = vmul.f32 0.31830987, %v5753_v40 }
 0x1cb   : > { %v1569_v44 = vpop.f32.mrf.mxu1 }
 0x1cc   : > { %v5756_v46 = vadd.f32 %v1569_v44, %v5746_v41  ;;  %v1802_v49 = vadd.f32 0.5, %v1770_v0 }
 0x1ce   : > { %v1771_v14 = vmul.f32 0.31830987, %v5756_v46  ;;  %v5782_v11 = vfloor.f32 %v1802_v49 }
 0x1cf   : > { %v5773_v59 = vpop.permute.xlu2 %1493 }
 0x1d0   : > { %v1803_v3 = vadd.f32 0.5, %v1771_v14  ;;  %v5777_v35 = vadd.f32 %v1537_v48, %v5773_v59  ;;  %v5780_v34 = vadd.f32 %v1566_v52, %v5773_v59  ;;  %v1866_v15 = vmul.f32 3.140625, %v5782_v11 }
 0x1d1   : > { %v1994_v30 = vmul.f32 0.5, %v5782_v11  ;;  %v1930_v9 = vmul.f32 0.0009676536, %v5782_v11 }
 0x1d2   : > { %v1762_v29 = vmul.f32 0.31830987, %v5777_v35  ;;  %v1763_v32 = vmul.f32 0.31830987, %v5780_v34  ;;  %v5791_v50 = vfloor.f32 %v1803_v3  ;;  %v1898_v21 = vsub.f32 %v5753_v40, %v1866_v15 }
 0x1d3   : > { %v2026_v44 = vfloor.f32 %v1994_v30 }
 0x1d4   : > { %v1794_v38 = vadd.f32 0.5, %v1762_v29  ;;  %v1795_v63 = vadd.f32 0.5, %v1763_v32  ;;  %v1867_v48 = vmul.f32 3.140625, %v5791_v50  ;;  %v1931_v40 = vmul.f32 0.0009676536, %v5791_v50 }
 0x1d5   : > { %v2058_v27 = vmul.f32 2.0, %v2026_v44 }
 0x1d6   : > { %v1589_v23 = vpop.f32.mrf.mxu2  ;;  %v5812_v4 = vfloor.f32 %v1794_v38  ;;  %v5818_v55 = vfloor.f32 %v1795_v63  ;;  %v1899_v5 = vsub.f32 %v5756_v46, %v1867_v48 }
 0x1d7   : > { %v5765_v17 = vadd.f32 %v1589_v23, %v5730_v19  ;;  %v2090_v30 = vsub.f32 %v5782_v11, %v2058_v27 }
 0x1d8   : > { %v1858_v14 = vmul.f32 3.140625, %v5812_v4  ;;  %v1859_v49 = vmul.f32 3.140625, %v5818_v55 }
 0x1d9   : > { %v1748_v60 = vmul.f32 0.31830987, %v5765_v17  ;;  %v1618_v58 = vpop.f32.mrf.mxu3  ;;  %vm2122_vm6 = vcmp.gt.f32.partialorder %v2090_v30, 0.5 }
 0x1da   : > { %v5787_v31 = vadd.f32 %v1618_v58, %v5730_v19  ;;  %v1962_v58 = vsub.f32 %v1898_v21, %v1930_v9  ;;  %v1890_v36 = vsub.f32 %v5777_v35, %v1858_v14  ;;  %v1891_v15 = vsub.f32 %v5780_v34, %v1859_v49 }
 0x1db   : > { %v1780_v61 = vadd.f32 0.5, %v1748_v60  ;;  %v1922_v60 = vmul.f32 0.0009676536, %v5812_v4  ;;  %v5873_v9 = vmul.f32 0.5, %v5818_v55 }
 0x1dc   : > { %v1749_v10 = vmul.f32 0.31830987, %v5787_v31  ;;  %v2154_v49 = vsub.f32 0.0, %v1962_v58 }
 0x1dd   : > { %v5798_v45 = vfloor.f32 %v1780_v61 }
 0x1de   : > { %v1781_v28 = vadd.f32 0.5, %v1749_v10  ;;  %v1592_v8 = vpop.f32.mrf.mxu2  ;;  %v5854_v10 = vmul.f32 0.5, %v5812_v4 }
 0x1df   : > { %7910 = vst [vmem:[#allocation11_spill] sm:$0xff] %v5798_v45  ;;  %v5821_v42 = vadd.f32 %v1592_v8, %v5734_v43  ;;  %v1844_v57 = vmul.f32 3.140625, %v5798_v45  ;;  %v1908_v62 = vmul.f32 0.0009676536, %v5798_v45  ;;  %v5837_v23 = vmul.f32 0.5, %v5798_v45 }
 0x1e0   : > { %v5816_v7 = vfloor.f32 %v1781_v28 }
 0x1e1   : > { %v1621_v2 = vpop.f32.mrf.mxu3  ;;  %7912 = vst [vmem:[#allocation9_spill] sm:$0xff] %v5837_v23  ;;  %v1756_v3 = vmul.f32 0.31830987, %v5821_v42  ;;  %v1876_v54 = vsub.f32 %v5765_v17, %v1844_v57  ;;  %v1995_v17 = vmul.f32 0.5, %v5791_v50 }
 0x1e2   : > { %7911 = vst [vmem:[#allocation12_spill] sm:$0xff] %v5816_v7  ;;  %v1845_v0 = vmul.f32 3.140625, %v5816_v7  ;;  %v5842_v1 = vadd.f32 %v1621_v2, %v5734_v43  ;;  %v1909_v32 = vmul.f32 0.0009676536, %v5816_v7  ;;  %v5851_v37 = vmul.f32 0.5, %v5816_v7 }
 0x1e3   : > { %v1788_v25 = vadd.f32 0.5, %v1756_v3  ;;  %v5861_v63 = vsub.f32 %v1876_v54, %v1908_v62  ;;  %v2027_v28 = vfloor.f32 %v1995_v17  ;;  %v5867_v2 = vsub.f32 %v1890_v36, %v1922_v60 }
 0x1e4   : > { %v1877_v46 = vsub.f32 %v5787_v31, %v1845_v0  ;;  %v1757_v61 = vmul.f32 0.31830987, %v5842_v1  ;;  %7913 = vst [vmem:[#allocation6_spill] sm:$0xff] %v5851_v37  ;;  %v1923_v31 = vmul.f32 0.0009676536, %v5818_v55  ;;  %v1963_v3 = vsub.f32 %v1899_v5, %v1931_v40 }
 0x1e5   : > { %v5859_v38 = vfloor.f32 %v1788_v25  ;;  %7914 = vst [vmem:[#allocation17_spill] sm:$0xff] %v5861_v63  ;;  %v2059_v44 = vmul.f32 2.0, %v2027_v28 }
 0x1e6   : > { %v1595_v29 = vpop.f32.mrf.mxu2  ;;  %v1789_v35 = vadd.f32 0.5, %v1757_v61  ;;  %v5865_v57 = vsub.f32 %v1877_v46, %v1909_v32  ;;  %v5876_v11 = vsub.f32 %v1891_v15, %v1923_v31  ;;  %v5890_v31 = vsel %vm2122_vm6, %v2154_v49, %v1962_v58 }
 0x1e7   : > { %v1596_v8 = vadd.f32 %v1595_v29, %v5773_v59  ;;  %v1852_v21 = vmul.f32 3.140625, %v5859_v38  ;;  %v2091_v61 = vsub.f32 %v5791_v50, %v2059_v44  ;;  %v1916_v32 = vmul.f32 0.0009676536, %v5859_v38 }
 0x1e8   : > { %7915 = vst [vmem:[#allocation18_spill] sm:$0xff] %v5865_v57  ;;  %v5870_v34 = vfloor.f32 %v1789_v35  ;;  %v2155_v35 = vsub.f32 0.0, %v1963_v3  ;;  %v5895_v50 = vmul.f32 0.5, %v5859_v38 }
 0x1e9   : > { %v1624_v48 = vpop.f32.mrf.mxu3  ;;  %v1764_v0 = vmul.f32 0.31830987, %v1596_v8  ;;  %v1884_v54 = vsub.f32 %v5821_v42, %v1852_v21  ;;  %vm2123_vm7 = vcmp.gt.f32.partialorder %v2091_v61, 0.5 }
 0x1ea   : > { %7916 = vst [vmem:[#allocation27_spill] sm:$0xff] %v5870_v34  ;;  %v1625_v14 = vadd.f32 %v1624_v48, %v5773_v59  ;;  %v1853_v62 = vmul.f32 3.140625, %v5870_v34  ;;  %v1917_v48 = vmul.f32 0.0009676536, %v5870_v34  ;;  %v5903_v58 = vmul.f32 0.5, %v5870_v34 }
 0x1eb   : > { %v1796_v60 = vadd.f32 0.5, %v1764_v0  ;;  %v5892_v28 = vsub.f32 %v1884_v54, %v1916_v32 }
 0x1ec   : > { %v1765_v27 = vmul.f32 0.31830987, %v1625_v14  ;;  %v1885_v40 = vsub.f32 %v5842_v1, %v1853_v62  ;;  %7918 = vst [vmem:[#allocation7_spill] sm:$0xff] %v5903_v58  ;;  %v5907_v62 = vmul.f32 %v5890_v31, %v5890_v31 }
 0x1ed   : > { %v5885_v17 = vfloor.f32 %v1796_v60  ;;  %7917 = vst [vmem:[#allocation10_spill] sm:$0xff] %v5892_v28 }
 0x1ee   : > { %v1598_v29 = vpop.f32.mrf.mxu2  ;;  %v1797_v15 = vadd.f32 0.5, %v1765_v27 }
 0x1ef   : > { %v1599_v5 = vadd.f32 %v1598_v29, %v5746_v41  ;;  %v1860_v21 = vmul.f32 3.140625, %v5885_v17  ;;  %v5910_v29 = vsub.f32 %v1885_v40, %v1917_v48  ;;  %v1924_v61 = vmul.f32 0.0009676536, %v5885_v17 }
 0x1f0   : > { %v5899_v0 = vfloor.f32 %v1797_v15 }
 0x1f1   : > { %v1647_v30 = vpop.f32.mrf.mxu0  ;;  %v1627_v44 = vpop.f32.mrf.mxu3  ;;  %v1772_v1 = vmul.f32 0.31830987, %v1599_v5  ;;  %v1892_v49 = vsub.f32 %v1596_v8, %v1860_v21  ;;  %7919 = vst [vmem:[#allocation30_spill] sm:$0xff] %v5910_v29 }
 0x1f2   : > { %v1648_v60 = vadd.f32 %v1647_v30, %v5730_v19  ;;  %v1628_v27 = vadd.f32 %v1627_v44, %v5746_v41  ;;  %v1861_v32 = vmul.f32 3.140625, %v5899_v0  ;;  %v5914_v30 = vsel %vm2123_vm7, %v2155_v35, %v1963_v3 }
 0x1f3   : > { %v1804_v46 = vadd.f32 0.5, %v1772_v1  ;;  %v5918_v13 = vsub.f32 %v1892_v49, %v1924_v61  ;;  %v1925_v40 = vmul.f32 0.0009676536, %v5899_v0  ;;  %v5924_v3 = vmul.f32 %v5914_v30, %v5914_v30 }
 0x1f4   : > { %v1676_v54 = vpop.f32.mrf.mxu1  ;;  %v1750_v15 = vmul.f32 0.31830987, %v1648_v60  ;;  %v1773_v52 = vmul.f32 0.31830987, %v1628_v27  ;;  %v1893_v8 = vsub.f32 %v1625_v14, %v1861_v32  ;;  %v5927_v35 = vmul.f32 0.5, %v5885_v17 }
 0x1f5   : > { %v1677_v36 = vadd.f32 %v1676_v54, %v5730_v19  ;;  %v1836_v44 = vfloor.f32 %v1804_v46 }
 0x1f6   : > { %v1782_v21 = vadd.f32 0.5, %v1750_v15  ;;  %v1805_v42 = vadd.f32 0.5, %v1773_v52  ;;  %v5931_v49 = vsub.f32 %v1893_v8, %v1925_v40  ;;  %v5935_v52 = vmul.f32 0.5, %v5899_v0 }
 0x1f7   : > { %v1751_v48 = vmul.f32 0.31830987, %v1677_v36  ;;  %v1868_v54 = vmul.f32 3.140625, %v1836_v44  ;;  %v1996_v61 = vmul.f32 0.5, %v1836_v44  ;;  %v1932_v25 = vmul.f32 0.0009676536, %v1836_v44 }
 0x1f8   : > { %v5929_v1 = vfloor.f32 %v1782_v21  ;;  %v1837_v21 = vfloor.f32 %v1805_v42 }
 0x1f9   : > { %v1783_v14 = vadd.f32 0.5, %v1751_v48  ;;  %v1650_v32 = vpop.f32.mrf.mxu0  ;;  %v1900_v47 = vsub.f32 %v1599_v5, %v1868_v54  ;;  %v2028_v57 = vfloor.f32 %v1996_v61 }
 0x1fa   : > { %7920 = vst [vmem:[#allocation8_spill] sm:$0xff] %v5929_v1  ;;  %v1846_v15 = vmul.f32 3.140625, %v5929_v1  ;;  %v1910_v40 = vmul.f32 0.0009676536, %v5929_v1  ;;  %v1651_v48 = vadd.f32 %v1650_v32, %v5734_v43  ;;  %v5945_v37 = vmul.f32 0.5, %v5929_v1 }
 0x1fb   : > { %v5938_v22 = vfloor.f32 %v1783_v14  ;;  %v1964_v14 = vsub.f32 %v1900_v47, %v1932_v25  ;;  %v2060_v42 = vmul.f32 2.0, %v2028_v57  ;;  %v1933_v34 = vmul.f32 0.0009676536, %v1837_v21 }
 0x1fc   : > { %v1679_v7 = vpop.f32.mrf.mxu1  ;;  %v1878_v8 = vsub.f32 %v1648_v60, %v1846_v15  ;;  %7922 = vst [vmem:[#allocation39_spill] sm:$0xff] %v5945_v37  ;;  %v1869_v60 = vmul.f32 3.140625, %v1837_v21  ;;  %v1997_v15 = vmul.f32 0.5, %v1837_v21  ;;  %v1758_v32 = vmul.f32 0.31830987, %v1651_v48 }
 0x1fd   : > { %7921 = vst [vmem:[#allocation22_spill] sm:$0xff] %v5938_v22  ;;  %v1680_v63 = vadd.f32 %v1679_v7, %v5734_v43  ;;  %v1847_v45 = vmul.f32 3.140625, %v5938_v22  ;;  %v1911_v5 = vmul.f32 0.0009676536, %v5938_v22  ;;  %v2156_v61 = vsub.f32 0.0, %v1964_v14 }
 0x1fe   : > { %v5948_v29 = vsub.f32 %v1878_v8, %v1910_v40  ;;  %v2092_v23 = vsub.f32 %v1836_v44, %v2060_v42  ;;  %v1901_v7 = vsub.f32 %v1628_v27, %v1869_v60  ;;  %v2029_v1 = vfloor.f32 %v1997_v15 }
 0x1ff   : > { %v1879_v54 = vsub.f32 %v1677_v36, %v1847_v45  ;;  %v1759_v46 = vmul.f32 0.31830987, %v1680_v63  ;;  %v1790_v37 = vadd.f32 0.5, %v1758_v32  ;;  %v2010_v47 = vfloor.f32 %v5808_v6 }
 0x200   : > { %7923 = vst [vmem:[#allocation41_spill] sm:$0xff] %v5948_v29  ;;  %v5955_v25 = vmul.f32 0.5, %v5938_v22  ;;  %vm2124_vm8 = vcmp.gt.f32.partialorder %v2092_v23, 0.5  ;;  %v1965_v57 = vsub.f32 %v1901_v7, %v1933_v34  ;;  %v2061_v44 = vmul.f32 2.0, %v2029_v1 }
 0x201   : > { %v5951_v58 = vsub.f32 %v1879_v54, %v1911_v5  ;;  %v1791_v8 = vadd.f32 0.5, %v1759_v46  ;;  %v5958_v36 = vsel %vm2124_vm8, %v2156_v61, %v1964_v14  ;;  %v5960_v27 = vfloor.f32 %v1790_v37  ;;  %v1653_v15 = vpop.f32.mrf.mxu0 }
 0x202   : > { %7925 = vst [vmem:[#allocation35_spill] sm:$0xff] %v5955_v25  ;;  %v2157_v5 = vsub.f32 0.0, %v1965_v57  ;;  %v2042_v60 = vmul.f32 2.0, %v2010_v47  ;;  %v5967_v6 = vmul.f32 %v5958_v36, %v5958_v36  ;;  %v2093_v23 = vsub.f32 %v1837_v21, %v2061_v44 }
 0x203   : > { %7924 = vst [vmem:[#allocation23_spill] sm:$0xff] %v5951_v58  ;;  %v5963_v42 = vfloor.f32 %v1791_v8  ;;  %v1854_v34 = vmul.f32 3.140625, %v5960_v27  ;;  %v1918_v46 = vmul.f32 0.0009676536, %v5960_v27  ;;  %v5972_v14 = vmul.f32 0.5, %v5960_v27 }
 0x204   : > { %7926 = vst [vmem:[#allocation36_spill] sm:$0xff] %v5958_v36  ;;  %v2018_v54 = vfloor.f32 %v5854_v10  ;;  %vm2125_vm9 = vcmp.gt.f32.partialorder %v2093_v23, 0.5  ;;  %v1682_v32 = vpop.f32.mrf.mxu1  ;;  %v2019_v7 = vfloor.f32 %v5873_v9  ;;  %v2074_v21 = vsub.f32 %v5748_v56, %v2042_v60 }
 0x205   : > { %7927 = vst [vmem:[#allocation42_spill] sm:$0xff] %v5960_v27  ;;  %v1855_v37 = vmul.f32 3.140625, %v5963_v42  ;;  %v1919_v1 = vmul.f32 0.0009676536, %v5963_v42  ;;  %v1886_v61 = vsub.f32 %v1651_v48, %v1854_v34  ;;  %v5979_v47 = vsel %vm2125_vm9, %v2157_v5, %v1965_v57 }
 0x206   : > { %7928 = vst [vmem:[#allocation43_spill] sm:$0xff] %v5963_v42  ;;  %v1654_v44 = vadd.f32 %v1653_v15, %v5773_v59  ;;  %v1683_v40 = vadd.f32 %v1682_v32, %v5773_v59  ;;  %v5986_v58 = vmul.f32 0.5, %v5963_v42  ;;  %v2050_v10 = vmul.f32 2.0, %v2018_v54 }
 0x207   : > { %7929 = vst [vmem:[#allocation29_spill] sm:$0xff] %v5972_v14  ;;  %v1887_v8 = vsub.f32 %v1680_v63, %v1855_v37  ;;  %v5983_v45 = vsub.f32 %v1886_v61, %v1918_v46  ;;  %v2051_v48 = vmul.f32 2.0, %v2019_v7  ;;  %vm2106_vm10 = vcmp.gt.f32.partialorder %v2074_v21, 0.5 }
 0x208   : > { %7930 = vst [vmem:[#allocation31_spill] sm:$0xff] %v5979_v47  ;;  %v1766_v34 = vmul.f32 0.31830987, %v1654_v44  ;;  %v1767_v9 = vmul.f32 0.31830987, %v1683_v40  ;;  %v5992_v56 = vmul.f32 %v5979_v47, %v5979_v47  ;;  %v2082_v63 = vsub.f32 %v5812_v4, %v2050_v10 }
 0x209   : > { %7931 = vst [vmem:[#allocation13_spill] sm:$0xff] %v5983_v45  ;;  %v5988_v23 = vsub.f32 %v1887_v8, %v1919_v1  ;;  %v2083_v57 = vsub.f32 %v5818_v55, %v2051_v48  ;;  %v7934_v5 = vsub.f32 0.0, %v5805_v18  ;;  %v2011_v4 = vfloor.f32 %v5828_v51 }
 0x20a   : > { %7932 = vst [vmem:[#allocation16_spill] sm:$0xff] %v5986_v58  ;;  %v1798_v37 = vadd.f32 0.5, %v1766_v34  ;;  %v1799_v1 = vadd.f32 0.5, %v1767_v9  ;;  %vm2114_vm11 = vcmp.gt.f32.partialorder %v2082_v63, 0.5  ;;  %v7938_v7 = vsub.f32 0.0, %v5876_v11  ;;  %v1656_v63 = vpop.f32.mrf.mxu0 }
 0x20b   : > { %7933 = vst [vmem:[#allocation14_spill] sm:$0xff] %v5988_v23  ;;  %v5999_v60 = vsel %vm2106_vm10, %v7934_v5, %v5805_v18  ;;  %vm2115_vm12 = vcmp.gt.f32.partialorder %v2083_v57, 0.5  ;;  %v7937_v18 = vsub.f32 0.0, %v5867_v2  ;;  %v2043_v48 = vmul.f32 2.0, %v2011_v4 }
 0x20c   : > { %v6004_v54 = vmul.f32 %v5999_v60, %v5999_v60  ;;  %v6008_v55 = vfloor.f32 %v1798_v37  ;;  %v6010_v15 = vfloor.f32 %v1799_v1  ;;  %v6020_v21 = vsel %vm2115_vm12, %v7938_v7, %v5876_v11  ;;  %v1685_v11 = vpop.f32.mrf.mxu1 }
 0x20d   : > { %v6015_v32 = vsel %vm2114_vm11, %v7937_v18, %v5867_v2  ;;  %v6028_v51 = vmul.f32 %v6020_v21, %v6020_v21  ;;  %v1657_v1 = vadd.f32 %v1656_v63, %v5746_v41  ;;  %v1686_v18 = vadd.f32 %v1685_v11, %v5746_v41 }
 0x20e   : > { %7935 = vst [vmem:[#allocation20_spill] sm:$0xff] %v6008_v55  ;;  %v6024_v8 = vmul.f32 %v6015_v32, %v6015_v32  ;;  %v2234_v10 = vmul.f32 -2.5052108e-08, %v6004_v54  ;;  %v1862_v34 = vmul.f32 3.140625, %v6008_v55  ;;  %v1926_v2 = vmul.f32 0.0009676536, %v6008_v55 }
 0x20f   : > { %7936 = vst [vmem:[#allocation45_spill] sm:$0xff] %v6010_v15  ;;  %v1863_v9 = vmul.f32 3.140625, %v6010_v15  ;;  %v6036_v5 = vmul.f32 0.5, %v6008_v55  ;;  %v1927_v37 = vmul.f32 0.0009676536, %v6010_v15  ;;  %v2075_v57 = vsub.f32 %v5750_v16, %v2043_v48 }
 0x210   : > { %v1894_v4 = vsub.f32 %v1654_v44, %v1862_v34  ;;  %v2242_v61 = vmul.f32 -2.5052108e-08, %v6024_v8  ;;  %v2243_v46 = vmul.f32 -2.5052108e-08, %v6028_v51  ;;  %v1774_v29 = vmul.f32 0.31830987, %v1657_v1 }
 0x211   : > { %7939 = vst [vmem:[#allocation47_spill] sm:$0xff] %v6036_v5  ;;  %v1895_v7 = vsub.f32 %v1683_v40, %v1863_v9  ;;  %v1775_v22 = vmul.f32 0.31830987, %v1686_v18  ;;  %v2266_v23 = vadd.f32 2.7557319e-06, %v2234_v10  ;;  %v6049_v63 = vmul.f32 0.5, %v6010_v15 }
 0x212   : > { %v6044_v25 = vsub.f32 %v1894_v4, %v1926_v2  ;;  %v2274_v58 = vadd.f32 2.7557319e-06, %v2242_v61  ;;  %v2275_v45 = vadd.f32 2.7557319e-06, %v2243_v46  ;;  %v1806_v44 = vadd.f32 0.5, %v1774_v29 }
 0x213   : > { %v6046_v42 = vsub.f32 %v1895_v7, %v1927_v37  ;;  %7942 = vst [vmem:[#allocation44_spill] sm:$0xff] %v6049_v63  ;;  %v1807_v40 = vadd.f32 0.5, %v1775_v22  ;;  %vm6051_vm13 = vcmp.gt.f32.partialorder %v2075_v57, 0.5  ;;  %v2250_v29 = vmul.f32 -2.5052108e-08, %v5907_v62 }
 0x214   : > { %7940 = vst [vmem:[#allocation40_spill] sm:$0xff] %v6044_v25  ;;  %v2306_v48 = vmul.f32 %v2274_v58, %v6024_v8  ;;  %v2307_v2 = vmul.f32 %v2275_v45, %v6028_v51  ;;  %v1838_v61 = vfloor.f32 %v1806_v44  ;;  %v2251_v57 = vmul.f32 -2.5052108e-08, %v5924_v3 }
 0x215   : > { %7941 = vst [vmem:[#allocation46_spill] sm:$0xff] %v6046_v42  ;;  %v1839_v11 = vfloor.f32 %v1807_v40  ;;  %v6067_v7 = vmul.f32 %v2266_v23, %v6004_v54  ;;  %v2282_v55 = vadd.f32 2.7557319e-06, %v2250_v29 }
 0x216   : > { %v6062_v37 = vadd.f32 -0.0001984127, %v2306_v48  ;;  %v6064_v4 = vadd.f32 -0.0001984127, %v2307_v2  ;;  %v1870_v45 = vmul.f32 3.140625, %v1838_v61 }
 0x217   : > { %v1934_v10 = vmul.f32 0.0009676536, %v1838_v61  ;;  %v1871_v44 = vmul.f32 3.140625, %v1839_v11  ;;  %v1935_v40 = vmul.f32 0.0009676536, %v1839_v11  ;;  %v1999_v42 = vmul.f32 0.5, %v1839_v11 }
 0x218   : > { %v1705_v9 = vpop.f32.mrf.mxu2  ;;  %v1902_v27 = vsub.f32 %v1657_v1, %v1870_v45  ;;  %v2283_v5 = vadd.f32 2.7557319e-06, %v2251_v57  ;;  %v2314_v29 = vmul.f32 %v2282_v55, %v5907_v62 }
 0x219   : > { %v1706_v46 = vadd.f32 %v1705_v9, %v5730_v19  ;;  %v1998_v9 = vmul.f32 0.5, %v1838_v61  ;;  %v1903_v63 = vsub.f32 %v1686_v18, %v1871_v44  ;;  %v2031_v2 = vfloor.f32 %v1999_v42 }
 0x21a   : > { %v1734_v22 = vpop.f32.mrf.mxu3  ;;  %v1966_v47 = vsub.f32 %v1902_v27, %v1934_v10 }
 0x21b   : > { %v1752_v16 = vmul.f32 0.31830987, %v1706_v46  ;;  %v1735_v58 = vadd.f32 %v1734_v22, %v5730_v19  ;;  %v2030_v48 = vfloor.f32 %v1998_v9  ;;  %v7946_v19 = vsub.f32 0.0, %v5810_v24 }
 0x21c   : > { %v1967_v28 = vsub.f32 %v1903_v63, %v1935_v40  ;;  %v2063_v1 = vmul.f32 2.0, %v2031_v2 }
 0x21d   : > { %v1784_v15 = vadd.f32 0.5, %v1752_v16  ;;  %v1753_v25 = vmul.f32 0.31830987, %v1735_v58  ;;  %v6077_v22 = vsel %vm6051_vm13, %v7946_v19, %v5810_v24  ;;  %v2062_v16 = vmul.f32 2.0, %v2030_v48 }
 0x21e   : > { %v2158_v24 = vsub.f32 0.0, %v1966_v47  ;;  %v2095_v57 = vsub.f32 %v1839_v11, %v2063_v1 }
 0x21f   : > { %v6070_v14 = vfloor.f32 %v1784_v15  ;;  %v1785_v23 = vadd.f32 0.5, %v1753_v25  ;;  %v2315_v25 = vmul.f32 %v2283_v5, %v5924_v3  ;;  %v2094_v34 = vsub.f32 %v1838_v61, %v2062_v16 }
 0x220   : > { %v1708_v36 = vpop.f32.mrf.mxu2  ;;  %vm2127_vm15 = vcmp.gt.f32.partialorder %v2095_v57, 0.5  ;;  %v2159_v61 = vsub.f32 0.0, %v1967_v28 }
 0x221   : > { %7945 = vst [vmem:[#allocation33_spill] sm:$0xff] %v6070_v14  ;;  %v1848_v42 = vmul.f32 3.140625, %v6070_v14  ;;  %v1912_v15 = vmul.f32 0.0009676536, %v6070_v14  ;;  %v6082_v18 = vfloor.f32 %v1785_v23  ;;  %v1709_v27 = vadd.f32 %v1708_v36, %v5734_v43 }
 0x222   : > { %v1737_v10 = vpop.f32.mrf.mxu3  ;;  %v6087_v63 = vmul.f32 0.5, %v6070_v14  ;;  %vm2126_vm14 = vcmp.gt.f32.partialorder %v2094_v34, 0.5  ;;  %v4333_v23 = vadd.f32 -0.0001984127, %v2314_v29  ;;  %v4334_v1 = vadd.f32 -0.0001984127, %v2315_v25 }
 0x223   : > { %7947 = vst [vmem:[#allocation37_spill] sm:$0xff] %v6082_v18  ;;  %v1880_v45 = vsub.f32 %v1706_v46, %v1848_v42  ;;  %v1849_v55 = vmul.f32 3.140625, %v6082_v18  ;;  %v1913_v9 = vmul.f32 0.0009676536, %v6082_v18  ;;  %v1760_v44 = vmul.f32 0.31830987, %v1709_v27 }
 0x224   : > { %7948 = vst [vmem:[#allocation28_spill] sm:$0xff] %v6087_v63  ;;  %v1738_v40 = vadd.f32 %v1737_v10, %v5734_v43  ;;  %v6094_v48 = vsel %vm2126_vm14, %v2158_v24, %v1966_v47  ;;  %v6097_v46 = vmul.f32 0.5, %v6082_v18  ;;  %v6104_v43 = vsel %vm2127_vm15, %v2159_v61, %v1967_v28 }
 0x225   : > { %v6092_v5 = vsub.f32 %v1880_v45, %v1912_v15  ;;  %v1881_v36 = vsub.f32 %v1735_v58, %v1849_v55  ;;  %v1792_v11 = vadd.f32 0.5, %v1760_v44  ;;  %v6102_v16 = vmul.f32 %v6094_v48, %v6094_v48 }
 0x226   : > { %7950 = vst [vmem:[#allocation34_spill] sm:$0xff] %v6097_v46  ;;  %v1761_v2 = vmul.f32 0.31830987, %v1738_v40  ;;  %v2378_v10 = vmul.f32 %v4333_v23, %v5907_v62  ;;  %v6113_v29 = vmul.f32 %v6104_v43, %v6104_v43  ;;  %v2379_v24 = vmul.f32 %v4334_v1, %v5924_v3 }
 0x227   : > { %7949 = vst [vmem:[#allocation32_spill] sm:$0xff] %v6092_v5  ;;  %v6106_v42 = vsub.f32 %v1881_v36, %v1913_v9  ;;  %v6108_v47 = vfloor.f32 %v1792_v11  ;;  %v2370_v28 = vmul.f32 %v6062_v37, %v6024_v8 }
 0x228   : > { %v1793_v58 = vadd.f32 0.5, %v1761_v2  ;;  %v1711_v15 = vpop.f32.mrf.mxu2  ;;  %v2410_v61 = vadd.f32 0.008333334, %v2378_v10  ;;  %v2411_v11 = vadd.f32 0.008333334, %v2379_v24 }
 0x229   : > { %7951 = vst [vmem:[#allocation21_spill] sm:$0xff] %v6106_v42  ;;  %v1712_v34 = vadd.f32 %v1711_v15, %v5773_v59  ;;  %v1856_v25 = vmul.f32 3.140625, %v6108_v47  ;;  %v1920_v57 = vmul.f32 0.0009676536, %v6108_v47  ;;  %v6122_v45 = vmul.f32 0.5, %v6108_v47 }
 0x22a   : > { %v6124_v55 = vfloor.f32 %v1793_v58  ;;  %v1740_v9 = vpop.f32.mrf.mxu3  ;;  %v2442_v5 = vmul.f32 %v2410_v61, %v5907_v62  ;;  %v2443_v58 = vmul.f32 %v2411_v11, %v5924_v3 }
 0x22b   : > { %v1768_v44 = vmul.f32 0.31830987, %v1712_v34  ;;  %v1741_v36 = vadd.f32 %v1740_v9, %v5773_v59  ;;  %v1888_v2 = vsub.f32 %v1709_v27, %v1856_v25  ;;  %v2402_v59 = vadd.f32 0.008333334, %v2370_v28 }
 0x22c   : > { %7952 = vst [vmem:[#allocation38_spill] sm:$0xff] %v6124_v55  ;;  %v1857_v23 = vmul.f32 3.140625, %v6124_v55  ;;  %v1921_v37 = vmul.f32 0.0009676536, %v6124_v55  ;;  %v6130_v1 = vmul.f32 0.5, %v6124_v55  ;;  %v2371_v27 = vmul.f32 %v6064_v4, %v6028_v51 }
 0x22d   : > { %v1800_v15 = vadd.f32 0.5, %v1768_v44  ;;  %v1769_v19 = vmul.f32 0.31830987, %v1741_v36  ;;  %v6134_v18 = vsub.f32 %v1888_v2, %v1920_v57  ;;  %v4365_v25 = vadd.f32 -0.16666667, %v2442_v5 }
 0x22e   : > { %v1889_v14 = vsub.f32 %v1738_v40, %v1857_v23  ;;  %v4366_v9 = vadd.f32 -0.16666667, %v2443_v58  ;;  %v2434_v61 = vmul.f32 %v2402_v59, %v6024_v8  ;;  %v2403_v11 = vadd.f32 0.008333334, %v2371_v27 }
 0x22f   : > { %v6138_v10 = vfloor.f32 %v1800_v15  ;;  %v1801_v24 = vadd.f32 0.5, %v1769_v19  ;;  %v2506_v19 = vmul.f32 %v4365_v25, %v5907_v62 }
 0x230   : > { %v6141_v44 = vsub.f32 %v1889_v14, %v1921_v37  ;;  %v1714_v46 = vpop.f32.mrf.mxu2  ;;  %v2507_v14 = vmul.f32 %v4366_v9, %v5924_v3 }
 0x231   : > { %v1864_v57 = vmul.f32 3.140625, %v6138_v10  ;;  %v1928_v40 = vmul.f32 0.0009676536, %v6138_v10  ;;  %v6147_v28 = vmul.f32 0.5, %v6138_v10  ;;  %v6149_v4 = vfloor.f32 %v1801_v24 }
 0x232   : > { %7953 = vst [vmem:[#allocation25_spill] sm:$0xff] %v6141_v44  ;;  %v1715_v2 = vadd.f32 %v1714_v46, %v5746_v41  ;;  %v1743_v23 = vpop.f32.mrf.mxu3  ;;  %v2538_v27 = vmul.f32 %v2506_v19, %v5890_v31  ;;  %v2539_v24 = vmul.f32 %v2507_v14, %v5914_v30  ;;  %v4357_v46 = vadd.f32 -0.16666667, %v2434_v61 }
 0x233   : > { %v1896_v37 = vsub.f32 %v1712_v34, %v1864_v57  ;;  %v1865_v15 = vmul.f32 3.140625, %v6149_v4  ;;  %v1929_v58 = vmul.f32 0.0009676536, %v6149_v4  ;;  %v6158_v59 = vmul.f32 0.5, %v6149_v4 }
 0x234   : > { %v1776_v5 = vmul.f32 0.31830987, %v1715_v2  ;;  %v1744_v62 = vadd.f32 %v1743_v23, %v5746_v41  ;;  %v2435_v34 = vmul.f32 %v2403_v11, %v6028_v51  ;;  %v2570_v9 = vadd.f32 %v2538_v27, %v5890_v31 }
 0x235   : > { %v6163_v25 = vsub.f32 %v1896_v37, %v1928_v40  ;;  %v1897_v3 = vsub.f32 %v1741_v36, %v1865_v15  ;;  %v2571_v57 = vadd.f32 %v2539_v24, %v5914_v30  ;;  %v2498_v14 = vmul.f32 %v4357_v46, %v6024_v8 }
 0x236   : > { %v1808_v42 = vadd.f32 0.5, %v1776_v5  ;;  %v1777_v44 = vmul.f32 0.31830987, %v1744_v62  ;;  %v4358_v63 = vadd.f32 -0.16666667, %v2435_v34  ;;  %2630 = vmatpush.msra.mxu0 %v2570_v9  ;;  %v6175_v31 = vmul.f32 %v6077_v22, %v6077_v22 }
 0x237   : > { %v2152_v55 = vsub.f32 0.0, %v6163_v25  ;;  %v6169_v19 = vsub.f32 %v1897_v3, %v1929_v58  ;;  %2659 = vmatpush.msra.mxu1 %v2571_v57  ;;  %v4317_v61 = vadd.f32 -0.0001984127, %v6067_v7  ;;  %v2530_v11 = vmul.f32 %v2498_v14, %v6015_v32 }
 0x238   : > { %v1840_v41 = vfloor.f32 %v1808_v42  ;;  %v1809_v36 = vadd.f32 0.5, %v1777_v44  ;;  %v2499_v40 = vmul.f32 %v4358_v63, %v6028_v51  ;;  %v7954_v5 = vfloor.f32 %v5770_v39 }
 0x239   : > { %v2153_v30 = vsub.f32 0.0, %v6169_v19  ;;  %v2562_v44 = vadd.f32 %v2530_v11, %v6015_v32  ;;  %v2362_v58 = vmul.f32 %v4317_v61, %v6004_v54  ;;  %v2235_v27 = vmul.f32 -2.5052108e-08, %v6175_v31 }
 0x23a   : > { %v2034_v8 = vmul.f32 2.0, %v7954_v5  ;;  %v1872_v23 = vmul.f32 3.140625, %v1840_v41  ;;  %v1936_v37 = vmul.f32 0.0009676536, %v1840_v41  ;;  %v2000_v15 = vmul.f32 0.5, %v1840_v41 }
 0x23b   : > { %v1841_v42 = vfloor.f32 %v1809_v36  ;;  %v2531_v7 = vmul.f32 %v2499_v40, %v6020_v21  ;;  %2631 = vmatpush.msra.mxu0 %v2562_v44  ;;  %v2394_v63 = vadd.f32 0.008333334, %v2362_v58  ;;  %v2267_v9 = vadd.f32 2.7557319e-06, %v2235_v27 }
 0x23c   : > { %v1904_v24 = vsub.f32 %v1715_v2, %v1872_v23  ;;  %v2032_v3 = vfloor.f32 %v2000_v15  ;;  %v2066_v32 = vsub.f32 %v5741_v26, %v2034_v8  ;;  %v2003_v40 = vfloor.f32 %v5803_v33 }
 0x23d   : > { %v1873_v46 = vmul.f32 3.140625, %v1841_v42  ;;  %v1937_v34 = vmul.f32 0.0009676536, %v1841_v42  ;;  %v2001_v51 = vmul.f32 0.5, %v1841_v42  ;;  %v2563_v39 = vadd.f32 %v2531_v7, %v6020_v21 }
 0x23e   : > { %v1968_v57 = vsub.f32 %v1904_v24, %v1936_v37  ;;  %v2064_v14 = vmul.f32 2.0, %v2032_v3  ;;  %v2426_v61 = vmul.f32 %v2394_v63, %v6004_v54  ;;  %v2299_v2 = vmul.f32 %v2267_v9, %v6175_v31 }
 0x23f   : > { %v1905_v36 = vsub.f32 %v1744_v62, %v1873_v46  ;;  %v2033_v11 = vfloor.f32 %v2001_v51  ;;  %2660 = vmatpush.msra.mxu1 %v2563_v39  ;;  %vm2098_vm2 = vcmp.gt.f32.partialorder %v2066_v32, 0.5  ;;  %v7955_v62 = vsub.f32 0.0, %v5767_v12 }
 0x240   : > { %v2096_v5 = vsub.f32 %v1840_v41, %v2064_v14  ;;  %v2160_v23 = vsub.f32 0.0, %v1968_v57  ;;  %v4349_v44 = vadd.f32 -0.16666667, %v2426_v61  ;;  %v4318_v7 = vadd.f32 -0.0001984127, %v2299_v2 }
 0x241   : > { %v1969_v15 = vsub.f32 %v1905_v36, %v1937_v34  ;;  %v2065_v21 = vmul.f32 2.0, %v2033_v11  ;;  %v6194_v37 = vsel %vm2098_vm2, %v7955_v62, %v5767_v12  ;;  %v2035_v58 = vmul.f32 2.0, %v2003_v40 }
 0x242   : > { %vm2128_vm3 = vcmp.gt.f32.partialorder %v2096_v5, 0.5  ;;  %v6198_v8 = vmul.f32 %v6194_v37, %v6194_v37  ;;  %v2490_v27 = vmul.f32 %v4349_v44, %v6004_v54  ;;  %v2363_v24 = vmul.f32 %v4318_v7, %v6175_v31 }
 0x243   : > { %v2161_v26 = vsub.f32 0.0, %v1969_v15  ;;  %v6200_v33 = vsel %vm2128_vm3, %v2160_v23, %v1968_v57  ;;  %v2097_v41 = vsub.f32 %v1841_v42, %v2065_v21  ;;  %v2067_v46 = vsub.f32 %v5744_v20, %v2035_v58 }
 0x244   : > { %v6206_v3 = vmul.f32 %v6200_v33, %v6200_v33  ;;  %v2226_v12 = vmul.f32 -2.5052108e-08, %v6198_v8  ;;  %v2252_v34 = vmul.f32 -2.5052108e-08, %v5967_v6  ;;  %v2522_v51 = vmul.f32 %v2490_v27, %v5999_v60 }
 0x245   : > { %vm2129_vm4 = vcmp.gt.f32.partialorder %v2097_v41, 0.5  ;;  %v2395_v39 = vadd.f32 0.008333334, %v2363_v24  ;;  %v2253_v42 = vmul.f32 -2.5052108e-08, %v5992_v56  ;;  %vm2099_vm5 = vcmp.gt.f32.partialorder %v2067_v46, 0.5 }
 0x246   : > { %v6213_v63 = vsel %vm2129_vm4, %v2161_v26, %v1969_v15  ;;  %v2258_v54 = vadd.f32 2.7557319e-06, %v2226_v12  ;;  %v2284_v9 = vadd.f32 2.7557319e-06, %v2252_v34  ;;  %v2554_v14 = vadd.f32 %v2522_v51, %v5999_v60 }
 0x247   : > { %v6217_v57 = vmul.f32 %v6213_v63, %v6213_v63  ;;  %v2427_v20 = vmul.f32 %v2395_v39, %v6175_v31  ;;  %v7956_v36 = vsub.f32 0.0, %v5793_v53  ;;  %v2285_v40 = vadd.f32 2.7557319e-06, %v2253_v42 }
 0x248   : > { %v2290_v11 = vmul.f32 %v2258_v54, %v6198_v8  ;;  %v2316_v2 = vmul.f32 %v2284_v9, %v5967_v6  ;;  %2632 = vmatpush.msra.mxu0 %v2554_v14  ;;  %v2020_v60 = vfloor.f32 %v5927_v35  ;;  %v2021_v23 = vfloor.f32 %v5935_v52 }
 0x249   : > { %v6224_v32 = vsel %vm2099_vm5, %v7956_v36, %v5793_v53  ;;  %v4350_v5 = vadd.f32 -0.16666667, %v2427_v20  ;;  %v2012_v15 = vfloor.f32 %v5895_v50  ;;  %v2317_v7 = vmul.f32 %v2285_v40, %v5992_v56 }
 0x24a   : > { %v6229_v61 = vmul.f32 %v6224_v32, %v6224_v32  ;;  %v4309_v21 = vadd.f32 -0.0001984127, %v2290_v11  ;;  %v4335_v44 = vadd.f32 -0.0001984127, %v2316_v2  ;;  %v2052_v26 = vmul.f32 2.0, %v2020_v60 }
 0x24b   : > { %v2491_v62 = vmul.f32 %v4350_v5, %v6175_v31  ;;  %v2053_v58 = vmul.f32 2.0, %v2021_v23  ;;  %v2044_v41 = vmul.f32 2.0, %v2012_v15  ;;  %v4336_v12 = vadd.f32 -0.0001984127, %v2317_v7  ;;  %v7961_v5 = vld [vmem:[#allocation7_spill] sm:$0xff] }
 0x24c   : > { %v2227_v53 = vmul.f32 -2.5052108e-08, %v6229_v61  ;;  %v2354_v27 = vmul.f32 %v4309_v21, %v6198_v8  ;;  %v2380_v35 = vmul.f32 %v4335_v44, %v5967_v6  ;;  %v2084_v50 = vsub.f32 %v5885_v17, %v2052_v26 }
 0x24d   : > { %v2523_v52 = vmul.f32 %v2491_v62, %v6077_v22  ;;  %v2085_v46 = vsub.f32 %v5899_v0, %v2053_v58  ;;  %v2076_v34 = vsub.f32 %v5859_v38, %v2044_v41  ;;  %v2381_v42 = vmul.f32 %v4336_v12, %v5992_v56  ;;  %v7962_v12 = vld [vmem:[#allocation27_spill] sm:$0xff] }
 0x24e   : > { %v2259_v24 = vadd.f32 2.7557319e-06, %v2227_v53  ;;  %v2386_v51 = vadd.f32 0.008333334, %v2354_v27  ;;  %v2412_v39 = vadd.f32 0.008333334, %v2380_v35  ;;  %v2013_v60 = vfloor.f32 %v7961_v5 }
 0x24f   : > { %v2555_v54 = vadd.f32 %v2523_v52, %v6077_v22  ;;  %vm2116_vm6 = vcmp.gt.f32.partialorder %v2084_v50, 0.5  ;;  %vm2117_vm7 = vcmp.gt.f32.partialorder %v2085_v46, 0.5  ;;  %vm2108_vm8 = vcmp.gt.f32.partialorder %v2076_v34, 0.5  ;;  %v7959_v22 = vld [vmem:[#allocation10_spill] sm:$0xff]  ;;  %v7963_v34 = vld [vmem:[#allocation36_spill] sm:$0xff] }
 0x250   : > { %v2291_v31 = vmul.f32 %v2259_v24, %v6229_v61  ;;  %v2418_v9 = vmul.f32 %v2386_v51, %v6198_v8  ;;  %v2444_v17 = vmul.f32 %v2412_v39, %v5967_v6  ;;  %v2413_v20 = vadd.f32 0.008333334, %v2381_v42  ;;  %v7964_v42 = vld [vmem:[#allocation9_spill] sm:$0xff] }
 0x251   : > { %2661 = vmatpush.msra.mxu1 %v2555_v54  ;;  %v7957_v38 = vsub.f32 0.0, %v5918_v13  ;;  %v7958_v36 = vsub.f32 0.0, %v5931_v49  ;;  %v7960_v2 = vsub.f32 0.0, %v7959_v22  ;;  %v2045_v7 = vmul.f32 2.0, %v2013_v60  ;;  %v7966_v60 = vld [vmem:[#allocation30_spill] sm:$0xff] }
 0x252   : > { %v4310_v14 = vadd.f32 -0.0001984127, %v2291_v31  ;;  %v4341_v23 = vadd.f32 -0.16666667, %v2418_v9  ;;  %v4367_v21 = vadd.f32 -0.16666667, %v2444_v17  ;;  %v2445_v53 = vmul.f32 %v2413_v20, %v5992_v56 }
 0x253   : > { %v6252_v0 = vsel %vm2116_vm6, %v7957_v38, %v5918_v13  ;;  %v6257_v11 = vsel %vm2117_vm7, %v7958_v36, %v5931_v49  ;;  %v6262_v40 = vsel %vm2108_vm8, %v7960_v2, %v7959_v22  ;;  %v2077_v52 = vsub.f32 %v7962_v12, %v2045_v7  ;;  %v6294_v17 = vld [vmem:[%s7670_s5] sm:$0xff] }
 0x254   : > { %v2355_v15 = vmul.f32 %v4310_v14, %v6229_v61  ;;  %v6269_v13 = vmul.f32 %v6252_v0, %v6252_v0  ;;  %v6273_v49 = vmul.f32 %v6257_v11, %v6257_v11  ;;  %v6277_v44 = vmul.f32 %v6262_v40, %v6262_v40  ;;  %v7965_v38 = vld [vmem:[#allocation31_spill] sm:$0xff] }
 0x255   : > { %v2482_v62 = vmul.f32 %v4341_v23, %v6198_v8  ;;  %v2508_v58 = vmul.f32 %v4367_v21, %v5967_v6  ;;  %v4368_v41 = vadd.f32 -0.16666667, %v2445_v53  ;;  %v2004_v54 = vfloor.f32 %v7964_v42 }
 0x256   : > { %v2387_v26 = vadd.f32 0.008333334, %v2355_v15  ;;  %v2244_v27 = vmul.f32 -2.5052108e-08, %v6269_v13  ;;  %v2245_v24 = vmul.f32 -2.5052108e-08, %v6273_v49 }
 0x257   : > { %v2236_v35 = vmul.f32 -2.5052108e-08, %v6277_v44  ;;  %v2514_v50 = vmul.f32 %v2482_v62, %v6194_v37  ;;  %v2540_v51 = vmul.f32 %v2508_v58, %v7963_v34  ;;  %v2509_v8 = vmul.f32 %v4368_v41, %v5992_v56  ;;  %v7968_v58 = vld [vmem:[#allocation11_spill] sm:$0xff] }
 0x258   : > { %v2419_v46 = vmul.f32 %v2387_v26, %v6229_v61  ;;  %v2276_v31 = vadd.f32 2.7557319e-06, %v2244_v27  ;;  %v2277_v39 = vadd.f32 2.7557319e-06, %v2245_v24  ;;  %vm2109_vm9 = vcmp.gt.f32.partialorder %v2077_v52, 0.5  ;;  %v7969_v27 = vld [vmem:[#allocation6_spill] sm:$0xff] }
 0x259   : > { %v2268_v6 = vadd.f32 2.7557319e-06, %v2236_v35  ;;  %v2546_v9 = vadd.f32 %v2514_v50, %v6194_v37  ;;  %v2572_v20 = vadd.f32 %v2540_v51, %v7963_v34  ;;  %v2541_v36 = vmul.f32 %v2509_v8, %v7965_v38  ;;  %v7970_v35 = vld [vmem:[#allocation29_spill] sm:$0xff] }
 0x25a   : > { %v4342_v14 = vadd.f32 -0.16666667, %v2419_v46  ;;  %v2308_v22 = vmul.f32 %v2276_v31, %v6269_v13  ;;  %v2309_v56 = vmul.f32 %v2277_v39, %v6273_v49  ;;  %v7967_v23 = vsub.f32 0.0, %v7966_v60 }
 0x25b   : > { %v2300_v2 = vmul.f32 %v2268_v6, %v6277_v44  ;;  %2633 = vmatpush.msra.mxu0 %v2546_v9  ;;  %2688 = vmatpush.msra.mxu2 %v2572_v20  ;;  %v2573_v5 = vadd.f32 %v2541_v36, %v7965_v38  ;;  %v2036_v21 = vmul.f32 2.0, %v2004_v54  ;;  %v2005_v24 = vfloor.f32 %v7969_v27  ;;  %v7971_v54 = vld [vmem:[#allocation17_spill] sm:$0xff]  ;;  %v6331_v20 = vld [vmem:[%s7670_s5 + $0x8] sm:$0xff]  ;;  %v7976_v27 = vld [vmem:[#allocation18_spill] sm:$0xff] }
 0x25c   : > { %v2483_v37 = vmul.f32 %v4342_v14, %v6229_v61  ;;  %v6306_v15 = vsel %vm2109_vm9, %v7967_v23, %v7966_v60  ;;  %4373 = vmatmul.msk.f32.vlgmr.msra.gmra.mxu0 %vm1501_vm1, %v6294_v17  ;;  %v4327_v53 = vadd.f32 -0.0001984127, %v2308_v22  ;;  %v4328_v7 = vadd.f32 -0.0001984127, %v2309_v56  ;;  %v7973_v36 = vld [vmem:[#allocation12_spill] sm:$0xff]  ;;  %v7974_v56 = vld [vmem:[#allocation47_spill] sm:$0xff] }
 0x25d   : > { %v4319_v62 = vadd.f32 -0.0001984127, %v2300_v2  ;;  %v6312_v26 = vmul.f32 %v6306_v15, %v6306_v15  ;;  %2717 = vmatpush.msra.mxu3 %v2573_v5  ;;  %v2068_v41 = vsub.f32 %v7968_v58, %v2036_v21  ;;  %v2014_v12 = vfloor.f32 %v7970_v35  ;;  %v7975_v23 = vld [vmem:[#allocation44_spill] sm:$0xff] }
 0x25e   : > { %v2515_v61 = vmul.f32 %v2483_v37, %v6224_v32  ;;  %v2372_v52 = vmul.f32 %v4327_v53, %v6269_v13  ;;  %v2373_v50 = vmul.f32 %v4328_v7, %v6273_v49  ;;  %v2037_v8 = vmul.f32 2.0, %v2005_v24 }
 0x25f   : > { %v2364_v46 = vmul.f32 %v4319_v62, %v6277_v44  ;;  %v2237_v34 = vmul.f32 -2.5052108e-08, %v6312_v26  ;;  %vm2100_vm10 = vcmp.gt.f32.partialorder %v2068_v41, 0.5  ;;  %v2046_v31 = vmul.f32 2.0, %v2014_v12 }
 0x260   : > { %v2547_v51 = vadd.f32 %v2515_v61, %v6224_v32  ;;  %v2404_v39 = vadd.f32 0.008333334, %v2372_v52  ;;  %v2405_v6 = vadd.f32 0.008333334, %v2373_v50  ;;  %v7972_v9 = vsub.f32 0.0, %v7971_v54 }
 0x261   : > { %v2396_v42 = vadd.f32 0.008333334, %v2364_v46  ;;  %v2269_v38 = vadd.f32 2.7557319e-06, %v2237_v34  ;;  %v2069_v22 = vsub.f32 %v7973_v36, %v2037_v8  ;;  %v2022_v2 = vfloor.f32 %v7974_v56  ;;  %v7978_v46 = vld [vmem:[#allocation20_spill] sm:$0xff] }
 0x262   : > { %v6326_v14 = vsel %vm2100_vm10, %v7972_v9, %v7971_v54  ;;  %2662 = vmatpush.msra.mxu1 %v2547_v51  ;;  %v2436_v37 = vmul.f32 %v2404_v39, %v6269_v13  ;;  %v2437_v5 = vmul.f32 %v2405_v6, %v6273_v49  ;;  %v2023_v21 = vfloor.f32 %v7975_v23 }
 0x263   : > { %v6335_v32 = vmul.f32 %v6326_v14, %v6326_v14  ;;  %4377 = vmatmul.msk.f32.vlgmr.msra.gmra.mxu1 %vm1501_vm1, %v6294_v17  ;;  %v2428_v60 = vmul.f32 %v2396_v42, %v6277_v44  ;;  %v2301_v53 = vmul.f32 %v2269_v38, %v6312_v26  ;;  %vm2101_vm11 = vcmp.gt.f32.partialorder %v2069_v22, 0.5 }
 0x264   : > { %v2054_v62 = vmul.f32 2.0, %v2022_v2  ;;  %v4359_v61 = vadd.f32 -0.16666667, %v2436_v37  ;;  %v4360_v58 = vadd.f32 -0.16666667, %v2437_v5  ;;  %4374 = vmatmul.msk.f32.gmra.mxu0 %vm1501_vm1, %v6331_v20  ;;  %v7977_v24 = vsub.f32 0.0, %v7976_v27 }
 0x265   : > { %v2228_v7 = vmul.f32 -2.5052108e-08, %v6335_v32  ;;  %v4351_v41 = vadd.f32 -0.16666667, %v2428_v60  ;;  %v4320_v12 = vadd.f32 -0.0001984127, %v2301_v53 }
 0x266   : > { %v6352_v35 = vsel %vm2101_vm11, %v7977_v24, %v7976_v27  ;;  %v2086_v34 = vsub.f32 %v7978_v46, %v2054_v62  ;;  %v2500_v51 = vmul.f32 %v4359_v61, %v6269_v13  ;;  %v2501_v8 = vmul.f32 %v4360_v58, %v6273_v49  ;;  %v7979_v37 = vld [vmem:[#allocation42_spill] sm:$0xff]  ;;  %v7980_v46 = vld [vmem:[#allocation40_spill] sm:$0xff] }
 0x267   : > { %v2260_v52 = vadd.f32 2.7557319e-06, %v2228_v7  ;;  %v6356_v50 = vmul.f32 %v6352_v35, %v6352_v35  ;;  %v2492_v39 = vmul.f32 %v4351_v41, %v6277_v44  ;;  %v2254_v6 = vmul.f32 -2.5052108e-08, %v6102_v16  ;;  %v6379_v7 = vld [vmem:[%s7670_s5 + $0x10] sm:$0xff] }
 0x268   : > { %v2365_v42 = vmul.f32 %v4320_v12, %v6312_v26  ;;  %v2255_v38 = vmul.f32 -2.5052108e-08, %v6113_v29  ;;  %v2532_v36 = vmul.f32 %v2500_v51, %v6252_v0  ;;  %v2533_v22 = vmul.f32 %v2501_v8, %v6257_v11 }
 0x269   : > { %v2292_v54 = vmul.f32 %v2260_v52, %v6335_v32  ;;  %v2229_v9 = vmul.f32 -2.5052108e-08, %v6356_v50  ;;  %v2524_v13 = vmul.f32 %v2492_v39, %v6262_v40  ;;  %v2286_v56 = vadd.f32 2.7557319e-06, %v2254_v6  ;;  %v7982_v39 = vld [vmem:[#allocation45_spill] sm:$0xff] }
 0x26a   : > { %v2397_v49 = vadd.f32 0.008333334, %v2365_v42  ;;  %v2078_v5 = vsub.f32 %v7979_v37, %v2046_v31  ;;  %v2564_v60 = vadd.f32 %v2532_v36, %v6252_v0  ;;  %v2565_v23 = vadd.f32 %v2533_v22, %v6257_v11  ;;  %v6418_v37 = vld [vmem:[%s7670_s5 + $0x18] sm:$0xff] }
 0x26b   : > { %v4311_v2 = vadd.f32 -0.0001984127, %v2292_v54  ;;  %v2261_v44 = vadd.f32 2.7557319e-06, %v2229_v9  ;;  %4378 = vmatmul.msk.f32.gmra.mxu1 %vm1501_vm1, %v6331_v20  ;;  %v2556_v53 = vadd.f32 %v2524_v13, %v6262_v40  ;;  %v2318_v62 = vmul.f32 %v2286_v56, %v6102_v16 }
 0x26c   : > { %v2429_v61 = vmul.f32 %v2397_v49, %v6312_v26  ;;  %v2287_v58 = vadd.f32 2.7557319e-06, %v2255_v38  ;;  %2689 = vmatpush.msra.mxu2 %v2564_v60  ;;  %2718 = vmatpush.msra.mxu3 %v2565_v23  ;;  %vm2118_vm12 = vcmp.gt.f32.partialorder %v2086_v34, 0.5  ;;  %v2055_v41 = vmul.f32 2.0, %v2023_v21  ;;  %v7983_v21 = vld [vmem:[#allocation13_spill] sm:$0xff]  ;;  %v7985_v23 = vld [vmem:[#allocation46_spill] sm:$0xff] }
 0x26d   : > { %v2356_v31 = vmul.f32 %v4311_v2, %v6335_v32  ;;  %v2293_v0 = vmul.f32 %v2261_v44, %v6356_v50  ;;  %v4337_v11 = vadd.f32 -0.0001984127, %v2318_v62  ;;  %vm2110_vm13 = vcmp.gt.f32.partialorder %v2078_v5, 0.5  ;;  %4375 = vmatmul.msk.f32.gmra.mxu0 %vm1501_vm1, %v6379_v7 }
 0x26e   : > { %v4352_v40 = vadd.f32 -0.16666667, %v2429_v61  ;;  %v2319_v12 = vmul.f32 %v2287_v58, %v6113_v29  ;;  %2690 = vmatpush.msra.mxu2 %v2556_v53  ;;  %v7981_v51 = vsub.f32 0.0, %v7980_v46  ;;  %v2087_v34 = vsub.f32 %v7982_v39, %v2055_v41 }
 0x26f   : > { %v2388_v27 = vadd.f32 0.008333334, %v2356_v31  ;;  %v4312_v24 = vadd.f32 -0.0001984127, %v2293_v0  ;;  %v2382_v52 = vmul.f32 %v4337_v11, %v6102_v16  ;;  %v7984_v6 = vsub.f32 0.0, %v7983_v21 }
 0x270   : > { %v6392_v8 = vsel %vm2118_vm12, %v7981_v51, %v7980_v46  ;;  %v2493_v54 = vmul.f32 %v4352_v40, %v6312_v26  ;;  %v4338_v36 = vadd.f32 -0.0001984127, %v2319_v12  ;;  %vm2119_vm14 = vcmp.gt.f32.partialorder %v2087_v34, 0.5 }
 0x271   : > { %v6398_v42 = vsel %vm2110_vm13, %v7984_v6, %v7983_v21  ;;  %v2420_v9 = vmul.f32 %v2388_v27, %v6335_v32  ;;  %v2357_v38 = vmul.f32 %v4312_v24, %v6356_v50  ;;  %v2414_v22 = vadd.f32 0.008333334, %v2382_v52 }
 0x272   : > { %v6405_v13 = vmul.f32 %v6392_v8, %v6392_v8  ;;  %v6409_v56 = vmul.f32 %v6398_v42, %v6398_v42  ;;  %v2525_v49 = vmul.f32 %v2493_v54, %v6306_v15  ;;  %v2383_v26 = vmul.f32 %v4338_v36, %v6113_v29 }
 0x273   : > { %v4343_v2 = vadd.f32 -0.16666667, %v2420_v9  ;;  %v2389_v44 = vadd.f32 0.008333334, %v2357_v38  ;;  %4379 = vmatmul.msk.f32.gmra.mxu1 %vm1501_vm1, %v6379_v7  ;;  %v2446_v5 = vmul.f32 %v2414_v22, %v6102_v16  ;;  %v7986_v53 = vsub.f32 0.0, %v7985_v23 }
 0x274   : > { %v2246_v60 = vmul.f32 -2.5052108e-08, %v6405_v13  ;;  %v2238_v61 = vmul.f32 -2.5052108e-08, %v6409_v56  ;;  %v2557_v31 = vadd.f32 %v2525_v49, %v6306_v15  ;;  %v2415_v11 = vadd.f32 0.008333334, %v2383_v26 }
 0x275   : > { %v6425_v62 = vsel %vm2119_vm14, %v7986_v53, %v7985_v23  ;;  %v2484_v0 = vmul.f32 %v4343_v2, %v6335_v32  ;;  %v2421_v58 = vmul.f32 %v2389_v44, %v6356_v50  ;;  %v4369_v41 = vadd.f32 -0.16666667, %v2446_v5  ;;  %4376 = vmatmul.msk.f32.gmra.mxu0 %vm1501_vm1, %v6418_v37  ;;  %v7987_v32 = vld [vmem:[#allocation16_spill] sm:$0xff]  ;;  %v7988_v26 = vld [vmem:[#allocation43_spill] sm:$0xff] }
 0x276   : > { %v2278_v40 = vadd.f32 2.7557319e-06, %v2246_v60  ;;  %v6433_v27 = vmul.f32 %v6425_v62, %v6425_v62  ;;  %v2270_v24 = vadd.f32 2.7557319e-06, %v2238_v61  ;;  %2719 = vmatpush.msra.mxu3 %v2557_v31  ;;  %v2447_v15 = vmul.f32 %v2415_v11, %v6113_v29  ;;  %v7989_v60 = vld [vmem:[#allocation39_spill] sm:$0xff] }
 0x277   : > { %v2516_v12 = vmul.f32 %v2484_v0, %v6326_v14  ;;  %v4344_v52 = vadd.f32 -0.16666667, %v2421_v58  ;;  %v2015_v46 = vfloor.f32 %v7987_v32  ;;  %v2510_v51 = vmul.f32 %v4369_v41, %v6102_v16  ;;  %v7990_v61 = vld [vmem:[#allocation35_spill] sm:$0xff] }
 0x278   : > { %v2310_v39 = vmul.f32 %v2278_v40, %v6405_v13  ;;  %v2247_v34 = vmul.f32 -2.5052108e-08, %v6433_v27  ;;  %v2302_v21 = vmul.f32 %v2270_v24, %v6409_v56  ;;  %v4370_v9 = vadd.f32 -0.16666667, %v2447_v15  ;;  %v7991_v40 = vld [vmem:[#allocation14_spill] sm:$0xff] }
 0x279   : > { %v2548_v6 = vadd.f32 %v2516_v12, %v6326_v14  ;;  %v2485_v54 = vmul.f32 %v4344_v52, %v6356_v50  ;;  %v2047_v38 = vmul.f32 2.0, %v2015_v46  ;;  %v2542_v36 = vmul.f32 %v2510_v51, %v6094_v48 }
 0x27a   : > { %v4329_v22 = vadd.f32 -0.0001984127, %v2310_v39  ;;  %v2279_v49 = vadd.f32 2.7557319e-06, %v2247_v34  ;;  %v4321_v2 = vadd.f32 -0.0001984127, %v2302_v21  ;;  %v2511_v44 = vmul.f32 %v4370_v9, %v6113_v29 }
 0x27b   : > { %2691 = vmatpush.msra.mxu2 %v2548_v6  ;;  %v2517_v16 = vmul.f32 %v2485_v54, %v6352_v35  ;;  %v2079_v5 = vsub.f32 %v7988_v26, %v2047_v38  ;;  %v2006_v23 = vfloor.f32 %v7989_v60  ;;  %4380 = vmatmul.msk.f32.gmra.mxu1 %vm1501_vm1, %v6418_v37  ;;  %v2574_v14 = vadd.f32 %v2542_v36, %v6094_v48  ;;  %v7993_v39 = vld [vmem:[#allocation8_spill] sm:$0xff]  ;;  %v7994_v54 = vld [vmem:[#allocation22_spill] sm:$0xff] }
 0x27c   : > { %4381 = vmatmul.msk.f32.vlgmr.msra.gmra.mxu2 %vm1501_vm1, %v6294_v17  ;;  %v2374_v50 = vmul.f32 %v4329_v22, %v6405_v13  ;;  %v2311_v53 = vmul.f32 %v2279_v49, %v6433_v27  ;;  %v2007_v31 = vfloor.f32 %v7990_v61  ;;  %v2543_v0 = vmul.f32 %v2511_v44, %v6104_v43  ;;  %v7995_v44 = vld [vmem:[#allocation41_spill] sm:$0xff] }
 0x27d   : > { %v2549_v29 = vadd.f32 %v2517_v16, %v6352_v35  ;;  %v2366_v58 = vmul.f32 %v4321_v2, %v6409_v56  ;;  %vm2111_vm15 = vcmp.gt.f32.partialorder %v2079_v5, 0.5  ;;  %2746 = vmatpush.msrb.mxu0 %v2574_v14  ;;  %v7992_v24 = vsub.f32 0.0, %v7991_v40 }
 0x27e   : > { %v2406_v11 = vadd.f32 0.008333334, %v2374_v50  ;;  %v4330_v41 = vadd.f32 -0.0001984127, %v2311_v53  ;;  %v2038_v12 = vmul.f32 2.0, %v2006_v23  ;;  %v2575_v52 = vadd.f32 %v2543_v0, %v6104_v43 }
 0x27f   : > { %v6465_v48 = vsel %vm2111_vm15, %v7992_v24, %v7991_v40  ;;  %2720 = vmatpush.msra.mxu3 %v2549_v29  ;;  %v2398_v15 = vadd.f32 0.008333334, %v2366_v58  ;;  %v2039_v32 = vmul.f32 2.0, %v2007_v31  ;;  %v2256_v21 = vmul.f32 -2.5052108e-08, %v6206_v3 }
 0x280   : > { %v6470_v35 = vmul.f32 %v6465_v48, %v6465_v48  ;;  %4385 = vmatmul.msk.f32.vlgmr.msra.gmra.mxu3 %vm1501_vm1, %v6294_v17  ;;  %v2438_v46 = vmul.f32 %v2406_v11, %v6405_v13  ;;  %v2375_v51 = vmul.f32 %v4330_v41, %v6433_v27  ;;  %v2070_v34 = vsub.f32 %v7993_v39, %v2038_v12 }
 0x281   : > { %2775 = vmatpush.msrb.mxu1 %v2575_v52  ;;  %v2430_v43 = vmul.f32 %v2398_v15, %v6409_v56  ;;  %v2071_v9 = vsub.f32 %v7994_v54, %v2039_v32  ;;  %v2257_v38 = vmul.f32 -2.5052108e-08, %v6217_v57  ;;  %v2024_v49 = vfloor.f32 %v6147_v28  ;;  %v7997_v28 = vld [vmem:[#allocation23_spill] sm:$0xff] }
 0x282   : > { %v2239_v6 = vmul.f32 -2.5052108e-08, %v6470_v35  ;;  %v4361_v36 = vadd.f32 -0.16666667, %v2438_v46  ;;  %v2407_v22 = vadd.f32 0.008333334, %v2375_v51 }
 0x283   : > { %vm2102_vm2 = vcmp.gt.f32.partialorder %v2070_v34, 0.5  ;;  %v4353_v2 = vadd.f32 -0.16666667, %v2430_v43  ;;  %v7996_v26 = vsub.f32 0.0, %v7995_v44  ;;  %vm2103_vm3 = vcmp.gt.f32.partialorder %v2071_v9, 0.5 }
 0x284   : > { %v2271_v16 = vadd.f32 2.7557319e-06, %v2239_v6  ;;  %4382 = vmatmul.msk.f32.gmra.mxu2 %vm1501_vm1, %v6331_v20  ;;  %v2502_v60 = vmul.f32 %v4361_v36, %v6405_v13  ;;  %v2439_v23 = vmul.f32 %v2407_v22, %v6433_v27  ;;  %v7998_v50 = vsub.f32 0.0, %v7997_v28 }
 0x285   : > { %v6486_v5 = vsel %vm2102_vm2, %v7996_v26, %v7995_v44  ;;  %v2494_v61 = vmul.f32 %v4353_v2, %v6409_v56  ;;  %v2288_v13 = vadd.f32 2.7557319e-06, %v2256_v21  ;;  %v2289_v41 = vadd.f32 2.7557319e-06, %v2257_v38 }
 0x286   : > { %v6494_v14 = vmul.f32 %v6486_v5, %v6486_v5  ;;  %v6499_v53 = vsel %vm2103_vm3, %v7998_v50, %v7997_v28  ;;  %v2303_v31 = vmul.f32 %v2271_v16, %v6470_v35  ;;  %v2534_v0 = vmul.f32 %v2502_v60, %v6392_v8 }
 0x287   : > { %v6505_v29 = vmul.f32 %v6499_v53, %v6499_v53  ;;  %v4362_v58 = vadd.f32 -0.16666667, %v2439_v23  ;;  %v2526_v40 = vmul.f32 %v2494_v61, %v6398_v42  ;;  %v2320_v56 = vmul.f32 %v2288_v13, %v6206_v3 }
 0x288   : > { %v2230_v11 = vmul.f32 -2.5052108e-08, %v6494_v14  ;;  %v4322_v24 = vadd.f32 -0.0001984127, %v2303_v31  ;;  %4386 = vmatmul.msk.f32.gmra.mxu3 %vm1501_vm1, %v6331_v20  ;;  %v2566_v52 = vadd.f32 %v2534_v0, %v6392_v8  ;;  %v2321_v46 = vmul.f32 %v2289_v41, %v6217_v57 }
 0x289   : > { %v2231_v12 = vmul.f32 -2.5052108e-08, %v6505_v29  ;;  %v2503_v15 = vmul.f32 %v4362_v58, %v6433_v27  ;;  %v2558_v51 = vadd.f32 %v2526_v40, %v6398_v42  ;;  %v4339_v21 = vadd.f32 -0.0001984127, %v2320_v56 }
 0x28a   : > { %v2262_v32 = vadd.f32 2.7557319e-06, %v2230_v11  ;;  %v2367_v39 = vmul.f32 %v4322_v24, %v6470_v35  ;;  %2747 = vmatpush.msrb.mxu0 %v2566_v52  ;;  %v4340_v54 = vadd.f32 -0.0001984127, %v2321_v46  ;;  %v2056_v9 = vmul.f32 2.0, %v2024_v49 }
 0x28b   : > { %v2263_v34 = vadd.f32 2.7557319e-06, %v2231_v12  ;;  %v2535_v43 = vmul.f32 %v2503_v15, %v6425_v62  ;;  %v2384_v27 = vmul.f32 %v4339_v21, %v6206_v3  ;;  %v2025_v36 = vfloor.f32 %v6158_v59 }
 0x28c   : > { %v2294_v6 = vmul.f32 %v2262_v32, %v6494_v14  ;;  %v2399_v38 = vadd.f32 0.008333334, %v2367_v39  ;;  %4383 = vmatmul.msk.f32.gmra.mxu2 %vm1501_vm1, %v6379_v7  ;;  %2748 = vmatpush.msrb.mxu0 %v2558_v51  ;;  %v2385_v2 = vmul.f32 %v4340_v54, %v6217_v57  ;;  %v2088_v16 = vsub.f32 %v6138_v10, %v2056_v9 }
 0x28d   : > { %v2295_v8 = vmul.f32 %v2263_v34, %v6505_v29  ;;  %v2567_v42 = vadd.f32 %v2535_v43, %v6425_v62  ;;  %v2416_v26 = vadd.f32 0.008333334, %v2384_v27  ;;  %v2057_v60 = vmul.f32 2.0, %v2025_v36  ;;  %v8000_v27 = vld [vmem:[#allocation28_spill] sm:$0xff] }
 0x28e   : > { %v4313_v22 = vadd.f32 -0.0001984127, %v2294_v6  ;;  %v2431_v49 = vmul.f32 %v2399_v38, %v6470_v35  ;;  %v2417_v59 = vadd.f32 0.008333334, %v2385_v2  ;;  %vm2120_vm4 = vcmp.gt.f32.partialorder %v2088_v16, 0.5  ;;  %v8001_v16 = vld [vmem:[#allocation38_spill] sm:$0xff] }
 0x28f   : > { %v4314_v44 = vadd.f32 -0.0001984127, %v2295_v8  ;;  %2776 = vmatpush.msrb.mxu1 %v2567_v42  ;;  %v2016_v62 = vfloor.f32 %v6122_v45  ;;  %v2448_v61 = vmul.f32 %v2416_v26, %v6206_v3  ;;  %v6537_v10 = vsel %vm2120_vm4, %v2152_v55, %v6163_v25 }
 0x290   : > { %v2358_v23 = vmul.f32 %v4313_v22, %v6494_v14  ;;  %v4354_v28 = vadd.f32 -0.16666667, %v2431_v49  ;;  %4387 = vmatmul.msk.f32.gmra.mxu3 %vm1501_vm1, %v6379_v7  ;;  %v2449_v13 = vmul.f32 %v2417_v59, %v6217_v57  ;;  %v6544_v0 = vmul.f32 %v6537_v10, %v6537_v10  ;;  %v8003_v59 = vld [vmem:[#allocation21_spill] sm:$0xff] }
 0x291   : > { %v2359_v50 = vmul.f32 %v4314_v44, %v6505_v29  ;;  %v2089_v45 = vsub.f32 %v6149_v4, %v2057_v60  ;;  %v4371_v41 = vadd.f32 -0.16666667, %v2448_v61  ;;  %v2048_v40 = vmul.f32 2.0, %v2016_v62  ;;  %v8002_v44 = vld [vmem:[#allocation34_spill] sm:$0xff] }
 0x292   : > { %v2390_v31 = vadd.f32 0.008333334, %v2358_v23  ;;  %v2495_v58 = vmul.f32 %v4354_v28, %v6470_v35  ;;  %v4372_v25 = vadd.f32 -0.16666667, %v2449_v13  ;;  %v2248_v24 = vmul.f32 -2.5052108e-08, %v6544_v0 }
 0x293   : > { %v2391_v11 = vadd.f32 0.008333334, %v2359_v50  ;;  %vm2121_vm5 = vcmp.gt.f32.partialorder %v2089_v45, 0.5  ;;  %v2512_v52 = vmul.f32 %v4371_v41, %v6206_v3  ;;  %v2080_v34 = vsub.f32 %v6108_v47, %v2048_v40  ;;  %v8004_v28 = vld [vmem:[#allocation33_spill] sm:$0xff] }
 0x294   : > { %v2422_v55 = vmul.f32 %v2390_v31, %v6494_v14  ;;  %v2527_v12 = vmul.f32 %v2495_v58, %v6465_v48  ;;  %v6556_v4 = vsel %vm2121_vm5, %v2153_v30, %v6169_v19  ;;  %4384 = vmatmul.msk.f32.gmra.mxu2 %vm1501_vm1, %v6418_v37  ;;  %v2513_v15 = vmul.f32 %v4372_v25, %v6217_v57  ;;  %v8005_v45 = vld [vmem:[#allocation25_spill] sm:$0xff] }
 0x295   : > { %v2423_v56 = vmul.f32 %v2391_v11, %v6505_v29  ;;  %v2280_v32 = vadd.f32 2.7557319e-06, %v2248_v24  ;;  %v6563_v46 = vmul.f32 %v6556_v4, %v6556_v4  ;;  %v2544_v3 = vmul.f32 %v2512_v52, %v6200_v33  ;;  %v8007_v40 = vld [vmem:[#allocation37_spill] sm:$0xff] }
 0x296   : > { %v4345_v35 = vadd.f32 -0.16666667, %v2422_v55  ;;  %v2559_v51 = vadd.f32 %v2527_v12, %v6465_v48  ;;  %v2545_v30 = vmul.f32 %v2513_v15, %v6213_v63  ;;  %vm2112_vm6 = vcmp.gt.f32.partialorder %v2080_v34, 0.5 }
 0x297   : > { %v4346_v39 = vadd.f32 -0.16666667, %v2423_v56  ;;  %v2312_v21 = vmul.f32 %v2280_v32, %v6544_v0  ;;  %v2249_v57 = vmul.f32 -2.5052108e-08, %v6563_v46  ;;  %v2576_v6 = vadd.f32 %v2544_v3, %v6200_v33  ;;  %v8008_v56 = vld [vmem:[#allocation32_spill] sm:$0xff] }
 0x298   : > { %v2486_v19 = vmul.f32 %v4345_v35, %v6494_v14  ;;  %2777 = vmatpush.msrb.mxu1 %v2559_v51  ;;  %v2017_v48 = vfloor.f32 %v6130_v1  ;;  %4388 = vmatmul.msk.f32.gmra.mxu3 %vm1501_vm1, %v6418_v37  ;;  %v2577_v47 = vadd.f32 %v2545_v30, %v6213_v63  ;;  %v2008_v1 = vfloor.f32 %v8000_v27 }
 0x299   : > { %v2487_v43 = vmul.f32 %v4346_v39, %v6505_v29  ;;  %v4331_v14 = vadd.f32 -0.0001984127, %v2312_v21  ;;  %v2281_v9 = vadd.f32 2.7557319e-06, %v2249_v57  ;;  %2804 = vmatpush.msrb.mxu2 %v2576_v6  ;;  %v7999_v29 = vsub.f32 0.0, %v6134_v18 }
 0x29a   : > { %v2518_v54 = vmul.f32 %v2486_v19, %v6486_v5  ;;  %v2049_v33 = vmul.f32 2.0, %v2017_v48  ;;  %2833 = vmatpush.msrb.mxu3 %v2577_v47  ;;  %v2009_v26 = vfloor.f32 %v8002_v44  ;;  %v2137_v62 = vsub.f32 0.0, %v8003_v59 }
 0x29b   : > { %v2519_v38 = vmul.f32 %v2487_v43, %v6499_v53  ;;  %v6583_v8 = vsel %vm2112_vm6, %v7999_v29, %v6134_v18  ;;  %v2376_v42 = vmul.f32 %v4331_v14, %v6544_v0  ;;  %v2313_v63 = vmul.f32 %v2281_v9, %v6563_v46 }
 0x29c   : > { %v2550_v36 = vadd.f32 %v2518_v54, %v6486_v5  ;;  %v6591_v22 = vmul.f32 %v6583_v8, %v6583_v8  ;;  %v2081_v49 = vsub.f32 %v8001_v16, %v2049_v33  ;;  %v2040_v18 = vmul.f32 2.0, %v2008_v1 }
 0x29d   : > { %v2551_v2 = vadd.f32 %v2519_v38, %v6499_v53  ;;  %v2408_v60 = vadd.f32 0.008333334, %v2376_v42  ;;  %v4332_v23 = vadd.f32 -0.0001984127, %v2313_v63  ;;  %v2041_v53 = vmul.f32 2.0, %v2009_v26 }
 0x29e   : > { %2749 = vmatpush.msrb.mxu0 %v2550_v36  ;;  %v2240_v5 = vmul.f32 -2.5052108e-08, %v6591_v22  ;;  %vm2113_vm7 = vcmp.gt.f32.partialorder %v2081_v49, 0.5  ;;  %v2072_v50 = vsub.f32 %v8004_v28, %v2040_v18  ;;  %v8006_v58 = vsub.f32 0.0, %v8005_v45 }
 0x29f   : > { %2778 = vmatpush.msrb.mxu1 %v2551_v2  ;;  %4389 = vmatmul.msk.f32.vlgmr.msrb.gmra.mxu0 %vm1501_vm1, %v6294_v17  ;;  %v2440_v61 = vmul.f32 %v2408_v60, %v6544_v0  ;;  %v2377_v31 = vmul.f32 %v4332_v23, %v6563_v46  ;;  %v2073_v55 = vsub.f32 %v8007_v40, %v2041_v53  ;;  %v8009_v52 = vsub.f32 0.0, %v8008_v56 }
 0x2a0   : > { %4393 = vmatmul.msk.f32.vlgmr.msrb.gmra.mxu1 %vm1501_vm1, %v6294_v17  ;;  %v2272_v13 = vadd.f32 2.7557319e-06, %v2240_v5  ;;  %v2177_v11 = vsel %vm2113_vm7, %v8006_v58, %v8005_v45  ;;  %vm2104_vm8 = vcmp.gt.f32.partialorder %v2072_v50, 0.5 }
 0x2a1   : > { %v2209_v41 = vmul.f32 %v2177_v11, %v2177_v11  ;;  %v4363_v25 = vadd.f32 -0.16666667, %v2440_v61  ;;  %v2409_v24 = vadd.f32 0.008333334, %v2377_v31  ;;  %v2168_v35 = vsel %vm2104_vm8, %v8009_v52, %v8008_v56 }
 0x2a2   : > { %v2304_v12 = vmul.f32 %v2272_v13, %v6591_v22  ;;  %v2200_v32 = vmul.f32 %v2168_v35, %v2168_v35  ;;  %vm2105_vm9 = vcmp.gt.f32.partialorder %v2073_v55, 0.5 }
 0x2a3   : > { %v2241_v15 = vmul.f32 -2.5052108e-08, %v2209_v41  ;;  %v2504_v51 = vmul.f32 %v4363_v25, %v6544_v0  ;;  %v2441_v39 = vmul.f32 %v2409_v24, %v6563_v46  ;;  %v2169_v34 = vsel %vm2105_vm9, %v2137_v62, %v8003_v59 }
 0x2a4   : > { %v4323_v3 = vadd.f32 -0.0001984127, %v2304_v12  ;;  %v2232_v30 = vmul.f32 -2.5052108e-08, %v2200_v32  ;;  %v2201_v21 = vmul.f32 %v2169_v34, %v2169_v34 }
 0x2a5   : > { %v2273_v19 = vadd.f32 2.7557319e-06, %v2241_v15  ;;  %v2536_v57 = vmul.f32 %v2504_v51, %v6537_v10  ;;  %v4364_v43 = vadd.f32 -0.16666667, %v2441_v39 }
 0x2a6   : > { %v2368_v6 = vmul.f32 %v4323_v3, %v6591_v22  ;;  %v2264_v54 = vadd.f32 2.7557319e-06, %v2232_v30  ;;  %v2233_v47 = vmul.f32 -2.5052108e-08, %v2201_v21 }
 0x2a7   : > { %4390 = vmatmul.msk.f32.gmra.mxu0 %vm1501_vm1, %v6331_v20  ;;  %v2305_v48 = vmul.f32 %v2273_v19, %v2209_v41  ;;  %v2568_v0 = vadd.f32 %v2536_v57, %v6537_v10  ;;  %v2505_v14 = vmul.f32 %v4364_v43, %v6563_v46 }
 0x2a8   : > { %4394 = vmatmul.msk.f32.gmra.mxu1 %vm1501_vm1, %v6331_v20  ;;  %v2400_v9 = vadd.f32 0.008333334, %v2368_v6  ;;  %v2296_v29 = vmul.f32 %v2264_v54, %v2200_v32  ;;  %v2265_v33 = vadd.f32 2.7557319e-06, %v2233_v47  ;;  %v6675_v54 = vpop.permute.xlu0 %2598 }
 0x2a9   : > { %v4324_v38 = vadd.f32 -0.0001984127, %v2305_v48  ;;  %2805 = vmatpush.msrb.mxu2 %v2568_v0  ;;  %v2537_v27 = vmul.f32 %v2505_v14, %v6556_v4 }
 0x2aa   : > { %v2432_v1 = vmul.f32 %v2400_v9, %v6591_v22  ;;  %v4315_v42 = vadd.f32 -0.0001984127, %v2296_v29  ;;  %v2297_v63 = vmul.f32 %v2265_v33, %v2201_v21 }
 0x2ab   : > { %v2369_v36 = vmul.f32 %v4324_v38, %v2209_v41  ;;  %v2569_v2 = vadd.f32 %v2537_v27, %v6556_v4 }
 0x2ac   : > { %v4355_v10 = vadd.f32 -0.16666667, %v2432_v1  ;;  %v2360_v46 = vmul.f32 %v4315_v42, %v2200_v32  ;;  %v4316_v49 = vadd.f32 -0.0001984127, %v2297_v63 }
 0x2ad   : > { %v2401_v16 = vadd.f32 0.008333334, %v2369_v36  ;;  %2834 = vmatpush.msrb.mxu3 %v2569_v2 }
 0x2ae   : > { %v2496_v18 = vmul.f32 %v4355_v10, %v6591_v22  ;;  %v2392_v26 = vadd.f32 0.008333334, %v2360_v46  ;;  %v2361_v60 = vmul.f32 %v4316_v49, %v2201_v21 }
 0x2af   : > { %v2433_v44 = vmul.f32 %v2401_v16, %v2209_v41  ;;  %4391 = vmatmul.msk.f32.gmra.mxu0 %vm1501_vm1, %v6379_v7 }
 0x2b0   : > { %v2528_v23 = vmul.f32 %v2496_v18, %v6583_v8  ;;  %4395 = vmatmul.msk.f32.gmra.mxu1 %vm1501_vm1, %v6379_v7  ;;  %v2424_v4 = vmul.f32 %v2392_v26, %v2200_v32  ;;  %v2393_v59 = vadd.f32 0.008333334, %v2361_v60 }
 0x2b1   : > { %v4356_v5 = vadd.f32 -0.16666667, %v2433_v44 }
 0x2b2   : > { %v2560_v62 = vadd.f32 %v2528_v23, %v6583_v8  ;;  %v4347_v50 = vadd.f32 -0.16666667, %v2424_v4  ;;  %v2425_v53 = vmul.f32 %v2393_v59, %v2201_v21 }
 0x2b3   : > { %v2497_v28 = vmul.f32 %v4356_v5, %v2209_v41 }
 0x2b4   : > { %2806 = vmatpush.msrb.mxu2 %v2560_v62  ;;  %v2488_v61 = vmul.f32 %v4347_v50, %v2200_v32  ;;  %v4348_v31 = vadd.f32 -0.16666667, %v2425_v53 }
 0x2b5   : > { %v2529_v22 = vmul.f32 %v2497_v28, %v2177_v11 }
 0x2b6   : > { %v2520_v45 = vmul.f32 %v2488_v61, %v2168_v35  ;;  %v2489_v58 = vmul.f32 %v4348_v31, %v2201_v21 }
 0x2b7   : > { %v2561_v13 = vadd.f32 %v2529_v22, %v2177_v11  ;;  %4392 = vmatmul.msk.f32.gmra.mxu0 %vm1501_vm1, %v6418_v37 }
 0x2b8   : > { %4396 = vmatmul.msk.f32.gmra.mxu1 %vm1501_vm1, %v6418_v37  ;;  %v2552_v40 = vadd.f32 %v2520_v45, %v2168_v35  ;;  %v2521_v55 = vmul.f32 %v2489_v58, %v2169_v34  ;;  %v6660_v35 = vpop.permute.xlu1 %2593 }
 0x2b9   : > { %2835 = vmatpush.msrb.mxu3 %v2561_v13 }
 0x2ba   : > { %2807 = vmatpush.msrb.mxu2 %v2552_v40  ;;  %v2553_v8 = vadd.f32 %v2521_v55, %v2169_v34 }
 0x2bb   : > { %4397 = vmatmul.msk.f32.vlgmr.msrb.gmra.mxu2 %vm1501_vm1, %v6294_v17 }
 0x2bc   : > { %2836 = vmatpush.msrb.mxu3 %v2553_v8 }
 0x2bd   : > { %4401 = vmatmul.msk.f32.vlgmr.msrb.gmra.mxu3 %vm1501_vm1, %v6294_v17  ;;  %v6654_v17 = vpop.permute.xlu2 %2603 }
 0x2c3   : > { %4398 = vmatmul.msk.f32.gmra.mxu2 %vm1501_vm1, %v6331_v20 }
 0x2c5   : > { %4402 = vmatmul.msk.f32.gmra.mxu3 %vm1501_vm1, %v6331_v20  ;;  %v6656_v24 = vpop.permute.xlu2 %2588 }
 0x2cb   : > { %4399 = vmatmul.msk.f32.gmra.mxu2 %vm1501_vm1, %v6379_v7 }
 0x2cd   : > { %4403 = vmatmul.msk.f32.gmra.mxu3 %vm1501_vm1, %v6379_v7 }
 0x2d3   : > { %4400 = vmatmul.msk.f32.gmra.mxu2 %vm1501_vm1, %v6418_v37 }
 0x2d5   : > { %4404 = vmatmul.msk.f32.gmra.mxu3 %vm1501_vm1, %v6418_v37 }
 0x2d9   : > { %v2635_v11 = vpop.f32.mrf.mxu0 }
 0x2da   : > { %v2636_v20 = vadd.f32 %v2635_v11, %v6656_v24 }
 0x2dc   : > { %v2850_v52 = vmul.f32 0.31830987, %v2636_v20 }
 0x2de   : > { %v2882_v37 = vadd.f32 0.5, %v2850_v52 }
 0x2e0   : > { %v2664_v41 = vpop.f32.mrf.mxu1  ;;  %v6666_v19 = vfloor.f32 %v2882_v37 }
 0x2e1   : > { %v2638_v25 = vpop.f32.mrf.mxu0  ;;  %v2665_v56 = vadd.f32 %v2664_v41, %v6656_v24 }
 0x2e2   : > { %v2639_v15 = vadd.f32 %v2638_v25, %v6660_v35  ;;  %v2946_v47 = vmul.f32 3.140625, %v6666_v19  ;;  %v3010_v16 = vmul.f32 0.0009676536, %v6666_v19  ;;  %v6719_v11 = vmul.f32 0.5, %v6666_v19 }
 0x2e3   : > { %v2851_v32 = vmul.f32 0.31830987, %v2665_v56 }
 0x2e4   : > { %v2858_v39 = vmul.f32 0.31830987, %v2639_v15  ;;  %v2978_v36 = vsub.f32 %v2636_v20, %v2946_v47 }
 0x2e5   : > { %v2883_v3 = vadd.f32 0.5, %v2851_v32 }
 0x2e6   : > { %v2890_v57 = vadd.f32 0.5, %v2858_v39  ;;  %v6699_v60 = vsub.f32 %v2978_v36, %v3010_v16 }
 0x2e7   : > { %v6671_v43 = vfloor.f32 %v2883_v3 }
 0x2e8   : > { %v2667_v12 = vpop.f32.mrf.mxu1  ;;  %v6684_v29 = vfloor.f32 %v2890_v57 }
 0x2e9   : > { %v6664_v34 = vadd.f32 %v2667_v12, %v6660_v35  ;;  %v2947_v33 = vmul.f32 3.140625, %v6671_v43  ;;  %v3011_v4 = vmul.f32 0.0009676536, %v6671_v43  ;;  %v6727_v12 = vmul.f32 0.5, %v6671_v43 }
 0x2ea   : > { %v2641_v7 = vpop.f32.mrf.mxu0  ;;  %v2954_v46 = vmul.f32 3.140625, %v6684_v29  ;;  %v3018_v61 = vmul.f32 0.0009676536, %v6684_v29  ;;  %v6735_v32 = vmul.f32 0.5, %v6684_v29 }
 0x2eb   : > { %v2859_v6 = vmul.f32 0.31830987, %v6664_v34  ;;  %v6679_v0 = vadd.f32 %v2641_v7, %v6675_v54  ;;  %v2979_v49 = vsub.f32 %v2665_v56, %v2947_v33 }
 0x2ec   : > { %v2986_v50 = vsub.f32 %v2639_v15, %v2954_v46 }
 0x2ed   : > { %v2891_v27 = vadd.f32 0.5, %v2859_v6  ;;  %v2866_v63 = vmul.f32 0.31830987, %v6679_v0  ;;  %v6709_v22 = vsub.f32 %v2979_v49, %v3011_v4 }
 0x2ee   : > { %v6729_v56 = vsub.f32 %v2986_v50, %v3018_v61 }
 0x2ef   : > { %v6697_v18 = vfloor.f32 %v2891_v27  ;;  %v2898_v59 = vadd.f32 0.5, %v2866_v63 }
 0x2f0   : > { %v2670_v51 = vpop.f32.mrf.mxu1 }
 0x2f1   : > { %v6682_v14 = vadd.f32 %v2670_v51, %v6675_v54  ;;  %v2955_v31 = vmul.f32 3.140625, %v6697_v18  ;;  %v6722_v25 = vfloor.f32 %v2898_v59  ;;  %v6753_v36 = vmul.f32 0.5, %v6697_v18 }
 0x2f2   : > { %v2644_v30 = vpop.f32.mrf.mxu0 }
 0x2f3   : > { %v6669_v21 = vadd.f32 %v2644_v30, %v6654_v17  ;;  %v2867_v2 = vmul.f32 0.31830987, %v6682_v14  ;;  %v2987_v3 = vsub.f32 %v6664_v34, %v2955_v31 }
 0x2f5   : > { %v2874_v48 = vmul.f32 0.31830987, %v6669_v21  ;;  %v2899_v62 = vadd.f32 0.5, %v2867_v2 }
 0x2f7   : > { %v2906_v9 = vadd.f32 0.5, %v2874_v48  ;;  %v6724_v20 = vfloor.f32 %v2899_v62  ;;  %v2962_v48 = vmul.f32 3.140625, %v6722_v25  ;;  %v3026_v62 = vmul.f32 0.0009676536, %v6722_v25 }
 0x2f8   : > { %v2673_v38 = vpop.f32.mrf.mxu1 }
 0x2f9   : > { %v6688_v1 = vadd.f32 %v2673_v38, %v6654_v17  ;;  %v6690_v42 = vfloor.f32 %v2906_v9  ;;  %v2963_v47 = vmul.f32 3.140625, %v6724_v20  ;;  %v3027_v50 = vmul.f32 0.0009676536, %v6724_v20 }
 0x2fb   : > { %v2875_v10 = vmul.f32 0.31830987, %v6688_v1  ;;  %v3098_v5 = vmul.f32 0.5, %v6690_v42  ;;  %v2970_v45 = vmul.f32 3.140625, %v6690_v42  ;;  %v3034_v9 = vmul.f32 0.0009676536, %v6690_v42 }
 0x2fd   : > { %v2907_v26 = vadd.f32 0.5, %v2875_v10  ;;  %v3130_v55 = vfloor.f32 %v3098_v5  ;;  %v3002_v37 = vsub.f32 %v6669_v21, %v2970_v45  ;;  %v3019_v21 = vmul.f32 0.0009676536, %v6697_v18 }
 0x2fe   : > { %v2994_v5 = vsub.f32 %v6679_v0, %v2962_v48 }
 0x2ff   : > { %v2693_v44 = vpop.f32.mrf.mxu2  ;;  %v6706_v28 = vfloor.f32 %v2907_v26  ;;  %v3162_v6 = vmul.f32 2.0, %v3130_v55  ;;  %v3066_v63 = vsub.f32 %v3002_v37, %v3034_v9  ;;  %v6756_v46 = vsub.f32 %v2987_v3, %v3019_v21 }
 0x300   : > { %v6702_v23 = vadd.f32 %v2693_v44, %v6656_v24 }
 0x301   : > { %v3099_v8 = vmul.f32 0.5, %v6706_v28  ;;  %v2971_v7 = vmul.f32 3.140625, %v6706_v28  ;;  %v3194_v44 = vsub.f32 %v6690_v42, %v3162_v6  ;;  %v3035_v26 = vmul.f32 0.0009676536, %v6706_v28 }
 0x302   : > { %v2852_v53 = vmul.f32 0.31830987, %v6702_v23  ;;  %v3258_v31 = vsub.f32 0.0, %v3066_v63 }
 0x303   : > { %v2722_v13 = vpop.f32.mrf.mxu3  ;;  %v3131_v51 = vfloor.f32 %v3099_v8  ;;  %v3003_v34 = vsub.f32 %v6688_v1, %v2971_v7  ;;  %v2995_v1 = vsub.f32 %v6682_v14, %v2963_v47  ;;  %v6774_v14 = vmul.f32 0.5, %v6722_v25 }
 0x304   : > { %v2884_v58 = vadd.f32 0.5, %v2852_v53  ;;  %v6715_v40 = vadd.f32 %v2722_v13, %v6656_v24  ;;  %vm3226_vm10 = vcmp.gt.f32.partialorder %v3194_v44, 0.5 }
 0x305   : > { %v3163_v2 = vmul.f32 2.0, %v3131_v51  ;;  %v3067_v61 = vsub.f32 %v3003_v34, %v3035_v26  ;;  %v6781_v7 = vsub.f32 %v2995_v1, %v3027_v50 }
 0x306   : > { %v2853_v52 = vmul.f32 0.31830987, %v6715_v40  ;;  %v6739_v30 = vfloor.f32 %v2884_v58 }
 0x307   : > { %v2696_v39 = vpop.f32.mrf.mxu2  ;;  %v3195_v42 = vsub.f32 %v6706_v28, %v3163_v2 }
 0x308   : > { %8010 = vst [vmem:[#allocation24_spill] sm:$0xff] %v6739_v30  ;;  %v2885_v57 = vadd.f32 0.5, %v2853_v52  ;;  %v6745_v38 = vadd.f32 %v2696_v39, %v6660_v35  ;;  %v2948_v49 = vmul.f32 3.140625, %v6739_v30  ;;  %v6779_v52 = vsub.f32 %v2994_v5, %v3026_v62 }
 0x309   : > { %v3012_v37 = vmul.f32 0.0009676536, %v6739_v30  ;;  %v3259_v39 = vsub.f32 0.0, %v3067_v61  ;;  %vm3227_vm11 = vcmp.gt.f32.partialorder %v3195_v42, 0.5  ;;  %v6807_v5 = vmul.f32 0.5, %v6739_v30 }
 0x30a   : > { %v6749_v27 = vfloor.f32 %v2885_v57  ;;  %v2860_v10 = vmul.f32 0.31830987, %v6745_v38  ;;  %v2980_v58 = vsub.f32 %v6702_v23, %v2948_v49  ;;  %v6785_v57 = vsel %vm3226_vm10, %v3258_v31, %v3066_v63 }
 0x30b   : > { %v2725_v16 = vpop.f32.mrf.mxu3  ;;  %v6802_v49 = vsel %vm3227_vm11, %v3259_v39, %v3067_v61  ;;  %8016 = vst [vmem:[#allocation27_spill] sm:$0xff] %v6807_v5 }
 0x30c   : > { %8011 = vst [vmem:[#allocation26_spill] sm:$0xff] %v6749_v27  ;;  %v2892_v4 = vadd.f32 0.5, %v2860_v10  ;;  %v6764_v59 = vadd.f32 %v2725_v16, %v6660_v35  ;;  %v2949_v53 = vmul.f32 3.140625, %v6749_v27  ;;  %v6790_v47 = vsub.f32 %v2980_v58, %v3012_v37 }
 0x30d   : > { %v3013_v9 = vmul.f32 0.0009676536, %v6749_v27  ;;  %v6810_v1 = vmul.f32 0.5, %v6749_v27 }
 0x30e   : > { %v6770_v13 = vfloor.f32 %v2892_v4  ;;  %v2861_v0 = vmul.f32 0.31830987, %v6764_v59  ;;  %v2981_v51 = vsub.f32 %v6715_v40, %v2949_v53  ;;  %8014 = vst [vmem:[#allocation10_spill] sm:$0xff] %v6790_v47  ;;  %v6796_v40 = vmul.f32 0.5, %v6724_v20 }
 0x30f   : > { %v2699_v45 = vpop.f32.mrf.mxu2  ;;  %8017 = vst [vmem:[#allocation36_spill] sm:$0xff] %v6810_v1  ;;  %v6814_v4 = vmul.f32 %v6785_v57, %v6785_v57 }
 0x310   : > { %8012 = vst [vmem:[#allocation15_spill] sm:$0xff] %v6770_v13  ;;  %v2700_v55 = vadd.f32 %v2699_v45, %v6675_v54  ;;  %v2893_v28 = vadd.f32 0.5, %v2861_v0  ;;  %v2956_v23 = vmul.f32 3.140625, %v6770_v13  ;;  %v6800_v16 = vsub.f32 %v2981_v51, %v3013_v9 }
 0x311   : > { %v6822_v0 = vmul.f32 %v6802_v49, %v6802_v49  ;;  %v3020_v45 = vmul.f32 0.0009676536, %v6770_v13  ;;  %v6826_v58 = vmul.f32 0.5, %v6770_v13 }
 0x312   : > { %v2868_v3 = vmul.f32 0.31830987, %v2700_v55  ;;  %v6788_v6 = vfloor.f32 %v2893_v28  ;;  %8015 = vst [vmem:[#allocation7_spill] sm:$0xff] %v6800_v16  ;;  %v2988_v62 = vsub.f32 %v6745_v38, %v2956_v23 }
 0x313   : > { %v2728_v48 = vpop.f32.mrf.mxu3 }
 0x314   : > { %8013 = vst [vmem:[#allocation19_spill] sm:$0xff] %v6788_v6  ;;  %v2900_v21 = vadd.f32 0.5, %v2868_v3  ;;  %v2729_v34 = vadd.f32 %v2728_v48, %v6675_v54  ;;  %v2957_v10 = vmul.f32 3.140625, %v6788_v6  ;;  %v3021_v37 = vmul.f32 0.0009676536, %v6788_v6 }
 0x315   : > { %v6833_v3 = vsub.f32 %v2988_v62, %v3020_v45 }
 0x316   : > { %v6804_v44 = vfloor.f32 %v2900_v21  ;;  %v2869_v26 = vmul.f32 0.31830987, %v2729_v34  ;;  %v2989_v61 = vsub.f32 %v6764_v59, %v2957_v10 }
 0x317   : > { %v2702_v50 = vpop.f32.mrf.mxu2  ;;  %8018 = vst [vmem:[#allocation9_spill] sm:$0xff] %v6833_v3 }
 0x318   : > { %v2964_v31 = vmul.f32 3.140625, %v6804_v44  ;;  %v2901_v42 = vadd.f32 0.5, %v2869_v26  ;;  %v2703_v28 = vadd.f32 %v2702_v50, %v6654_v17  ;;  %v3028_v9 = vmul.f32 0.0009676536, %v6804_v44 }
 0x319   : > { %v6837_v26 = vsub.f32 %v2989_v61, %v3021_v37  ;;  %v6840_v50 = vmul.f32 0.5, %v6788_v6  ;;  %v3114_v61 = vfloor.f32 %v6735_v32 }
 0x31a   : > { %v2996_v59 = vsub.f32 %v2700_v55, %v2964_v31  ;;  %v6831_v39 = vfloor.f32 %v2901_v42  ;;  %v2876_v21 = vmul.f32 0.31830987, %v2703_v28 }
 0x31b   : > { %v2731_v10 = vpop.f32.mrf.mxu3  ;;  %8019 = vst [vmem:[#allocation31_spill] sm:$0xff] %v6837_v26 }
 0x31c   : > { %v2751_v51 = vpop.f32.mrf.mxu0  ;;  %8020 = vst [vmem:[#allocation30_spill] sm:$0xff] %v6840_v50  ;;  %v2965_v55 = vmul.f32 3.140625, %v6831_v39  ;;  %v6844_v42 = vsub.f32 %v2996_v59, %v3028_v9  ;;  %v2908_v62 = vadd.f32 0.5, %v2876_v21  ;;  %v6847_v45 = vadd.f32 %v2731_v10, %v6654_v17 }
 0x31d   : > { %v2752_v23 = vadd.f32 %v2751_v51, %v6656_v24  ;;  %v2780_v48 = vpop.f32.mrf.mxu1  ;;  %v3029_v15 = vmul.f32 0.0009676536, %v6831_v39  ;;  %v6854_v59 = vmul.f32 0.5, %v6804_v44  ;;  %v6858_v21 = vmul.f32 2.0, %v3114_v61 }
 0x31e   : > { %v2781_v38 = vadd.f32 %v2780_v48, %v6656_v24  ;;  %v2997_v53 = vsub.f32 %v2729_v34, %v2965_v55  ;;  %v2940_v8 = vfloor.f32 %v2908_v62  ;;  %v2877_v48 = vmul.f32 0.31830987, %v6847_v45 }
 0x31f   : > { %v2854_v31 = vmul.f32 0.31830987, %v2752_v23  ;;  %v6867_v62 = vmul.f32 0.5, %v6831_v39 }
 0x320   : > { %v2855_v51 = vmul.f32 0.31830987, %v2781_v38  ;;  %v6856_v9 = vsub.f32 %v2997_v53, %v3029_v15  ;;  %v2972_v55 = vmul.f32 3.140625, %v2940_v8  ;;  %v3100_v32 = vmul.f32 0.5, %v2940_v8 }
 0x321   : > { %v2886_v41 = vadd.f32 0.5, %v2854_v31  ;;  %v2909_v37 = vadd.f32 0.5, %v2877_v48 }
 0x322   : > { %v2887_v33 = vadd.f32 0.5, %v2855_v51  ;;  %v3004_v48 = vsub.f32 %v2703_v28, %v2972_v55  ;;  %v3132_v26 = vfloor.f32 %v3100_v32 }
 0x323   : > { %v6861_v10 = vfloor.f32 %v2886_v41  ;;  %v3036_v41 = vmul.f32 0.0009676536, %v2940_v8 }
 0x324   : > { %v6863_v63 = vfloor.f32 %v2887_v33  ;;  %v2754_v51 = vpop.f32.mrf.mxu0  ;;  %v3164_v50 = vmul.f32 2.0, %v3132_v26 }
 0x325   : > { %8021 = vst [vmem:[#allocation11_spill] sm:$0xff] %v6861_v10  ;;  %v2950_v15 = vmul.f32 3.140625, %v6861_v10  ;;  %v2755_v61 = vadd.f32 %v2754_v51, %v6660_v35  ;;  %v2783_v34 = vpop.f32.mrf.mxu1  ;;  %v3014_v2 = vmul.f32 0.0009676536, %v6861_v10  ;;  %v2941_v51 = vfloor.f32 %v2909_v37 }
 0x326   : > { %8022 = vst [vmem:[#allocation6_spill] sm:$0xff] %v6863_v63  ;;  %v2951_v33 = vmul.f32 3.140625, %v6863_v63  ;;  %v2784_v16 = vadd.f32 %v2783_v34, %v6660_v35  ;;  %v3015_v53 = vmul.f32 0.0009676536, %v6863_v63  ;;  %v3068_v5 = vsub.f32 %v3004_v48, %v3036_v41 }
 0x327   : > { %v2982_v27 = vsub.f32 %v2752_v23, %v2950_v15  ;;  %v2862_v47 = vmul.f32 0.31830987, %v2755_v61  ;;  %v6881_v13 = vmul.f32 0.5, %v6861_v10  ;;  %v2973_v23 = vmul.f32 3.140625, %v2941_v51 }
 0x328   : > { %v2983_v1 = vsub.f32 %v2781_v38, %v2951_v33  ;;  %v2863_v30 = vmul.f32 0.31830987, %v2784_v16  ;;  %v6886_v28 = vmul.f32 0.5, %v6863_v63  ;;  %v3196_v55 = vsub.f32 %v2940_v8, %v3164_v50 }
 0x329   : > { %v6878_v6 = vsub.f32 %v2982_v27, %v3014_v2  ;;  %v2894_v3 = vadd.f32 0.5, %v2862_v47  ;;  %8024 = vst [vmem:[#allocation17_spill] sm:$0xff] %v6881_v13  ;;  %v3122_v37 = vfloor.f32 %v6774_v14  ;;  %v3005_v47 = vsub.f32 %v6847_v45, %v2973_v23 }
 0x32a   : > { %v6883_v34 = vsub.f32 %v2983_v1, %v3015_v53  ;;  %v2895_v31 = vadd.f32 0.5, %v2863_v30  ;;  %8026 = vst [vmem:[#allocation47_spill] sm:$0xff] %v6886_v28  ;;  %v3037_v2 = vmul.f32 0.0009676536, %v2941_v51  ;;  %v3101_v26 = vmul.f32 0.5, %v2941_v51 }
 0x32b   : > { %8023 = vst [vmem:[#allocation29_spill] sm:$0xff] %v6878_v6  ;;  %v6888_v38 = vfloor.f32 %v2894_v3  ;;  %v3260_v53 = vsub.f32 0.0, %v3068_v5  ;;  %vm3228_vm12 = vcmp.gt.f32.partialorder %v3196_v55, 0.5  ;;  %v3154_v1 = vmul.f32 2.0, %v3122_v37 }
 0x32c   : > { %8025 = vst [vmem:[#allocation12_spill] sm:$0xff] %v6883_v34  ;;  %v6891_v27 = vfloor.f32 %v2895_v31  ;;  %v2757_v32 = vpop.f32.mrf.mxu0  ;;  %v3069_v31 = vsub.f32 %v3005_v47, %v3037_v2  ;;  %v3133_v33 = vfloor.f32 %v3101_v26  ;;  %v3123_v10 = vfloor.f32 %v6796_v40 }
 0x32d   : > { %8027 = vst [vmem:[#allocation44_spill] sm:$0xff] %v6888_v38  ;;  %v2958_v15 = vmul.f32 3.140625, %v6888_v38  ;;  %v2786_v41 = vpop.f32.mrf.mxu1  ;;  %v3022_v3 = vmul.f32 0.0009676536, %v6888_v38  ;;  %v6899_v8 = vmul.f32 0.5, %v6888_v38  ;;  %v2758_v23 = vadd.f32 %v2757_v32, %v6675_v54 }
 0x32e   : > { %8028 = vst [vmem:[#allocation18_spill] sm:$0xff] %v6891_v27  ;;  %v2959_v14 = vmul.f32 3.140625, %v6891_v27  ;;  %v3023_v45 = vmul.f32 0.0009676536, %v6891_v27  ;;  %v2787_v30 = vadd.f32 %v2786_v41, %v6675_v54  ;;  %v6906_v34 = vmul.f32 0.5, %v6891_v27 }
 0x32f   : > { %8029 = vst [vmem:[#allocation20_spill] sm:$0xff] %v6899_v8  ;;  %v2990_v50 = vsub.f32 %v2755_v61, %v2958_v15  ;;  %v6908_v6 = vsel %vm3228_vm12, %v3260_v53, %v3068_v5  ;;  %v3165_v63 = vmul.f32 2.0, %v3133_v33  ;;  %v3261_v55 = vsub.f32 0.0, %v3069_v31 }
 0x330   : > { %v2991_v48 = vsub.f32 %v2784_v16, %v2959_v14  ;;  %8030 = vst [vmem:[#allocation42_spill] sm:$0xff] %v6906_v34  ;;  %v2870_v61 = vmul.f32 0.31830987, %v2758_v23  ;;  %v2871_v15 = vmul.f32 0.31830987, %v2787_v30  ;;  %v3186_v47 = vsub.f32 %v6722_v25, %v3154_v1 }
 0x331   : > { %8031 = vst [vmem:[#allocation40_spill] sm:$0xff] %v6908_v6  ;;  %v6912_v2 = vsub.f32 %v2990_v50, %v3022_v3  ;;  %v3197_v26 = vsub.f32 %v2941_v51, %v3165_v63  ;;  %v3155_v32 = vmul.f32 2.0, %v3123_v10  ;;  %v6918_v37 = vmul.f32 %v6908_v6, %v6908_v6 }
 0x332   : > { %v6914_v16 = vsub.f32 %v2991_v48, %v3023_v45  ;;  %v2902_v5 = vadd.f32 0.5, %v2870_v61  ;;  %v2903_v53 = vadd.f32 0.5, %v2871_v15  ;;  %vm3218_vm13 = vcmp.gt.f32.partialorder %v3186_v47, 0.5 }
 0x333   : > { %8032 = vst [vmem:[#allocation45_spill] sm:$0xff] %v6912_v2  ;;  %vm3229_vm14 = vcmp.gt.f32.partialorder %v3197_v26, 0.5  ;;  %v8034_v25 = vsub.f32 0.0, %v6779_v52  ;;  %v3187_v63 = vsub.f32 %v6724_v20, %v3155_v32 }
 0x334   : > { %8033 = vst [vmem:[#allocation13_spill] sm:$0xff] %v6914_v16  ;;  %v2760_v41 = vpop.f32.mrf.mxu0  ;;  %v6927_v10 = vsel %vm3229_vm14, %v3261_v55, %v3069_v31  ;;  %v6929_v51 = vfloor.f32 %v2902_v5  ;;  %v6931_v3 = vfloor.f32 %v2903_v53 }
 0x335   : > { %v2761_v40 = vadd.f32 %v2760_v41, %v6654_v17  ;;  %v2789_v14 = vpop.f32.mrf.mxu1  ;;  %v6924_v1 = vsel %vm3218_vm13, %v8034_v25, %v6779_v52  ;;  %8035 = vst [vmem:[#allocation46_spill] sm:$0xff] %v6927_v10  ;;  %v6938_v48 = vmul.f32 %v6927_v10, %v6927_v10  ;;  %vm6946_vm15 = vcmp.gt.f32.partialorder %v3187_v63, 0.5 }
 0x336   : > { %8036 = vst [vmem:[#allocation16_spill] sm:$0xff] %v6929_v51  ;;  %v2790_v50 = vadd.f32 %v2789_v14, %v6654_v17  ;;  %v2966_v61 = vmul.f32 3.140625, %v6929_v51  ;;  %v2967_v20 = vmul.f32 3.140625, %v6931_v3  ;;  %v6944_v31 = vmul.f32 %v6924_v1, %v6924_v1 }
 0x337   : > { %8037 = vst [vmem:[#allocation43_spill] sm:$0xff] %v6931_v3  ;;  %v2878_v52 = vmul.f32 0.31830987, %v2761_v40  ;;  %v3030_v15 = vmul.f32 0.0009676536, %v6929_v51  ;;  %v6952_v47 = vmul.f32 0.5, %v6929_v51 }
 0x338   : > { %v2879_v32 = vmul.f32 0.31830987, %v2790_v50  ;;  %v2998_v5 = vsub.f32 %v2758_v23, %v2966_v61  ;;  %v2999_v53 = vsub.f32 %v2787_v30, %v2967_v20  ;;  %v3354_v41 = vmul.f32 -2.5052108e-08, %v6814_v4 }
 0x339   : > { %8040 = vst [vmem:[#allocation39_spill] sm:$0xff] %v6952_v47  ;;  %v2910_v26 = vadd.f32 0.5, %v2878_v52  ;;  %v3355_v14 = vmul.f32 -2.5052108e-08, %v6822_v0  ;;  %v3031_v25 = vmul.f32 0.0009676536, %v6931_v3 }
 0x33a   : > { %v6958_v63 = vmul.f32 0.5, %v6931_v3  ;;  %v2911_v45 = vadd.f32 0.5, %v2879_v32  ;;  %v3386_v16 = vadd.f32 2.7557319e-06, %v3354_v41  ;;  %v3346_v2 = vmul.f32 -2.5052108e-08, %v6944_v31 }
 0x33b   : > { %v2942_v33 = vfloor.f32 %v2910_v26  ;;  %v3387_v27 = vadd.f32 2.7557319e-06, %v3355_v14  ;;  %v8042_v52 = vsub.f32 0.0, %v6781_v7  ;;  %v6968_v23 = vsub.f32 %v2998_v5, %v3030_v15 }
 0x33c   : > { %8041 = vst [vmem:[#allocation35_spill] sm:$0xff] %v6958_v63  ;;  %v2943_v28 = vfloor.f32 %v2911_v45  ;;  %v6970_v13 = vsub.f32 %v2999_v53, %v3031_v25  ;;  %v3418_v32 = vmul.f32 %v3386_v16, %v6814_v4  ;;  %v3378_v25 = vadd.f32 2.7557319e-06, %v3346_v2 }
 0x33d   : > { %v6966_v30 = vsel %vm6946_vm15, %v8042_v52, %v6781_v7  ;;  %v2974_v61 = vmul.f32 3.140625, %v2942_v33  ;;  %v3102_v20 = vmul.f32 0.5, %v2942_v33  ;;  %v3038_v26 = vmul.f32 0.0009676536, %v2942_v33 }
 0x33e   : > { %v3419_v41 = vmul.f32 %v3387_v27, %v6822_v0  ;;  %v2809_v14 = vpop.f32.mrf.mxu2  ;;  %v2975_v8 = vmul.f32 3.140625, %v2943_v28  ;;  %v3039_v3 = vmul.f32 0.0009676536, %v2943_v28  ;;  %v3103_v55 = vmul.f32 0.5, %v2943_v28 }
 0x33f   : > { %v3006_v34 = vsub.f32 %v2761_v40, %v2974_v61  ;;  %v3134_v38 = vfloor.f32 %v3102_v20  ;;  %v2810_v7 = vadd.f32 %v2809_v14, %v6656_v24  ;;  %v4429_v15 = vadd.f32 -0.0001984127, %v3418_v32 }
 0x340   : > { %v4430_v5 = vadd.f32 -0.0001984127, %v3419_v41  ;;  %v2838_v52 = vpop.f32.mrf.mxu3  ;;  %v3007_v53 = vsub.f32 %v2790_v50, %v2975_v8  ;;  %v3135_v47 = vfloor.f32 %v3103_v55  ;;  %v3410_v8 = vmul.f32 %v3378_v25, %v6944_v31 }
 0x341   : > { %v3070_v63 = vsub.f32 %v3006_v34, %v3038_v26  ;;  %v3166_v45 = vmul.f32 2.0, %v3134_v38  ;;  %v2856_v51 = vmul.f32 0.31830987, %v2810_v7  ;;  %v2839_v16 = vadd.f32 %v2838_v52, %v6656_v24 }
 0x342   : > { %v3482_v27 = vmul.f32 %v4429_v15, %v6814_v4  ;;  %v3071_v20 = vsub.f32 %v3007_v53, %v3039_v3  ;;  %v3483_v10 = vmul.f32 %v4430_v5, %v6822_v0  ;;  %v3167_v32 = vmul.f32 2.0, %v3135_v47 }
 0x343   : > { %v3198_v40 = vsub.f32 %v2942_v33, %v3166_v45  ;;  %v3262_v61 = vsub.f32 0.0, %v3070_v63  ;;  %v2888_v14 = vadd.f32 0.5, %v2856_v51  ;;  %v2857_v6 = vmul.f32 0.31830987, %v2839_v16 }
 0x344   : > { %v3514_v41 = vadd.f32 0.008333334, %v3482_v27  ;;  %v3515_v38 = vadd.f32 0.008333334, %v3483_v10  ;;  %v3199_v33 = vsub.f32 %v2943_v28, %v3167_v32  ;;  %v3263_v26 = vsub.f32 0.0, %v3071_v20 }
 0x345   : > { %vm3230_vm2 = vcmp.gt.f32.partialorder %v3198_v40, 0.5  ;;  %v6980_v2 = vfloor.f32 %v2888_v14  ;;  %v2889_v24 = vadd.f32 0.5, %v2857_v6  ;;  %v4421_v6 = vadd.f32 -0.0001984127, %v3410_v8 }
 0x346   : > { %v6982_v50 = vsel %vm3230_vm2, %v3262_v61, %v3070_v63  ;;  %v2812_v55 = vpop.f32.mrf.mxu2  ;;  %v3546_v51 = vmul.f32 %v3514_v41, %v6814_v4  ;;  %v3547_v47 = vmul.f32 %v3515_v38, %v6822_v0  ;;  %vm3231_vm3 = vcmp.gt.f32.partialorder %v3199_v33, 0.5 }
 0x347   : > { %8043 = vst [vmem:[#allocation14_spill] sm:$0xff] %v6980_v2  ;;  %v2952_v15 = vmul.f32 3.140625, %v6980_v2  ;;  %v6988_v5 = vfloor.f32 %v2889_v24  ;;  %v6992_v10 = vmul.f32 %v6982_v50, %v6982_v50  ;;  %v2813_v28 = vadd.f32 %v2812_v55, %v6660_v35 }
 0x348   : > { %v2841_v63 = vpop.f32.mrf.mxu3  ;;  %v4461_v52 = vadd.f32 -0.16666667, %v3546_v51  ;;  %v4462_v45 = vadd.f32 -0.16666667, %v3547_v47  ;;  %v3016_v25 = vmul.f32 0.0009676536, %v6980_v2  ;;  %v8045_v61 = vsub.f32 %v6684_v29, %v6858_v21 }
 0x349   : > { %8044 = vst [vmem:[#allocation8_spill] sm:$0xff] %v6988_v5  ;;  %v2984_v53 = vsub.f32 %v2810_v7, %v2952_v15  ;;  %v6997_v27 = vmul.f32 0.5, %v6980_v2  ;;  %v2953_v40 = vmul.f32 3.140625, %v6988_v5  ;;  %v7007_v32 = vsel %vm3231_vm3, %v3263_v26, %v3071_v20 }
 0x34a   : > { %vm7003_vm4 = vcmp.gt.f32.partialorder %v8045_v61, 0.5  ;;  %v2864_v41 = vmul.f32 0.31830987, %v2813_v28  ;;  %v2842_v38 = vadd.f32 %v2841_v63, %v6660_v35  ;;  %v3610_v7 = vmul.f32 %v4461_v52, %v6814_v4 }
 0x34b   : > { %v2985_v8 = vsub.f32 %v2839_v16, %v2953_v40  ;;  %v3017_v24 = vmul.f32 0.0009676536, %v6988_v5  ;;  %v7013_v33 = vmul.f32 0.5, %v6988_v5  ;;  %v3611_v55 = vmul.f32 %v4462_v45, %v6822_v0 }
 0x34c   : > { %v2896_v29 = vadd.f32 0.5, %v2864_v41  ;;  %v2865_v21 = vmul.f32 0.31830987, %v2842_v38  ;;  %v3642_v51 = vmul.f32 %v3610_v7, %v6785_v57  ;;  %v3474_v20 = vmul.f32 %v4421_v6, %v6944_v31 }
 0x34d   : > { %v7018_v26 = vsub.f32 %v2984_v53, %v3016_v25  ;;  %v7022_v35 = vmul.f32 %v7007_v32, %v7007_v32  ;;  %v3643_v4 = vmul.f32 %v3611_v55, %v6802_v49  ;;  %v7027_v16 = vmul.f32 %v6966_v30, %v6966_v30 }
 0x34e   : > { %v7029_v47 = vfloor.f32 %v2896_v29  ;;  %v2897_v0 = vadd.f32 0.5, %v2865_v21  ;;  %v2815_v15 = vpop.f32.mrf.mxu2  ;;  %v3674_v63 = vadd.f32 %v3642_v51, %v6785_v57  ;;  %v3506_v52 = vadd.f32 0.008333334, %v3474_v20 }
 0x34f   : > { %v7032_v6 = vsub.f32 %v2985_v8, %v3017_v24  ;;  %v2816_v45 = vadd.f32 %v2815_v15, %v6675_v54  ;;  %v3675_v53 = vadd.f32 %v3643_v4, %v6802_v49  ;;  %v3347_v25 = vmul.f32 -2.5052108e-08, %v7027_v16 }
 0x350   : > { %v2960_v40 = vmul.f32 3.140625, %v7029_v47  ;;  %v3024_v61 = vmul.f32 0.0009676536, %v7029_v47  ;;  %v7040_v41 = vmul.f32 0.5, %v7029_v47  ;;  %v7042_v7 = vfloor.f32 %v2897_v0  ;;  %v2844_v55 = vpop.f32.mrf.mxu3  ;;  %3705 = vmatpush.msra.mxu0 %v3674_v63 }
 0x351   : > { %8048 = vst [vmem:[#allocation22_spill] sm:$0xff] %v7032_v6  ;;  %v2872_v57 = vmul.f32 0.31830987, %v2816_v45  ;;  %v2845_v8 = vadd.f32 %v2844_v55, %v6675_v54  ;;  %3725 = vmatpush.msra.mxu1 %v3675_v53  ;;  %v3538_v24 = vmul.f32 %v3506_v52, %v6944_v31  ;;  %v3379_v49 = vadd.f32 2.7557319e-06, %v3347_v25 }
 0x352   : > { %v2992_v29 = vsub.f32 %v2813_v28, %v2960_v40  ;;  %v2961_v21 = vmul.f32 3.140625, %v7042_v7  ;;  %v3025_v51 = vmul.f32 0.0009676536, %v7042_v7  ;;  %v7049_v20 = vmul.f32 0.5, %v7042_v7 }
 0x353   : > { %v2904_v4 = vadd.f32 0.5, %v2872_v57  ;;  %v2873_v0 = vmul.f32 0.31830987, %v2845_v8  ;;  %v4453_v15 = vadd.f32 -0.16666667, %v3538_v24  ;;  %v3411_v63 = vmul.f32 %v3379_v49, %v7027_v16 }
 0x354   : > { %v7052_v3 = vsub.f32 %v2992_v29, %v3024_v61  ;;  %v2993_v54 = vsub.f32 %v2842_v38, %v2961_v21  ;;  %v8050_v52 = vsub.f32 0.0, %v6729_v56  ;;  %v3115_v53 = vfloor.f32 %v6753_v36 }
 0x355   : > { %v7062_v25 = vfloor.f32 %v2904_v4  ;;  %v2905_v40 = vadd.f32 0.5, %v2873_v0  ;;  %v3602_v55 = vmul.f32 %v4453_v15, %v6944_v31  ;;  %v4422_v57 = vadd.f32 -0.0001984127, %v3411_v63 }
 0x356   : > { %8049 = vst [vmem:[#allocation41_spill] sm:$0xff] %v7052_v3  ;;  %v7059_v28 = vsel %vm7003_vm4, %v8050_v52, %v6729_v56  ;;  %v7066_v61 = vsub.f32 %v2993_v54, %v3025_v51  ;;  %v3147_v49 = vmul.f32 2.0, %v3115_v53 }
 0x357   : > { %v7070_v38 = vmul.f32 %v7059_v28, %v7059_v28  ;;  %v2968_v56 = vmul.f32 3.140625, %v7062_v25  ;;  %v3032_v14 = vmul.f32 0.0009676536, %v7062_v25  ;;  %v7075_v36 = vmul.f32 0.5, %v7062_v25 }
 0x358   : > { %8051 = vst [vmem:[#allocation23_spill] sm:$0xff] %v7066_v61  ;;  %v7077_v29 = vfloor.f32 %v2905_v40  ;;  %v3634_v21 = vmul.f32 %v3602_v55, %v6924_v1  ;;  %v3475_v51 = vmul.f32 %v4422_v57, %v7027_v16  ;;  %v3179_v31 = vsub.f32 %v6697_v18, %v3147_v49  ;;  %v2818_v49 = vpop.f32.mrf.mxu2 }
 0x359   : > { %v3338_v4 = vmul.f32 -2.5052108e-08, %v7070_v38  ;;  %v3000_v0 = vsub.f32 %v2816_v45, %v2968_v56  ;;  %v3106_v57 = vfloor.f32 %v6719_v11  ;;  %v3107_v45 = vfloor.f32 %v6727_v12  ;;  %v2847_v12 = vpop.f32.mrf.mxu3 }
 0x35a   : > { %v2969_v15 = vmul.f32 3.140625, %v7077_v29  ;;  %v3033_v63 = vmul.f32 0.0009676536, %v7077_v29  ;;  %v7086_v54 = vmul.f32 0.5, %v7077_v29  ;;  %v3666_v52 = vadd.f32 %v3634_v21, %v6924_v1 }
 0x35b   : > { %v3507_v53 = vadd.f32 0.008333334, %v3475_v51  ;;  %v3370_v40 = vadd.f32 2.7557319e-06, %v3338_v4  ;;  %v7090_v24 = vsub.f32 %v3000_v0, %v3032_v14  ;;  %vm3211_vm5 = vcmp.gt.f32.partialorder %v3179_v31, 0.5 }
 0x35c   : > { %v3001_v55 = vsub.f32 %v2845_v8, %v2969_v15  ;;  %3706 = vmatpush.msra.mxu0 %v3666_v52  ;;  %v8052_v18 = vsub.f32 0.0, %v6756_v46  ;;  %v3138_v11 = vmul.f32 2.0, %v3106_v57  ;;  %v3139_v31 = vmul.f32 2.0, %v3107_v45 }
 0x35d   : > { %v3539_v56 = vmul.f32 %v3507_v53, %v7027_v16  ;;  %v3402_v34 = vmul.f32 %v3370_v40, %v7070_v38  ;;  %v2848_v52 = vadd.f32 %v2847_v12, %v6654_v17 }
 0x35e   : > { %v7098_v21 = vsub.f32 %v3001_v55, %v3033_v63  ;;  %v7103_v8 = vsel %vm3211_vm5, %v8052_v18, %v6756_v46  ;;  %v3170_v15 = vsub.f32 %v6666_v19, %v3138_v11  ;;  %v2819_v63 = vadd.f32 %v2818_v49, %v6654_v17 }
 0x35f   : > { %v4454_v14 = vadd.f32 -0.16666667, %v3539_v56  ;;  %v4413_v51 = vadd.f32 -0.0001984127, %v3402_v34  ;;  %v7107_v4 = vmul.f32 %v7103_v8, %v7103_v8  ;;  %v3171_v34 = vsub.f32 %v6671_v43, %v3139_v31 }
 0x360   : > { %vm3202_vm6 = vcmp.gt.f32.partialorder %v3170_v15, 0.5  ;;  %v2880_v55 = vmul.f32 0.31830987, %v2819_v63  ;;  %v2881_v57 = vmul.f32 0.31830987, %v2848_v52  ;;  %v8053_v17 = vsub.f32 0.0, %v6699_v60 }
 0x361   : > { %v3603_v46 = vmul.f32 %v4454_v14, %v7027_v16  ;;  %v3466_v53 = vmul.f32 %v4413_v51, %v7070_v38  ;;  %v3339_v40 = vmul.f32 -2.5052108e-08, %v7107_v4  ;;  %vm3203_vm7 = vcmp.gt.f32.partialorder %v3171_v34, 0.5 }
 0x362   : > { %v7122_v11 = vsel %vm3202_vm6, %v8053_v17, %v6699_v60  ;;  %v2912_v43 = vadd.f32 0.5, %v2880_v55  ;;  %v2913_v49 = vadd.f32 0.5, %v2881_v57  ;;  %v8054_v31 = vsub.f32 0.0, %v6709_v22 }
 0x363   : > { %v3635_v56 = vmul.f32 %v3603_v46, %v6966_v30  ;;  %v3498_v19 = vadd.f32 0.008333334, %v3466_v53  ;;  %v3371_v18 = vadd.f32 2.7557319e-06, %v3339_v40  ;;  %v7126_v16 = vmul.f32 %v7122_v11, %v7122_v11 }
 0x364   : > { %v7134_v15 = vsel %vm3203_vm7, %v8054_v31, %v6709_v22  ;;  %v2944_v53 = vfloor.f32 %v2912_v43  ;;  %v2945_v40 = vfloor.f32 %v2913_v49  ;;  %v3356_v55 = vmul.f32 -2.5052108e-08, %v6918_v37 }
 0x365   : > { %v3667_v12 = vadd.f32 %v3635_v56, %v6966_v30  ;;  %v3530_v14 = vmul.f32 %v3498_v19, %v7070_v38  ;;  %v3403_v51 = vmul.f32 %v3371_v18, %v7107_v4  ;;  %v3330_v60 = vmul.f32 -2.5052108e-08, %v7126_v16 }
 0x366   : > { %v7139_v46 = vmul.f32 %v7134_v15, %v7134_v15  ;;  %v3125_v57 = vfloor.f32 %v6867_v62  ;;  %v2976_v22 = vmul.f32 3.140625, %v2944_v53  ;;  %v3104_v18 = vmul.f32 0.5, %v2944_v53 }
 0x367   : > { %3726 = vmatpush.msra.mxu1 %v3667_v12  ;;  %v4445_v34 = vadd.f32 -0.16666667, %v3530_v14  ;;  %v4414_v30 = vadd.f32 -0.0001984127, %v3403_v51  ;;  %v3362_v56 = vadd.f32 2.7557319e-06, %v3330_v60 }
 0x368   : > { %v3331_v19 = vmul.f32 -2.5052108e-08, %v7139_v46  ;;  %v3040_v0 = vmul.f32 0.0009676536, %v2944_v53  ;;  %v2977_v1 = vmul.f32 3.140625, %v2945_v40  ;;  %v3008_v12 = vsub.f32 %v2819_v63, %v2976_v22 }
 0x369   : > { %v3594_v17 = vmul.f32 %v4445_v34, %v7070_v38  ;;  %v3467_v31 = vmul.f32 %v4414_v30, %v7107_v4  ;;  %v3394_v43 = vmul.f32 %v3362_v56, %v7126_v16  ;;  %v3136_v14 = vfloor.f32 %v3104_v18 }
 0x36a   : > { %v3363_v49 = vadd.f32 2.7557319e-06, %v3331_v19  ;;  %v3009_v62 = vsub.f32 %v2848_v52, %v2977_v1  ;;  %v3041_v60 = vmul.f32 0.0009676536, %v2945_v40  ;;  %v3072_v2 = vsub.f32 %v3008_v12, %v3040_v0 }
 0x36b   : > { %v3626_v51 = vmul.f32 %v3594_v17, %v7059_v28  ;;  %v3499_v5 = vadd.f32 0.008333334, %v3467_v31  ;;  %v4405_v45 = vadd.f32 -0.0001984127, %v3394_v43  ;;  %v3168_v61 = vmul.f32 2.0, %v3136_v14 }
 0x36c   : > { %v3395_v6 = vmul.f32 %v3363_v49, %v7139_v46  ;;  %v3073_v30 = vsub.f32 %v3009_v62, %v3041_v60  ;;  %v3105_v3 = vmul.f32 0.5, %v2945_v40  ;;  %v3264_v22 = vsub.f32 0.0, %v3072_v2 }
 0x36d   : > { %v3658_v38 = vadd.f32 %v3626_v51, %v7059_v28  ;;  %v3531_v34 = vmul.f32 %v3499_v5, %v7107_v4  ;;  %v3458_v56 = vmul.f32 %v4405_v45, %v7126_v16  ;;  %v3200_v19 = vsub.f32 %v2944_v53, %v3168_v61 }
 0x36e   : > { %v4406_v63 = vadd.f32 -0.0001984127, %v3395_v6  ;;  %v3137_v1 = vfloor.f32 %v3105_v3  ;;  %v3265_v52 = vsub.f32 0.0, %v3073_v30  ;;  %v3388_v17 = vadd.f32 2.7557319e-06, %v3356_v55 }
 0x36f   : > { %3707 = vmatpush.msra.mxu0 %v3658_v38  ;;  %v4446_v18 = vadd.f32 -0.16666667, %v3531_v34  ;;  %v3490_v31 = vadd.f32 0.008333334, %v3458_v56  ;;  %vm3232_vm8 = vcmp.gt.f32.partialorder %v3200_v19, 0.5  ;;  %v8055_v51 = vfloor.f32 %v6854_v59 }
 0x370   : > { %v3459_v0 = vmul.f32 %v4406_v63, %v7139_v46  ;;  %v3357_v28 = vmul.f32 -2.5052108e-08, %v6938_v48  ;;  %v7155_v43 = vsel %vm3232_vm8, %v3264_v22, %v3072_v2  ;;  %v3169_v49 = vmul.f32 2.0, %v3137_v1 }
 0x371   : > { %v3595_v5 = vmul.f32 %v4446_v18, %v7107_v4  ;;  %v3420_v6 = vmul.f32 %v3388_v17, %v6918_v37  ;;  %v3522_v61 = vmul.f32 %v3490_v31, %v7126_v16  ;;  %v7161_v3 = vmul.f32 %v7155_v43, %v7155_v43 }
 0x372   : > { %v3491_v45 = vadd.f32 0.008333334, %v3459_v0  ;;  %v3389_v53 = vadd.f32 2.7557319e-06, %v3357_v28  ;;  %v3201_v12 = vsub.f32 %v2945_v40, %v3169_v49  ;;  %v3156_v4 = vmul.f32 2.0, %v8055_v51 }
 0x373   : > { %v3627_v55 = vmul.f32 %v3595_v5, %v7103_v8  ;;  %v4431_v14 = vadd.f32 -0.0001984127, %v3420_v6  ;;  %v4437_v2 = vadd.f32 -0.16666667, %v3522_v61  ;;  %v3157_v38 = vmul.f32 2.0, %v3125_v57 }
 0x374   : > { %v3523_v62 = vmul.f32 %v3491_v45, %v7139_v46  ;;  %v3421_v60 = vmul.f32 %v3389_v53, %v6938_v48  ;;  %vm3233_vm9 = vcmp.gt.f32.partialorder %v3201_v12, 0.5  ;;  %v3188_v63 = vsub.f32 %v6804_v44, %v3156_v4  ;;  %v7199_v5 = vld [vmem:[%s7672_s7] sm:$0x1]  ;;  %v8061_v4 = vld [vmem:[#allocation27_spill] sm:$0xff] }
 0x375   : > { %v3659_v34 = vadd.f32 %v3627_v55, %v7103_v8  ;;  %v3484_v56 = vmul.f32 %v4431_v14, %v6918_v37  ;;  %v3586_v19 = vmul.f32 %v4437_v2, %v7126_v16  ;;  %v7172_v22 = vsel %vm3233_vm9, %v3265_v52, %v3073_v30  ;;  %v8060_v14 = vld [vmem:[#allocation30_spill] sm:$0xff] }
 0x376   : > { %v4438_v40 = vadd.f32 -0.16666667, %v3523_v62  ;;  %v4432_v59 = vadd.f32 -0.0001984127, %v3421_v60  ;;  %v7176_v18 = vmul.f32 %v7172_v22, %v7172_v22  ;;  %vm3220_vm10 = vcmp.gt.f32.partialorder %v3188_v63, 0.5 }
 0x377   : > { %3727 = vmatpush.msra.mxu1 %v3659_v34  ;;  %v3516_v1 = vadd.f32 0.008333334, %v3484_v56  ;;  %v3189_v8 = vsub.f32 %v6831_v39, %v3157_v38  ;;  %v3618_v57 = vmul.f32 %v3586_v19, %v7122_v11  ;;  %v8056_v16 = vsub.f32 0.0, %v6844_v42  ;;  %v8062_v34 = vld [vmem:[#allocation9_spill] sm:$0xff] }
 0x378   : > { %v3587_v17 = vmul.f32 %v4438_v40, %v7139_v46  ;;  %v3485_v44 = vmul.f32 %v4432_v59, %v6938_v48  ;;  %v8057_v39 = vfloor.f32 %v6826_v58  ;;  %v8058_v49 = vsub.f32 0.0, %v6856_v9  ;;  %v8064_v40 = vld [vmem:[#allocation40_spill] sm:$0xff] }
 0x379   : > { %v7185_v30 = vsel %vm3220_vm10, %v8056_v16, %v6844_v42  ;;  %v3548_v52 = vmul.f32 %v3516_v1, %v6918_v37  ;;  %vm3221_vm11 = vcmp.gt.f32.partialorder %v3189_v8, 0.5  ;;  %v3650_v28 = vadd.f32 %v3618_v57, %v7122_v11  ;;  %v8059_v11 = vld [vmem:[#allocation15_spill] sm:$0xff]  ;;  %v8066_v16 = vld [vmem:[#allocation24_spill] sm:$0xff] }
 0x37a   : > { %v7190_v31 = vmul.f32 %v7185_v30, %v7185_v30  ;;  %v3148_v0 = vmul.f32 2.0, %v8057_v39  ;;  %v3619_v46 = vmul.f32 %v3587_v17, %v7134_v15  ;;  %v3517_v42 = vadd.f32 0.008333334, %v3485_v44  ;;  %v8065_v17 = vld [vmem:[#allocation19_spill] sm:$0xff]  ;;  %v8067_v39 = vld [vmem:[#allocation36_spill] sm:$0xff] }
 0x37b   : > { %v7204_v6 = vsel %vm3221_vm11, %v8058_v49, %v6856_v9  ;;  %v4463_v61 = vadd.f32 -0.16666667, %v3548_v52  ;;  %3708 = vmatpush.msra.mxu0 %v3650_v28  ;;  %v3117_v51 = vfloor.f32 %v8060_v14  ;;  %v3108_v2 = vfloor.f32 %v8061_v4 }
 0x37c   : > { %v3348_v45 = vmul.f32 -2.5052108e-08, %v7190_v31  ;;  %v7209_v58 = vmul.f32 %v7204_v6, %v7204_v6  ;;  %v3180_v53 = vsub.f32 %v8059_v11, %v3148_v0  ;;  %v3651_v55 = vadd.f32 %v3619_v46, %v7134_v15  ;;  %4469 = vmatmul.msk.f32.vlgmr.msra.gmra.mxu0 %vm1501_vm1, %v7199_v5 }
 0x37d   : > { %v3549_v12 = vmul.f32 %v3517_v42, %v6938_v48  ;;  %v3612_v9 = vmul.f32 %v4463_v61, %v6918_v37  ;;  %v8063_v15 = vsub.f32 0.0, %v8062_v34  ;;  %v3149_v63 = vmul.f32 2.0, %v3117_v51  ;;  %v8068_v61 = vld [vmem:[#allocation46_spill] sm:$0xff] }
 0x37e   : > { %v3380_v62 = vadd.f32 2.7557319e-06, %v3348_v45  ;;  %v3349_v60 = vmul.f32 -2.5052108e-08, %v7209_v58  ;;  %vm3212_vm12 = vcmp.gt.f32.partialorder %v3180_v53, 0.5  ;;  %3728 = vmatpush.msra.mxu1 %v3651_v55  ;;  %v3140_v19 = vmul.f32 2.0, %v3108_v2 }
 0x37f   : > { %v4464_v38 = vadd.f32 -0.16666667, %v3549_v12  ;;  %v7223_v56 = vsel %vm3212_vm12, %v8063_v15, %v8062_v34  ;;  %4470 = vmatmul.msk.f32.vlgmr.msra.gmra.mxu1 %vm1501_vm1, %v7199_v5  ;;  %v3644_v59 = vmul.f32 %v3612_v9, %v8064_v40  ;;  %v3181_v44 = vsub.f32 %v8065_v17, %v3149_v63  ;;  %v8069_v12 = vld [vmem:[#allocation31_spill] sm:$0xff]  ;;  %v8071_v9 = vld [vmem:[#allocation10_spill] sm:$0xff] }
 0x380   : > { %v3412_v37 = vmul.f32 %v3380_v62, %v7190_v31  ;;  %v3381_v1 = vadd.f32 2.7557319e-06, %v3349_v60  ;;  %v7231_v8 = vmul.f32 %v7223_v56, %v7223_v56  ;;  %v3172_v52 = vsub.f32 %v8066_v16, %v3140_v19 }
 0x381   : > { %v3613_v57 = vmul.f32 %v4464_v38, %v6938_v48  ;;  %v3109_v0 = vfloor.f32 %v8067_v39  ;;  %v3676_v28 = vadd.f32 %v3644_v59, %v8064_v40  ;;  %vm3213_vm13 = vcmp.gt.f32.partialorder %v3181_v44, 0.5  ;;  %v8073_v38 = vld [vmem:[#allocation26_spill] sm:$0xff] }
 0x382   : > { %v4423_v46 = vadd.f32 -0.0001984127, %v3412_v37  ;;  %v3413_v42 = vmul.f32 %v3381_v1, %v7209_v58  ;;  %v3340_v49 = vmul.f32 -2.5052108e-08, %v7231_v8  ;;  %vm3204_vm14 = vcmp.gt.f32.partialorder %v3172_v52, 0.5  ;;  %v8074_v1 = vld [vmem:[#allocation39_spill] sm:$0xff] }
 0x383   : > { %v3645_v45 = vmul.f32 %v3613_v57, %v8068_v61  ;;  %v3141_v11 = vmul.f32 2.0, %v3109_v0  ;;  %3745 = vmatpush.msra.mxu2 %v3676_v28  ;;  %v8070_v14 = vsub.f32 0.0, %v8069_v12  ;;  %v8072_v62 = vsub.f32 0.0, %v8071_v9  ;;  %v8075_v0 = vld [vmem:[#allocation7_spill] sm:$0xff] }
 0x384   : > { %v3476_v48 = vmul.f32 %v4423_v46, %v7190_v31  ;;  %v4424_v53 = vadd.f32 -0.0001984127, %v3413_v42  ;;  %v3372_v55 = vadd.f32 2.7557319e-06, %v3340_v49  ;;  %v3358_v37 = vmul.f32 -2.5052108e-08, %v6992_v10 }
 0x385   : > { %v7245_v51 = vsel %vm3213_vm13, %v8070_v14, %v8069_v12  ;;  %v3677_v4 = vadd.f32 %v3645_v45, %v8068_v61  ;;  %v7255_v60 = vsel %vm3204_vm14, %v8072_v62, %v8071_v9  ;;  %v3173_v34 = vsub.f32 %v8073_v38, %v3141_v11 }
 0x386   : > { %v7250_v2 = vmul.f32 %v7245_v51, %v7245_v51  ;;  %v3508_v15 = vadd.f32 0.008333334, %v3476_v48  ;;  %v3477_v63 = vmul.f32 %v4424_v53, %v7209_v58  ;;  %v3404_v19 = vmul.f32 %v3372_v55, %v7231_v8 }
 0x387   : > { %v7262_v40 = vmul.f32 %v7255_v60, %v7255_v60  ;;  %3765 = vmatpush.msra.mxu3 %v3677_v4  ;;  %vm3205_vm15 = vcmp.gt.f32.partialorder %v3173_v34, 0.5  ;;  %v3126_v57 = vfloor.f32 %v8074_v1  ;;  %v8076_v28 = vsub.f32 0.0, %v8075_v0 }
 0x388   : > { %v3341_v59 = vmul.f32 -2.5052108e-08, %v7250_v2  ;;  %v3540_v17 = vmul.f32 %v3508_v15, %v7190_v31  ;;  %v3509_v44 = vadd.f32 0.008333334, %v3477_v63  ;;  %v4415_v16 = vadd.f32 -0.0001984127, %v3404_v19 }
 0x389   : > { %v3332_v52 = vmul.f32 -2.5052108e-08, %v7262_v40  ;;  %v7272_v46 = vsel %vm3205_vm15, %v8076_v28, %v8075_v0  ;;  %v3390_v42 = vadd.f32 2.7557319e-06, %v3358_v37  ;;  %v3359_v49 = vmul.f32 -2.5052108e-08, %v7022_v35 }
 0x38a   : > { %v3373_v39 = vadd.f32 2.7557319e-06, %v3341_v59  ;;  %v4455_v61 = vadd.f32 -0.16666667, %v3540_v17  ;;  %v3541_v45 = vmul.f32 %v3509_v44, %v7209_v58  ;;  %v3468_v11 = vmul.f32 %v4415_v16, %v7231_v8 }
 0x38b   : > { %v3364_v48 = vadd.f32 2.7557319e-06, %v3332_v52  ;;  %v7280_v55 = vmul.f32 %v7272_v46, %v7272_v46  ;;  %v3422_v12 = vmul.f32 %v3390_v42, %v6992_v10  ;;  %v3391_v14 = vadd.f32 2.7557319e-06, %v3359_v49 }
 0x38c   : > { %v3405_v53 = vmul.f32 %v3373_v39, %v7250_v2  ;;  %v3604_v4 = vmul.f32 %v4455_v61, %v7190_v31  ;;  %v4456_v9 = vadd.f32 -0.16666667, %v3541_v45  ;;  %v3500_v62 = vadd.f32 0.008333334, %v3468_v11 }
 0x38d   : > { %v3396_v38 = vmul.f32 %v3364_v48, %v7262_v40  ;;  %v3333_v15 = vmul.f32 -2.5052108e-08, %v7280_v55  ;;  %v4433_v63 = vadd.f32 -0.0001984127, %v3422_v12  ;;  %v3423_v19 = vmul.f32 %v3391_v14, %v7022_v35 }
 0x38e   : > { %v4416_v34 = vadd.f32 -0.0001984127, %v3405_v53  ;;  %v3636_v59 = vmul.f32 %v3604_v4, %v7185_v30  ;;  %v3605_v37 = vmul.f32 %v4456_v9, %v7209_v58  ;;  %v3532_v1 = vmul.f32 %v3500_v62, %v7231_v8 }
 0x38f   : > { %v4407_v17 = vadd.f32 -0.0001984127, %v3396_v38  ;;  %v3365_v31 = vadd.f32 2.7557319e-06, %v3333_v15  ;;  %v3486_v16 = vmul.f32 %v4433_v63, %v6992_v10  ;;  %v4434_v52 = vadd.f32 -0.0001984127, %v3423_v19 }
 0x390   : > { %v3469_v44 = vmul.f32 %v4416_v34, %v7250_v2  ;;  %v3668_v39 = vadd.f32 %v3636_v59, %v7185_v30  ;;  %v3637_v0 = vmul.f32 %v3605_v37, %v7204_v6  ;;  %v4447_v28 = vadd.f32 -0.16666667, %v3532_v1  ;;  %v8077_v34 = vld [vmem:[#allocation16_spill] sm:$0xff]  ;;  %v8078_v63 = vld [vmem:[#allocation35_spill] sm:$0xff] }
 0x391   : > { %v3460_v42 = vmul.f32 %v4407_v17, %v7262_v40  ;;  %v3397_v61 = vmul.f32 %v3365_v31, %v7280_v55  ;;  %v3518_v58 = vadd.f32 0.008333334, %v3486_v16  ;;  %v3487_v45 = vmul.f32 %v4434_v52, %v7022_v35 }
 0x392   : > { %v3501_v49 = vadd.f32 0.008333334, %v3469_v44  ;;  %3746 = vmatpush.msra.mxu2 %v3668_v39  ;;  %v3669_v11 = vadd.f32 %v3637_v0, %v7204_v6  ;;  %v3596_v48 = vmul.f32 %v4447_v28, %v7231_v8  ;;  %v3158_v12 = vmul.f32 2.0, %v3126_v57 }
 0x393   : > { %v3492_v53 = vadd.f32 0.008333334, %v3460_v42  ;;  %v4408_v14 = vadd.f32 -0.0001984127, %v3397_v61  ;;  %v3550_v4 = vmul.f32 %v3518_v58, %v6992_v10  ;;  %v3519_v9 = vadd.f32 0.008333334, %v3487_v45 }
 0x394   : > { %v3533_v30 = vmul.f32 %v3501_v49, %v7250_v2  ;;  %3766 = vmatpush.msra.mxu3 %v3669_v11  ;;  %v3628_v62 = vmul.f32 %v3596_v48, %v7223_v56  ;;  %v3190_v15 = vsub.f32 %v8077_v34, %v3158_v12  ;;  %v3127_v19 = vfloor.f32 %v8078_v63  ;;  %v8080_v42 = vld [vmem:[#allocation43_spill] sm:$0xff] }
 0x395   : > { %v3524_v38 = vmul.f32 %v3492_v53, %v7262_v40  ;;  %v3461_v8 = vmul.f32 %v4408_v14, %v7280_v55  ;;  %v4465_v59 = vadd.f32 -0.16666667, %v3550_v4  ;;  %v3551_v57 = vmul.f32 %v3519_v9, %v7022_v35 }
 0x396   : > { %v4448_v6 = vadd.f32 -0.16666667, %v3533_v30  ;;  %v3660_v37 = vadd.f32 %v3628_v62, %v7223_v56  ;;  %vm3222_vm2 = vcmp.gt.f32.partialorder %v3190_v15, 0.5  ;;  %v3159_v17 = vmul.f32 2.0, %v3127_v19  ;;  %v8081_v56 = vld [vmem:[#allocation20_spill] sm:$0xff]  ;;  %v8085_v19 = vld [vmem:[#allocation17_spill] sm:$0xff] }
 0x397   : > { %v4439_v1 = vadd.f32 -0.16666667, %v3524_v38  ;;  %v3493_v31 = vadd.f32 0.008333334, %v3461_v8  ;;  %v3614_v16 = vmul.f32 %v4465_v59, %v6992_v10  ;;  %v4466_v52 = vadd.f32 -0.16666667, %v3551_v57 }
 0x398   : > { %v3597_v44 = vmul.f32 %v4448_v6, %v7250_v2  ;;  %3747 = vmatpush.msra.mxu2 %v3660_v37  ;;  %v8079_v0 = vsub.f32 0.0, %v6968_v23  ;;  %v3191_v49 = vsub.f32 %v8080_v42, %v3159_v17  ;;  %v3118_v61 = vfloor.f32 %v8081_v56  ;;  %v8083_v62 = vld [vmem:[#allocation44_spill] sm:$0xff]  ;;  %v8086_v6 = vld [vmem:[#allocation47_spill] sm:$0xff] }
 0x399   : > { %v3588_v39 = vmul.f32 %v4439_v1, %v7262_v40  ;;  %v3525_v2 = vmul.f32 %v3493_v31, %v7280_v55  ;;  %v3646_v45 = vmul.f32 %v3614_v16, %v6982_v50  ;;  %v3615_v10 = vmul.f32 %v4466_v52, %v7022_v35 }
 0x39a   : > { %v7314_v28 = vsel %vm3222_vm2, %v8079_v0, %v6968_v23  ;;  %v3629_v58 = vmul.f32 %v3597_v44, %v7245_v51  ;;  %vm3223_vm3 = vcmp.gt.f32.partialorder %v3191_v49, 0.5  ;;  %v3150_v23 = vmul.f32 2.0, %v3118_v61  ;;  %v8089_v0 = vld [vmem:[#allocation18_spill] sm:$0xff] }
 0x39b   : > { %v3620_v11 = vmul.f32 %v3588_v39, %v7255_v60  ;;  %v7325_v40 = vmul.f32 %v7314_v28, %v7314_v28  ;;  %v4440_v53 = vadd.f32 -0.16666667, %v3525_v2  ;;  %v3678_v12 = vadd.f32 %v3646_v45, %v6982_v50  ;;  %v8091_v45 = vld [vmem:[#allocation6_spill] sm:$0xff] }
 0x39c   : > { %v3661_v48 = vadd.f32 %v3629_v58, %v7245_v51  ;;  %v3647_v30 = vmul.f32 %v3615_v10, %v7007_v32  ;;  %v8082_v35 = vsub.f32 0.0, %v6970_v13  ;;  %v3182_v38 = vsub.f32 %v8083_v62, %v3150_v23  ;;  %v8090_v58 = vld [vmem:[#allocation11_spill] sm:$0xff]  ;;  %v8094_v62 = vld [vmem:[#allocation29_spill] sm:$0xff] }
 0x39d   : > { %v3652_v14 = vadd.f32 %v3620_v11, %v7255_v60  ;;  %v3350_v4 = vmul.f32 -2.5052108e-08, %v7325_v40  ;;  %v3589_v34 = vmul.f32 %v4440_v53, %v7280_v55  ;;  %3785 = vmatpush.msrb.mxu0 %v3678_v12  ;;  %v8084_v60 = vld [vmem:[#allocation42_spill] sm:$0xff]  ;;  %v3111_v8 = vfloor.f32 %v8086_v6  ;;  %v8087_v55 = vld [vmem:[#allocation45_spill] sm:$0xff] }
 0x39e   : > { %v7335_v9 = vsel %vm3223_vm3, %v8082_v35, %v6970_v13  ;;  %3767 = vmatpush.msra.mxu3 %v3661_v48  ;;  %v3679_v51 = vadd.f32 %v3647_v30, %v7007_v32  ;;  %v3119_v15 = vfloor.f32 %v8084_v60  ;;  %vm3214_vm4 = vcmp.gt.f32.partialorder %v3182_v38, 0.5  ;;  %v8092_v12 = vld [vmem:[#allocation13_spill] sm:$0xff] }
 0x39f   : > { %v7342_v50 = vmul.f32 %v7335_v9, %v7335_v9  ;;  %3748 = vmatpush.msra.mxu2 %v3652_v14  ;;  %v3382_v63 = vadd.f32 2.7557319e-06, %v3350_v4  ;;  %v3110_v13 = vfloor.f32 %v8085_v19  ;;  %v3621_v59 = vmul.f32 %v3589_v34, %v7272_v46 }
 0x3a0   : > { %4471 = vmatmul.msk.f32.vlgmr.msra.gmra.mxu2 %vm1501_vm1, %v7199_v5  ;;  %3805 = vmatpush.msrb.mxu1 %v3679_v51  ;;  %v8088_v57 = vsub.f32 0.0, %v8087_v55  ;;  %v3151_v1 = vmul.f32 2.0, %v3119_v15  ;;  %v3143_v16 = vmul.f32 2.0, %v3111_v8  ;;  %v3360_v49 = vmul.f32 -2.5052108e-08, %v7161_v3 }
 0x3a1   : > { %v3351_v32 = vmul.f32 -2.5052108e-08, %v7342_v50  ;;  %v3414_v17 = vmul.f32 %v3382_v63, %v7325_v40  ;;  %v3142_v31 = vmul.f32 2.0, %v3110_v13  ;;  %v3653_v52 = vadd.f32 %v3621_v59, %v7272_v46  ;;  %v8096_v63 = vld [vmem:[#allocation12_spill] sm:$0xff] }
 0x3a2   : > { %v7354_v37 = vsel %vm3214_vm4, %v8088_v57, %v8087_v55  ;;  %v3183_v42 = vsub.f32 %v8089_v0, %v3151_v1  ;;  %v3175_v10 = vsub.f32 %v8091_v45, %v3143_v16  ;;  %v3392_v23 = vadd.f32 2.7557319e-06, %v3360_v49 }
 0x3a3   : > { %v7359_v44 = vmul.f32 %v7354_v37, %v7354_v37  ;;  %v3383_v39 = vadd.f32 2.7557319e-06, %v3351_v32  ;;  %v4425_v56 = vadd.f32 -0.0001984127, %v3414_v17  ;;  %v3174_v2 = vsub.f32 %v8090_v58, %v3142_v31  ;;  %3768 = vmatpush.msra.mxu3 %v3653_v52 }
 0x3a4   : > { %vm3215_vm5 = vcmp.gt.f32.partialorder %v3183_v42, 0.5  ;;  %v3361_v48 = vmul.f32 -2.5052108e-08, %v7176_v18  ;;  %4472 = vmatmul.msk.f32.vlgmr.msra.gmra.mxu3 %vm1501_vm1, %v7199_v5  ;;  %v8093_v30 = vsub.f32 0.0, %v8092_v12  ;;  %v8095_v38 = vsub.f32 0.0, %v8094_v62 }
 0x3a5   : > { %v3342_v61 = vmul.f32 -2.5052108e-08, %v7359_v44  ;;  %v3415_v11 = vmul.f32 %v3383_v39, %v7342_v50  ;;  %v3478_v46 = vmul.f32 %v4425_v56, %v7325_v40  ;;  %vm3206_vm6 = vcmp.gt.f32.partialorder %v3174_v2, 0.5 }
 0x3a6   : > { %v7375_v14 = vsel %vm3215_vm5, %v8093_v30, %v8092_v12  ;;  %v7384_v34 = vsel %vm3206_vm6, %v8095_v38, %v8094_v62  ;;  %vm3207_vm7 = vcmp.gt.f32.partialorder %v3175_v10, 0.5  ;;  %v8097_v19 = vsub.f32 0.0, %v8096_v63 }
 0x3a7   : > { %v3374_v53 = vadd.f32 2.7557319e-06, %v3342_v61  ;;  %v4426_v4 = vadd.f32 -0.0001984127, %v3415_v11  ;;  %v7379_v35 = vmul.f32 %v7375_v14, %v7375_v14  ;;  %v3510_v51 = vadd.f32 0.008333334, %v3478_v46 }
 0x3a8   : > { %v7389_v15 = vmul.f32 %v7384_v34, %v7384_v34  ;;  %v7394_v13 = vsel %vm3207_vm7, %v8097_v19, %v8096_v63  ;;  %v3424_v32 = vmul.f32 %v3392_v23, %v7161_v3  ;;  %v3393_v17 = vadd.f32 2.7557319e-06, %v3361_v48 }
 0x3a9   : > { %v3406_v60 = vmul.f32 %v3374_v53, %v7359_v44  ;;  %v3479_v6 = vmul.f32 %v4426_v4, %v7342_v50  ;;  %v3343_v8 = vmul.f32 -2.5052108e-08, %v7379_v35  ;;  %v7400_v59 = vmul.f32 %v7394_v13, %v7394_v13 }
 0x3aa   : > { %v3542_v55 = vmul.f32 %v3510_v51, %v7325_v40  ;;  %v3334_v1 = vmul.f32 -2.5052108e-08, %v7389_v15  ;;  %v3128_v39 = vfloor.f32 %v7075_v36  ;;  %v4435_v56 = vadd.f32 -0.0001984127, %v3424_v32 }
 0x3ab   : > { %v4417_v57 = vadd.f32 -0.0001984127, %v3406_v60  ;;  %v3511_v31 = vadd.f32 0.008333334, %v3479_v6  ;;  %v3375_v16 = vadd.f32 2.7557319e-06, %v3343_v8  ;;  %v3425_v45 = vmul.f32 %v3393_v17, %v7176_v18 }
 0x3ac   : > { %v3335_v52 = vmul.f32 -2.5052108e-08, %v7400_v59  ;;  %v4457_v0 = vadd.f32 -0.16666667, %v3542_v55  ;;  %v3366_v49 = vadd.f32 2.7557319e-06, %v3334_v1  ;;  %v3488_v48 = vmul.f32 %v4435_v56, %v7161_v3 }
 0x3ad   : > { %v3470_v42 = vmul.f32 %v4417_v57, %v7359_v44  ;;  %v3543_v61 = vmul.f32 %v3511_v31, %v7342_v50  ;;  %v3407_v58 = vmul.f32 %v3375_v16, %v7379_v35  ;;  %v4436_v12 = vadd.f32 -0.0001984127, %v3425_v45 }
 0x3ae   : > { %v3367_v2 = vadd.f32 2.7557319e-06, %v3335_v52  ;;  %v3606_v10 = vmul.f32 %v4457_v0, %v7325_v40  ;;  %v3398_v23 = vmul.f32 %v3366_v49, %v7389_v15  ;;  %v3520_v38 = vadd.f32 0.008333334, %v3488_v48 }
 0x3af   : > { %v3502_v11 = vadd.f32 0.008333334, %v3470_v42  ;;  %v4458_v36 = vadd.f32 -0.16666667, %v3543_v61  ;;  %v4418_v46 = vadd.f32 -0.0001984127, %v3407_v58  ;;  %v3489_v63 = vmul.f32 %v4436_v12, %v7176_v18 }
 0x3b0   : > { %v3399_v53 = vmul.f32 %v3367_v2, %v7400_v59  ;;  %v3638_v30 = vmul.f32 %v3606_v10, %v7314_v28  ;;  %v4409_v62 = vadd.f32 -0.0001984127, %v3398_v23  ;;  %v3552_v32 = vmul.f32 %v3520_v38, %v7161_v3 }
 0x3b1   : > { %v3534_v4 = vmul.f32 %v3502_v11, %v7359_v44  ;;  %v3607_v51 = vmul.f32 %v4458_v36, %v7342_v50  ;;  %v3471_v40 = vmul.f32 %v4418_v46, %v7379_v35  ;;  %v3521_v17 = vadd.f32 0.008333334, %v3489_v63 }
 0x3b2   : > { %v4410_v60 = vadd.f32 -0.0001984127, %v3399_v53  ;;  %v3670_v19 = vadd.f32 %v3638_v30, %v7314_v28  ;;  %v3462_v8 = vmul.f32 %v4409_v62, %v7389_v15  ;;  %v4467_v16 = vadd.f32 -0.16666667, %v3552_v32 }
 0x3b3   : > { %v4449_v6 = vadd.f32 -0.16666667, %v3534_v4  ;;  %v3639_v55 = vmul.f32 %v3607_v51, %v7335_v9  ;;  %v3503_v57 = vadd.f32 0.008333334, %v3471_v40  ;;  %v3160_v52 = vmul.f32 2.0, %v3128_v39 }
 0x3b4   : > { %v3463_v1 = vmul.f32 %v4410_v60, %v7400_v59  ;;  %3786 = vmatpush.msrb.mxu0 %v3670_v19  ;;  %v3494_v31 = vadd.f32 0.008333334, %v3462_v8  ;;  %v3553_v49 = vmul.f32 %v3521_v17, %v7176_v18  ;;  %v3616_v58 = vmul.f32 %v4467_v16, %v7161_v3 }
 0x3b5   : > { %v3598_v50 = vmul.f32 %v4449_v6, %v7359_v44  ;;  %v3671_v0 = vadd.f32 %v3639_v55, %v7335_v9  ;;  %v3535_v28 = vmul.f32 %v3503_v57, %v7379_v35  ;;  %v3192_v2 = vsub.f32 %v7062_v25, %v3160_v52  ;;  %v8100_v55 = vld [vmem:[#allocation41_spill] sm:$0xff] }
 0x3b6   : > { %v3495_v42 = vadd.f32 0.008333334, %v3463_v1  ;;  %v3526_v61 = vmul.f32 %v3494_v31, %v7389_v15  ;;  %v4468_v39 = vadd.f32 -0.16666667, %v3553_v49  ;;  %v3129_v9 = vfloor.f32 %v7086_v54  ;;  %v8102_v1 = vld [vmem:[#allocation23_spill] sm:$0xff]  ;;  %v8104_v31 = vld [vmem:[#allocation14_spill] sm:$0xff] }
 0x3b7   : > { %v3630_v56 = vmul.f32 %v3598_v50, %v7354_v37  ;;  %3806 = vmatpush.msrb.mxu1 %v3671_v0  ;;  %v4450_v44 = vadd.f32 -0.16666667, %v3535_v28  ;;  %v3648_v23 = vmul.f32 %v3616_v58, %v7155_v43  ;;  %vm3224_vm8 = vcmp.gt.f32.partialorder %v3192_v2, 0.5  ;;  %v8105_v0 = vld [vmem:[#allocation22_spill] sm:$0xff]  ;;  %v8106_v58 = vld [vmem:[#allocation8_spill] sm:$0xff] }
 0x3b8   : > { %v3527_v45 = vmul.f32 %v3495_v42, %v7400_v59  ;;  %v4441_v11 = vadd.f32 -0.16666667, %v3526_v61  ;;  %v3617_v3 = vmul.f32 %v4468_v39, %v7176_v18  ;;  %v8098_v25 = vsub.f32 0.0, %v7090_v24 }
 0x3b9   : > { %v3662_v10 = vadd.f32 %v3630_v56, %v7354_v37  ;;  %v3599_v48 = vmul.f32 %v4450_v44, %v7379_v35  ;;  %v3680_v54 = vadd.f32 %v3648_v23, %v7155_v43  ;;  %v3161_v12 = vmul.f32 2.0, %v3129_v9 }
 0x3ba   : > { %v4442_v36 = vadd.f32 -0.16666667, %v3527_v45  ;;  %v7442_v46 = vsel %vm3224_vm8, %v8098_v25, %v7090_v24  ;;  %v3590_v53 = vmul.f32 %v4441_v11, %v7389_v15  ;;  %v3649_v18 = vmul.f32 %v3617_v3, %v7172_v22 }
 0x3bb   : > { %3787 = vmatpush.msrb.mxu0 %v3662_v10  ;;  %v7448_v37 = vmul.f32 %v7442_v46, %v7442_v46  ;;  %v3631_v35 = vmul.f32 %v3599_v48, %v7375_v14  ;;  %v3120_v4 = vfloor.f32 %v7040_v41  ;;  %3825 = vmatpush.msrb.mxu2 %v3680_v54  ;;  %v3193_v43 = vsub.f32 %v7077_v29, %v3161_v12 }
 0x3bc   : > { %v3591_v30 = vmul.f32 %v4442_v36, %v7400_v59  ;;  %v3622_v24 = vmul.f32 %v3590_v53, %v7384_v34  ;;  %v3121_v62 = vfloor.f32 %v7049_v20  ;;  %v3681_v40 = vadd.f32 %v3649_v18, %v7172_v22 }
 0x3bd   : > { %v3352_v15 = vmul.f32 -2.5052108e-08, %v7448_v37  ;;  %v3663_v38 = vadd.f32 %v3631_v35, %v7375_v14  ;;  %v3152_v59 = vmul.f32 2.0, %v3120_v4  ;;  %vm3225_vm9 = vcmp.gt.f32.partialorder %v3193_v43, 0.5 }
 0x3be   : > { %v3623_v51 = vmul.f32 %v3591_v30, %v7394_v13  ;;  %v3654_v60 = vadd.f32 %v3622_v24, %v7384_v34  ;;  %v3153_v41 = vmul.f32 2.0, %v3121_v62  ;;  %3845 = vmatpush.msrb.mxu3 %v3681_v40  ;;  %v8099_v29 = vsub.f32 0.0, %v7098_v21 }
 0x3bf   : > { %v3384_v63 = vadd.f32 2.7557319e-06, %v3352_v15  ;;  %3807 = vmatpush.msrb.mxu1 %v3663_v38  ;;  %v3184_v14 = vsub.f32 %v7029_v47, %v3152_v59  ;;  %v3112_v6 = vfloor.f32 %v6997_v27  ;;  %v3240_v32 = vsub.f32 0.0, %v7018_v26 }
 0x3c0   : > { %v3655_v19 = vadd.f32 %v3623_v51, %v7394_v13  ;;  %v7466_v20 = vsel %vm3225_vm9, %v8099_v29, %v7098_v21  ;;  %3788 = vmatpush.msrb.mxu0 %v3654_v60  ;;  %v3185_v8 = vsub.f32 %v7042_v7, %v3153_v41  ;;  %v3113_v13 = vfloor.f32 %v7013_v33 }
 0x3c1   : > { %v3416_v22 = vmul.f32 %v3384_v63, %v7448_v37  ;;  %v7473_v34 = vmul.f32 %v7466_v20, %v7466_v20  ;;  %4473 = vmatmul.msk.f32.vlgmr.msrb.gmra.mxu0 %vm1501_vm1, %v7199_v5  ;;  %vm3216_vm10 = vcmp.gt.f32.partialorder %v3184_v14, 0.5  ;;  %v3144_v47 = vmul.f32 2.0, %v3112_v6 }
 0x3c2   : > { %3808 = vmatpush.msrb.mxu1 %v3655_v19  ;;  %v8101_v57 = vsub.f32 0.0, %v8100_v55  ;;  %vm3217_vm11 = vcmp.gt.f32.partialorder %v3185_v8, 0.5  ;;  %v8103_v17 = vsub.f32 0.0, %v8102_v1  ;;  %v3145_v52 = vmul.f32 2.0, %v3113_v13 }
 0x3c3   : > { %4474 = vmatmul.msk.f32.vlgmr.msrb.gmra.mxu1 %vm1501_vm1, %v7199_v5  ;;  %v4427_v27 = vadd.f32 -0.0001984127, %v3416_v22  ;;  %v3353_v21 = vmul.f32 -2.5052108e-08, %v7473_v34  ;;  %v3176_v16 = vsub.f32 %v8104_v31, %v3144_v47  ;;  %v3241_v28 = vsub.f32 0.0, %v8105_v0 }
 0x3c4   : > { %v7486_v7 = vsel %vm3216_vm10, %v8101_v57, %v8100_v55  ;;  %v7493_v50 = vsel %vm3217_vm11, %v8103_v17, %v8102_v1  ;;  %v3177_v2 = vsub.f32 %v8106_v58, %v3145_v52  ;;  %vm4078_vm7 = vcmask 1042434  }
 0x3c5   : > { %v3312_v33 = vmul.f32 %v7486_v7, %v7486_v7  ;;  %v3480_v42 = vmul.f32 %v4427_v27, %v7448_v37  ;;  %v3385_v49 = vadd.f32 2.7557319e-06, %v3353_v21  ;;  %v3313_v56 = vmul.f32 %v7493_v50, %v7493_v50 }
 0x3c6   : > { %vm3208_vm12 = vcmp.gt.f32.partialorder %v3176_v16, 0.5  ;;  %vm3209_vm13 = vcmp.gt.f32.partialorder %v3177_v2, 0.5  ;;  %vm4076_vm8 = vcmask 1040384   ;;  %vm4081_vm9 = vcmask 1044484  }
 0x3c7   : > { %v3344_v61 = vmul.f32 -2.5052108e-08, %v3312_v33  ;;  %v3512_v44 = vadd.f32 0.008333334, %v3480_v42  ;;  %v3417_v45 = vmul.f32 %v3385_v49, %v7473_v34  ;;  %v3345_v39 = vmul.f32 -2.5052108e-08, %v3313_v56 }
 0x3c8   : > { %v3272_v9 = vsel %vm3208_vm12, %v3240_v32, %v7018_v26  ;;  %v3273_v3 = vsel %vm3209_vm13, %v3241_v28, %v8105_v0  ;;  %vm4083_vm10 = vcmask 1046534   ;;  %vm4085_vm11 = vcmask 1045508  }
 0x3c9   : > { %v3376_v10 = vadd.f32 2.7557319e-06, %v3344_v61  ;;  %v3304_v11 = vmul.f32 %v3272_v9, %v3272_v9  ;;  %v3544_v23 = vmul.f32 %v3512_v44, %v7448_v37  ;;  %v4428_v48 = vadd.f32 -0.0001984127, %v3417_v45 }
 0x3ca   : > { %v3377_v36 = vadd.f32 2.7557319e-06, %v3345_v39  ;;  %v3305_v54 = vmul.f32 %v3273_v3, %v3273_v3  ;;  %vm4087_vm12 = vcmask 1043456  }
 0x3cb   : > { %v3408_v25 = vmul.f32 %v3376_v10, %v3312_v33  ;;  %v3336_v53 = vmul.f32 -2.5052108e-08, %v3304_v11  ;;  %v4459_v12 = vadd.f32 -0.16666667, %v3544_v23  ;;  %v3481_v35 = vmul.f32 %v4428_v48, %v7473_v34 }
 0x3cc   : > { %v3409_v30 = vmul.f32 %v3377_v36, %v3313_v56  ;;  %v3337_v24 = vmul.f32 -2.5052108e-08, %v3305_v54 }
 0x3cd   : > { %v4419_v18 = vadd.f32 -0.0001984127, %v3408_v25  ;;  %v3368_v4 = vadd.f32 2.7557319e-06, %v3336_v53  ;;  %v3608_v26 = vmul.f32 %v4459_v12, %v7448_v37  ;;  %v3513_v15 = vadd.f32 0.008333334, %v3481_v35 }
 0x3ce   : > { %v4420_v43 = vadd.f32 -0.0001984127, %v3409_v30  ;;  %v3369_v51 = vadd.f32 2.7557319e-06, %v3337_v24 }
 0x3cf   : > { %v3472_v62 = vmul.f32 %v4419_v18, %v3312_v33  ;;  %v3400_v38 = vmul.f32 %v3368_v4, %v3304_v11  ;;  %v3640_v40 = vmul.f32 %v3608_v26, %v7442_v46  ;;  %v3545_v59 = vmul.f32 %v3513_v15, %v7473_v34 }
 0x3d0   : > { %v3473_v60 = vmul.f32 %v4420_v43, %v3313_v56  ;;  %v3401_v19 = vmul.f32 %v3369_v51, %v3305_v54 }
 0x3d1   : > { %v3504_v63 = vadd.f32 0.008333334, %v3472_v62  ;;  %v4411_v41 = vadd.f32 -0.0001984127, %v3400_v38  ;;  %v3672_v29 = vadd.f32 %v3640_v40, %v7442_v46  ;;  %v4460_v14 = vadd.f32 -0.16666667, %v3545_v59 }
 0x3d2   : > { %v3505_v6 = vadd.f32 0.008333334, %v3473_v60  ;;  %v4412_v37 = vadd.f32 -0.0001984127, %v3401_v19 }
 0x3d3   : > { %v3536_v22 = vmul.f32 %v3504_v63, %v3312_v33  ;;  %v3464_v8 = vmul.f32 %v4411_v41, %v3304_v11  ;;  %3826 = vmatpush.msrb.mxu2 %v3672_v29  ;;  %v3609_v13 = vmul.f32 %v4460_v14, %v7473_v34 }
 0x3d4   : > { %v3537_v32 = vmul.f32 %v3505_v6, %v3313_v56  ;;  %v3465_v21 = vmul.f32 %v4412_v37, %v3305_v54 }
 0x3d5   : > { %v4451_v47 = vadd.f32 -0.16666667, %v3536_v22  ;;  %v3496_v27 = vadd.f32 0.008333334, %v3464_v8  ;;  %v3641_v55 = vmul.f32 %v3609_v13, %v7466_v20 }
 0x3d6   : > { %v4452_v57 = vadd.f32 -0.16666667, %v3537_v32  ;;  %v3497_v31 = vadd.f32 0.008333334, %v3465_v21 }
 0x3d7   : > { %v3600_v1 = vmul.f32 %v4451_v47, %v3312_v33  ;;  %v3528_v17 = vmul.f32 %v3496_v27, %v3304_v11  ;;  %v3673_v46 = vadd.f32 %v3641_v55, %v7466_v20 }
 0x3d8   : > { %v3601_v16 = vmul.f32 %v4452_v57, %v3313_v56  ;;  %v3529_v28 = vmul.f32 %v3497_v31, %v3305_v54 }
 0x3d9   : > { %v3632_v52 = vmul.f32 %v3600_v1, %v7486_v7  ;;  %v4443_v0 = vadd.f32 -0.16666667, %v3528_v17  ;;  %3846 = vmatpush.msrb.mxu3 %v3673_v46 }
 0x3da   : > { %v3633_v34 = vmul.f32 %v3601_v16, %v7493_v50  ;;  %v4444_v61 = vadd.f32 -0.16666667, %v3529_v28 }
 0x3db   : > { %v3664_v42 = vadd.f32 %v3632_v52, %v7486_v7  ;;  %v3592_v49 = vmul.f32 %v4443_v0, %v3304_v11  ;;  %v3687_v7 = vpop.permute.xlu0 %3686 }
 0x3dc   : > { %v3665_v58 = vadd.f32 %v3633_v34, %v7493_v50  ;;  %v3593_v2 = vmul.f32 %v4444_v61, %v3305_v54  ;;  %v7521_v39 = vperm.slane %v3687_v7, 0 }
 0x3dd   : > { %3827 = vmatpush.msrb.mxu2 %v3664_v42  ;;  %v3624_v33 = vmul.f32 %v3592_v49, %v3272_v9 }
 0x3de   : > { %3847 = vmatpush.msrb.mxu3 %v3665_v58  ;;  %v3625_v20 = vmul.f32 %v3593_v2, %v3273_v3 }
 0x3df   : > { %v3656_v44 = vadd.f32 %v3624_v33, %v3272_v9 }
 0x3e0   : > { %v3657_v56 = vadd.f32 %v3625_v20, %v3273_v3 }
 0x3e1   : > { %3828 = vmatpush.msrb.mxu2 %v3656_v44 }
 0x3e2   : > { %4475 = vmatmul.msk.f32.vlgmr.msrb.gmra.mxu2 %vm1501_vm1, %v7199_v5  ;;  %3848 = vmatpush.msrb.mxu3 %v3657_v56 }
 0x3e3   : > { %4476 = vmatmul.msk.f32.vlgmr.msrb.gmra.mxu3 %vm1501_vm1, %v7199_v5 }
 0x3f9   : > { %v3710_v23 = vpop.f32.mrf.mxu0 }
 0x3fa   : > { %v7527_v53 = vadd.f32 %v3710_v23, %v7521_v39 }
 0x3fc   : > { %v3730_v50 = vpop.f32.mrf.mxu1  ;;  %v3853_v18 = vmul.f32 0.31830987, %v7527_v53 }
 0x3fd   : > { %v3731_v9 = vadd.f32 %v3730_v50, %v7521_v39 }
 0x3fe   : > { %v3861_v62 = vadd.f32 0.5, %v3853_v18 }
 0x3ff   : > { %v3854_v3 = vmul.f32 0.31830987, %v3731_v9 }
 0x400   : > { %v7533_v60 = vfloor.f32 %v3861_v62 }
 0x401   : > { %v3862_v12 = vadd.f32 0.5, %v3854_v3 }
 0x402   : > { %v3909_v13 = vmul.f32 0.5, %v7533_v60  ;;  %v3877_v57 = vmul.f32 3.140625, %v7533_v60 }
 0x403   : > { %v3870_v26 = vfloor.f32 %v3862_v12 }
 0x404   : > { %v3917_v0 = vfloor.f32 %v3909_v13 }
 0x405   : > { %v3910_v40 = vmul.f32 0.5, %v3870_v26  ;;  %v3878_v22 = vmul.f32 3.140625, %v3870_v26  ;;  %v3894_v49 = vmul.f32 0.0009676536, %v3870_v26 }
 0x407   : > { %v3918_v8 = vfloor.f32 %v3910_v40  ;;  %v3886_v31 = vsub.f32 %v3731_v9, %v3878_v22 }
 0x409   : > { %v3926_v46 = vmul.f32 2.0, %v3918_v8  ;;  %v3902_v7 = vsub.f32 %v3886_v31, %v3894_v49 }
 0x423   : > { %v3750_v45 = vpop.f32.mrf.mxu2 }
 0x424   : > { %v3751_v11 = vadd.f32 %v3750_v45, %v7521_v39  ;;  %v3934_v45 = vsub.f32 %v3870_v26, %v3926_v46 }
 0x426   : > { %v3855_v36 = vmul.f32 0.31830987, %v3751_v11  ;;  %vm3942_vm15 = vcmp.gt.f32.partialorder %v3934_v45, 0.5 }
 0x427   : > { %v3770_v10 = vpop.f32.mrf.mxu3 }
 0x428   : > { %v3771_v48 = vadd.f32 %v3770_v10, %v7521_v39  ;;  %v3863_v5 = vadd.f32 0.5, %v3855_v36  ;;  %v3925_v36 = vmul.f32 2.0, %v3917_v0 }
 0x42a   : > { %v3856_v25 = vmul.f32 0.31830987, %v3771_v48  ;;  %v3871_v4 = vfloor.f32 %v3863_v5 }
 0x42c   : > { %v3864_v35 = vadd.f32 0.5, %v3856_v25  ;;  %v3911_v38 = vmul.f32 0.5, %v3871_v4  ;;  %v3879_v63 = vmul.f32 3.140625, %v3871_v4  ;;  %v3895_v16 = vmul.f32 0.0009676536, %v3871_v4 }
 0x42e   : > { %v3872_v15 = vfloor.f32 %v3864_v35  ;;  %v3919_v41 = vfloor.f32 %v3911_v38  ;;  %v3887_v27 = vsub.f32 %v3751_v11, %v3879_v63  ;;  %v3893_v35 = vmul.f32 0.0009676536, %v7533_v60 }
 0x430   : > { %v3912_v59 = vmul.f32 0.5, %v3872_v15  ;;  %v3880_v14 = vmul.f32 3.140625, %v3872_v15  ;;  %v3927_v21 = vmul.f32 2.0, %v3919_v41  ;;  %v3896_v28 = vmul.f32 0.0009676536, %v3872_v15 }
 0x431   : > { %v3903_v61 = vsub.f32 %v3887_v27, %v3895_v16 }
 0x432   : > { %v3920_v37 = vfloor.f32 %v3912_v59  ;;  %v3888_v1 = vsub.f32 %v3771_v48, %v3880_v14  ;;  %v3935_v58 = vsub.f32 %v3871_v4, %v3927_v21  ;;  %v3885_v48 = vsub.f32 %v7527_v53, %v3877_v57 }
 0x433   : > { %v3951_v3 = vsub.f32 0.0, %v3903_v61  ;;  %v3933_v53 = vsub.f32 %v7533_v60, %v3925_v36 }
 0x434   : > { %v3928_v52 = vmul.f32 2.0, %v3920_v37  ;;  %v3904_v2 = vsub.f32 %v3888_v1, %v3896_v28  ;;  %vm3943_vm1 = vcmp.gt.f32.partialorder %v3935_v58, 0.5  ;;  %v3901_v26 = vsub.f32 %v3885_v48, %v3893_v35 }
 0x435   : > { %vm3941_vm4 = vcmp.gt.f32.partialorder %v3933_v53, 0.5 }
 0x436   : > { %v3936_v50 = vsub.f32 %v3872_v15, %v3928_v52  ;;  %v3952_v5 = vsub.f32 0.0, %v3904_v2  ;;  %v7544_v15 = vsel %vm3943_vm1, %v3951_v3, %v3903_v61  ;;  %v3949_v59 = vsub.f32 0.0, %v3901_v26 }
 0x437   : > { %v7553_v38 = vmul.f32 %v7544_v15, %v7544_v15 }
 0x438   : > { %vm3944_vm14 = vcmp.gt.f32.partialorder %v3936_v50, 0.5  ;;  %v7576_v14 = vsel %vm3941_vm4, %v3949_v59, %v3901_v26 }
 0x43e   : > { %v3790_v54 = vpop.f32.mrf.mxu0 }
 0x43f   : > { %v3791_v30 = vadd.f32 %v3790_v54, %v7521_v39 }
 0x440   : > { %v3810_v29 = vpop.f32.mrf.mxu1 }
 0x441   : > { %v3857_v24 = vmul.f32 0.31830987, %v3791_v30  ;;  %v3811_v6 = vadd.f32 %v3810_v29, %v7521_v39  ;;  %v3975_v29 = vmul.f32 -2.5052108e-08, %v7553_v38 }
 0x443   : > { %v3865_v43 = vadd.f32 0.5, %v3857_v24  ;;  %v3858_v47 = vmul.f32 0.31830987, %v3811_v6 }
 0x445   : > { %v7531_v51 = vfloor.f32 %v3865_v43  ;;  %v3866_v17 = vadd.f32 0.5, %v3858_v47  ;;  %v7547_v43 = vsel %vm3944_vm14, %v3952_v5, %v3904_v2  ;;  %v3983_v47 = vadd.f32 2.7557319e-06, %v3975_v29 }
 0x446   : > { %v7561_v63 = vmul.f32 %v7547_v43, %v7547_v43 }
 0x447   : > { %v3913_v19 = vmul.f32 0.5, %v7531_v51  ;;  %v3881_v32 = vmul.f32 3.140625, %v7531_v51  ;;  %v3874_v42 = vfloor.f32 %v3866_v17  ;;  %v3897_v44 = vmul.f32 0.0009676536, %v7531_v51 }
 0x448   : > { %v3991_v52 = vmul.f32 %v3983_v47, %v7553_v38 }
 0x449   : > { %v3921_v55 = vfloor.f32 %v3913_v19  ;;  %v3889_v34 = vsub.f32 %v3791_v30, %v3881_v32  ;;  %v3882_v20 = vmul.f32 3.140625, %v3874_v42  ;;  %v3914_v56 = vmul.f32 0.5, %v3874_v42 }
 0x44a   : > { %v3898_v23 = vmul.f32 0.0009676536, %v3874_v42  ;;  %v3950_v30 = vsub.f32 0.0, %v3902_v7  ;;  %v7584_v32 = vmul.f32 %v7576_v14, %v7576_v14 }
 0x44b   : > { %v3929_v33 = vmul.f32 2.0, %v3921_v55  ;;  %v3905_v10 = vsub.f32 %v3889_v34, %v3897_v44  ;;  %v3890_v11 = vsub.f32 %v3811_v6, %v3882_v20  ;;  %v3922_v9 = vfloor.f32 %v3914_v56 }
 0x44c   : > { %v7549_v62 = vsel %vm3942_vm15, %v3950_v30, %v3902_v7  ;;  %v3976_v6 = vmul.f32 -2.5052108e-08, %v7561_v63  ;;  %v3973_v16 = vmul.f32 -2.5052108e-08, %v7584_v32 }
 0x44d   : > { %v3937_v25 = vsub.f32 %v7531_v51, %v3929_v33  ;;  %v3906_v54 = vsub.f32 %v3890_v11, %v3898_v23  ;;  %v3930_v12 = vmul.f32 2.0, %v3922_v9  ;;  %v3953_v18 = vsub.f32 0.0, %v3905_v10 }
 0x44e   : > { %v7565_v60 = vmul.f32 %v7549_v62, %v7549_v62  ;;  %v3984_v21 = vadd.f32 2.7557319e-06, %v3976_v6  ;;  %v3981_v2 = vadd.f32 2.7557319e-06, %v3973_v16 }
 0x44f   : > { %v3938_v4 = vsub.f32 %v3874_v42, %v3930_v12  ;;  %v3954_v24 = vsub.f32 0.0, %v3906_v54  ;;  %vm3945_vm2 = vcmp.gt.f32.partialorder %v3937_v25, 0.5 }
 0x450   : > { %v7555_v51 = vsel %vm3945_vm2, %v3953_v18, %v3905_v10  ;;  %v3974_v22 = vmul.f32 -2.5052108e-08, %v7565_v60  ;;  %v3992_v34 = vmul.f32 %v3984_v21, %v7561_v63  ;;  %v3989_v3 = vmul.f32 %v3981_v2, %v7584_v32 }
 0x451   : > { %vm3946_vm3 = vcmp.gt.f32.partialorder %v3938_v4, 0.5  ;;  %v7569_v41 = vmul.f32 %v7555_v51, %v7555_v51 }
 0x452   : > { %v7557_v40 = vsel %vm3946_vm3, %v3954_v24, %v3906_v54  ;;  %v3982_v57 = vadd.f32 2.7557319e-06, %v3974_v22  ;;  %v4480_v56 = vadd.f32 -0.0001984127, %v3992_v34  ;;  %v4477_v22 = vadd.f32 -0.0001984127, %v3989_v3 }
 0x453   : > { %v7573_v19 = vmul.f32 %v7557_v40, %v7557_v40  ;;  %v3977_v8 = vmul.f32 -2.5052108e-08, %v7569_v41 }
 0x454   : > { %v3990_v42 = vmul.f32 %v3982_v57, %v7565_v60  ;;  %v4008_v12 = vmul.f32 %v4480_v56, %v7561_v63 }
 0x455   : > { %v3978_v37 = vmul.f32 -2.5052108e-08, %v7573_v19  ;;  %v3985_v31 = vadd.f32 2.7557319e-06, %v3977_v8 }
 0x456   : > { %v4478_v45 = vadd.f32 -0.0001984127, %v3990_v42 }
 0x457   : > { %v3986_v46 = vadd.f32 2.7557319e-06, %v3978_v37  ;;  %v3993_v58 = vmul.f32 %v3985_v31, %v7569_v41  ;;  %v4016_v37 = vadd.f32 0.008333334, %v4008_v12 }
 0x458   : > { %v4006_v4 = vmul.f32 %v4478_v45, %v7565_v60 }
 0x459   : > { %v3994_v33 = vmul.f32 %v3986_v46, %v7573_v19  ;;  %v4481_v23 = vadd.f32 -0.0001984127, %v3993_v58 }
 0x45a   : > { %v4014_v21 = vadd.f32 0.008333334, %v4006_v4 }
 0x45b   : > { %v4482_v9 = vadd.f32 -0.0001984127, %v3994_v33  ;;  %v4009_v53 = vmul.f32 %v4481_v23, %v7569_v41 }
 0x45d   : > { %v4010_v59 = vmul.f32 %v4482_v9, %v7573_v19  ;;  %v4017_v57 = vadd.f32 0.008333334, %v4009_v53 }
 0x45f   : > { %v4025_v42 = vmul.f32 %v4017_v57, %v7569_v41 }
 0x465   : > { %v3830_v13 = vpop.f32.mrf.mxu2 }
 0x466   : > { %v3831_v27 = vadd.f32 %v3830_v13, %v7521_v39  ;;  %v3850_v55 = vpop.f32.mrf.mxu3 }
 0x467   : > { %v3851_v17 = vadd.f32 %v3850_v55, %v7521_v39  ;;  %v4479_v39 = vadd.f32 -0.0001984127, %v3991_v52  ;;  %v4024_v52 = vmul.f32 %v4016_v37, %v7561_v63 }
 0x468   : > { %v3859_v1 = vmul.f32 0.31830987, %v3831_v27 }
 0x469   : > { %v3860_v28 = vmul.f32 0.31830987, %v3851_v17  ;;  %v4007_v25 = vmul.f32 %v4479_v39, %v7553_v38  ;;  %v4488_v39 = vadd.f32 -0.16666667, %v4024_v52 }
 0x46a   : > { %v3867_v0 = vadd.f32 0.5, %v3859_v1  ;;  %v4018_v1 = vadd.f32 0.008333334, %v4010_v59 }
 0x46b   : > { %v3868_v61 = vadd.f32 0.5, %v3860_v28  ;;  %v4015_v8 = vadd.f32 0.008333334, %v4007_v25  ;;  %v4022_v28 = vmul.f32 %v4014_v21, %v7565_v60  ;;  %v4040_v9 = vmul.f32 %v4488_v39, %v7561_v63 }
 0x46c   : > { %v3875_v49 = vfloor.f32 %v3867_v0 }
 0x46d   : > { %v3876_v7 = vfloor.f32 %v3868_v61  ;;  %v4023_v16 = vmul.f32 %v4015_v8, %v7553_v38 }
 0x46e   : > { %v3883_v44 = vmul.f32 3.140625, %v3875_v49  ;;  %v3915_v20 = vmul.f32 0.5, %v3875_v49  ;;  %v3899_v10 = vmul.f32 0.0009676536, %v3875_v49 }
 0x46f   : > { %v3884_v48 = vmul.f32 3.140625, %v3876_v7  ;;  %v3916_v36 = vmul.f32 0.5, %v3876_v7  ;;  %v3900_v30 = vmul.f32 0.0009676536, %v3876_v7  ;;  %v4487_v2 = vadd.f32 -0.16666667, %v4023_v16 }
 0x470   : > { %v3891_v50 = vsub.f32 %v3831_v27, %v3883_v44  ;;  %v3923_v11 = vfloor.f32 %v3915_v20  ;;  %v4486_v20 = vadd.f32 -0.16666667, %v4022_v28 }
 0x471   : > { %v3892_v35 = vsub.f32 %v3851_v17, %v3884_v48  ;;  %v3924_v18 = vfloor.f32 %v3916_v36  ;;  %v4005_v17 = vmul.f32 %v4477_v22, %v7584_v32  ;;  %v4039_v23 = vmul.f32 %v4487_v2, %v7553_v38 }
 0x472   : > { %v3907_v5 = vsub.f32 %v3891_v50, %v3899_v10  ;;  %v3931_v54 = vmul.f32 2.0, %v3923_v11  ;;  %v4038_v36 = vmul.f32 %v4486_v20, %v7565_v60 }
 0x473   : > { %v3908_v29 = vsub.f32 %v3892_v35, %v3900_v30  ;;  %v3932_v6 = vmul.f32 2.0, %v3924_v18  ;;  %v4013_v58 = vadd.f32 0.008333334, %v4005_v17  ;;  %v4047_v30 = vmul.f32 %v4039_v23, %v7544_v15 }
 0x474   : > { %v3939_v24 = vsub.f32 %v3875_v49, %v3931_v54  ;;  %v3955_v26 = vsub.f32 0.0, %v3907_v5  ;;  %v4026_v49 = vmul.f32 %v4018_v1, %v7573_v19  ;;  %v4048_v18 = vmul.f32 %v4040_v9, %v7547_v43 }
 0x475   : > { %v3940_v47 = vsub.f32 %v3876_v7, %v3932_v6  ;;  %v3956_v27 = vsub.f32 0.0, %v3908_v29  ;;  %v4489_v7 = vadd.f32 -0.16666667, %v4025_v42  ;;  %v4021_v11 = vmul.f32 %v4013_v58, %v7584_v32 }
 0x476   : > { %vm3947_vm5 = vcmp.gt.f32.partialorder %v3939_v24, 0.5  ;;  %v4490_v45 = vadd.f32 -0.16666667, %v4026_v49  ;;  %v4046_v38 = vmul.f32 %v4038_v36, %v7549_v62  ;;  %v4055_v53 = vadd.f32 %v4047_v30, %v7544_v15 }
 0x477   : > { %v3963_v13 = vsel %vm3947_vm5, %v3955_v26, %v3907_v5  ;;  %vm3948_vm6 = vcmp.gt.f32.partialorder %v3940_v47, 0.5  ;;  %v4041_v25 = vmul.f32 %v4489_v7, %v7569_v41  ;;  %v4485_v35 = vadd.f32 -0.16666667, %v4021_v11 }
 0x478   : > { %v3971_v55 = vmul.f32 %v3963_v13, %v3963_v13  ;;  %v3964_v46 = vsel %vm3948_vm6, %v3956_v27, %v3908_v29  ;;  %v4042_v5 = vmul.f32 %v4490_v45, %v7573_v19  ;;  %v4056_v59 = vadd.f32 %v4048_v18, %v7547_v43 }
 0x479   : > { %v3972_v0 = vmul.f32 %v3964_v46, %v3964_v46  ;;  %v4049_v60 = vmul.f32 %v4041_v25, %v7555_v51  ;;  %v4037_v19 = vmul.f32 %v4485_v35, %v7584_v32  ;;  %v4054_v6 = vadd.f32 %v4046_v38, %v7549_v62 }
 0x47a   : > { %v3979_v31 = vmul.f32 -2.5052108e-08, %v3971_v55  ;;  %v4050_v24 = vmul.f32 %v4042_v5, %v7557_v40  ;;  %v4070_v21 = vrot.slane %v4055_v53, 6  ;;  %v4071_v15 = vrot.slane %v4056_v59, 5 }
 0x47b   : > { %v3980_v61 = vmul.f32 -2.5052108e-08, %v3972_v0  ;;  %v4057_v8 = vadd.f32 %v4049_v60, %v7555_v51  ;;  %v4045_v32 = vmul.f32 %v4037_v19, %v7576_v14  ;;  %v4069_v43 = vrot.slane %v4054_v6, 7 }
 0x47c   : > { %v3987_v34 = vadd.f32 2.7557319e-06, %v3979_v31  ;;  %v4058_v37 = vadd.f32 %v4050_v24, %v7557_v40  ;;  %v4079_v17 = vsel %vm4078_vm7, %v4070_v21, %v4071_v15 }
 0x47d   : > { %v3988_v44 = vadd.f32 2.7557319e-06, %v3980_v61  ;;  %v4072_v62 = vrot.slane %v4057_v8, 4 }
 0x47e   : > { %v3995_v33 = vmul.f32 %v3987_v34, %v3971_v55  ;;  %v4073_v51 = vrot.slane %v4058_v37, 3 }
 0x47f   : > { %v3996_v50 = vmul.f32 %v3988_v44, %v3972_v0 }
 0x480   : > { %v4483_v56 = vadd.f32 -0.0001984127, %v3995_v33  ;;  %v4082_v16 = vsel %vm4081_vm9, %v4072_v62, %v4073_v51 }
 0x481   : > { %v4484_v48 = vadd.f32 -0.0001984127, %v3996_v50 }
 0x482   : > { %v4011_v10 = vmul.f32 %v4483_v56, %v3971_v55 }
 0x483   : > { %v4012_v54 = vmul.f32 %v4484_v48, %v3972_v0 }
 0x484   : > { %v4019_v3 = vadd.f32 0.008333334, %v4011_v10 }
 0x485   : > { %v4020_v4 = vadd.f32 0.008333334, %v4012_v54 }
 0x486   : > { %v4027_v12 = vmul.f32 %v4019_v3, %v3971_v55 }
 0x487   : > { %v4028_v26 = vmul.f32 %v4020_v4, %v3972_v0 }
 0x488   : > { %v4491_v63 = vadd.f32 -0.16666667, %v4027_v12 }
 0x489   : > { %v4492_v29 = vadd.f32 -0.16666667, %v4028_v26 }
 0x48a   : > { %v4043_v41 = vmul.f32 %v4491_v63, %v3971_v55 }
 0x48b   : > { %v4044_v47 = vmul.f32 %v4492_v29, %v3972_v0 }
 0x48c   : > { %v4051_v22 = vmul.f32 %v4043_v41, %v3963_v13 }
 0x48d   : > { %v4052_v55 = vmul.f32 %v4044_v47, %v3964_v46 }
 0x48e   : > { %v4059_v27 = vadd.f32 %v4051_v22, %v3963_v13  ;;  %v4053_v13 = vadd.f32 %v4045_v32, %v7576_v14 }
 0x48f   : > { %v4060_v57 = vadd.f32 %v4052_v55, %v3964_v46 }
 0x490   : > { %v4074_v40 = vrot.slane %v4059_v27, 2  ;;  %v4077_v31 = vsel %vm4076_vm8, %v4053_v13, %v4069_v43 }
 0x491   : > { %v4075_v1 = vrot.slane %v4060_v57, 1  ;;  %v4080_v0 = vsel %vm392_vm0, %v4077_v31, %v4079_v17 }
 0x493   : > { %v4084_v52 = vsel %vm4083_vm10, %v4074_v40, %v4075_v1 }
 0x494   : > { %v4086_v46 = vsel %vm4085_vm11, %v4082_v16, %v4084_v52 }
 0x495   : > { %v4088_v28 = vsel %vm4087_vm12, %v4080_v0, %v4086_v46 }
 0x496   : > { %4090 = vst [vmem:[%s328_s10] sm:$0xff] %v4088_v28 }
 0x497   : > { %4567 = shalt.err (!%p4564_p3)
}
 0x498   : > { %4497 = dma.vmem_to_hbm [thread:$0]  (%p4693_p5), %s4105_s8, 128, %s4107_s15, %s4092_s22  }
 0x499 PF: > { %p4503_p4 = scmp.ge.s32.totalorder %s4602_s14, 2  ;;  %s4118_s26 = sand.u32 1, %s4590_s11  }
 0x49a   : > { %s4119_s29 = scalar_lea.sflag [#allocation4], %s4118_s26 }
 0x49b   : > { %p4500_p7 = pnand %p4503_p4, %p4697_p6 }
 0x49d   : > { %p4501_p8 = pneg %p4500_p7 }
 0x49f   : > { %4585 = dma.done.wait (%p4501_p8), %s4119_s29, 128  }
 0x4a0   : > { %4587 = vsyncadd (%p4501_p8), %s4119_s29, 4294967168  ;;  %p21_p9 = scmp.ge.s32.totalorder %s4681_s16, 4   ;;  %s8107_s11 = smov %s4594_s12 }
 0x4a1   : > { %s8108_s12 = smov %s4598_s13  ;;  %s8109_s13 = smov %s4691_s19 }
 0x4a2   : > { %s8110_s14 = smov %s4681_s16  ;;  %23 = sbr.rel (!%p21_p9) target bundleno = 6 (0x6), region = 92 }
 0x4a7   :  { %4125 = vsyncpa [#allocation4], 1 }
 0x4a8   :  { %4127 = vsyncpa [#allocation4 + $0x1], 1 }

// kernel: tpu_custom_call.1
= control target key start
LH: loop header
LB: loop body
LE: loop exit
PB: predicated region body
PF: predicated region fallthrough
CT: control target
= control target key end

     0   :  { %s7665_s0 = inlined_call_operand.vmem [shape: f32[2,2048], index: 0, kind: input, shape index: {}]   ;;  %s7666_s1 = inlined_call_operand.vmem [shape: f32[32,2], index: 1, kind: input, shape index: {}]   ;;  %s7667_s2 = inlined_call_operand.vmem [shape: f32[32,1], index: 2, kind: input, shape index: {}]   ;;  %s7668_s3 = inlined_call_operand.vmem [shape: f32[32,32], index: 3, kind: input, shape index: {}]   ;;  %s7669_s4 = inlined_call_operand.vmem [shape: f32[32,1], index: 4, kind: input, shape index: {}]   ;;  %s7670_s5 = inlined_call_operand.vmem [shape: f32[32,32], index: 5, kind: input, shape index: {}]   ;;  %s7671_s6 = inlined_call_operand.vmem [shape: f32[32,1], index: 6, kind: input, shape index: {}]   ;;  %s7672_s7 = inlined_call_operand.vmem [shape: f32[1,32], index: 7, kind: input, shape index: {}]   ;;  %s7673_s8 = inlined_call_operand.<no memory space> [shape: f32[1,1], index: 8, kind: input, shape index: {}]   ;;  %s7674_s9 = inlined_call_operand.hbm [shape: f32[1,2048], index: 9, kind: output, shape index: {}]  }
   0x1   :  { %v14_v0 = vstv %s7673_s8 }
   0x2   :  { %15 = vst [vmem:[#allocation2] sm:$0x1] %v14_v0 }
   0x3   :  { %16 = vsyncpa [#allocation4], 0 }
   0x4   :  { %18 = vsyncpa [#allocation4 + $0x1], 0  ;;  %s4658_s11 = smov 0   ;;  %s4660_s12 = smov 0  }
   0x5   :  { %s4662_s13 = smov 0   ;;  %s4664_s14 = smov 0  }
   0x6 LB: > { %s4165_s8 = sadd.s32 4294967295, %s4602_s14   ;;  %s4166_s15 = sadd.s32 4294967294, %s4602_s14   ;;  %s4602_s14 = sphi %s4664_s14, %s8110_s14   ;;  %s4598_s13 = sphi %s4662_s13, %s8109_s13   ;;  %s4594_s12 = sphi %s4660_s12, %s8108_s12   ;;  %s4590_s11 = sphi %s4658_s11, %s8107_s11  }
   0x7   : > { %s4681_s16 = sadd.s32 1, %s4602_s14   ;;  %s225_s17 = sadd.s32 1, %s4598_s13 }
   0x8   : > { %s222_s18 = ssub.s32 %s4602_s14, %s4681_s16  ;;  %p235_p0 = scmp.ne.s32.totalorder %s4598_s13, %s4594_s12 }
   0x9   : > { %p223_p1 = scmp.eq.s32.totalorder %s222_s18, 0  ;;  %p236_p2 = scmp.eq.s32.totalorder %s4165_s8, 1 }
   0xa   : > { %p241_p3 = scmp.ne.s32.totalorder %s4594_s12, %s4590_s11  ;;  %p242_p4 = scmp.eq.s32.totalorder %s4166_s15, 1 }
   0xb   : > { %s4691_s19 = scalar_select %p223_p1, %s4598_s13, %s225_s17  }
   0xc   : > { %p4693_p5 = por %p236_p2, %p235_p0  ;;  %p4697_p6 = por %p242_p4, %p241_p3 }
   0xd   : > { %p4169_p7 = scmp.ge.s32.totalorder %s4602_s14, 1  ;;  %p293_p8 = scmp.lt.s32.totalorder %s4602_s14, 3 }
   0xf   : > { %p294_p9 = pnand %p4169_p7, %p293_p8 }
  0x11   : > { %297 = sbr.rel (%p294_p9) target bundleno = 1177 (0x499), region = 56 }
  0x16   : > { %s4703_s22 = sshll.u32 %s4165_s8, 3  ;;  %v345_v1 = vld [vmem:[%s7667_s2 + $0x18] sm:$0xff]  ;;  %v4604_v2 = vmov 0   ;;  %v343_v3 = vld [vmem:[%s7667_s2 + $0x8] sm:$0xff]  ;;  %v344_v5 = vld [vmem:[%s7667_s2 + $0x10] sm:$0xff]  ;;  %vm392_vm0 = vcmask 1041408  }
  0x17   : > { %p330_p10 = scmp.lt.s32.totalorder %s4703_s22, 15  ;;  %4538 = vset.pattern.permute.xlu1 %v4604_v2  ;;  %4537 = vset.pattern.permute.xlu0 %v4604_v2  ;;  %v342_v6 = vld [vmem:[%s7667_s2] sm:$0xff]  ;;  %vm379_vm1 = vcmask 15360   ;;  %v1478_v13 = vld [vmem:[%s7669_s4 + $0x8] sm:$0xff]  ;;  %v2584_v20 = vld [vmem:[%s7671_s6 + $0x10] sm:$0xff]  ;;  %s326_s26 = sand.u32 1, %s4594_s12  }
  0x18   : > { %363 = vperm.xlu0 %4537, %v345_v1   ;;  %353 = vperm.xlu1 %4538, %v343_v3   ;;  %v338_v8 = vld [vmem:[%s7666_s1] sm:$0xff]  ;;  %v339_v19 = vld [vmem:[%s7666_s1 + $0x8] sm:$0xff]  ;;  %v340_v22 = vld [vmem:[%s7666_s1 + $0x10] sm:$0xff]  ;;  %s4102_s30 = scalar_lea.hbm %s7674_s9, %s4703_s22  ;;  %s4560_s25 = scalar_lea.hbm %s7674_s9, 16 }
  0x19   : > { %s331_s27 = scalar_select %p330_p10, %s4703_s22, 15  ;;  %4539 = vset.pattern.permute.xlu2 %v4604_v2  ;;  %v1477_v16 = vld [vmem:[%s7669_s4] sm:$0xff]  ;;  %v2583_v21 = vld [vmem:[%s7671_s6 + $0x8] sm:$0xff]  ;;  %v341_v24 = vld [vmem:[%s7666_s1 + $0x18] sm:$0xff] }
  0x1a   : > { %v3683_v23 = vld [vmem:[#allocation2] sm:$0x1]  ;;  %s4106_s15 = sshll.u32 %s4102_s30, 4  ;;  %s4092_s22 = scalar_lea.sflag [#allocation4], %s326_s26  ;;  %s4107_s15 = int_to_ptr.hbm [resolvable:$true] %s4106_s15 }
  0x1b   : > { %s4172_s28 = sshll.u32 %s331_s27, 1  ;;  %s7626_s27 = sshll.u32 %s326_s26, 3 }
  0x1c   : > { %s333_s10 = scalar_lea.vmem %s7665_s0, %s4172_s28  ;;  %s4554_s17 = sshra.s32 %s4107_s15, 4  ;;  %s4555_s17 = int_to_ptr.hbm [resolvable:$true] %s4554_s17 }
  0x1d   : > { %v336_v4 = vld [vmem:[%s333_s10] sm:$0xff]  ;;  %v337_v7 = vld [vmem:[%s333_s10 + $0x8] sm:$0xff]  ;;  %s328_s10 = scalar_lea.vmem [#allocation3], %s7626_s27  ;;  %s4556_s18 = scalar_lea.hbm %s4555_s17, 8 }
  0x1e   : > { %368 = vst [vmem:[#allocation1] ss:$4 sm:$0xff] %v336_v4  ;;  %s4104_s8 = sshll.u32 %s328_s10, 4  ;;  %p4557_p11 = scmp.ne.s32.totalorder %s4555_s17, %s4556_s18  ;;  %s4105_s8 = int_to_ptr.vmem [resolvable:$true] %s4104_s8 }
  0x1f   : > { %370 = vst [vmem:[#allocation1 + $0x20] ss:$4 sm:$0xff] %v337_v7  ;;  %p4561_p0 = scmp.lt.s32.totalorder %s4555_s17, %s7674_s9  ;;  %p4562_p1 = scmp.lt.s32.totalorder %s4560_s25, %s4556_s18 }
  0x20   : > { %358 = vperm.xlu0 %4537, %v344_v5   ;;  %348 = vperm.xlu1 %4538, %v342_v6   ;;  %p4558_p12 = pnand %p4557_p11, %p4693_p5 }
  0x21   : > { %p4563_p2 = por %p4562_p1, %p4561_p0 }
  0x22   : > { %p4559_p13 = pneg %p4558_p12 }
  0x24   : > { %p4564_p3 = pnand %p4563_p2, %p4559_p13 }
  0x25   : > { %v371_v9 = vld.sshfl [vmem:[#allocation1] sm:$0xff pattern:$0x73625140]  ;;  %v372_v10 = vld.sshfl [vmem:[#allocation1 + $0x8] sm:$0xff pattern:$0x73625140] }
  0x26   : > { %4173 = vmatpush.msk.msra.mxu0 %vm392_vm0, %v371_v9  ;;  %4178 = vmatpush.msk.msra.mxu1 %vm392_vm0, %v372_v10  ;;  %v373_v11 = vld.sshfl [vmem:[#allocation1 + $0x10] sm:$0xff pattern:$0x73625140]  ;;  %v374_v12 = vld.sshfl [vmem:[#allocation1 + $0x18] sm:$0xff pattern:$0x73625140] }
  0x27   : > { %4183 = vmatpush.msk.msra.mxu2 %vm392_vm0, %v373_v11  ;;  %4188 = vmatpush.msk.msra.mxu3 %vm392_vm0, %v374_v12  ;;  %v377_v14 = vld.sshfl [vmem:[#allocation1 + $0x30] sm:$0xff pattern:$0x73625140]  ;;  %v378_v15 = vld.sshfl [vmem:[#allocation1 + $0x38] sm:$0xff pattern:$0x73625140] }
  0x28   : > { %4174 = vmatmul.msk.f32.vlgmr.msra.gmra.mxu0 %vm379_vm1, %v338_v8  ;;  %4179 = vmatmul.msk.f32.vlgmr.msra.gmra.mxu1 %vm379_vm1, %v338_v8  ;;  %v375_v17 = vld.sshfl [vmem:[#allocation1 + $0x20] sm:$0xff pattern:$0x73625140]  ;;  %v376_v18 = vld.sshfl [vmem:[#allocation1 + $0x28] sm:$0xff pattern:$0x73625140] }
  0x29   : > { %4184 = vmatmul.msk.f32.vlgmr.msra.gmra.mxu2 %vm379_vm1, %v338_v8  ;;  %4189 = vmatmul.msk.f32.vlgmr.msra.gmra.mxu3 %vm379_vm1, %v338_v8 }
  0x2a   : > { %1488 = vperm.xlu0 %4537, %v1478_v13   ;;  %4203 = vmatpush.msk.msrb.mxu2 %vm392_vm0, %v377_v14 }
  0x2b   : > { %4208 = vmatpush.msk.msrb.mxu3 %vm392_vm0, %v378_v15  ;;  %1483 = vperm.xlu1 %4538, %v1477_v16  }
  0x2c   : > { %4193 = vmatpush.msk.msrb.mxu0 %vm392_vm0, %v375_v17  ;;  %4198 = vmatpush.msk.msrb.mxu1 %vm392_vm0, %v376_v18 }
  0x30   : > { %4175 = vmatmul.msk.f32.gmra.mxu0 %vm379_vm1, %v339_v19  ;;  %4180 = vmatmul.msk.f32.gmra.mxu1 %vm379_vm1, %v339_v19 }
  0x31   : > { %4185 = vmatmul.msk.f32.gmra.mxu2 %vm379_vm1, %v339_v19  ;;  %4190 = vmatmul.msk.f32.gmra.mxu3 %vm379_vm1, %v339_v19 }
  0x32   : > { %2598 = vperm.xlu0 %4537, %v2584_v20  }
  0x33   : > { %2593 = vperm.xlu1 %4538, %v2583_v21  }
  0x38   : > { %4176 = vmatmul.msk.f32.gmra.mxu0 %vm379_vm1, %v340_v22  ;;  %4181 = vmatmul.msk.f32.gmra.mxu1 %vm379_vm1, %v340_v22 }
  0x39   : > { %4186 = vmatmul.msk.f32.gmra.mxu2 %vm379_vm1, %v340_v22  ;;  %4191 = vmatmul.msk.f32.gmra.mxu3 %vm379_vm1, %v340_v22 }
  0x3a   : > { %3686 = vperm.xlu0 %4537, %v3683_v23  }
  0x40   : > { %4177 = vmatmul.msk.f32.gmra.mxu0 %vm379_vm1, %v341_v24  ;;  %4182 = vmatmul.msk.f32.gmra.mxu1 %vm379_vm1, %v341_v24 }
  0x41   : > { %4187 = vmatmul.msk.f32.gmra.mxu2 %vm379_vm1, %v341_v24  ;;  %4192 = vmatmul.msk.f32.gmra.mxu3 %vm379_vm1, %v341_v24 }
  0x48   : > { %4194 = vmatmul.msk.f32.vlgmr.msrb.gmra.mxu0 %vm379_vm1, %v338_v8  ;;  %4199 = vmatmul.msk.f32.vlgmr.msrb.gmra.mxu1 %vm379_vm1, %v338_v8 }
  0x49   : > { %4204 = vmatmul.msk.f32.vlgmr.msrb.gmra.mxu2 %vm379_vm1, %v338_v8  ;;  %4209 = vmatmul.msk.f32.vlgmr.msrb.gmra.mxu3 %vm379_vm1, %v338_v8 }
  0x50   : > { %4195 = vmatmul.msk.f32.gmra.mxu0 %vm379_vm1, %v339_v19  ;;  %4200 = vmatmul.msk.f32.gmra.mxu1 %vm379_vm1, %v339_v19 }
  0x51   : > { %4205 = vmatmul.msk.f32.gmra.mxu2 %vm379_vm1, %v339_v19  ;;  %4210 = vmatmul.msk.f32.gmra.mxu3 %vm379_vm1, %v339_v19 }
  0x58   : > { %4196 = vmatmul.msk.f32.gmra.mxu0 %vm379_vm1, %v340_v22  ;;  %4201 = vmatmul.msk.f32.gmra.mxu1 %vm379_vm1, %v340_v22 }
  0x59   : > { %4206 = vmatmul.msk.f32.gmra.mxu2 %vm379_vm1, %v340_v22  ;;  %4211 = vmatmul.msk.f32.gmra.mxu3 %vm379_vm1, %v340_v22 }
  0x60   : > { %4197 = vmatmul.msk.f32.gmra.mxu0 %vm379_vm1, %v341_v24  ;;  %4202 = vmatmul.msk.f32.gmra.mxu1 %vm379_vm1, %v341_v24 }
  0x61   : > { %4207 = vmatmul.msk.f32.gmra.mxu2 %vm379_vm1, %v341_v24  ;;  %4212 = vmatmul.msk.f32.gmra.mxu3 %vm379_vm1, %v341_v24  ;;  %vm1501_vm1 = vcmask 261120  }
  0x8a   : > { %v4786_v25 = vpop.permute.xlu1 %353  ;;  %v4792_v35 = vpop.permute.xlu0 %363 }
  0x92   : > { %v4788_v26 = vpop.permute.xlu1 %348  ;;  %v4819_v7 = vpop.permute.xlu0 %358 }
  0xa5   : > { %v426_v27 = vpop.f32.mrf.mxu0  ;;  %v455_v28 = vpop.f32.mrf.mxu1 }
  0xa6   : > { %v427_v29 = vadd.f32 %v426_v27, %v4788_v26  ;;  %v456_v30 = vadd.f32 %v455_v28, %v4788_v26 }
  0xa8   : > { %v641_v31 = vmul.f32 0.31830987, %v427_v29  ;;  %v642_v32 = vmul.f32 0.31830987, %v456_v30 }
  0xaa   : > { %v673_v33 = vadd.f32 0.5, %v641_v31  ;;  %v674_v34 = vadd.f32 0.5, %v642_v32 }
  0xac   : > { %v4794_v36 = vfloor.f32 %v673_v33  ;;  %v4796_v37 = vfloor.f32 %v674_v34  ;;  %v484_v38 = vpop.f32.mrf.mxu2  ;;  %v513_v39 = vpop.f32.mrf.mxu3 }
  0xad   : > { %v485_v40 = vadd.f32 %v484_v38, %v4788_v26  ;;  %v514_v41 = vadd.f32 %v513_v39, %v4788_v26  ;;  %v429_v42 = vpop.f32.mrf.mxu0  ;;  %v458_v43 = vpop.f32.mrf.mxu1 }
  0xae   : > { %v737_v44 = vmul.f32 3.140625, %v4794_v36  ;;  %v430_v47 = vadd.f32 %v429_v42, %v4786_v25  ;;  %v4803_v48 = vadd.f32 %v458_v43, %v4786_v25  ;;  %v801_v50 = vmul.f32 0.0009676536, %v4794_v36 }
  0xaf   : > { %v643_v45 = vmul.f32 0.31830987, %v485_v40  ;;  %v644_v46 = vmul.f32 0.31830987, %v514_v41  ;;  %v738_v51 = vmul.f32 3.140625, %v4796_v37 }
  0xb0   : > { %v769_v49 = vsub.f32 %v427_v29, %v737_v44  ;;  %v649_v54 = vmul.f32 0.31830987, %v430_v47  ;;  %v650_v55 = vmul.f32 0.31830987, %v4803_v48  ;;  %v802_v62 = vmul.f32 0.0009676536, %v4796_v37 }
  0xb1   : > { %v675_v52 = vadd.f32 0.5, %v643_v45  ;;  %v676_v53 = vadd.f32 0.5, %v644_v46  ;;  %v770_v61 = vsub.f32 %v456_v30, %v738_v51 }
  0xb2   : > { %v681_v58 = vadd.f32 0.5, %v649_v54  ;;  %v682_v59 = vadd.f32 0.5, %v650_v55  ;;  %v4812_v60 = vsub.f32 %v769_v49, %v801_v50 }
  0xb3   : > { %v4808_v56 = vfloor.f32 %v675_v52  ;;  %v4810_v57 = vfloor.f32 %v676_v53  ;;  %v4829_v16 = vsub.f32 %v770_v61, %v802_v62 }
  0xb4   : > { %v487_v63 = vpop.f32.mrf.mxu2  ;;  %v516_v0 = vpop.f32.mrf.mxu3  ;;  %v4821_v8 = vfloor.f32 %v681_v58  ;;  %v4823_v9 = vfloor.f32 %v682_v59 }
  0xb5   : > { %7805 = vst [vmem:[#allocation6_spill] sm:$0xff] %v4810_v57  ;;  %v739_v1 = vmul.f32 3.140625, %v4808_v56  ;;  %v803_v2 = vmul.f32 0.0009676536, %v4808_v56  ;;  %v740_v3 = vmul.f32 3.140625, %v4810_v57  ;;  %v432_v5 = vpop.f32.mrf.mxu0  ;;  %v461_v6 = vpop.f32.mrf.mxu1  ;;  %v488_v10 = vadd.f32 %v487_v63, %v4786_v25 }
  0xb6   : > { %v804_v4 = vmul.f32 0.0009676536, %v4810_v57  ;;  %v517_v11 = vadd.f32 %v516_v0, %v4786_v25  ;;  %v433_v14 = vadd.f32 %v432_v5, %v4819_v7  ;;  %v462_v15 = vadd.f32 %v461_v6, %v4819_v7 }
  0xb7   : > { %v771_v12 = vsub.f32 %v485_v40, %v739_v1  ;;  %v772_v13 = vsub.f32 %v514_v41, %v740_v3  ;;  %v745_v17 = vmul.f32 3.140625, %v4821_v8  ;;  %v809_v18 = vmul.f32 0.0009676536, %v4821_v8 }
  0xb8   : > { %v746_v19 = vmul.f32 3.140625, %v4823_v9  ;;  %v651_v22 = vmul.f32 0.31830987, %v488_v10  ;;  %v652_v23 = vmul.f32 0.31830987, %v517_v11 }
  0xb9   : > { %v4834_v20 = vsub.f32 %v771_v12, %v803_v2  ;;  %v4836_v21 = vsub.f32 %v772_v13, %v804_v4  ;;  %v777_v27 = vsub.f32 %v430_v47, %v745_v17  ;;  %v657_v28 = vmul.f32 0.31830987, %v433_v14 }
  0xba   : > { %v658_v29 = vmul.f32 0.31830987, %v462_v15  ;;  %v778_v30 = vsub.f32 %v4803_v48, %v746_v19  ;;  %v810_v31 = vmul.f32 0.0009676536, %v4823_v9  ;;  %v683_v32 = vadd.f32 0.5, %v651_v22 }
  0xbb   : > { %7806 = vst [vmem:[#allocation7_spill] sm:$0xff] %v4834_v20  ;;  %v684_v33 = vadd.f32 0.5, %v652_v23  ;;  %v4842_v38 = vsub.f32 %v777_v27, %v809_v18  ;;  %v689_v39 = vadd.f32 0.5, %v657_v28 }
  0xbc   : > { %7807 = vst [vmem:[#allocation8_spill] sm:$0xff] %v4836_v21  ;;  %v690_v40 = vadd.f32 0.5, %v658_v29  ;;  %v490_v41 = vpop.f32.mrf.mxu2  ;;  %v519_v42 = vpop.f32.mrf.mxu3  ;;  %v4846_v45 = vfloor.f32 %v683_v32  ;;  %v4861_v52 = vsub.f32 %v778_v30, %v810_v31 }
  0xbd   : > { %v4848_v46 = vfloor.f32 %v684_v33  ;;  %v4850_v47 = vfloor.f32 %v689_v39  ;;  %v4855_v49 = vadd.f32 %v490_v41, %v4819_v7  ;;  %v4858_v50 = vadd.f32 %v519_v42, %v4819_v7  ;;  %v435_v62 = vpop.f32.mrf.mxu0  ;;  %v464_v63 = vpop.f32.mrf.mxu1 }
  0xbe   : > { %v4852_v48 = vfloor.f32 %v690_v40  ;;  %v747_v53 = vmul.f32 3.140625, %v4846_v45  ;;  %v811_v55 = vmul.f32 0.0009676536, %v4846_v45  ;;  %v436_v18 = vadd.f32 %v435_v62, %v4792_v35 }
  0xbf   : > { %v748_v54 = vmul.f32 3.140625, %v4848_v46  ;;  %v753_v58 = vmul.f32 3.140625, %v4850_v47  ;;  %v817_v59 = vmul.f32 0.0009676536, %v4850_v47  ;;  %v812_v2 = vmul.f32 0.0009676536, %v4848_v46 }
  0xc0   : > { %v754_v61 = vmul.f32 3.140625, %v4852_v48  ;;  %v779_v0 = vsub.f32 %v488_v10, %v747_v53  ;;  %v818_v3 = vmul.f32 0.0009676536, %v4852_v48  ;;  %v659_v6 = vmul.f32 0.31830987, %v4855_v49 }
  0xc1   : > { %v780_v1 = vsub.f32 %v517_v11, %v748_v54  ;;  %v785_v4 = vsub.f32 %v433_v14, %v753_v58  ;;  %v660_v12 = vmul.f32 0.31830987, %v4858_v50  ;;  %v465_v19 = vadd.f32 %v464_v63, %v4792_v35 }
  0xc2   : > { %v786_v5 = vsub.f32 %v462_v15, %v754_v61  ;;  %v4874_v17 = vsub.f32 %v779_v0, %v811_v55  ;;  %v691_v22 = vadd.f32 0.5, %v659_v6  ;;  %v4883_v27 = vmul.f32 0.5, %v4850_v47 }
  0xc3   : > { %v4878_v10 = vsub.f32 %v780_v1, %v812_v2  ;;  %v4880_v11 = vsub.f32 %v785_v4, %v817_v59  ;;  %v692_v23 = vadd.f32 0.5, %v660_v12  ;;  %v665_v29 = vmul.f32 0.31830987, %v436_v18 }
  0xc4   : > { %7808 = vst [vmem:[#allocation9_spill] sm:$0xff] %v4874_v17  ;;  %v493_v14 = vpop.f32.mrf.mxu2  ;;  %v522_v15 = vpop.f32.mrf.mxu3  ;;  %v4885_v28 = vsub.f32 %v786_v5, %v818_v3  ;;  %v666_v30 = vmul.f32 0.31830987, %v465_v19  ;;  %v4889_v32 = vmul.f32 0.5, %v4852_v48  ;;  %v4891_v33 = vfloor.f32 %v691_v22 }
  0xc5   : > { %7809 = vst [vmem:[#allocation10_spill] sm:$0xff] %v4878_v10  ;;  %v4893_v39 = vfloor.f32 %v692_v23  ;;  %v697_v40 = vadd.f32 0.5, %v665_v29  ;;  %v494_v42 = vadd.f32 %v493_v14, %v4792_v35  ;;  %v4897_v53 = vadd.f32 %v522_v15, %v4792_v35  ;;  %v571_v44 = vpop.f32.mrf.mxu1 }
  0xc6   : > { %v698_v41 = vadd.f32 0.5, %v666_v30  ;;  %v755_v58 = vmul.f32 3.140625, %v4891_v33  ;;  %v819_v62 = vmul.f32 0.0009676536, %v4891_v33  ;;  %v4907_v2 = vmul.f32 0.5, %v4891_v33  ;;  %v542_v30 = vpop.f32.mrf.mxu0 }
  0xc7   : > { %v756_v59 = vmul.f32 3.140625, %v4893_v39  ;;  %v729_v63 = vfloor.f32 %v697_v40  ;;  %v667_v3 = vmul.f32 0.31830987, %v494_v42  ;;  %v668_v4 = vmul.f32 0.31830987, %v4897_v53 }
  0xc8   : > { %v730_v0 = vfloor.f32 %v698_v41  ;;  %v787_v1 = vsub.f32 %v4855_v49, %v755_v58  ;;  %v820_v5 = vmul.f32 0.0009676536, %v4893_v39  ;;  %v4915_v54 = vmul.f32 0.5, %v4893_v39 }
  0xc9   : > { %v761_v6 = vmul.f32 3.140625, %v729_v63  ;;  %v889_v12 = vmul.f32 0.5, %v729_v63  ;;  %v788_v23 = vsub.f32 %v4858_v50, %v756_v59  ;;  %v825_v14 = vmul.f32 0.0009676536, %v729_v63 }
  0xca   : > { %v762_v22 = vmul.f32 3.140625, %v730_v0  ;;  %v826_v15 = vmul.f32 0.0009676536, %v730_v0  ;;  %v890_v29 = vmul.f32 0.5, %v730_v0  ;;  %v699_v58 = vadd.f32 0.5, %v667_v3 }
  0xcb   : > { %v793_v40 = vsub.f32 %v436_v18, %v761_v6  ;;  %v921_v41 = vfloor.f32 %v889_v12  ;;  %v4912_v43 = vsub.f32 %v787_v1, %v819_v62  ;;  %v700_v34 = vadd.f32 0.5, %v668_v4 }
  0xcc   : > { %v794_v49 = vsub.f32 %v465_v19, %v762_v22  ;;  %v922_v31 = vfloor.f32 %v890_v29  ;;  %v731_v50 = vfloor.f32 %v699_v58  ;;  %v4917_v59 = vsub.f32 %v788_v23, %v820_v5 }
  0xcd   : > { %7810 = vst [vmem:[#allocation11_spill] sm:$0xff] %v4912_v43  ;;  %v857_v24 = vsub.f32 %v793_v40, %v825_v14  ;;  %v953_v13 = vmul.f32 2.0, %v921_v41  ;;  %v732_v55 = vfloor.f32 %v700_v34  ;;  %v4920_v18 = vadd.f32 %v542_v30, %v4788_v26  ;;  %v600_v14 = vpop.f32.mrf.mxu2 }
  0xce   : > { %v858_v51 = vsub.f32 %v794_v49, %v826_v15  ;;  %7811 = vst [vmem:[#allocation12_spill] sm:$0xff] %v4917_v59  ;;  %v954_v61 = vmul.f32 2.0, %v922_v31  ;;  %v763_v62 = vmul.f32 3.140625, %v731_v50  ;;  %v4923_v1 = vadd.f32 %v571_v44, %v4788_v26  ;;  %v545_v49 = vpop.f32.mrf.mxu0 }
  0xcf   : > { %v985_v19 = vsub.f32 %v729_v63, %v953_v13  ;;  %v1049_v3 = vsub.f32 0.0, %v857_v24  ;;  %v891_v4 = vmul.f32 0.5, %v731_v50  ;;  %v764_v22 = vmul.f32 3.140625, %v732_v55 }
  0xd0   : > { %v986_v6 = vsub.f32 %v730_v0, %v954_v61  ;;  %v1050_v12 = vsub.f32 0.0, %v858_v51  ;;  %v795_v15 = vsub.f32 %v494_v42, %v763_v62  ;;  %v827_v5 = vmul.f32 0.0009676536, %v731_v50  ;;  %v629_v61 = vpop.f32.mrf.mxu3 }
  0xd1   : > { %vm1017_vm2 = vcmp.gt.f32.partialorder %v985_v19, 0.5  ;;  %v892_v23 = vmul.f32 0.5, %v732_v55  ;;  %v923_v34 = vfloor.f32 %v891_v4  ;;  %v796_v31 = vsub.f32 %v4897_v53, %v764_v22 }
  0xd2   : > { %vm1018_vm3 = vcmp.gt.f32.partialorder %v986_v6, 0.5  ;;  %v828_v29 = vmul.f32 0.0009676536, %v732_v55  ;;  %v4927_v63 = vsel %vm1017_vm2, %v1049_v3, %v857_v24  ;;  %v859_v44 = vsub.f32 %v795_v15, %v827_v5  ;;  %v574_v6 = vpop.f32.mrf.mxu1 }
  0xd3   : > { %v924_v30 = vfloor.f32 %v892_v23  ;;  %v4929_v0 = vsel %vm1018_vm3, %v1050_v12, %v858_v51  ;;  %v955_v40 = vmul.f32 2.0, %v923_v34  ;;  %v645_v42 = vmul.f32 0.31830987, %v4920_v18 }
  0xd4   : > { %v860_v41 = vsub.f32 %v796_v31, %v828_v29  ;;  %v1051_v58 = vsub.f32 0.0, %v859_v44  ;;  %v646_v62 = vmul.f32 0.31830987, %v4923_v1  ;;  %v4934_v53 = vadd.f32 %v600_v14, %v4788_v26 }
  0xd5   : > { %v956_v19 = vmul.f32 2.0, %v924_v30  ;;  %v987_v24 = vsub.f32 %v731_v50, %v955_v40  ;;  %v677_v4 = vadd.f32 0.5, %v645_v42  ;;  %v4937_v22 = vadd.f32 %v629_v61, %v4788_v26  ;;  %v603_v40 = vpop.f32.mrf.mxu2 }
  0xd6   : > { %v1052_v3 = vsub.f32 0.0, %v860_v41  ;;  %v678_v12 = vadd.f32 0.5, %v646_v62  ;;  %v647_v15 = vmul.f32 0.31830987, %v4934_v53  ;;  %v4941_v5 = vadd.f32 %v545_v49, %v4786_v25 }
  0xd7   : > { %v988_v51 = vsub.f32 %v732_v55, %v956_v19  ;;  %vm1019_vm4 = vcmp.gt.f32.partialorder %v987_v24, 0.5  ;;  %v4943_v23 = vfloor.f32 %v677_v4  ;;  %v648_v14 = vmul.f32 0.31830987, %v4937_v22 }
  0xd8   : > { %v4947_v34 = vadd.f32 %v574_v6, %v4786_v25  ;;  %v4949_v50 = vsel %vm1019_vm4, %v1051_v58, %v859_v44  ;;  %v4951_v26 = vfloor.f32 %v678_v12  ;;  %v679_v55 = vadd.f32 0.5, %v647_v15  ;;  %v632_v12 = vpop.f32.mrf.mxu3 }
  0xd9   : > { %7812 = vst [vmem:[#allocation13_spill] sm:$0xff] %v4943_v23  ;;  %vm1020_vm5 = vcmp.gt.f32.partialorder %v988_v51, 0.5  ;;  %v4956_v29 = vmul.f32 %v4927_v63, %v4927_v63  ;;  %v741_v61 = vmul.f32 3.140625, %v4943_v23  ;;  %v4963_v42 = vmul.f32 %v4929_v0, %v4929_v0 }
  0xda   : > { %7813 = vst [vmem:[#allocation14_spill] sm:$0xff] %v4951_v26  ;;  %v4958_v30 = vsel %vm1020_vm5, %v1052_v3, %v860_v41  ;;  %v4967_v44 = vmul.f32 %v4949_v50, %v4949_v50  ;;  %v805_v49 = vmul.f32 0.0009676536, %v4943_v23  ;;  %v742_v58 = vmul.f32 3.140625, %v4951_v26  ;;  %v577_v21 = vpop.f32.mrf.mxu1 }
  0xdb   : > { %v4973_v19 = vmul.f32 %v4958_v30, %v4958_v30  ;;  %v773_v41 = vsub.f32 %v4920_v18, %v741_v61  ;;  %v4976_v62 = vfloor.f32 %v679_v55  ;;  %v680_v6 = vadd.f32 0.5, %v648_v14 }
  0xdc   : > { %v774_v24 = vsub.f32 %v4923_v1, %v742_v58  ;;  %v653_v3 = vmul.f32 0.31830987, %v4941_v5  ;;  %v654_v4 = vmul.f32 0.31830987, %v4947_v34  ;;  %v4982_v51 = vadd.f32 %v603_v40, %v4786_v25 }
  0xdd   : > { %7814 = vst [vmem:[#allocation15_spill] sm:$0xff] %v4976_v62  ;;  %v4984_v15 = vsub.f32 %v773_v41, %v805_v49  ;;  %v4987_v31 = vmul.f32 0.5, %v4943_v23  ;;  %v806_v18 = vmul.f32 0.0009676536, %v4951_v26  ;;  %v743_v55 = vmul.f32 3.140625, %v4976_v62  ;;  %v548_v23 = vpop.f32.mrf.mxu0 }
  0xde   : > { %v4992_v14 = vmul.f32 0.5, %v4951_v26  ;;  %v4994_v1 = vfloor.f32 %v680_v6  ;;  %v685_v61 = vadd.f32 0.5, %v653_v3  ;;  %v686_v58 = vadd.f32 0.5, %v654_v4 }
  0xdf   : > { %7815 = vst [vmem:[#allocation16_spill] sm:$0xff] %v4984_v15  ;;  %v4996_v13 = vsub.f32 %v774_v24, %v806_v18  ;;  %v775_v40 = vsub.f32 %v4934_v53, %v743_v55  ;;  %v655_v49 = vmul.f32 0.31830987, %v4982_v51  ;;  %v5001_v41 = vadd.f32 %v632_v12, %v4786_v25 }
  0xe0   : > { %7816 = vst [vmem:[#allocation17_spill] sm:$0xff] %v4987_v31  ;;  %v807_v26 = vmul.f32 0.0009676536, %v4976_v62  ;;  %v5006_v6 = vmul.f32 0.5, %v4976_v62  ;;  %v744_v3 = vmul.f32 3.140625, %v4994_v1  ;;  %v5010_v4 = vfloor.f32 %v685_v61 }
  0xe1   : > { %7817 = vst [vmem:[#allocation18_spill] sm:$0xff] %v4992_v14  ;;  %v808_v24 = vmul.f32 0.0009676536, %v4994_v1  ;;  %v5012_v53 = vfloor.f32 %v686_v58  ;;  %v687_v18 = vadd.f32 0.5, %v655_v49  ;;  %v656_v12 = vmul.f32 0.31830987, %v5001_v41  ;;  %v606_v49 = vpop.f32.mrf.mxu2 }
  0xe2   : > { %7818 = vst [vmem:[#allocation19_spill] sm:$0xff] %v4994_v1  ;;  %v776_v25 = vsub.f32 %v4937_v22, %v744_v3  ;;  %v5017_v55 = vadd.f32 %v548_v23, %v4819_v7  ;;  %v5020_v20 = vadd.f32 %v577_v21, %v4819_v7  ;;  %v5026_v61 = vmul.f32 0.5, %v4994_v1 }
  0xe3   : > { %7819 = vst [vmem:[#allocation20_spill] sm:$0xff] %v4996_v13  ;;  %v749_v58 = vmul.f32 3.140625, %v5010_v4  ;;  %v813_v22 = vmul.f32 0.0009676536, %v5010_v4  ;;  %v5033_v23 = vmul.f32 0.5, %v5010_v4  ;;  %v750_v21 = vmul.f32 3.140625, %v5012_v53 }
  0xe4   : > { %7820 = vst [vmem:[#allocation21_spill] sm:$0xff] %v5006_v6  ;;  %v5023_v6 = vsub.f32 %v775_v40, %v807_v26  ;;  %v5029_v15 = vsub.f32 %v776_v25, %v808_v24  ;;  %v5037_v62 = vfloor.f32 %v687_v18  ;;  %v688_v26 = vadd.f32 0.5, %v656_v12 }
  0xe5   : > { %7821 = vst [vmem:[#allocation22_spill] sm:$0xff] %v5010_v4  ;;  %v781_v3 = vsub.f32 %v4941_v5, %v749_v58  ;;  %v661_v40 = vmul.f32 0.31830987, %v5017_v55  ;;  %v782_v1 = vsub.f32 %v4947_v34, %v750_v21  ;;  %v662_v24 = vmul.f32 0.31830987, %v5020_v20 }
  0xe6   : > { %7822 = vst [vmem:[#allocation23_spill] sm:$0xff] %v5012_v53  ;;  %v5044_v25 = vadd.f32 %v606_v49, %v4819_v7  ;;  %v5049_v13 = vmul.f32 0.5, %v5012_v53  ;;  %v751_v5 = vmul.f32 3.140625, %v5037_v62  ;;  %v815_v18 = vmul.f32 0.0009676536, %v5037_v62 }
  0xe7   : > { %7823 = vst [vmem:[#allocation24_spill] sm:$0xff] %v5023_v6  ;;  %v814_v6 = vmul.f32 0.0009676536, %v5012_v53  ;;  %v5055_v34 = vfloor.f32 %v688_v26  ;;  %v693_v58 = vadd.f32 0.5, %v661_v40  ;;  %v694_v21 = vadd.f32 0.5, %v662_v24  ;;  %v551_v53 = vpop.f32.mrf.mxu0 }
  0xe8   : > { %7824 = vst [vmem:[#allocation25_spill] sm:$0xff] %v5026_v61  ;;  %v5046_v61 = vsub.f32 %v781_v3, %v813_v22  ;;  %v783_v4 = vsub.f32 %v4982_v51, %v751_v5  ;;  %v5059_v49 = vmul.f32 0.5, %v5037_v62  ;;  %v663_v22 = vmul.f32 0.31830987, %v5044_v25 }
  0xe9   : > { %7825 = vst [vmem:[#allocation26_spill] sm:$0xff] %v5029_v15  ;;  %v635_v15 = vpop.f32.mrf.mxu3  ;;  %v5053_v12 = vsub.f32 %v782_v1, %v814_v6  ;;  %v752_v6 = vmul.f32 3.140625, %v5055_v34  ;;  %v816_v26 = vmul.f32 0.0009676536, %v5055_v34  ;;  %v5069_v51 = vfloor.f32 %v693_v58  ;;  %v609_v58 = vpop.f32.mrf.mxu2 }
  0xea   : > { %7826 = vst [vmem:[#allocation27_spill] sm:$0xff] %v5033_v23  ;;  %v636_v3 = vadd.f32 %v635_v15, %v4819_v7  ;;  %v5067_v40 = vsub.f32 %v783_v4, %v815_v18  ;;  %v5071_v24 = vfloor.f32 %v694_v21  ;;  %v695_v5 = vadd.f32 0.5, %v663_v22 }
  0xeb   : > { %7827 = vst [vmem:[#allocation28_spill] sm:$0xff] %v5037_v62  ;;  %v784_v62 = vsub.f32 %v5001_v41, %v752_v6  ;;  %v552_v15 = vadd.f32 %v551_v53, %v4792_v35  ;;  %v757_v4 = vmul.f32 3.140625, %v5069_v51  ;;  %v821_v18 = vmul.f32 0.0009676536, %v5069_v51 }
  0xec   : > { %7828 = vst [vmem:[#allocation29_spill] sm:$0xff] %v5046_v61  ;;  %v664_v7 = vmul.f32 0.31830987, %v636_v3  ;;  %v5087_v41 = vmul.f32 0.5, %v5069_v51  ;;  %v758_v53 = vmul.f32 3.140625, %v5071_v24  ;;  %v5092_v6 = vfloor.f32 %v695_v5 }
  0xed   : > { %7829 = vst [vmem:[#allocation30_spill] sm:$0xff] %v5049_v13  ;;  %v580_v13 = vpop.f32.mrf.mxu1  ;;  %v5084_v21 = vsub.f32 %v784_v62, %v816_v26  ;;  %v789_v22 = vsub.f32 %v5017_v55, %v757_v4  ;;  %v610_v26 = vadd.f32 %v609_v58, %v4792_v35 }
  0xee   : > { %7830 = vst [vmem:[#allocation31_spill] sm:$0xff] %v5053_v12  ;;  %v5076_v10 = vadd.f32 %v580_v13, %v4792_v35  ;;  %v822_v13 = vmul.f32 0.0009676536, %v5071_v24  ;;  %v696_v1 = vadd.f32 0.5, %v664_v7  ;;  %v759_v55 = vmul.f32 3.140625, %v5092_v6 }
  0xef   : > { %7831 = vst [vmem:[#allocation32_spill] sm:$0xff] %v5055_v34  ;;  %v823_v5 = vmul.f32 0.0009676536, %v5092_v6  ;;  %v671_v58 = vmul.f32 0.31830987, %v610_v26 }
  0xf0   : > { %7832 = vst [vmem:[#allocation33_spill] sm:$0xff] %v5059_v49  ;;  %v5080_v49 = vmul.f32 0.5, %v5055_v34  ;;  %v790_v34 = vsub.f32 %v5020_v20, %v758_v53  ;;  %v670_v62 = vmul.f32 0.31830987, %v5076_v10  ;;  %v5107_v4 = vfloor.f32 %v696_v1 }
  0xf1   : > { %7833 = vst [vmem:[#allocation34_spill] sm:$0xff] %v5067_v40  ;;  %v669_v40 = vmul.f32 0.31830987, %v552_v15  ;;  %v638_v12 = vpop.f32.mrf.mxu3 }
  0xf2   : > { %7834 = vst [vmem:[#allocation35_spill] sm:$0xff] %v5069_v51  ;;  %v5101_v51 = vsub.f32 %v789_v22, %v821_v18  ;;  %v5105_v7 = vsub.f32 %v790_v34, %v822_v13  ;;  %v702_v53 = vadd.f32 0.5, %v670_v62  ;;  %v639_v61 = vadd.f32 %v638_v12, %v4792_v35 }
  0xf3   : > { %7835 = vst [vmem:[#allocation36_spill] sm:$0xff] %v5071_v24  ;;  %v701_v20 = vadd.f32 0.5, %v669_v40  ;;  %v824_v34 = vmul.f32 0.0009676536, %v5107_v4  ;;  %v703_v62 = vadd.f32 0.5, %v671_v58 }
  0xf4   : > { %7836 = vst [vmem:[#allocation37_spill] sm:$0xff] %v5080_v49  ;;  %v5096_v49 = vmul.f32 0.5, %v5071_v24  ;;  %v791_v24 = vsub.f32 %v5044_v25, %v759_v55  ;;  %v734_v13 = vfloor.f32 %v702_v53  ;;  %v5121_v55 = vmul.f32 0.5, %v5107_v4 }
  0xf5   : > { %7837 = vst [vmem:[#allocation38_spill] sm:$0xff] %v5084_v21  ;;  %v760_v21 = vmul.f32 3.140625, %v5107_v4  ;;  %v733_v40 = vfloor.f32 %v701_v20  ;;  %v1145_v35 = vmul.f32 -2.5052108e-08, %v4956_v29 }
  0xf6   : > { %7838 = vst [vmem:[#allocation39_spill] sm:$0xff] %v5087_v41  ;;  %v5118_v1 = vsub.f32 %v791_v24, %v823_v5  ;;  %v766_v5 = vmul.f32 3.140625, %v734_v13  ;;  %v894_v20 = vmul.f32 0.5, %v734_v13 }
  0xf7   : > { %7839 = vst [vmem:[#allocation40_spill] sm:$0xff] %v5092_v6  ;;  %v792_v25 = vsub.f32 %v636_v3, %v760_v21  ;;  %v765_v18 = vmul.f32 3.140625, %v733_v40  ;;  %v893_v22 = vmul.f32 0.5, %v733_v40  ;;  %v829_v24 = vmul.f32 0.0009676536, %v733_v40 }
  0xf8   : > { %7840 = vst [vmem:[#allocation41_spill] sm:$0xff] %v5096_v49  ;;  %v5111_v49 = vmul.f32 0.5, %v5092_v6  ;;  %v672_v6 = vmul.f32 0.31830987, %v639_v61  ;;  %v735_v3 = vfloor.f32 %v703_v62  ;;  %v1177_v41 = vadd.f32 2.7557319e-06, %v1145_v35 }
  0xf9   : > { %7841 = vst [vmem:[#allocation42_spill] sm:$0xff] %v5101_v51  ;;  %v797_v53 = vsub.f32 %v552_v15, %v765_v18  ;;  %v925_v58 = vfloor.f32 %v893_v22  ;;  %v926_v51 = vfloor.f32 %v894_v20  ;;  %v873_v20 = vmul.f32 0.5, %v4821_v8 }
  0xfa   : > { %7842 = vst [vmem:[#allocation43_spill] sm:$0xff] %v5105_v7  ;;  %v5126_v7 = vsub.f32 %v792_v25, %v824_v34  ;;  %v704_v21 = vadd.f32 0.5, %v672_v6  ;;  %v831_v14 = vmul.f32 0.0009676536, %v735_v3  ;;  %v895_v34 = vmul.f32 0.5, %v735_v3 }
  0xfb   : > { %7843 = vst [vmem:[#allocation44_spill] sm:$0xff] %v5107_v4  ;;  %v798_v4 = vsub.f32 %v5076_v10, %v766_v5  ;;  %v861_v23 = vsub.f32 %v797_v53, %v829_v24  ;;  %v957_v12 = vmul.f32 2.0, %v925_v58  ;;  %v958_v57 = vmul.f32 2.0, %v926_v51 }
  0xfc   : > { %7844 = vst [vmem:[#allocation45_spill] sm:$0xff] %v5111_v49  ;;  %v1146_v49 = vmul.f32 -2.5052108e-08, %v4963_v42  ;;  %v736_v25 = vfloor.f32 %v704_v21  ;;  %v1209_v15 = vmul.f32 %v1177_v41, %v4956_v29  ;;  %v927_v22 = vfloor.f32 %v895_v34 }
  0xfd   : > { %7845 = vst [vmem:[#allocation46_spill] sm:$0xff] %v5118_v1  ;;  %v767_v1 = vmul.f32 3.140625, %v735_v3  ;;  %v989_v17 = vsub.f32 %v733_v40, %v957_v12  ;;  %v1053_v59 = vsub.f32 0.0, %v861_v23  ;;  %v990_v18 = vsub.f32 %v734_v13, %v958_v57 }
  0xfe   : > { %7846 = vst [vmem:[#allocation47_spill] sm:$0xff] %v5121_v55  ;;  %v830_v55 = vmul.f32 0.0009676536, %v734_v13  ;;  %v768_v10 = vmul.f32 3.140625, %v736_v25  ;;  %v832_v35 = vmul.f32 0.0009676536, %v736_v25  ;;  %v905_v34 = vfloor.f32 %v873_v20 }
  0xff   : > { %v799_v43 = vsub.f32 %v610_v26, %v767_v1  ;;  %vm1021_vm6 = vcmp.gt.f32.partialorder %v989_v17, 0.5  ;;  %v896_v24 = vmul.f32 0.5, %v736_v25  ;;  %vm1022_vm7 = vcmp.gt.f32.partialorder %v990_v18, 0.5 }
 0x100   : > { %v862_v31 = vsub.f32 %v798_v4, %v830_v55  ;;  %v5130_v5 = vsel %vm1021_vm6, %v1053_v59, %v861_v23  ;;  %v959_v4 = vmul.f32 2.0, %v927_v22  ;;  %v800_v51 = vsub.f32 %v639_v61, %v768_v10 }
 0x101   : > { %v863_v62 = vsub.f32 %v799_v43, %v831_v14  ;;  %v1048_v55 = vsub.f32 0.0, %v5126_v7  ;;  %v5135_v26 = vmul.f32 %v5130_v5, %v5130_v5  ;;  %v928_v57 = vfloor.f32 %v896_v24 }
 0x102   : > { %v1054_v6 = vsub.f32 0.0, %v862_v31  ;;  %v991_v40 = vsub.f32 %v735_v3, %v959_v4  ;;  %v864_v17 = vsub.f32 %v800_v51, %v832_v35  ;;  %v4237_v43 = vadd.f32 -0.0001984127, %v1209_v15 }
 0x103   : > { %v1055_v41 = vsub.f32 0.0, %v863_v62  ;;  %v960_v14 = vmul.f32 2.0, %v928_v57  ;;  %v1178_v13 = vadd.f32 2.7557319e-06, %v1146_v49  ;;  %v913_v59 = vfloor.f32 %v4883_v27 }
 0x104   : > { %v5137_v1 = vsel %vm1022_vm7, %v1054_v6, %v862_v31  ;;  %v914_v23 = vfloor.f32 %v4889_v32  ;;  %vm1023_vm8 = vcmp.gt.f32.partialorder %v991_v40, 0.5  ;;  %v1056_v61 = vsub.f32 0.0, %v864_v17 }
 0x105   : > { %v1273_v12 = vmul.f32 %v4237_v43, %v4956_v29  ;;  %v5143_v53 = vsel %vm1023_vm8, %v1055_v41, %v863_v62  ;;  %v992_v58 = vsub.f32 %v736_v25, %v960_v14  ;;  %v1210_v31 = vmul.f32 %v1178_v13, %v4963_v42 }
 0x106   : > { %v945_v3 = vmul.f32 2.0, %v913_v59  ;;  %v5148_v21 = vmul.f32 %v5137_v1, %v5137_v1  ;;  %v946_v27 = vmul.f32 2.0, %v914_v23  ;;  %v874_v18 = vmul.f32 0.5, %v4823_v9 }
 0x107   : > { %v1305_v49 = vadd.f32 0.008333334, %v1273_v12  ;;  %vm1024_vm9 = vcmp.gt.f32.partialorder %v992_v58, 0.5  ;;  %v4238_v32 = vadd.f32 -0.0001984127, %v1210_v31  ;;  %v5154_v6 = vmul.f32 %v5143_v53, %v5143_v53 }
 0x108   : > { %v977_v15 = vsub.f32 %v4850_v47, %v945_v3  ;;  %v978_v22 = vsub.f32 %v4852_v48, %v946_v27  ;;  %v937_v10 = vmul.f32 2.0, %v905_v34  ;;  %v5158_v62 = vsel %vm1024_vm9, %v1056_v61, %v864_v17 }
 0x109   : > { %v1337_v25 = vmul.f32 %v1305_v49, %v4956_v29  ;;  %v1274_v35 = vmul.f32 %v4238_v32, %v4963_v42  ;;  %v906_v24 = vfloor.f32 %v874_v18  ;;  %v7847_v47 = vsub.f32 0.0, %v4880_v11 }
 0x10a   : > { %vm1009_vm10 = vcmp.gt.f32.partialorder %v977_v15, 0.5  ;;  %vm1010_vm11 = vcmp.gt.f32.partialorder %v978_v22, 0.5  ;;  %v969_v41 = vsub.f32 %v4821_v8, %v937_v10  ;;  %v7848_v40 = vsub.f32 0.0, %v4885_v28 }
 0x10b   : > { %v4269_v4 = vadd.f32 -0.16666667, %v1337_v25  ;;  %v5164_v51 = vsel %vm1009_vm10, %v7847_v47, %v4880_v11  ;;  %v1306_v57 = vadd.f32 0.008333334, %v1274_v35  ;;  %v938_v43 = vmul.f32 2.0, %v906_v24 }
 0x10c   : > { %v5169_v48 = vmul.f32 %v5164_v51, %v5164_v51  ;;  %v5174_v17 = vsel %vm1010_vm11, %v7848_v40, %v4885_v28  ;;  %vm1001_vm12 = vcmp.gt.f32.partialorder %v969_v41, 0.5  ;;  %v865_v8 = vmul.f32 0.5, %v4794_v36 }
 0x10d   : > { %v1401_v14 = vmul.f32 %v4269_v4, %v4956_v29  ;;  %v5179_v11 = vmul.f32 %v5174_v17, %v5174_v17  ;;  %v1338_v13 = vmul.f32 %v1306_v57, %v4963_v42  ;;  %v7849_v23 = vsub.f32 0.0, %v4842_v38 }
 0x10e   : > { %v1137_v59 = vmul.f32 -2.5052108e-08, %v5169_v48  ;;  %v970_v28 = vsub.f32 %v4823_v9, %v938_v43  ;;  %v897_v58 = vfloor.f32 %v865_v8  ;;  %v866_v49 = vmul.f32 0.5, %v4796_v37 }
 0x10f   : > { %v5187_v61 = vsel %vm1001_vm12, %v7849_v23, %v4842_v38  ;;  %v1433_v29 = vmul.f32 %v1401_v14, %v4927_v63  ;;  %v1138_v12 = vmul.f32 -2.5052108e-08, %v5179_v11  ;;  %v4270_v31 = vadd.f32 -0.16666667, %v1338_v13 }
 0x110   : > { %v5194_v20 = vmul.f32 %v5187_v61, %v5187_v61  ;;  %v1169_v3 = vadd.f32 2.7557319e-06, %v1137_v59  ;;  %vm1002_vm13 = vcmp.gt.f32.partialorder %v970_v28, 0.5  ;;  %v7850_v9 = vsub.f32 0.0, %v4861_v52 }
 0x111   : > { %v1465_v27 = vadd.f32 %v1433_v29, %v4927_v63  ;;  %v1170_v38 = vadd.f32 2.7557319e-06, %v1138_v12  ;;  %v1402_v15 = vmul.f32 %v4270_v31, %v4963_v42  ;;  %v929_v22 = vmul.f32 2.0, %v897_v58 }
 0x112   : > { %v1129_v34 = vmul.f32 -2.5052108e-08, %v5194_v20  ;;  %v5202_v32 = vsel %vm1002_vm13, %v7850_v9, %v4861_v52  ;;  %v1201_v18 = vmul.f32 %v1169_v3, %v5169_v48  ;;  %v898_v35 = vfloor.f32 %v866_v49 }
 0x113   : > { %v5208_v25 = vmul.f32 %v5202_v32, %v5202_v32  ;;  %1526 = vmatpush.msra.mxu0 %v1465_v27  ;;  %v1202_v63 = vmul.f32 %v1170_v38, %v5179_v11  ;;  %v1147_v24 = vmul.f32 -2.5052108e-08, %v4967_v44  ;;  %v1434_v4 = vmul.f32 %v1402_v15, %v4929_v0 }
 0x114   : > { %v1161_v10 = vadd.f32 2.7557319e-06, %v1129_v34  ;;  %v4229_v52 = vadd.f32 -0.0001984127, %v1201_v18  ;;  %v961_v42 = vsub.f32 %v4794_v36, %v929_v22  ;;  %v930_v40 = vmul.f32 2.0, %v898_v35 }
 0x115   : > { %v1130_v47 = vmul.f32 -2.5052108e-08, %v5208_v25  ;;  %v4230_v41 = vadd.f32 -0.0001984127, %v1202_v63  ;;  %v1179_v43 = vadd.f32 2.7557319e-06, %v1147_v24  ;;  %v1466_v14 = vadd.f32 %v1434_v4, %v4929_v0 }
 0x116   : > { %v1193_v57 = vmul.f32 %v1161_v10, %v5194_v20  ;;  %v1265_v8 = vmul.f32 %v4229_v52, %v5169_v48  ;;  %vm993_vm14 = vcmp.gt.f32.partialorder %v961_v42, 0.5  ;;  %v7851_v28 = vsub.f32 0.0, %v4812_v60 }
 0x117   : > { %v1162_v13 = vadd.f32 2.7557319e-06, %v1130_v47  ;;  %v1266_v59 = vmul.f32 %v4230_v41, %v5179_v11  ;;  %v962_v36 = vsub.f32 %v4796_v37, %v930_v40  ;;  %1555 = vmatpush.msra.mxu1 %v1466_v14  ;;  %v1211_v31 = vmul.f32 %v1179_v43, %v4967_v44 }
 0x118   : > { %v4221_v23 = vadd.f32 -0.0001984127, %v1193_v57  ;;  %v5222_v29 = vsel %vm993_vm14, %v7851_v28, %v4812_v60  ;;  %v1297_v12 = vadd.f32 0.008333334, %v1265_v8  ;;  %v1148_v27 = vmul.f32 -2.5052108e-08, %v4973_v19 }
 0x119   : > { %v1194_v58 = vmul.f32 %v1162_v13, %v5208_v25  ;;  %v5228_v0 = vmul.f32 %v5222_v29, %v5222_v29  ;;  %v1298_v3 = vadd.f32 0.008333334, %v1266_v59  ;;  %vm994_vm15 = vcmp.gt.f32.partialorder %v962_v36, 0.5 }
 0x11a   : > { %v1257_v49 = vmul.f32 %v4221_v23, %v5194_v20  ;;  %v1329_v60 = vmul.f32 %v1297_v12, %v5169_v48  ;;  %v7852_v34 = vsub.f32 0.0, %v4829_v16  ;;  %v4239_v63 = vadd.f32 -0.0001984127, %v1211_v31 }
 0x11b   : > { %v4222_v38 = vadd.f32 -0.0001984127, %v1194_v58  ;;  %v1121_v37 = vmul.f32 -2.5052108e-08, %v5228_v0  ;;  %v1330_v15 = vmul.f32 %v1298_v3, %v5179_v11  ;;  %v1180_v4 = vadd.f32 2.7557319e-06, %v1148_v27 }
 0x11c   : > { %v5238_v9 = vsel %vm994_vm15, %v7852_v34, %v4829_v16  ;;  %v1289_v18 = vadd.f32 0.008333334, %v1257_v49  ;;  %v4261_v10 = vadd.f32 -0.16666667, %v1329_v60  ;;  %v1275_v16 = vmul.f32 %v4239_v63, %v4967_v44 }
 0x11d   : > { %v5243_v22 = vmul.f32 %v5238_v9, %v5238_v9  ;;  %v1258_v35 = vmul.f32 %v4222_v38, %v5208_v25  ;;  %v1153_v24 = vadd.f32 2.7557319e-06, %v1121_v37  ;;  %v4262_v52 = vadd.f32 -0.16666667, %v1330_v15 }
 0x11e   : > { %v1321_v47 = vmul.f32 %v1289_v18, %v5194_v20  ;;  %v1393_v41 = vmul.f32 %v4261_v10, %v5169_v48  ;;  %v1212_v43 = vmul.f32 %v1180_v4, %v4973_v19  ;;  %v1307_v59 = vadd.f32 0.008333334, %v1275_v16 }
 0x11f   : > { %v1122_v42 = vmul.f32 -2.5052108e-08, %v5243_v22  ;;  %v1290_v57 = vadd.f32 0.008333334, %v1258_v35  ;;  %v1185_v40 = vmul.f32 %v1153_v24, %v5228_v0  ;;  %v1394_v14 = vmul.f32 %v4262_v52, %v5179_v11 }
 0x120   : > { %v4253_v8 = vadd.f32 -0.16666667, %v1321_v47  ;;  %v1425_v23 = vmul.f32 %v1393_v41, %v5164_v51  ;;  %v4240_v12 = vadd.f32 -0.0001984127, %v1212_v43  ;;  %v1339_v3 = vmul.f32 %v1307_v59, %v4967_v44 }
 0x121   : > { %v1154_v13 = vadd.f32 2.7557319e-06, %v1122_v42  ;;  %v1322_v28 = vmul.f32 %v1290_v57, %v5208_v25  ;;  %v4213_v36 = vadd.f32 -0.0001984127, %v1185_v40  ;;  %v1426_v58 = vmul.f32 %v1394_v14, %v5174_v17 }
 0x122   : > { %v1385_v48 = vmul.f32 %v4253_v8, %v5194_v20  ;;  %v1457_v49 = vadd.f32 %v1425_v23, %v5164_v51  ;;  %v1276_v60 = vmul.f32 %v4240_v12, %v4973_v19  ;;  %v4271_v15 = vadd.f32 -0.16666667, %v1339_v3 }
 0x123   : > { %v1186_v31 = vmul.f32 %v1154_v13, %v5243_v22  ;;  %v4254_v11 = vadd.f32 -0.16666667, %v1322_v28  ;;  %v1249_v27 = vmul.f32 %v4213_v36, %v5228_v0  ;;  %v1458_v38 = vadd.f32 %v1426_v58, %v5174_v17  ;;  %v7853_v58 = vld [vmem:[#allocation11_spill] sm:$0xff] }
 0x124   : > { %v1417_v37 = vmul.f32 %v1385_v48, %v5187_v61  ;;  %v5266_v20 = vmul.f32 %v5158_v62, %v5158_v62  ;;  %1527 = vmatpush.msra.mxu0 %v1457_v49  ;;  %v1308_v51 = vadd.f32 0.008333334, %v1276_v60  ;;  %v1403_v17 = vmul.f32 %v4271_v15, %v4967_v44 }
 0x125   : > { %v4214_v34 = vadd.f32 -0.0001984127, %v1186_v31  ;;  %v1386_v18 = vmul.f32 %v4254_v11, %v5208_v25  ;;  %v1281_v63 = vadd.f32 0.008333334, %v1249_v27  ;;  %1556 = vmatpush.msra.mxu1 %v1458_v38  ;;  %v915_v24 = vfloor.f32 %v4907_v2  ;;  %v7855_v31 = vld [vmem:[#allocation12_spill] sm:$0xff]  ;;  %v5311_v38 = vld [vmem:[%s7668_s3] sm:$0xff] }
 0x126   : > { %v1449_v10 = vadd.f32 %v1417_v37, %v5187_v61  ;;  %v1340_v47 = vmul.f32 %v1308_v51, %v4973_v19  ;;  %v916_v25 = vfloor.f32 %v4915_v54  ;;  %v1435_v16 = vmul.f32 %v1403_v17, %v4949_v50 }
 0x127   : > { %v1250_v35 = vmul.f32 %v4214_v34, %v5243_v22  ;;  %v1418_v4 = vmul.f32 %v1386_v18, %v5202_v32  ;;  %v1313_v52 = vmul.f32 %v1281_v63, %v5228_v0  ;;  %v947_v61 = vmul.f32 2.0, %v915_v24 }
 0x128   : > { %1528 = vmatpush.msra.mxu0 %v1449_v10  ;;  %v875_v41 = vmul.f32 0.5, %v4846_v45  ;;  %v4272_v2 = vadd.f32 -0.16666667, %v1340_v47  ;;  %v948_v40 = vmul.f32 2.0, %v916_v25  ;;  %v1467_v14 = vadd.f32 %v1435_v16, %v4949_v50  ;;  %v7859_v10 = vld [vmem:[#allocation6_spill] sm:$0xff]  ;;  %v7860_v16 = vld [vmem:[#allocation17_spill] sm:$0xff] }
 0x129   : > { %v1282_v42 = vadd.f32 0.008333334, %v1250_v35  ;;  %v1450_v44 = vadd.f32 %v1418_v4, %v5202_v32  ;;  %v4245_v57 = vadd.f32 -0.16666667, %v1313_v52  ;;  %v979_v8 = vsub.f32 %v4891_v33, %v947_v61 }
 0x12a   : > { %v907_v13 = vfloor.f32 %v875_v41  ;;  %v1404_v59 = vmul.f32 %v4272_v2, %v4973_v19  ;;  %v980_v23 = vsub.f32 %v4893_v39, %v948_v40  ;;  %v876_v28 = vmul.f32 0.5, %v4848_v46  ;;  %1584 = vmatpush.msra.mxu2 %v1467_v14 }
 0x12b   : > { %v1314_v43 = vmul.f32 %v1282_v42, %v5243_v22  ;;  %1557 = vmatpush.msra.mxu1 %v1450_v44  ;;  %v1377_v54 = vmul.f32 %v4245_v57, %v5228_v0  ;;  %vm1011_vm2 = vcmp.gt.f32.partialorder %v979_v8, 0.5  ;;  %v867_v12 = vmul.f32 0.5, %v4808_v56  ;;  %v7861_v57 = vld [vmem:[#allocation18_spill] sm:$0xff] }
 0x12c   : > { %v939_v36 = vmul.f32 2.0, %v907_v13  ;;  %v1436_v33 = vmul.f32 %v1404_v59, %v4958_v30  ;;  %v7854_v48 = vsub.f32 0.0, %v7853_v58  ;;  %vm1012_vm3 = vcmp.gt.f32.partialorder %v980_v23, 0.5 }
 0x12d   : > { %v4246_v32 = vadd.f32 -0.16666667, %v1314_v43  ;;  %v1409_v50 = vmul.f32 %v1377_v54, %v5222_v29  ;;  %v7856_v3 = vsub.f32 0.0, %v7855_v31  ;;  %v908_v37 = vfloor.f32 %v876_v28  ;;  %v7863_v54 = vld [vmem:[#allocation10_spill] sm:$0xff] }
 0x12e   : > { %v5293_v0 = vsel %vm1011_vm2, %v7854_v48, %v7853_v58  ;;  %v971_v11 = vsub.f32 %v4846_v45, %v939_v36  ;;  %v1468_v60 = vadd.f32 %v1436_v33, %v4958_v30  ;;  %v899_v45 = vfloor.f32 %v867_v12  ;;  %v5361_v33 = vld [vmem:[%s7668_s3 + $0x8] sm:$0xff] }
 0x12f   : > { %v1378_v39 = vmul.f32 %v4246_v32, %v5243_v22  ;;  %v5298_v19 = vmul.f32 %v5293_v0, %v5293_v0  ;;  %v5303_v49 = vsel %vm1012_vm3, %v7856_v3, %v7855_v31  ;;  %v1441_v27 = vadd.f32 %v1409_v50, %v5222_v29  ;;  %v7857_v29 = vld [vmem:[#allocation9_spill] sm:$0xff]  ;;  %v7865_v32 = vld [vmem:[#allocation7_spill] sm:$0xff] }
 0x130   : > { %v5315_v22 = vmul.f32 %v5303_v49, %v5303_v49  ;;  %vm1003_vm4 = vcmp.gt.f32.partialorder %v971_v11, 0.5  ;;  %1613 = vmatpush.msra.mxu3 %v1468_v60  ;;  %v7858_v18 = vsub.f32 0.0, %v7857_v29  ;;  %v940_v51 = vmul.f32 2.0, %v908_v37 }
 0x131   : > { %v1410_v34 = vmul.f32 %v1378_v39, %v5238_v9  ;;  %v1139_v15 = vmul.f32 -2.5052108e-08, %v5298_v19  ;;  %1529 = vmatpush.msra.mxu0 %v1441_v27  ;;  %v868_v35 = vmul.f32 0.5, %v7859_v10  ;;  %v931_v52 = vmul.f32 2.0, %v899_v45  ;;  %v7867_v27 = vld [vmem:[#allocation30_spill] sm:$0xff]  ;;  %v7868_v45 = vld [vmem:[#allocation8_spill] sm:$0xff] }
 0x132   : > { %v1140_v30 = vmul.f32 -2.5052108e-08, %v5315_v22  ;;  %v5323_v63 = vsel %vm1003_vm4, %v7858_v18, %v7857_v29  ;;  %4277 = vmatmul.msk.f32.vlgmr.msra.gmra.mxu0 %vm1501_vm1, %v5311_v38  ;;  %v972_v25 = vsub.f32 %v4848_v46, %v940_v51  ;;  %v901_v61 = vfloor.f32 %v7860_v16  ;;  %v7862_v46 = vld [vmem:[#allocation27_spill] sm:$0xff]  ;;  %v7884_v16 = vld [vmem:[#allocation13_spill] sm:$0xff] }
 0x133   : > { %v1442_v17 = vadd.f32 %v1410_v34, %v5238_v9  ;;  %v1171_v24 = vadd.f32 2.7557319e-06, %v1139_v15  ;;  %v5331_v4 = vmul.f32 %v5323_v63, %v5323_v63  ;;  %v900_v42 = vfloor.f32 %v868_v35  ;;  %v7870_v35 = vld [vmem:[#allocation22_spill] sm:$0xff] }
 0x134   : > { %v1172_v47 = vadd.f32 2.7557319e-06, %v1140_v30  ;;  %v963_v44 = vsub.f32 %v4808_v56, %v931_v52  ;;  %v902_v2 = vfloor.f32 %v7861_v57  ;;  %vm1004_vm5 = vcmp.gt.f32.partialorder %v972_v25, 0.5 }
 0x135   : > { %1558 = vmatpush.msra.mxu1 %v1442_v17  ;;  %v1203_v41 = vmul.f32 %v1171_v24, %v5298_v19  ;;  %v1131_v9 = vmul.f32 -2.5052108e-08, %v5331_v4  ;;  %v932_v43 = vmul.f32 2.0, %v900_v42  ;;  %v909_v14 = vfloor.f32 %v7862_v46 }
 0x136   : > { %4281 = vmatmul.msk.f32.vlgmr.msra.gmra.mxu1 %vm1501_vm1, %v5311_v38  ;;  %v1204_v40 = vmul.f32 %v1172_v47, %v5315_v22  ;;  %v7864_v59 = vsub.f32 0.0, %v7863_v54  ;;  %vm995_vm6 = vcmp.gt.f32.partialorder %v963_v44, 0.5  ;;  %v7866_v36 = vsub.f32 0.0, %v7865_v32  ;;  %v7871_v44 = vld [vmem:[#allocation39_spill] sm:$0xff] }
 0x137   : > { %v4231_v8 = vadd.f32 -0.0001984127, %v1203_v41  ;;  %v1163_v13 = vadd.f32 2.7557319e-06, %v1131_v9  ;;  %v964_v50 = vsub.f32 %v7859_v10, %v932_v43  ;;  %v5369_v31 = vmul.f32 2.0, %v909_v14 }
 0x138   : > { %v5346_v23 = vsel %vm1004_vm5, %v7864_v59, %v7863_v54  ;;  %v4232_v56 = vadd.f32 -0.0001984127, %v1204_v40  ;;  %v5355_v12 = vsel %vm995_vm6, %v7866_v36, %v7865_v32  ;;  %v910_v60 = vfloor.f32 %v7867_v27  ;;  %v7873_v36 = vld [vmem:[#allocation23_spill] sm:$0xff] }
 0x139   : > { %v5350_v28 = vmul.f32 %v5346_v23, %v5346_v23  ;;  %v1267_v58 = vmul.f32 %v4231_v8, %v5298_v19  ;;  %v1195_v48 = vmul.f32 %v1163_v13, %v5331_v4  ;;  %v5367_v39 = vmul.f32 %v5355_v12, %v5355_v12  ;;  %v5402_v8 = vld [vmem:[%s7668_s3 + $0x10] sm:$0xff] }
 0x13a   : > { %v1268_v3 = vmul.f32 %v4232_v56, %v5315_v22  ;;  %vm996_vm7 = vcmp.gt.f32.partialorder %v964_v50, 0.5  ;;  %v7869_v30 = vsub.f32 0.0, %v7868_v45  ;;  %4278 = vmatmul.msk.f32.gmra.mxu0 %vm1501_vm1, %v5361_v33  ;;  %v973_v17 = vsub.f32 %v7870_v35, %v5369_v31  ;;  %v7872_v13 = vld [vmem:[#allocation41_spill] sm:$0xff] }
 0x13b   : > { %v1132_v11 = vmul.f32 -2.5052108e-08, %v5350_v28  ;;  %v1299_v37 = vadd.f32 0.008333334, %v1267_v58  ;;  %v4223_v34 = vadd.f32 -0.0001984127, %v1195_v48  ;;  %v917_v40 = vfloor.f32 %v7871_v44 }
 0x13c   : > { %v1123_v15 = vmul.f32 -2.5052108e-08, %v5367_v39  ;;  %v5378_v29 = vsel %vm996_vm7, %v7869_v30, %v7868_v45  ;;  %v1300_v18 = vadd.f32 0.008333334, %v1268_v3  ;;  %v5390_v25 = vmul.f32 2.0, %v910_v60 }
 0x13d   : > { %v1164_v51 = vadd.f32 2.7557319e-06, %v1132_v11  ;;  %v5384_v10 = vmul.f32 %v5378_v29, %v5378_v29  ;;  %v1331_v24 = vmul.f32 %v1299_v37, %v5298_v19  ;;  %v1259_v52 = vmul.f32 %v4223_v34, %v5331_v4 }
 0x13e   : > { %v1155_v47 = vadd.f32 2.7557319e-06, %v1123_v15  ;;  %v1332_v42 = vmul.f32 %v1300_v18, %v5315_v22  ;;  %4282 = vmatmul.msk.f32.gmra.mxu1 %vm1501_vm1, %v5361_v33  ;;  %v918_v54 = vfloor.f32 %v7872_v13  ;;  %v974_v50 = vsub.f32 %v7873_v36, %v5390_v25 }
 0x13f   : > { %v1196_v41 = vmul.f32 %v1164_v51, %v5350_v28  ;;  %v1124_v9 = vmul.f32 -2.5052108e-08, %v5384_v10  ;;  %v4263_v43 = vadd.f32 -0.16666667, %v1331_v24  ;;  %v1291_v46 = vadd.f32 0.008333334, %v1259_v52 }
 0x140   : > { %v1187_v14 = vmul.f32 %v1155_v47, %v5367_v39  ;;  %v4264_v59 = vadd.f32 -0.16666667, %v1332_v42  ;;  %v949_v11 = vmul.f32 2.0, %v917_v40  ;;  %v950_v34 = vmul.f32 2.0, %v918_v54 }
 0x141   : > { %v4224_v56 = vadd.f32 -0.0001984127, %v1196_v41  ;;  %v1156_v32 = vadd.f32 2.7557319e-06, %v1124_v9  ;;  %v1395_v58 = vmul.f32 %v4263_v43, %v5298_v19  ;;  %v1323_v48 = vmul.f32 %v1291_v46, %v5331_v4  ;;  %v7874_v19 = vld [vmem:[#allocation35_spill] sm:$0xff] }
 0x142   : > { %v4215_v3 = vadd.f32 -0.0001984127, %v1187_v14  ;;  %v1396_v27 = vmul.f32 %v4264_v59, %v5315_v22  ;;  %4279 = vmatmul.msk.f32.gmra.mxu0 %vm1501_vm1, %v5402_v8  ;;  %v981_v18 = vsub.f32 %v7874_v19, %v949_v11  ;;  %v7875_v22 = vld [vmem:[#allocation36_spill] sm:$0xff]  ;;  %v1149_v44 = vmul.f32 -2.5052108e-08, %v5135_v26  ;;  %v7878_v19 = vld [vmem:[#allocation43_spill] sm:$0xff] }
 0x143   : > { %v1260_v60 = vmul.f32 %v4224_v56, %v5350_v28  ;;  %v1188_v37 = vmul.f32 %v1156_v32, %v5384_v10  ;;  %v1427_v15 = vmul.f32 %v1395_v58, %v5293_v0  ;;  %v4255_v45 = vadd.f32 -0.16666667, %v1323_v48  ;;  %v7876_v32 = vld [vmem:[#allocation42_spill] sm:$0xff] }
 0x144   : > { %v1251_v30 = vmul.f32 %v4215_v3, %v5367_v39  ;;  %v1428_v51 = vmul.f32 %v1396_v27, %v5303_v49  ;;  %v982_v47 = vsub.f32 %v7875_v22, %v950_v34  ;;  %v1150_v14 = vmul.f32 -2.5052108e-08, %v5148_v21 }
 0x145   : > { %v1292_v24 = vadd.f32 0.008333334, %v1260_v60  ;;  %v4216_v52 = vadd.f32 -0.0001984127, %v1188_v37  ;;  %v1459_v42 = vadd.f32 %v1427_v15, %v5293_v0  ;;  %v1387_v41 = vmul.f32 %v4255_v45, %v5331_v4  ;;  %v5433_v4 = vld [vmem:[%s7668_s3 + $0x18] sm:$0xff] }
 0x146   : > { %v1283_v9 = vadd.f32 0.008333334, %v1251_v30  ;;  %v1460_v40 = vadd.f32 %v1428_v51, %v5303_v49  ;;  %4283 = vmatmul.msk.f32.gmra.mxu1 %vm1501_vm1, %v5402_v8  ;;  %v1181_v49 = vadd.f32 2.7557319e-06, %v1149_v44  ;;  %vm1013_vm8 = vcmp.gt.f32.partialorder %v981_v18, 0.5 }
 0x147   : > { %v1324_v43 = vmul.f32 %v1292_v24, %v5350_v28  ;;  %v1252_v46 = vmul.f32 %v4216_v52, %v5384_v10  ;;  %1585 = vmatpush.msra.mxu2 %v1459_v42  ;;  %v1419_v13 = vmul.f32 %v1387_v41, %v5323_v63  ;;  %v1182_v56 = vadd.f32 2.7557319e-06, %v1150_v14 }
 0x148   : > { %v1315_v0 = vmul.f32 %v1283_v9, %v5367_v39  ;;  %1614 = vmatpush.msra.mxu3 %v1460_v40  ;;  %v7877_v58 = vsub.f32 0.0, %v7876_v32  ;;  %v1213_v27 = vmul.f32 %v1181_v49, %v5135_v26  ;;  %vm1014_vm9 = vcmp.gt.f32.partialorder %v982_v47, 0.5 }
 0x149   : > { %v4256_v54 = vadd.f32 -0.16666667, %v1324_v43  ;;  %v1284_v59 = vadd.f32 0.008333334, %v1252_v46  ;;  %v1451_v3 = vadd.f32 %v1419_v13, %v5323_v63  ;;  %v1214_v15 = vmul.f32 %v1182_v56, %v5148_v21  ;;  %v7880_v13 = vld [vmem:[#allocation29_spill] sm:$0xff] }
 0x14a   : > { %v5438_v48 = vsel %vm1013_vm8, %v7877_v58, %v7876_v32  ;;  %v4247_v11 = vadd.f32 -0.16666667, %v1315_v0  ;;  %4280 = vmatmul.msk.f32.gmra.mxu0 %vm1501_vm1, %v5433_v4  ;;  %v4241_v63 = vadd.f32 -0.0001984127, %v1213_v27  ;;  %v7879_v18 = vsub.f32 0.0, %v7878_v19  ;;  %v7882_v27 = vld [vmem:[#allocation31_spill] sm:$0xff] }
 0x14b   : > { %v5444_v60 = vmul.f32 %v5438_v48, %v5438_v48  ;;  %v1388_v37 = vmul.f32 %v4256_v54, %v5350_v28  ;;  %v1316_v34 = vmul.f32 %v1284_v59, %v5384_v10  ;;  %1586 = vmatpush.msra.mxu2 %v1451_v3  ;;  %v4242_v52 = vadd.f32 -0.0001984127, %v1214_v15 }
 0x14c   : > { %v1379_v45 = vmul.f32 %v4247_v11, %v5367_v39  ;;  %v5456_v51 = vsel %vm1014_vm9, %v7879_v18, %v7878_v19  ;;  %v1277_v47 = vmul.f32 %v4241_v63, %v5135_v26  ;;  %vm1005_vm10 = vcmp.gt.f32.partialorder %v973_v17, 0.5 }
 0x14d   : > { %v1141_v30 = vmul.f32 -2.5052108e-08, %v5444_v60  ;;  %v1420_v28 = vmul.f32 %v1388_v37, %v5346_v23  ;;  %v4248_v24 = vadd.f32 -0.16666667, %v1316_v34  ;;  %v5461_v22 = vmul.f32 %v5456_v51, %v5456_v51 }
 0x14e   : > { %v1411_v39 = vmul.f32 %v1379_v45, %v5355_v12  ;;  %4284 = vmatmul.msk.f32.gmra.mxu1 %vm1501_vm1, %v5433_v4  ;;  %v1278_v44 = vmul.f32 %v4242_v52, %v5148_v21  ;;  %v1309_v46 = vadd.f32 0.008333334, %v1277_v47  ;;  %v7881_v31 = vsub.f32 0.0, %v7880_v13 }
 0x14f   : > { %v1173_v42 = vadd.f32 2.7557319e-06, %v1141_v30  ;;  %v1452_v41 = vadd.f32 %v1420_v28, %v5346_v23  ;;  %v1380_v9 = vmul.f32 %v4248_v24, %v5384_v10  ;;  %v1142_v40 = vmul.f32 -2.5052108e-08, %v5461_v22 }
 0x150   : > { %v1443_v43 = vadd.f32 %v1411_v39, %v5355_v12  ;;  %v5479_v35 = vsel %vm1005_vm10, %v7881_v31, %v7880_v13  ;;  %v1310_v10 = vadd.f32 0.008333334, %v1278_v44  ;;  %v1341_v12 = vmul.f32 %v1309_v46, %v5135_v26  ;;  %v7885_v39 = vld [vmem:[#allocation16_spill] sm:$0xff] }
 0x151   : > { %v1205_v14 = vmul.f32 %v1173_v42, %v5444_v60  ;;  %1615 = vmatpush.msra.mxu3 %v1452_v41  ;;  %v1412_v23 = vmul.f32 %v1380_v9, %v5378_v29  ;;  %v1174_v17 = vadd.f32 2.7557319e-06, %v1142_v40  ;;  %v5484_v0 = vmul.f32 %v5479_v35, %v5479_v35  ;;  %v7887_v42 = vld [vmem:[#allocation14_spill] sm:$0xff] }
 0x152   : > { %1587 = vmatpush.msra.mxu2 %v1443_v43  ;;  %vm1006_vm11 = vcmp.gt.f32.partialorder %v974_v50, 0.5  ;;  %v933_v54 = vmul.f32 2.0, %v901_v61  ;;  %v1342_v56 = vmul.f32 %v1310_v10, %v5148_v21  ;;  %v4273_v3 = vadd.f32 -0.16666667, %v1341_v12  ;;  %v7888_v10 = vld [vmem:[#allocation20_spill] sm:$0xff] }
 0x153   : > { %v4233_v49 = vadd.f32 -0.0001984127, %v1205_v14  ;;  %v1444_v59 = vadd.f32 %v1412_v23, %v5378_v29  ;;  %4285 = vmatmul.msk.f32.vlgmr.msra.gmra.mxu2 %vm1501_vm1, %v5311_v38  ;;  %v1206_v32 = vmul.f32 %v1174_v17, %v5461_v22  ;;  %v1133_v58 = vmul.f32 -2.5052108e-08, %v5484_v0 }
 0x154   : > { %v7883_v25 = vsub.f32 0.0, %v7882_v27  ;;  %v965_v61 = vsub.f32 %v7884_v16, %v933_v54  ;;  %v4274_v29 = vadd.f32 -0.16666667, %v1342_v56  ;;  %v1405_v15 = vmul.f32 %v4273_v3, %v5135_v26 }
 0x155   : > { %v1269_v11 = vmul.f32 %v4233_v49, %v5444_v60  ;;  %1616 = vmatpush.msra.mxu3 %v1444_v59  ;;  %v4234_v50 = vadd.f32 -0.0001984127, %v1206_v32  ;;  %v1165_v37 = vadd.f32 2.7557319e-06, %v1133_v58  ;;  %v934_v63 = vmul.f32 2.0, %v902_v2 }
 0x156   : > { %v5502_v36 = vsel %vm1006_vm11, %v7883_v25, %v7882_v27  ;;  %4289 = vmatmul.msk.f32.vlgmr.msra.gmra.mxu3 %vm1501_vm1, %v5311_v38  ;;  %vm997_vm12 = vcmp.gt.f32.partialorder %v965_v61, 0.5  ;;  %v1406_v30 = vmul.f32 %v4274_v29, %v5148_v21  ;;  %v1437_v24 = vmul.f32 %v1405_v15, %v5130_v5 }
 0x157   : > { %v5507_v34 = vmul.f32 %v5502_v36, %v5502_v36  ;;  %v1301_v45 = vadd.f32 0.008333334, %v1269_v11  ;;  %v1270_v19 = vmul.f32 %v4234_v50, %v5461_v22  ;;  %v1197_v18 = vmul.f32 %v1165_v37, %v5484_v0 }
 0x158   : > { %v7886_v26 = vsub.f32 0.0, %v7885_v39  ;;  %v966_v57 = vsub.f32 %v7887_v42, %v934_v63  ;;  %v1438_v2 = vmul.f32 %v1406_v30, %v5137_v1  ;;  %v1469_v44 = vadd.f32 %v1437_v24, %v5130_v5 }
 0x159   : > { %v1134_v28 = vmul.f32 -2.5052108e-08, %v5507_v34  ;;  %v1333_v52 = vmul.f32 %v1301_v45, %v5444_v60  ;;  %v1302_v21 = vadd.f32 0.008333334, %v1270_v19  ;;  %v4225_v41 = vadd.f32 -0.0001984127, %v1197_v18 }
 0x15a   : > { %v5523_v47 = vsel %vm997_vm12, %v7886_v26, %v7885_v39  ;;  %vm998_vm13 = vcmp.gt.f32.partialorder %v966_v57, 0.5  ;;  %v1470_v46 = vadd.f32 %v1438_v2, %v5137_v1  ;;  %1642 = vmatpush.msrb.mxu0 %v1469_v44  ;;  %v7889_v17 = vsub.f32 0.0, %v7888_v10 }
 0x15b   : > { %v1166_v9 = vadd.f32 2.7557319e-06, %v1134_v28  ;;  %v4265_v40 = vadd.f32 -0.16666667, %v1333_v52  ;;  %v5530_v43 = vmul.f32 %v5523_v47, %v5523_v47  ;;  %4286 = vmatmul.msk.f32.gmra.mxu2 %vm1501_vm1, %v5361_v33  ;;  %v1334_v14 = vmul.f32 %v1302_v21, %v5461_v22  ;;  %v7890_v28 = vld [vmem:[#allocation45_spill] sm:$0xff] }
 0x15c   : > { %v1261_v13 = vmul.f32 %v4225_v41, %v5484_v0  ;;  %v5543_v12 = vsel %vm998_vm13, %v7889_v17, %v7888_v10  ;;  %v1151_v49 = vmul.f32 -2.5052108e-08, %v5154_v6  ;;  %1671 = vmatpush.msrb.mxu1 %v1470_v46  ;;  %v1152_v3 = vmul.f32 -2.5052108e-08, %v5266_v20 }
 0x15d   : > { %v1198_v31 = vmul.f32 %v1166_v9, %v5507_v34  ;;  %v1397_v5 = vmul.f32 %v4265_v40, %v5444_v60  ;;  %v1125_v23 = vmul.f32 -2.5052108e-08, %v5530_v43  ;;  %v4266_v1 = vadd.f32 -0.16666667, %v1334_v14  ;;  %v7891_v40 = vld [vmem:[#allocation47_spill] sm:$0xff] }
 0x15e   : > { %v1293_v54 = vadd.f32 0.008333334, %v1261_v13  ;;  %v5548_v56 = vmul.f32 %v5543_v12, %v5543_v12  ;;  %4290 = vmatmul.msk.f32.gmra.mxu3 %vm1501_vm1, %v5361_v33  ;;  %v1183_v58 = vadd.f32 2.7557319e-06, %v1151_v49  ;;  %v1184_v37 = vadd.f32 2.7557319e-06, %v1152_v3 }
 0x15f   : > { %v4226_v59 = vadd.f32 -0.0001984127, %v1198_v31  ;;  %v1429_v60 = vmul.f32 %v1397_v5, %v5438_v48  ;;  %v1157_v32 = vadd.f32 2.7557319e-06, %v1125_v23  ;;  %v1398_v11 = vmul.f32 %v4266_v1, %v5461_v22  ;;  %v7892_v13 = vld [vmem:[#allocation40_spill] sm:$0xff] }
 0x160   : > { %v1325_v27 = vmul.f32 %v1293_v54, %v5484_v0  ;;  %v1126_v16 = vmul.f32 -2.5052108e-08, %v5548_v56  ;;  %v1215_v50 = vmul.f32 %v1183_v58, %v5154_v6  ;;  %v1216_v18 = vmul.f32 %v1184_v37, %v5266_v20 }
 0x161   : > { %v1262_v25 = vmul.f32 %v4226_v59, %v5507_v34  ;;  %v1461_v61 = vadd.f32 %v1429_v60, %v5438_v48  ;;  %v1189_v29 = vmul.f32 %v1157_v32, %v5530_v43  ;;  %v1430_v15 = vmul.f32 %v1398_v11, %v5456_v51  ;;  %v7893_v32 = vld [vmem:[#allocation46_spill] sm:$0xff] }
 0x162   : > { %v4257_v45 = vadd.f32 -0.16666667, %v1325_v27  ;;  %v1158_v30 = vadd.f32 2.7557319e-06, %v1126_v16  ;;  %v4243_v19 = vadd.f32 -0.0001984127, %v1215_v50  ;;  %v919_v24 = vfloor.f32 %v7890_v28 }
 0x163   : > { %v1294_v63 = vadd.f32 0.008333334, %v1262_v25  ;;  %1643 = vmatpush.msrb.mxu0 %v1461_v61  ;;  %v4217_v22 = vadd.f32 -0.0001984127, %v1189_v29  ;;  %4287 = vmatmul.msk.f32.gmra.mxu2 %vm1501_vm1, %v5402_v8  ;;  %v1462_v48 = vadd.f32 %v1430_v15, %v5456_v51  ;;  %v4244_v2 = vadd.f32 -0.0001984127, %v1216_v18 }
 0x164   : > { %v1389_v52 = vmul.f32 %v4257_v45, %v5484_v0  ;;  %v1190_v26 = vmul.f32 %v1158_v30, %v5548_v56  ;;  %v1279_v57 = vmul.f32 %v4243_v19, %v5154_v6  ;;  %v951_v21 = vmul.f32 2.0, %v919_v24  ;;  %v7896_v50 = vld [vmem:[#allocation33_spill] sm:$0xff] }
 0x165   : > { %v1326_v39 = vmul.f32 %v1294_v63, %v5507_v34  ;;  %v1253_v42 = vmul.f32 %v4217_v22, %v5530_v43  ;;  %1672 = vmatpush.msrb.mxu1 %v1462_v48  ;;  %v920_v46 = vfloor.f32 %v7891_v40  ;;  %v1280_v14 = vmul.f32 %v4244_v2, %v5266_v20  ;;  %v7897_v18 = vld [vmem:[#allocation37_spill] sm:$0xff] }
 0x166   : > { %v1421_v41 = vmul.f32 %v1389_v52, %v5479_v35  ;;  %v4218_v44 = vadd.f32 -0.0001984127, %v1190_v26  ;;  %4291 = vmatmul.msk.f32.gmra.mxu3 %vm1501_vm1, %v5402_v8  ;;  %v1311_v0 = vadd.f32 0.008333334, %v1279_v57  ;;  %v983_v31 = vsub.f32 %v7892_v13, %v951_v21 }
 0x167   : > { %v4258_v9 = vadd.f32 -0.16666667, %v1326_v39  ;;  %v1285_v51 = vadd.f32 0.008333334, %v1253_v42  ;;  %v952_v17 = vmul.f32 2.0, %v920_v46  ;;  %v7894_v58 = vsub.f32 0.0, %v7893_v32 }
 0x168   : > { %v1453_v5 = vadd.f32 %v1421_v41, %v5479_v35  ;;  %v1254_v10 = vmul.f32 %v4218_v44, %v5548_v56  ;;  %v1343_v1 = vmul.f32 %v1311_v0, %v5154_v6  ;;  %v1312_v54 = vadd.f32 0.008333334, %v1280_v14  ;;  %v7895_v35 = vld [vmem:[#allocation44_spill] sm:$0xff]  ;;  %v7900_v46 = vld [vmem:[#allocation34_spill] sm:$0xff] }
 0x169   : > { %v1390_v23 = vmul.f32 %v4258_v9, %v5507_v34  ;;  %v1317_v49 = vmul.f32 %v1285_v51, %v5530_v43  ;;  %vm1015_vm14 = vcmp.gt.f32.partialorder %v983_v31, 0.5  ;;  %v984_v34 = vsub.f32 %v7895_v35, %v952_v17  ;;  %v7902_v51 = vld [vmem:[#allocation21_spill] sm:$0xff]  ;;  %v7907_v35 = vld [vmem:[#allocation26_spill] sm:$0xff] }
 0x16a   : > { %1644 = vmatpush.msrb.mxu0 %v1453_v5  ;;  %v1286_v60 = vadd.f32 0.008333334, %v1254_v10  ;;  %v5587_v3 = vsel %vm1015_vm14, %v7894_v58, %v7893_v32  ;;  %v4275_v27 = vadd.f32 -0.16666667, %v1343_v1  ;;  %v1344_v25 = vmul.f32 %v1312_v54, %v5266_v20  ;;  %v7903_v5 = vld [vmem:[#allocation38_spill] sm:$0xff]  ;;  %v7906_v1 = vld [vmem:[#allocation24_spill] sm:$0xff] }
 0x16b   : > { %v1422_v59 = vmul.f32 %v1390_v23, %v5502_v36  ;;  %v4249_v11 = vadd.f32 -0.16666667, %v1317_v49  ;;  %v5593_v16 = vmul.f32 %v5587_v3, %v5587_v3  ;;  %4288 = vmatmul.msk.f32.gmra.mxu2 %vm1501_vm1, %v5433_v4  ;;  %vm1016_vm15 = vcmp.gt.f32.partialorder %v984_v34, 0.5  ;;  %v7905_v49 = vld [vmem:[#allocation25_spill] sm:$0xff] }
 0x16c   : > { %v1318_v29 = vmul.f32 %v1286_v60, %v5548_v56  ;;  %v911_v37 = vfloor.f32 %v7896_v50  ;;  %v1407_v45 = vmul.f32 %v4275_v27, %v5154_v6  ;;  %v4276_v63 = vadd.f32 -0.16666667, %v1344_v25  ;;  %v1480_v58 = vld [vmem:[%s7669_s4 + $0x18] sm:$0xff]  ;;  %v7908_v27 = vld [vmem:[#allocation15_spill] sm:$0xff] }
 0x16d   : > { %v1454_v61 = vadd.f32 %v1422_v59, %v5502_v36  ;;  %v1381_v15 = vmul.f32 %v4249_v11, %v5530_v43  ;;  %v1143_v30 = vmul.f32 -2.5052108e-08, %v5593_v16  ;;  %v5606_v36 = vsel %vm1016_vm15, %v1048_v55, %v5126_v7  ;;  %v7898_v7 = vld [vmem:[#allocation28_spill] sm:$0xff]  ;;  %1498 = vperm.xlu2 %4539, %v1480_v58  }
 0x16e   : > { %v4250_v22 = vadd.f32 -0.16666667, %v1318_v29  ;;  %v943_v19 = vmul.f32 2.0, %v911_v37  ;;  %v912_v28 = vfloor.f32 %v7897_v18  ;;  %4292 = vmatmul.msk.f32.gmra.mxu3 %vm1501_vm1, %v5433_v4  ;;  %v1439_v6 = vmul.f32 %v1407_v45, %v5143_v53  ;;  %v7909_v45 = vld [vmem:[#allocation19_spill] sm:$0xff] }
 0x16f   : > { %1673 = vmatpush.msrb.mxu1 %v1454_v61  ;;  %v1413_v43 = vmul.f32 %v1381_v15, %v5523_v47  ;;  %v1408_v24 = vmul.f32 %v4276_v63, %v5266_v20  ;;  %v1175_v48 = vadd.f32 2.7557319e-06, %v1143_v30  ;;  %v5617_v39 = vmul.f32 %v5606_v36, %v5606_v36 }
 0x170   : > { %v1382_v52 = vmul.f32 %v4250_v22, %v5548_v56  ;;  %v975_v55 = vsub.f32 %v7898_v7, %v943_v19  ;;  %v944_v26 = vmul.f32 2.0, %v912_v28  ;;  %v1471_v57 = vadd.f32 %v1439_v6, %v5143_v53  ;;  %v7899_v56 = vld [vmem:[#allocation32_spill] sm:$0xff] }
 0x171   : > { %v1445_v42 = vadd.f32 %v1413_v43, %v5523_v47  ;;  %v1440_v2 = vmul.f32 %v1408_v24, %v5158_v62  ;;  %v1207_v21 = vmul.f32 %v1175_v48, %v5593_v16  ;;  %v1144_v41 = vmul.f32 -2.5052108e-08, %v5617_v39 }
 0x172   : > { %v1414_v20 = vmul.f32 %v1382_v52, %v5543_v12  ;;  %vm1007_vm2 = vcmp.gt.f32.partialorder %v975_v55, 0.5  ;;  %v976_v9 = vsub.f32 %v7899_v56, %v944_v26  ;;  %1700 = vmatpush.msrb.mxu2 %v1471_v57  ;;  %v7901_v47 = vsub.f32 0.0, %v7900_v46 }
 0x173   : > { %1645 = vmatpush.msrb.mxu0 %v1445_v42  ;;  %v1472_v44 = vadd.f32 %v1440_v2, %v5158_v62  ;;  %v4235_v40 = vadd.f32 -0.0001984127, %v1207_v21  ;;  %v903_v0 = vfloor.f32 %v7902_v51  ;;  %v1176_v13 = vadd.f32 2.7557319e-06, %v1144_v41  ;;  %v1479_v21 = vld [vmem:[%s7669_s4 + $0x10] sm:$0xff] }
 0x174   : > { %v5631_v53 = vsel %vm1007_vm2, %v7901_v47, %v7900_v46  ;;  %v1446_v14 = vadd.f32 %v1414_v20, %v5543_v12  ;;  %4293 = vmatmul.msk.f32.vlgmr.msrb.gmra.mxu0 %vm1501_vm1, %v5311_v38  ;;  %vm1008_vm3 = vcmp.gt.f32.partialorder %v976_v9, 0.5  ;;  %v7904_v23 = vsub.f32 0.0, %v7903_v5 }
 0x175   : > { %v5639_v31 = vmul.f32 %v5631_v53, %v5631_v53  ;;  %1729 = vmatpush.msrb.mxu3 %v1472_v44  ;;  %v1271_v62 = vmul.f32 %v4235_v40, %v5593_v16  ;;  %v935_v17 = vmul.f32 2.0, %v903_v0  ;;  %v904_v12 = vfloor.f32 %v7905_v49  ;;  %1493 = vperm.xlu2 %4539, %v1479_v21  }
 0x176   : > { %v5645_v10 = vsel %vm1008_vm3, %v7904_v23, %v7903_v5  ;;  %v1031_v54 = vsub.f32 0.0, %v7906_v1  ;;  %1674 = vmatpush.msrb.mxu1 %v1446_v14  ;;  %v1208_v59 = vmul.f32 %v1176_v13, %v5617_v39  ;;  %v1032_v34 = vsub.f32 0.0, %v7907_v35 }
 0x177   : > { %v1135_v60 = vmul.f32 -2.5052108e-08, %v5639_v31  ;;  %v5653_v32 = vmul.f32 %v5645_v10, %v5645_v10  ;;  %4297 = vmatmul.msk.f32.vlgmr.msrb.gmra.mxu1 %vm1501_vm1, %v5311_v38  ;;  %v1303_v11 = vadd.f32 0.008333334, %v1271_v62  ;;  %v967_v25 = vsub.f32 %v7908_v27, %v935_v17 }
 0x178   : > { %v936_v61 = vmul.f32 2.0, %v904_v12  ;;  %v4236_v29 = vadd.f32 -0.0001984127, %v1208_v59 }
 0x179   : > { %v1167_v50 = vadd.f32 2.7557319e-06, %v1135_v60  ;;  %v1136_v37 = vmul.f32 -2.5052108e-08, %v5653_v32  ;;  %v1335_v15 = vmul.f32 %v1303_v11, %v5593_v16  ;;  %vm999_vm4 = vcmp.gt.f32.partialorder %v967_v25, 0.5 }
 0x17a   : > { %v968_v63 = vsub.f32 %v7909_v45, %v936_v61  ;;  %v1272_v30 = vmul.f32 %v4236_v29, %v5617_v39  ;;  %v5668_v18 = vsel %vm999_vm4, %v1031_v54, %v7906_v1  ;;  %v2582_v45 = vld [vmem:[%s7671_s6] sm:$0xff] }
 0x17b   : > { %v1199_v22 = vmul.f32 %v1167_v50, %v5639_v31  ;;  %v1168_v19 = vadd.f32 2.7557319e-06, %v1136_v37  ;;  %v4267_v28 = vadd.f32 -0.16666667, %v1335_v15  ;;  %v1095_v43 = vmul.f32 %v5668_v18, %v5668_v18 }
 0x17c   : > { %vm1000_vm5 = vcmp.gt.f32.partialorder %v968_v63, 0.5  ;;  %v1304_v6 = vadd.f32 0.008333334, %v1272_v30  ;;  %4294 = vmatmul.msk.f32.gmra.mxu0 %vm1501_vm1, %v5361_v33 }
 0x17d   : > { %v4227_v24 = vadd.f32 -0.0001984127, %v1199_v22  ;;  %v1200_v48 = vmul.f32 %v1168_v19, %v5653_v32  ;;  %v1064_v52 = vsel %vm1000_vm5, %v1032_v34, %v7907_v35  ;;  %v1399_v7 = vmul.f32 %v4267_v28, %v5593_v16  ;;  %v5730_v19 = vpop.permute.xlu1 %1483 }
 0x17e   : > { %v1127_v55 = vmul.f32 -2.5052108e-08, %v1095_v43  ;;  %v1096_v26 = vmul.f32 %v1064_v52, %v1064_v52  ;;  %v1336_v42 = vmul.f32 %v1304_v6, %v5617_v39 }
 0x17f   : > { %v1263_v57 = vmul.f32 %v4227_v24, %v5639_v31  ;;  %v4228_v2 = vadd.f32 -0.0001984127, %v1200_v48  ;;  %v1431_v20 = vmul.f32 %v1399_v7, %v5587_v3  ;;  %4298 = vmatmul.msk.f32.gmra.mxu1 %vm1501_vm1, %v5361_v33 }
 0x180   : > { %v1159_v41 = vadd.f32 2.7557319e-06, %v1127_v55  ;;  %v1128_v56 = vmul.f32 -2.5052108e-08, %v1096_v26  ;;  %v4268_v16 = vadd.f32 -0.16666667, %v1336_v42 }
 0x181   : > { %v1295_v9 = vadd.f32 0.008333334, %v1263_v57  ;;  %v1264_v44 = vmul.f32 %v4228_v2, %v5653_v32  ;;  %v1463_v40 = vadd.f32 %v1431_v20, %v5587_v3 }
 0x182   : > { %v1191_v46 = vmul.f32 %v1159_v41, %v1095_v43  ;;  %v1160_v47 = vadd.f32 2.7557319e-06, %v1128_v56  ;;  %v1400_v51 = vmul.f32 %v4268_v16, %v5617_v39 }
 0x183   : > { %v1327_v0 = vmul.f32 %v1295_v9, %v5639_v31  ;;  %v1296_v14 = vadd.f32 0.008333334, %v1264_v44  ;;  %1701 = vmatpush.msrb.mxu2 %v1463_v40 }
 0x184   : > { %v4219_v13 = vadd.f32 -0.0001984127, %v1191_v46  ;;  %v1192_v62 = vmul.f32 %v1160_v47, %v1096_v26  ;;  %v1432_v5 = vmul.f32 %v1400_v51, %v5606_v36  ;;  %4295 = vmatmul.msk.f32.gmra.mxu0 %vm1501_vm1, %v5402_v8 }
 0x185   : > { %v4259_v23 = vadd.f32 -0.16666667, %v1327_v0  ;;  %v1328_v17 = vmul.f32 %v1296_v14, %v5653_v32 }
 0x186   : > { %v1255_v49 = vmul.f32 %v4219_v13, %v1095_v43  ;;  %v4220_v3 = vadd.f32 -0.0001984127, %v1192_v62  ;;  %v1464_v12 = vadd.f32 %v1432_v5, %v5606_v36 }
 0x187   : > { %v1391_v39 = vmul.f32 %v4259_v23, %v5639_v31  ;;  %v4260_v1 = vadd.f32 -0.16666667, %v1328_v17  ;;  %4299 = vmatmul.msk.f32.gmra.mxu1 %vm1501_vm1, %v5402_v8 }
 0x188   : > { %v1287_v54 = vadd.f32 0.008333334, %v1255_v49  ;;  %v1256_v59 = vmul.f32 %v4220_v3, %v1096_v26  ;;  %1730 = vmatpush.msrb.mxu3 %v1464_v12 }
 0x189   : > { %v1423_v60 = vmul.f32 %v1391_v39, %v5631_v53  ;;  %v1392_v58 = vmul.f32 %v4260_v1, %v5653_v32  ;;  %v2585_v32 = vld [vmem:[%s7671_s6 + $0x18] sm:$0xff] }
 0x18a   : > { %v1319_v35 = vmul.f32 %v1287_v54, %v1095_v43  ;;  %v1288_v34 = vadd.f32 0.008333334, %v1256_v59  ;;  %2603 = vperm.xlu2 %4539, %v2585_v32  }
 0x18b   : > { %v1455_v11 = vadd.f32 %v1423_v60, %v5631_v53  ;;  %v1424_v27 = vmul.f32 %v1392_v58, %v5645_v10 }
 0x18c   : > { %v4251_v36 = vadd.f32 -0.16666667, %v1319_v35  ;;  %v1320_v25 = vmul.f32 %v1288_v34, %v1096_v26  ;;  %4296 = vmatmul.msk.f32.gmra.mxu0 %vm1501_vm1, %v5433_v4 }
 0x18d   : > { %1702 = vmatpush.msrb.mxu2 %v1455_v11  ;;  %v1456_v31 = vadd.f32 %v1424_v27, %v5645_v10 }
 0x18e   : > { %v1383_v61 = vmul.f32 %v4251_v36, %v1095_v43  ;;  %v4252_v29 = vadd.f32 -0.16666667, %v1320_v25  ;;  %v5734_v43 = vpop.permute.xlu0 %1488 }
 0x18f   : > { %1731 = vmatpush.msrb.mxu3 %v1456_v31  ;;  %4300 = vmatmul.msk.f32.gmra.mxu1 %vm1501_vm1, %v5433_v4 }
 0x190   : > { %v1415_v50 = vmul.f32 %v1383_v61, %v5668_v18  ;;  %v1384_v53 = vmul.f32 %v4252_v29, %v1096_v26 }
 0x192   : > { %v1447_v37 = vadd.f32 %v1415_v50, %v5668_v18  ;;  %v1416_v10 = vmul.f32 %v1384_v53, %v1064_v52  ;;  %2588 = vperm.xlu2 %4539, %v2582_v45  }
 0x194   : > { %1703 = vmatpush.msrb.mxu2 %v1447_v37  ;;  %v1448_v15 = vadd.f32 %v1416_v10, %v1064_v52 }
 0x195   : > { %4301 = vmatmul.msk.f32.vlgmr.msrb.gmra.mxu2 %vm1501_vm1, %v5311_v38 }
 0x196   : > { %1732 = vmatpush.msrb.mxu3 %v1448_v15 }
 0x197   : > { %4305 = vmatmul.msk.f32.vlgmr.msrb.gmra.mxu3 %vm1501_vm1, %v5311_v38 }
 0x19d   : > { %4302 = vmatmul.msk.f32.gmra.mxu2 %vm1501_vm1, %v5361_v33 }
 0x19f   : > { %4306 = vmatmul.msk.f32.gmra.mxu3 %vm1501_vm1, %v5361_v33 }
 0x1a5   : > { %4303 = vmatmul.msk.f32.gmra.mxu2 %vm1501_vm1, %v5402_v8 }
 0x1a7   : > { %4307 = vmatmul.msk.f32.gmra.mxu3 %vm1501_vm1, %v5402_v8 }
 0x1ad   : > { %4304 = vmatmul.msk.f32.gmra.mxu2 %vm1501_vm1, %v5433_v4 }
 0x1af   : > { %4308 = vmatmul.msk.f32.gmra.mxu3 %vm1501_vm1, %v5433_v4  ;;  %v1531_v38 = vpop.f32.mrf.mxu0 }
 0x1b0   : > { %v1532_v33 = vadd.f32 %v1531_v38, %v5730_v19 }
 0x1b2   : > { %v1746_v18 = vmul.f32 0.31830987, %v1532_v33 }
 0x1b3   : > { %v1560_v63 = vpop.f32.mrf.mxu1 }
 0x1b4   : > { %v1561_v28 = vadd.f32 %v1560_v63, %v5730_v19  ;;  %v1778_v24 = vadd.f32 0.5, %v1746_v18 }
 0x1b6   : > { %v1747_v4 = vmul.f32 0.31830987, %v1561_v28  ;;  %v5741_v26 = vfloor.f32 %v1778_v24 }
 0x1b7   : > { %v1534_v30 = vpop.f32.mrf.mxu0 }
 0x1b8   : > { %v1535_v8 = vadd.f32 %v1534_v30, %v5734_v43  ;;  %v1779_v42 = vadd.f32 0.5, %v1747_v4  ;;  %v1842_v21 = vmul.f32 3.140625, %v5741_v26  ;;  %v1906_v13 = vmul.f32 0.0009676536, %v5741_v26 }
 0x1b9   : > { %v5770_v39 = vmul.f32 0.5, %v5741_v26 }
 0x1ba   : > { %v1754_v7 = vmul.f32 0.31830987, %v1535_v8  ;;  %v5744_v20 = vfloor.f32 %v1779_v42  ;;  %v1874_v47 = vsub.f32 %v1532_v33, %v1842_v21 }
 0x1bb   : > { %v1563_v22 = vpop.f32.mrf.mxu1 }
 0x1bc   : > { %v5738_v6 = vadd.f32 %v1563_v22, %v5734_v43  ;;  %v1786_v57 = vadd.f32 0.5, %v1754_v7  ;;  %v1843_v51 = vmul.f32 3.140625, %v5744_v20  ;;  %v5767_v12 = vsub.f32 %v1874_v47, %v1906_v13 }
 0x1bd   : > { %v1907_v54 = vmul.f32 0.0009676536, %v5744_v20  ;;  %v5803_v33 = vmul.f32 0.5, %v5744_v20 }
 0x1be   : > { %v1755_v55 = vmul.f32 0.31830987, %v5738_v6  ;;  %v5748_v56 = vfloor.f32 %v1786_v57  ;;  %v1875_v1 = vsub.f32 %v1561_v28, %v1843_v51 }
 0x1bf   : > { %v1537_v48 = vpop.f32.mrf.mxu0 }
 0x1c0   : > { %v1787_v2 = vadd.f32 0.5, %v1755_v55  ;;  %v1850_v62 = vmul.f32 3.140625, %v5748_v56  ;;  %v1914_v36 = vmul.f32 0.0009676536, %v5748_v56  ;;  %v5793_v53 = vsub.f32 %v1875_v1, %v1907_v54 }
 0x1c2   : > { %v5750_v16 = vfloor.f32 %v1787_v2  ;;  %v1882_v27 = vsub.f32 %v1535_v8, %v1850_v62 }
 0x1c3   : > { %v1566_v52 = vpop.f32.mrf.mxu1 }
 0x1c4   : > { %v1851_v5 = vmul.f32 3.140625, %v5750_v16  ;;  %v1915_v37 = vmul.f32 0.0009676536, %v5750_v16  ;;  %v5805_v18 = vsub.f32 %v1882_v27, %v1914_v36  ;;  %v5828_v51 = vmul.f32 0.5, %v5750_v16 }
 0x1c6   : > { %v1883_v25 = vsub.f32 %v5738_v6, %v1851_v5  ;;  %v5808_v6 = vmul.f32 0.5, %v5748_v56 }
 0x1c7   : > { %v5746_v41 = vpop.permute.xlu2 %1498  ;;  %v1540_v9 = vpop.f32.mrf.mxu0 }
 0x1c8   : > { %v5753_v40 = vadd.f32 %v1540_v9, %v5746_v41  ;;  %v5810_v24 = vsub.f32 %v1883_v25, %v1915_v37 }
 0x1ca   : > { %v1770_v0 = vmul.f32 0.31830987, %v5753_v40 }
 0x1cb   : > { %v1569_v44 = vpop.f32.mrf.mxu1 }
 0x1cc   : > { %v5756_v46 = vadd.f32 %v1569_v44, %v5746_v41  ;;  %v1802_v49 = vadd.f32 0.5, %v1770_v0 }
 0x1ce   : > { %v1771_v14 = vmul.f32 0.31830987, %v5756_v46  ;;  %v5782_v11 = vfloor.f32 %v1802_v49 }
 0x1cf   : > { %v5773_v59 = vpop.permute.xlu2 %1493 }
 0x1d0   : > { %v1803_v3 = vadd.f32 0.5, %v1771_v14  ;;  %v5777_v35 = vadd.f32 %v1537_v48, %v5773_v59  ;;  %v5780_v34 = vadd.f32 %v1566_v52, %v5773_v59  ;;  %v1866_v15 = vmul.f32 3.140625, %v5782_v11 }
 0x1d1   : > { %v1994_v30 = vmul.f32 0.5, %v5782_v11  ;;  %v1930_v9 = vmul.f32 0.0009676536, %v5782_v11 }
 0x1d2   : > { %v1762_v29 = vmul.f32 0.31830987, %v5777_v35  ;;  %v1763_v32 = vmul.f32 0.31830987, %v5780_v34  ;;  %v5791_v50 = vfloor.f32 %v1803_v3  ;;  %v1898_v21 = vsub.f32 %v5753_v40, %v1866_v15 }
 0x1d3   : > { %v2026_v44 = vfloor.f32 %v1994_v30 }
 0x1d4   : > { %v1794_v38 = vadd.f32 0.5, %v1762_v29  ;;  %v1795_v63 = vadd.f32 0.5, %v1763_v32  ;;  %v1867_v48 = vmul.f32 3.140625, %v5791_v50  ;;  %v1931_v40 = vmul.f32 0.0009676536, %v5791_v50 }
 0x1d5   : > { %v2058_v27 = vmul.f32 2.0, %v2026_v44 }
 0x1d6   : > { %v1589_v23 = vpop.f32.mrf.mxu2  ;;  %v5812_v4 = vfloor.f32 %v1794_v38  ;;  %v5818_v55 = vfloor.f32 %v1795_v63  ;;  %v1899_v5 = vsub.f32 %v5756_v46, %v1867_v48 }
 0x1d7   : > { %v5765_v17 = vadd.f32 %v1589_v23, %v5730_v19  ;;  %v2090_v30 = vsub.f32 %v5782_v11, %v2058_v27 }
 0x1d8   : > { %v1858_v14 = vmul.f32 3.140625, %v5812_v4  ;;  %v1859_v49 = vmul.f32 3.140625, %v5818_v55 }
 0x1d9   : > { %v1748_v60 = vmul.f32 0.31830987, %v5765_v17  ;;  %v1618_v58 = vpop.f32.mrf.mxu3  ;;  %vm2122_vm6 = vcmp.gt.f32.partialorder %v2090_v30, 0.5 }
 0x1da   : > { %v5787_v31 = vadd.f32 %v1618_v58, %v5730_v19  ;;  %v1962_v58 = vsub.f32 %v1898_v21, %v1930_v9  ;;  %v1890_v36 = vsub.f32 %v5777_v35, %v1858_v14  ;;  %v1891_v15 = vsub.f32 %v5780_v34, %v1859_v49 }
 0x1db   : > { %v1780_v61 = vadd.f32 0.5, %v1748_v60  ;;  %v1922_v60 = vmul.f32 0.0009676536, %v5812_v4  ;;  %v5873_v9 = vmul.f32 0.5, %v5818_v55 }
 0x1dc   : > { %v1749_v10 = vmul.f32 0.31830987, %v5787_v31  ;;  %v2154_v49 = vsub.f32 0.0, %v1962_v58 }
 0x1dd   : > { %v5798_v45 = vfloor.f32 %v1780_v61 }
 0x1de   : > { %v1781_v28 = vadd.f32 0.5, %v1749_v10  ;;  %v1592_v8 = vpop.f32.mrf.mxu2  ;;  %v5854_v10 = vmul.f32 0.5, %v5812_v4 }
 0x1df   : > { %7910 = vst [vmem:[#allocation11_spill] sm:$0xff] %v5798_v45  ;;  %v5821_v42 = vadd.f32 %v1592_v8, %v5734_v43  ;;  %v1844_v57 = vmul.f32 3.140625, %v5798_v45  ;;  %v1908_v62 = vmul.f32 0.0009676536, %v5798_v45  ;;  %v5837_v23 = vmul.f32 0.5, %v5798_v45 }
 0x1e0   : > { %v5816_v7 = vfloor.f32 %v1781_v28 }
 0x1e1   : > { %v1621_v2 = vpop.f32.mrf.mxu3  ;;  %7912 = vst [vmem:[#allocation9_spill] sm:$0xff] %v5837_v23  ;;  %v1756_v3 = vmul.f32 0.31830987, %v5821_v42  ;;  %v1876_v54 = vsub.f32 %v5765_v17, %v1844_v57  ;;  %v1995_v17 = vmul.f32 0.5, %v5791_v50 }
 0x1e2   : > { %7911 = vst [vmem:[#allocation12_spill] sm:$0xff] %v5816_v7  ;;  %v1845_v0 = vmul.f32 3.140625, %v5816_v7  ;;  %v5842_v1 = vadd.f32 %v1621_v2, %v5734_v43  ;;  %v1909_v32 = vmul.f32 0.0009676536, %v5816_v7  ;;  %v5851_v37 = vmul.f32 0.5, %v5816_v7 }
 0x1e3   : > { %v1788_v25 = vadd.f32 0.5, %v1756_v3  ;;  %v5861_v63 = vsub.f32 %v1876_v54, %v1908_v62  ;;  %v2027_v28 = vfloor.f32 %v1995_v17  ;;  %v5867_v2 = vsub.f32 %v1890_v36, %v1922_v60 }
 0x1e4   : > { %v1877_v46 = vsub.f32 %v5787_v31, %v1845_v0  ;;  %v1757_v61 = vmul.f32 0.31830987, %v5842_v1  ;;  %7913 = vst [vmem:[#allocation6_spill] sm:$0xff] %v5851_v37  ;;  %v1923_v31 = vmul.f32 0.0009676536, %v5818_v55  ;;  %v1963_v3 = vsub.f32 %v1899_v5, %v1931_v40 }
 0x1e5   : > { %v5859_v38 = vfloor.f32 %v1788_v25  ;;  %7914 = vst [vmem:[#allocation17_spill] sm:$0xff] %v5861_v63  ;;  %v2059_v44 = vmul.f32 2.0, %v2027_v28 }
 0x1e6   : > { %v1595_v29 = vpop.f32.mrf.mxu2  ;;  %v1789_v35 = vadd.f32 0.5, %v1757_v61  ;;  %v5865_v57 = vsub.f32 %v1877_v46, %v1909_v32  ;;  %v5876_v11 = vsub.f32 %v1891_v15, %v1923_v31  ;;  %v5890_v31 = vsel %vm2122_vm6, %v2154_v49, %v1962_v58 }
 0x1e7   : > { %v1596_v8 = vadd.f32 %v1595_v29, %v5773_v59  ;;  %v1852_v21 = vmul.f32 3.140625, %v5859_v38  ;;  %v2091_v61 = vsub.f32 %v5791_v50, %v2059_v44  ;;  %v1916_v32 = vmul.f32 0.0009676536, %v5859_v38 }
 0x1e8   : > { %7915 = vst [vmem:[#allocation18_spill] sm:$0xff] %v5865_v57  ;;  %v5870_v34 = vfloor.f32 %v1789_v35  ;;  %v2155_v35 = vsub.f32 0.0, %v1963_v3  ;;  %v5895_v50 = vmul.f32 0.5, %v5859_v38 }
 0x1e9   : > { %v1624_v48 = vpop.f32.mrf.mxu3  ;;  %v1764_v0 = vmul.f32 0.31830987, %v1596_v8  ;;  %v1884_v54 = vsub.f32 %v5821_v42, %v1852_v21  ;;  %vm2123_vm7 = vcmp.gt.f32.partialorder %v2091_v61, 0.5 }
 0x1ea   : > { %7916 = vst [vmem:[#allocation27_spill] sm:$0xff] %v5870_v34  ;;  %v1625_v14 = vadd.f32 %v1624_v48, %v5773_v59  ;;  %v1853_v62 = vmul.f32 3.140625, %v5870_v34  ;;  %v1917_v48 = vmul.f32 0.0009676536, %v5870_v34  ;;  %v5903_v58 = vmul.f32 0.5, %v5870_v34 }
 0x1eb   : > { %v1796_v60 = vadd.f32 0.5, %v1764_v0  ;;  %v5892_v28 = vsub.f32 %v1884_v54, %v1916_v32 }
 0x1ec   : > { %v1765_v27 = vmul.f32 0.31830987, %v1625_v14  ;;  %v1885_v40 = vsub.f32 %v5842_v1, %v1853_v62  ;;  %7918 = vst [vmem:[#allocation7_spill] sm:$0xff] %v5903_v58  ;;  %v5907_v62 = vmul.f32 %v5890_v31, %v5890_v31 }
 0x1ed   : > { %v5885_v17 = vfloor.f32 %v1796_v60  ;;  %7917 = vst [vmem:[#allocation10_spill] sm:$0xff] %v5892_v28 }
 0x1ee   : > { %v1598_v29 = vpop.f32.mrf.mxu2  ;;  %v1797_v15 = vadd.f32 0.5, %v1765_v27 }
 0x1ef   : > { %v1599_v5 = vadd.f32 %v1598_v29, %v5746_v41  ;;  %v1860_v21 = vmul.f32 3.140625, %v5885_v17  ;;  %v5910_v29 = vsub.f32 %v1885_v40, %v1917_v48  ;;  %v1924_v61 = vmul.f32 0.0009676536, %v5885_v17 }
 0x1f0   : > { %v5899_v0 = vfloor.f32 %v1797_v15 }
 0x1f1   : > { %v1647_v30 = vpop.f32.mrf.mxu0  ;;  %v1627_v44 = vpop.f32.mrf.mxu3  ;;  %v1772_v1 = vmul.f32 0.31830987, %v1599_v5  ;;  %v1892_v49 = vsub.f32 %v1596_v8, %v1860_v21  ;;  %7919 = vst [vmem:[#allocation30_spill] sm:$0xff] %v5910_v29 }
 0x1f2   : > { %v1648_v60 = vadd.f32 %v1647_v30, %v5730_v19  ;;  %v1628_v27 = vadd.f32 %v1627_v44, %v5746_v41  ;;  %v1861_v32 = vmul.f32 3.140625, %v5899_v0  ;;  %v5914_v30 = vsel %vm2123_vm7, %v2155_v35, %v1963_v3 }
 0x1f3   : > { %v1804_v46 = vadd.f32 0.5, %v1772_v1  ;;  %v5918_v13 = vsub.f32 %v1892_v49, %v1924_v61  ;;  %v1925_v40 = vmul.f32 0.0009676536, %v5899_v0  ;;  %v5924_v3 = vmul.f32 %v5914_v30, %v5914_v30 }
 0x1f4   : > { %v1676_v54 = vpop.f32.mrf.mxu1  ;;  %v1750_v15 = vmul.f32 0.31830987, %v1648_v60  ;;  %v1773_v52 = vmul.f32 0.31830987, %v1628_v27  ;;  %v1893_v8 = vsub.f32 %v1625_v14, %v1861_v32  ;;  %v5927_v35 = vmul.f32 0.5, %v5885_v17 }
 0x1f5   : > { %v1677_v36 = vadd.f32 %v1676_v54, %v5730_v19  ;;  %v1836_v44 = vfloor.f32 %v1804_v46 }
 0x1f6   : > { %v1782_v21 = vadd.f32 0.5, %v1750_v15  ;;  %v1805_v42 = vadd.f32 0.5, %v1773_v52  ;;  %v5931_v49 = vsub.f32 %v1893_v8, %v1925_v40  ;;  %v5935_v52 = vmul.f32 0.5, %v5899_v0 }
 0x1f7   : > { %v1751_v48 = vmul.f32 0.31830987, %v1677_v36  ;;  %v1868_v54 = vmul.f32 3.140625, %v1836_v44  ;;  %v1996_v61 = vmul.f32 0.5, %v1836_v44  ;;  %v1932_v25 = vmul.f32 0.0009676536, %v1836_v44 }
 0x1f8   : > { %v5929_v1 = vfloor.f32 %v1782_v21  ;;  %v1837_v21 = vfloor.f32 %v1805_v42 }
 0x1f9   : > { %v1783_v14 = vadd.f32 0.5, %v1751_v48  ;;  %v1650_v32 = vpop.f32.mrf.mxu0  ;;  %v1900_v47 = vsub.f32 %v1599_v5, %v1868_v54  ;;  %v2028_v57 = vfloor.f32 %v1996_v61 }
 0x1fa   : > { %7920 = vst [vmem:[#allocation8_spill] sm:$0xff] %v5929_v1  ;;  %v1846_v15 = vmul.f32 3.140625, %v5929_v1  ;;  %v1910_v40 = vmul.f32 0.0009676536, %v5929_v1  ;;  %v1651_v48 = vadd.f32 %v1650_v32, %v5734_v43  ;;  %v5945_v37 = vmul.f32 0.5, %v5929_v1 }
 0x1fb   : > { %v5938_v22 = vfloor.f32 %v1783_v14  ;;  %v1964_v14 = vsub.f32 %v1900_v47, %v1932_v25  ;;  %v2060_v42 = vmul.f32 2.0, %v2028_v57  ;;  %v1933_v34 = vmul.f32 0.0009676536, %v1837_v21 }
 0x1fc   : > { %v1679_v7 = vpop.f32.mrf.mxu1  ;;  %v1878_v8 = vsub.f32 %v1648_v60, %v1846_v15  ;;  %7922 = vst [vmem:[#allocation39_spill] sm:$0xff] %v5945_v37  ;;  %v1869_v60 = vmul.f32 3.140625, %v1837_v21  ;;  %v1997_v15 = vmul.f32 0.5, %v1837_v21  ;;  %v1758_v32 = vmul.f32 0.31830987, %v1651_v48 }
 0x1fd   : > { %7921 = vst [vmem:[#allocation22_spill] sm:$0xff] %v5938_v22  ;;  %v1680_v63 = vadd.f32 %v1679_v7, %v5734_v43  ;;  %v1847_v45 = vmul.f32 3.140625, %v5938_v22  ;;  %v1911_v5 = vmul.f32 0.0009676536, %v5938_v22  ;;  %v2156_v61 = vsub.f32 0.0, %v1964_v14 }
 0x1fe   : > { %v5948_v29 = vsub.f32 %v1878_v8, %v1910_v40  ;;  %v2092_v23 = vsub.f32 %v1836_v44, %v2060_v42  ;;  %v1901_v7 = vsub.f32 %v1628_v27, %v1869_v60  ;;  %v2029_v1 = vfloor.f32 %v1997_v15 }
 0x1ff   : > { %v1879_v54 = vsub.f32 %v1677_v36, %v1847_v45  ;;  %v1759_v46 = vmul.f32 0.31830987, %v1680_v63  ;;  %v1790_v37 = vadd.f32 0.5, %v1758_v32  ;;  %v2010_v47 = vfloor.f32 %v5808_v6 }
 0x200   : > { %7923 = vst [vmem:[#allocation41_spill] sm:$0xff] %v5948_v29  ;;  %v5955_v25 = vmul.f32 0.5, %v5938_v22  ;;  %vm2124_vm8 = vcmp.gt.f32.partialorder %v2092_v23, 0.5  ;;  %v1965_v57 = vsub.f32 %v1901_v7, %v1933_v34  ;;  %v2061_v44 = vmul.f32 2.0, %v2029_v1 }
 0x201   : > { %v5951_v58 = vsub.f32 %v1879_v54, %v1911_v5  ;;  %v1791_v8 = vadd.f32 0.5, %v1759_v46  ;;  %v5958_v36 = vsel %vm2124_vm8, %v2156_v61, %v1964_v14  ;;  %v5960_v27 = vfloor.f32 %v1790_v37  ;;  %v1653_v15 = vpop.f32.mrf.mxu0 }
 0x202   : > { %7925 = vst [vmem:[#allocation35_spill] sm:$0xff] %v5955_v25  ;;  %v2157_v5 = vsub.f32 0.0, %v1965_v57  ;;  %v2042_v60 = vmul.f32 2.0, %v2010_v47  ;;  %v5967_v6 = vmul.f32 %v5958_v36, %v5958_v36  ;;  %v2093_v23 = vsub.f32 %v1837_v21, %v2061_v44 }
 0x203   : > { %7924 = vst [vmem:[#allocation23_spill] sm:$0xff] %v5951_v58  ;;  %v5963_v42 = vfloor.f32 %v1791_v8  ;;  %v1854_v34 = vmul.f32 3.140625, %v5960_v27  ;;  %v1918_v46 = vmul.f32 0.0009676536, %v5960_v27  ;;  %v5972_v14 = vmul.f32 0.5, %v5960_v27 }
 0x204   : > { %7926 = vst [vmem:[#allocation36_spill] sm:$0xff] %v5958_v36  ;;  %v2018_v54 = vfloor.f32 %v5854_v10  ;;  %vm2125_vm9 = vcmp.gt.f32.partialorder %v2093_v23, 0.5  ;;  %v1682_v32 = vpop.f32.mrf.mxu1  ;;  %v2019_v7 = vfloor.f32 %v5873_v9  ;;  %v2074_v21 = vsub.f32 %v5748_v56, %v2042_v60 }
 0x205   : > { %7927 = vst [vmem:[#allocation42_spill] sm:$0xff] %v5960_v27  ;;  %v1855_v37 = vmul.f32 3.140625, %v5963_v42  ;;  %v1919_v1 = vmul.f32 0.0009676536, %v5963_v42  ;;  %v1886_v61 = vsub.f32 %v1651_v48, %v1854_v34  ;;  %v5979_v47 = vsel %vm2125_vm9, %v2157_v5, %v1965_v57 }
 0x206   : > { %7928 = vst [vmem:[#allocation43_spill] sm:$0xff] %v5963_v42  ;;  %v1654_v44 = vadd.f32 %v1653_v15, %v5773_v59  ;;  %v1683_v40 = vadd.f32 %v1682_v32, %v5773_v59  ;;  %v5986_v58 = vmul.f32 0.5, %v5963_v42  ;;  %v2050_v10 = vmul.f32 2.0, %v2018_v54 }
 0x207   : > { %7929 = vst [vmem:[#allocation29_spill] sm:$0xff] %v5972_v14  ;;  %v1887_v8 = vsub.f32 %v1680_v63, %v1855_v37  ;;  %v5983_v45 = vsub.f32 %v1886_v61, %v1918_v46  ;;  %v2051_v48 = vmul.f32 2.0, %v2019_v7  ;;  %vm2106_vm10 = vcmp.gt.f32.partialorder %v2074_v21, 0.5 }
 0x208   : > { %7930 = vst [vmem:[#allocation31_spill] sm:$0xff] %v5979_v47  ;;  %v1766_v34 = vmul.f32 0.31830987, %v1654_v44  ;;  %v1767_v9 = vmul.f32 0.31830987, %v1683_v40  ;;  %v5992_v56 = vmul.f32 %v5979_v47, %v5979_v47  ;;  %v2082_v63 = vsub.f32 %v5812_v4, %v2050_v10 }
 0x209   : > { %7931 = vst [vmem:[#allocation13_spill] sm:$0xff] %v5983_v45  ;;  %v5988_v23 = vsub.f32 %v1887_v8, %v1919_v1  ;;  %v2083_v57 = vsub.f32 %v5818_v55, %v2051_v48  ;;  %v7934_v5 = vsub.f32 0.0, %v5805_v18  ;;  %v2011_v4 = vfloor.f32 %v5828_v51 }
 0x20a   : > { %7932 = vst [vmem:[#allocation16_spill] sm:$0xff] %v5986_v58  ;;  %v1798_v37 = vadd.f32 0.5, %v1766_v34  ;;  %v1799_v1 = vadd.f32 0.5, %v1767_v9  ;;  %vm2114_vm11 = vcmp.gt.f32.partialorder %v2082_v63, 0.5  ;;  %v7938_v7 = vsub.f32 0.0, %v5876_v11  ;;  %v1656_v63 = vpop.f32.mrf.mxu0 }
 0x20b   : > { %7933 = vst [vmem:[#allocation14_spill] sm:$0xff] %v5988_v23  ;;  %v5999_v60 = vsel %vm2106_vm10, %v7934_v5, %v5805_v18  ;;  %vm2115_vm12 = vcmp.gt.f32.partialorder %v2083_v57, 0.5  ;;  %v7937_v18 = vsub.f32 0.0, %v5867_v2  ;;  %v2043_v48 = vmul.f32 2.0, %v2011_v4 }
 0x20c   : > { %v6004_v54 = vmul.f32 %v5999_v60, %v5999_v60  ;;  %v6008_v55 = vfloor.f32 %v1798_v37  ;;  %v6010_v15 = vfloor.f32 %v1799_v1  ;;  %v6020_v21 = vsel %vm2115_vm12, %v7938_v7, %v5876_v11  ;;  %v1685_v11 = vpop.f32.mrf.mxu1 }
 0x20d   : > { %v6015_v32 = vsel %vm2114_vm11, %v7937_v18, %v5867_v2  ;;  %v6028_v51 = vmul.f32 %v6020_v21, %v6020_v21  ;;  %v1657_v1 = vadd.f32 %v1656_v63, %v5746_v41  ;;  %v1686_v18 = vadd.f32 %v1685_v11, %v5746_v41 }
 0x20e   : > { %7935 = vst [vmem:[#allocation20_spill] sm:$0xff] %v6008_v55  ;;  %v6024_v8 = vmul.f32 %v6015_v32, %v6015_v32  ;;  %v2234_v10 = vmul.f32 -2.5052108e-08, %v6004_v54  ;;  %v1862_v34 = vmul.f32 3.140625, %v6008_v55  ;;  %v1926_v2 = vmul.f32 0.0009676536, %v6008_v55 }
 0x20f   : > { %7936 = vst [vmem:[#allocation45_spill] sm:$0xff] %v6010_v15  ;;  %v1863_v9 = vmul.f32 3.140625, %v6010_v15  ;;  %v6036_v5 = vmul.f32 0.5, %v6008_v55  ;;  %v1927_v37 = vmul.f32 0.0009676536, %v6010_v15  ;;  %v2075_v57 = vsub.f32 %v5750_v16, %v2043_v48 }
 0x210   : > { %v1894_v4 = vsub.f32 %v1654_v44, %v1862_v34  ;;  %v2242_v61 = vmul.f32 -2.5052108e-08, %v6024_v8  ;;  %v2243_v46 = vmul.f32 -2.5052108e-08, %v6028_v51  ;;  %v1774_v29 = vmul.f32 0.31830987, %v1657_v1 }
 0x211   : > { %7939 = vst [vmem:[#allocation47_spill] sm:$0xff] %v6036_v5  ;;  %v1895_v7 = vsub.f32 %v1683_v40, %v1863_v9  ;;  %v1775_v22 = vmul.f32 0.31830987, %v1686_v18  ;;  %v2266_v23 = vadd.f32 2.7557319e-06, %v2234_v10  ;;  %v6049_v63 = vmul.f32 0.5, %v6010_v15 }
 0x212   : > { %v6044_v25 = vsub.f32 %v1894_v4, %v1926_v2  ;;  %v2274_v58 = vadd.f32 2.7557319e-06, %v2242_v61  ;;  %v2275_v45 = vadd.f32 2.7557319e-06, %v2243_v46  ;;  %v1806_v44 = vadd.f32 0.5, %v1774_v29 }
 0x213   : > { %v6046_v42 = vsub.f32 %v1895_v7, %v1927_v37  ;;  %7942 = vst [vmem:[#allocation44_spill] sm:$0xff] %v6049_v63  ;;  %v1807_v40 = vadd.f32 0.5, %v1775_v22  ;;  %vm6051_vm13 = vcmp.gt.f32.partialorder %v2075_v57, 0.5  ;;  %v2250_v29 = vmul.f32 -2.5052108e-08, %v5907_v62 }
 0x214   : > { %7940 = vst [vmem:[#allocation40_spill] sm:$0xff] %v6044_v25  ;;  %v2306_v48 = vmul.f32 %v2274_v58, %v6024_v8  ;;  %v2307_v2 = vmul.f32 %v2275_v45, %v6028_v51  ;;  %v1838_v61 = vfloor.f32 %v1806_v44  ;;  %v2251_v57 = vmul.f32 -2.5052108e-08, %v5924_v3 }
 0x215   : > { %7941 = vst [vmem:[#allocation46_spill] sm:$0xff] %v6046_v42  ;;  %v1839_v11 = vfloor.f32 %v1807_v40  ;;  %v6067_v7 = vmul.f32 %v2266_v23, %v6004_v54  ;;  %v2282_v55 = vadd.f32 2.7557319e-06, %v2250_v29 }
 0x216   : > { %v6062_v37 = vadd.f32 -0.0001984127, %v2306_v48  ;;  %v6064_v4 = vadd.f32 -0.0001984127, %v2307_v2  ;;  %v1870_v45 = vmul.f32 3.140625, %v1838_v61 }
 0x217   : > { %v1934_v10 = vmul.f32 0.0009676536, %v1838_v61  ;;  %v1871_v44 = vmul.f32 3.140625, %v1839_v11  ;;  %v1935_v40 = vmul.f32 0.0009676536, %v1839_v11  ;;  %v1999_v42 = vmul.f32 0.5, %v1839_v11 }
 0x218   : > { %v1705_v9 = vpop.f32.mrf.mxu2  ;;  %v1902_v27 = vsub.f32 %v1657_v1, %v1870_v45  ;;  %v2283_v5 = vadd.f32 2.7557319e-06, %v2251_v57  ;;  %v2314_v29 = vmul.f32 %v2282_v55, %v5907_v62 }
 0x219   : > { %v1706_v46 = vadd.f32 %v1705_v9, %v5730_v19  ;;  %v1998_v9 = vmul.f32 0.5, %v1838_v61  ;;  %v1903_v63 = vsub.f32 %v1686_v18, %v1871_v44  ;;  %v2031_v2 = vfloor.f32 %v1999_v42 }
 0x21a   : > { %v1734_v22 = vpop.f32.mrf.mxu3  ;;  %v1966_v47 = vsub.f32 %v1902_v27, %v1934_v10 }
 0x21b   : > { %v1752_v16 = vmul.f32 0.31830987, %v1706_v46  ;;  %v1735_v58 = vadd.f32 %v1734_v22, %v5730_v19  ;;  %v2030_v48 = vfloor.f32 %v1998_v9  ;;  %v7946_v19 = vsub.f32 0.0, %v5810_v24 }
 0x21c   : > { %v1967_v28 = vsub.f32 %v1903_v63, %v1935_v40  ;;  %v2063_v1 = vmul.f32 2.0, %v2031_v2 }
 0x21d   : > { %v1784_v15 = vadd.f32 0.5, %v1752_v16  ;;  %v1753_v25 = vmul.f32 0.31830987, %v1735_v58  ;;  %v6077_v22 = vsel %vm6051_vm13, %v7946_v19, %v5810_v24  ;;  %v2062_v16 = vmul.f32 2.0, %v2030_v48 }
 0x21e   : > { %v2158_v24 = vsub.f32 0.0, %v1966_v47  ;;  %v2095_v57 = vsub.f32 %v1839_v11, %v2063_v1 }
 0x21f   : > { %v6070_v14 = vfloor.f32 %v1784_v15  ;;  %v1785_v23 = vadd.f32 0.5, %v1753_v25  ;;  %v2315_v25 = vmul.f32 %v2283_v5, %v5924_v3  ;;  %v2094_v34 = vsub.f32 %v1838_v61, %v2062_v16 }
 0x220   : > { %v1708_v36 = vpop.f32.mrf.mxu2  ;;  %vm2127_vm15 = vcmp.gt.f32.partialorder %v2095_v57, 0.5  ;;  %v2159_v61 = vsub.f32 0.0, %v1967_v28 }
 0x221   : > { %7945 = vst [vmem:[#allocation33_spill] sm:$0xff] %v6070_v14  ;;  %v1848_v42 = vmul.f32 3.140625, %v6070_v14  ;;  %v1912_v15 = vmul.f32 0.0009676536, %v6070_v14  ;;  %v6082_v18 = vfloor.f32 %v1785_v23  ;;  %v1709_v27 = vadd.f32 %v1708_v36, %v5734_v43 }
 0x222   : > { %v1737_v10 = vpop.f32.mrf.mxu3  ;;  %v6087_v63 = vmul.f32 0.5, %v6070_v14  ;;  %vm2126_vm14 = vcmp.gt.f32.partialorder %v2094_v34, 0.5  ;;  %v4333_v23 = vadd.f32 -0.0001984127, %v2314_v29  ;;  %v4334_v1 = vadd.f32 -0.0001984127, %v2315_v25 }
 0x223   : > { %7947 = vst [vmem:[#allocation37_spill] sm:$0xff] %v6082_v18  ;;  %v1880_v45 = vsub.f32 %v1706_v46, %v1848_v42  ;;  %v1849_v55 = vmul.f32 3.140625, %v6082_v18  ;;  %v1913_v9 = vmul.f32 0.0009676536, %v6082_v18  ;;  %v1760_v44 = vmul.f32 0.31830987, %v1709_v27 }
 0x224   : > { %7948 = vst [vmem:[#allocation28_spill] sm:$0xff] %v6087_v63  ;;  %v1738_v40 = vadd.f32 %v1737_v10, %v5734_v43  ;;  %v6094_v48 = vsel %vm2126_vm14, %v2158_v24, %v1966_v47  ;;  %v6097_v46 = vmul.f32 0.5, %v6082_v18  ;;  %v6104_v43 = vsel %vm2127_vm15, %v2159_v61, %v1967_v28 }
 0x225   : > { %v6092_v5 = vsub.f32 %v1880_v45, %v1912_v15  ;;  %v1881_v36 = vsub.f32 %v1735_v58, %v1849_v55  ;;  %v1792_v11 = vadd.f32 0.5, %v1760_v44  ;;  %v6102_v16 = vmul.f32 %v6094_v48, %v6094_v48 }
 0x226   : > { %7950 = vst [vmem:[#allocation34_spill] sm:$0xff] %v6097_v46  ;;  %v1761_v2 = vmul.f32 0.31830987, %v1738_v40  ;;  %v2378_v10 = vmul.f32 %v4333_v23, %v5907_v62  ;;  %v6113_v29 = vmul.f32 %v6104_v43, %v6104_v43  ;;  %v2379_v24 = vmul.f32 %v4334_v1, %v5924_v3 }
 0x227   : > { %7949 = vst [vmem:[#allocation32_spill] sm:$0xff] %v6092_v5  ;;  %v6106_v42 = vsub.f32 %v1881_v36, %v1913_v9  ;;  %v6108_v47 = vfloor.f32 %v1792_v11  ;;  %v2370_v28 = vmul.f32 %v6062_v37, %v6024_v8 }
 0x228   : > { %v1793_v58 = vadd.f32 0.5, %v1761_v2  ;;  %v1711_v15 = vpop.f32.mrf.mxu2  ;;  %v2410_v61 = vadd.f32 0.008333334, %v2378_v10  ;;  %v2411_v11 = vadd.f32 0.008333334, %v2379_v24 }
 0x229   : > { %7951 = vst [vmem:[#allocation21_spill] sm:$0xff] %v6106_v42  ;;  %v1712_v34 = vadd.f32 %v1711_v15, %v5773_v59  ;;  %v1856_v25 = vmul.f32 3.140625, %v6108_v47  ;;  %v1920_v57 = vmul.f32 0.0009676536, %v6108_v47  ;;  %v6122_v45 = vmul.f32 0.5, %v6108_v47 }
 0x22a   : > { %v6124_v55 = vfloor.f32 %v1793_v58  ;;  %v1740_v9 = vpop.f32.mrf.mxu3  ;;  %v2442_v5 = vmul.f32 %v2410_v61, %v5907_v62  ;;  %v2443_v58 = vmul.f32 %v2411_v11, %v5924_v3 }
 0x22b   : > { %v1768_v44 = vmul.f32 0.31830987, %v1712_v34  ;;  %v1741_v36 = vadd.f32 %v1740_v9, %v5773_v59  ;;  %v1888_v2 = vsub.f32 %v1709_v27, %v1856_v25  ;;  %v2402_v59 = vadd.f32 0.008333334, %v2370_v28 }
 0x22c   : > { %7952 = vst [vmem:[#allocation38_spill] sm:$0xff] %v6124_v55  ;;  %v1857_v23 = vmul.f32 3.140625, %v6124_v55  ;;  %v1921_v37 = vmul.f32 0.0009676536, %v6124_v55  ;;  %v6130_v1 = vmul.f32 0.5, %v6124_v55  ;;  %v2371_v27 = vmul.f32 %v6064_v4, %v6028_v51 }
 0x22d   : > { %v1800_v15 = vadd.f32 0.5, %v1768_v44  ;;  %v1769_v19 = vmul.f32 0.31830987, %v1741_v36  ;;  %v6134_v18 = vsub.f32 %v1888_v2, %v1920_v57  ;;  %v4365_v25 = vadd.f32 -0.16666667, %v2442_v5 }
 0x22e   : > { %v1889_v14 = vsub.f32 %v1738_v40, %v1857_v23  ;;  %v4366_v9 = vadd.f32 -0.16666667, %v2443_v58  ;;  %v2434_v61 = vmul.f32 %v2402_v59, %v6024_v8  ;;  %v2403_v11 = vadd.f32 0.008333334, %v2371_v27 }
 0x22f   : > { %v6138_v10 = vfloor.f32 %v1800_v15  ;;  %v1801_v24 = vadd.f32 0.5, %v1769_v19  ;;  %v2506_v19 = vmul.f32 %v4365_v25, %v5907_v62 }
 0x230   : > { %v6141_v44 = vsub.f32 %v1889_v14, %v1921_v37  ;;  %v1714_v46 = vpop.f32.mrf.mxu2  ;;  %v2507_v14 = vmul.f32 %v4366_v9, %v5924_v3 }
 0x231   : > { %v1864_v57 = vmul.f32 3.140625, %v6138_v10  ;;  %v1928_v40 = vmul.f32 0.0009676536, %v6138_v10  ;;  %v6147_v28 = vmul.f32 0.5, %v6138_v10  ;;  %v6149_v4 = vfloor.f32 %v1801_v24 }
 0x232   : > { %7953 = vst [vmem:[#allocation25_spill] sm:$0xff] %v6141_v44  ;;  %v1715_v2 = vadd.f32 %v1714_v46, %v5746_v41  ;;  %v1743_v23 = vpop.f32.mrf.mxu3  ;;  %v2538_v27 = vmul.f32 %v2506_v19, %v5890_v31  ;;  %v2539_v24 = vmul.f32 %v2507_v14, %v5914_v30  ;;  %v4357_v46 = vadd.f32 -0.16666667, %v2434_v61 }
 0x233   : > { %v1896_v37 = vsub.f32 %v1712_v34, %v1864_v57  ;;  %v1865_v15 = vmul.f32 3.140625, %v6149_v4  ;;  %v1929_v58 = vmul.f32 0.0009676536, %v6149_v4  ;;  %v6158_v59 = vmul.f32 0.5, %v6149_v4 }
 0x234   : > { %v1776_v5 = vmul.f32 0.31830987, %v1715_v2  ;;  %v1744_v62 = vadd.f32 %v1743_v23, %v5746_v41  ;;  %v2435_v34 = vmul.f32 %v2403_v11, %v6028_v51  ;;  %v2570_v9 = vadd.f32 %v2538_v27, %v5890_v31 }
 0x235   : > { %v6163_v25 = vsub.f32 %v1896_v37, %v1928_v40  ;;  %v1897_v3 = vsub.f32 %v1741_v36, %v1865_v15  ;;  %v2571_v57 = vadd.f32 %v2539_v24, %v5914_v30  ;;  %v2498_v14 = vmul.f32 %v4357_v46, %v6024_v8 }
 0x236   : > { %v1808_v42 = vadd.f32 0.5, %v1776_v5  ;;  %v1777_v44 = vmul.f32 0.31830987, %v1744_v62  ;;  %v4358_v63 = vadd.f32 -0.16666667, %v2435_v34  ;;  %2630 = vmatpush.msra.mxu0 %v2570_v9  ;;  %v6175_v31 = vmul.f32 %v6077_v22, %v6077_v22 }
 0x237   : > { %v2152_v55 = vsub.f32 0.0, %v6163_v25  ;;  %v6169_v19 = vsub.f32 %v1897_v3, %v1929_v58  ;;  %2659 = vmatpush.msra.mxu1 %v2571_v57  ;;  %v4317_v61 = vadd.f32 -0.0001984127, %v6067_v7  ;;  %v2530_v11 = vmul.f32 %v2498_v14, %v6015_v32 }
 0x238   : > { %v1840_v41 = vfloor.f32 %v1808_v42  ;;  %v1809_v36 = vadd.f32 0.5, %v1777_v44  ;;  %v2499_v40 = vmul.f32 %v4358_v63, %v6028_v51  ;;  %v7954_v5 = vfloor.f32 %v5770_v39 }
 0x239   : > { %v2153_v30 = vsub.f32 0.0, %v6169_v19  ;;  %v2562_v44 = vadd.f32 %v2530_v11, %v6015_v32  ;;  %v2362_v58 = vmul.f32 %v4317_v61, %v6004_v54  ;;  %v2235_v27 = vmul.f32 -2.5052108e-08, %v6175_v31 }
 0x23a   : > { %v2034_v8 = vmul.f32 2.0, %v7954_v5  ;;  %v1872_v23 = vmul.f32 3.140625, %v1840_v41  ;;  %v1936_v37 = vmul.f32 0.0009676536, %v1840_v41  ;;  %v2000_v15 = vmul.f32 0.5, %v1840_v41 }
 0x23b   : > { %v1841_v42 = vfloor.f32 %v1809_v36  ;;  %v2531_v7 = vmul.f32 %v2499_v40, %v6020_v21  ;;  %2631 = vmatpush.msra.mxu0 %v2562_v44  ;;  %v2394_v63 = vadd.f32 0.008333334, %v2362_v58  ;;  %v2267_v9 = vadd.f32 2.7557319e-06, %v2235_v27 }
 0x23c   : > { %v1904_v24 = vsub.f32 %v1715_v2, %v1872_v23  ;;  %v2032_v3 = vfloor.f32 %v2000_v15  ;;  %v2066_v32 = vsub.f32 %v5741_v26, %v2034_v8  ;;  %v2003_v40 = vfloor.f32 %v5803_v33 }
 0x23d   : > { %v1873_v46 = vmul.f32 3.140625, %v1841_v42  ;;  %v1937_v34 = vmul.f32 0.0009676536, %v1841_v42  ;;  %v2001_v51 = vmul.f32 0.5, %v1841_v42  ;;  %v2563_v39 = vadd.f32 %v2531_v7, %v6020_v21 }
 0x23e   : > { %v1968_v57 = vsub.f32 %v1904_v24, %v1936_v37  ;;  %v2064_v14 = vmul.f32 2.0, %v2032_v3  ;;  %v2426_v61 = vmul.f32 %v2394_v63, %v6004_v54  ;;  %v2299_v2 = vmul.f32 %v2267_v9, %v6175_v31 }
 0x23f   : > { %v1905_v36 = vsub.f32 %v1744_v62, %v1873_v46  ;;  %v2033_v11 = vfloor.f32 %v2001_v51  ;;  %2660 = vmatpush.msra.mxu1 %v2563_v39  ;;  %vm2098_vm2 = vcmp.gt.f32.partialorder %v2066_v32, 0.5  ;;  %v7955_v62 = vsub.f32 0.0, %v5767_v12 }
 0x240   : > { %v2096_v5 = vsub.f32 %v1840_v41, %v2064_v14  ;;  %v2160_v23 = vsub.f32 0.0, %v1968_v57  ;;  %v4349_v44 = vadd.f32 -0.16666667, %v2426_v61  ;;  %v4318_v7 = vadd.f32 -0.0001984127, %v2299_v2 }
 0x241   : > { %v1969_v15 = vsub.f32 %v1905_v36, %v1937_v34  ;;  %v2065_v21 = vmul.f32 2.0, %v2033_v11  ;;  %v6194_v37 = vsel %vm2098_vm2, %v7955_v62, %v5767_v12  ;;  %v2035_v58 = vmul.f32 2.0, %v2003_v40 }
 0x242   : > { %vm2128_vm3 = vcmp.gt.f32.partialorder %v2096_v5, 0.5  ;;  %v6198_v8 = vmul.f32 %v6194_v37, %v6194_v37  ;;  %v2490_v27 = vmul.f32 %v4349_v44, %v6004_v54  ;;  %v2363_v24 = vmul.f32 %v4318_v7, %v6175_v31 }
 0x243   : > { %v2161_v26 = vsub.f32 0.0, %v1969_v15  ;;  %v6200_v33 = vsel %vm2128_vm3, %v2160_v23, %v1968_v57  ;;  %v2097_v41 = vsub.f32 %v1841_v42, %v2065_v21  ;;  %v2067_v46 = vsub.f32 %v5744_v20, %v2035_v58 }
 0x244   : > { %v6206_v3 = vmul.f32 %v6200_v33, %v6200_v33  ;;  %v2226_v12 = vmul.f32 -2.5052108e-08, %v6198_v8  ;;  %v2252_v34 = vmul.f32 -2.5052108e-08, %v5967_v6  ;;  %v2522_v51 = vmul.f32 %v2490_v27, %v5999_v60 }
 0x245   : > { %vm2129_vm4 = vcmp.gt.f32.partialorder %v2097_v41, 0.5  ;;  %v2395_v39 = vadd.f32 0.008333334, %v2363_v24  ;;  %v2253_v42 = vmul.f32 -2.5052108e-08, %v5992_v56  ;;  %vm2099_vm5 = vcmp.gt.f32.partialorder %v2067_v46, 0.5 }
 0x246   : > { %v6213_v63 = vsel %vm2129_vm4, %v2161_v26, %v1969_v15  ;;  %v2258_v54 = vadd.f32 2.7557319e-06, %v2226_v12  ;;  %v2284_v9 = vadd.f32 2.7557319e-06, %v2252_v34  ;;  %v2554_v14 = vadd.f32 %v2522_v51, %v5999_v60 }
 0x247   : > { %v6217_v57 = vmul.f32 %v6213_v63, %v6213_v63  ;;  %v2427_v20 = vmul.f32 %v2395_v39, %v6175_v31  ;;  %v7956_v36 = vsub.f32 0.0, %v5793_v53  ;;  %v2285_v40 = vadd.f32 2.7557319e-06, %v2253_v42 }
 0x248   : > { %v2290_v11 = vmul.f32 %v2258_v54, %v6198_v8  ;;  %v2316_v2 = vmul.f32 %v2284_v9, %v5967_v6  ;;  %2632 = vmatpush.msra.mxu0 %v2554_v14  ;;  %v2020_v60 = vfloor.f32 %v5927_v35  ;;  %v2021_v23 = vfloor.f32 %v5935_v52 }
 0x249   : > { %v6224_v32 = vsel %vm2099_vm5, %v7956_v36, %v5793_v53  ;;  %v4350_v5 = vadd.f32 -0.16666667, %v2427_v20  ;;  %v2012_v15 = vfloor.f32 %v5895_v50  ;;  %v2317_v7 = vmul.f32 %v2285_v40, %v5992_v56 }
 0x24a   : > { %v6229_v61 = vmul.f32 %v6224_v32, %v6224_v32  ;;  %v4309_v21 = vadd.f32 -0.0001984127, %v2290_v11  ;;  %v4335_v44 = vadd.f32 -0.0001984127, %v2316_v2  ;;  %v2052_v26 = vmul.f32 2.0, %v2020_v60 }
 0x24b   : > { %v2491_v62 = vmul.f32 %v4350_v5, %v6175_v31  ;;  %v2053_v58 = vmul.f32 2.0, %v2021_v23  ;;  %v2044_v41 = vmul.f32 2.0, %v2012_v15  ;;  %v4336_v12 = vadd.f32 -0.0001984127, %v2317_v7  ;;  %v7961_v5 = vld [vmem:[#allocation7_spill] sm:$0xff] }
 0x24c   : > { %v2227_v53 = vmul.f32 -2.5052108e-08, %v6229_v61  ;;  %v2354_v27 = vmul.f32 %v4309_v21, %v6198_v8  ;;  %v2380_v35 = vmul.f32 %v4335_v44, %v5967_v6  ;;  %v2084_v50 = vsub.f32 %v5885_v17, %v2052_v26 }
 0x24d   : > { %v2523_v52 = vmul.f32 %v2491_v62, %v6077_v22  ;;  %v2085_v46 = vsub.f32 %v5899_v0, %v2053_v58  ;;  %v2076_v34 = vsub.f32 %v5859_v38, %v2044_v41  ;;  %v2381_v42 = vmul.f32 %v4336_v12, %v5992_v56  ;;  %v7962_v12 = vld [vmem:[#allocation27_spill] sm:$0xff] }
 0x24e   : > { %v2259_v24 = vadd.f32 2.7557319e-06, %v2227_v53  ;;  %v2386_v51 = vadd.f32 0.008333334, %v2354_v27  ;;  %v2412_v39 = vadd.f32 0.008333334, %v2380_v35  ;;  %v2013_v60 = vfloor.f32 %v7961_v5 }
 0x24f   : > { %v2555_v54 = vadd.f32 %v2523_v52, %v6077_v22  ;;  %vm2116_vm6 = vcmp.gt.f32.partialorder %v2084_v50, 0.5  ;;  %vm2117_vm7 = vcmp.gt.f32.partialorder %v2085_v46, 0.5  ;;  %vm2108_vm8 = vcmp.gt.f32.partialorder %v2076_v34, 0.5  ;;  %v7959_v22 = vld [vmem:[#allocation10_spill] sm:$0xff]  ;;  %v7963_v34 = vld [vmem:[#allocation36_spill] sm:$0xff] }
 0x250   : > { %v2291_v31 = vmul.f32 %v2259_v24, %v6229_v61  ;;  %v2418_v9 = vmul.f32 %v2386_v51, %v6198_v8  ;;  %v2444_v17 = vmul.f32 %v2412_v39, %v5967_v6  ;;  %v2413_v20 = vadd.f32 0.008333334, %v2381_v42  ;;  %v7964_v42 = vld [vmem:[#allocation9_spill] sm:$0xff] }
 0x251   : > { %2661 = vmatpush.msra.mxu1 %v2555_v54  ;;  %v7957_v38 = vsub.f32 0.0, %v5918_v13  ;;  %v7958_v36 = vsub.f32 0.0, %v5931_v49  ;;  %v7960_v2 = vsub.f32 0.0, %v7959_v22  ;;  %v2045_v7 = vmul.f32 2.0, %v2013_v60  ;;  %v7966_v60 = vld [vmem:[#allocation30_spill] sm:$0xff] }
 0x252   : > { %v4310_v14 = vadd.f32 -0.0001984127, %v2291_v31  ;;  %v4341_v23 = vadd.f32 -0.16666667, %v2418_v9  ;;  %v4367_v21 = vadd.f32 -0.16666667, %v2444_v17  ;;  %v2445_v53 = vmul.f32 %v2413_v20, %v5992_v56 }
 0x253   : > { %v6252_v0 = vsel %vm2116_vm6, %v7957_v38, %v5918_v13  ;;  %v6257_v11 = vsel %vm2117_vm7, %v7958_v36, %v5931_v49  ;;  %v6262_v40 = vsel %vm2108_vm8, %v7960_v2, %v7959_v22  ;;  %v2077_v52 = vsub.f32 %v7962_v12, %v2045_v7  ;;  %v6294_v17 = vld [vmem:[%s7670_s5] sm:$0xff] }
 0x254   : > { %v2355_v15 = vmul.f32 %v4310_v14, %v6229_v61  ;;  %v6269_v13 = vmul.f32 %v6252_v0, %v6252_v0  ;;  %v6273_v49 = vmul.f32 %v6257_v11, %v6257_v11  ;;  %v6277_v44 = vmul.f32 %v6262_v40, %v6262_v40  ;;  %v7965_v38 = vld [vmem:[#allocation31_spill] sm:$0xff] }
 0x255   : > { %v2482_v62 = vmul.f32 %v4341_v23, %v6198_v8  ;;  %v2508_v58 = vmul.f32 %v4367_v21, %v5967_v6  ;;  %v4368_v41 = vadd.f32 -0.16666667, %v2445_v53  ;;  %v2004_v54 = vfloor.f32 %v7964_v42 }
 0x256   : > { %v2387_v26 = vadd.f32 0.008333334, %v2355_v15  ;;  %v2244_v27 = vmul.f32 -2.5052108e-08, %v6269_v13  ;;  %v2245_v24 = vmul.f32 -2.5052108e-08, %v6273_v49 }
 0x257   : > { %v2236_v35 = vmul.f32 -2.5052108e-08, %v6277_v44  ;;  %v2514_v50 = vmul.f32 %v2482_v62, %v6194_v37  ;;  %v2540_v51 = vmul.f32 %v2508_v58, %v7963_v34  ;;  %v2509_v8 = vmul.f32 %v4368_v41, %v5992_v56  ;;  %v7968_v58 = vld [vmem:[#allocation11_spill] sm:$0xff] }
 0x258   : > { %v2419_v46 = vmul.f32 %v2387_v26, %v6229_v61  ;;  %v2276_v31 = vadd.f32 2.7557319e-06, %v2244_v27  ;;  %v2277_v39 = vadd.f32 2.7557319e-06, %v2245_v24  ;;  %vm2109_vm9 = vcmp.gt.f32.partialorder %v2077_v52, 0.5  ;;  %v7969_v27 = vld [vmem:[#allocation6_spill] sm:$0xff] }
 0x259   : > { %v2268_v6 = vadd.f32 2.7557319e-06, %v2236_v35  ;;  %v2546_v9 = vadd.f32 %v2514_v50, %v6194_v37  ;;  %v2572_v20 = vadd.f32 %v2540_v51, %v7963_v34  ;;  %v2541_v36 = vmul.f32 %v2509_v8, %v7965_v38  ;;  %v7970_v35 = vld [vmem:[#allocation29_spill] sm:$0xff] }
 0x25a   : > { %v4342_v14 = vadd.f32 -0.16666667, %v2419_v46  ;;  %v2308_v22 = vmul.f32 %v2276_v31, %v6269_v13  ;;  %v2309_v56 = vmul.f32 %v2277_v39, %v6273_v49  ;;  %v7967_v23 = vsub.f32 0.0, %v7966_v60 }
 0x25b   : > { %v2300_v2 = vmul.f32 %v2268_v6, %v6277_v44  ;;  %2633 = vmatpush.msra.mxu0 %v2546_v9  ;;  %2688 = vmatpush.msra.mxu2 %v2572_v20  ;;  %v2573_v5 = vadd.f32 %v2541_v36, %v7965_v38  ;;  %v2036_v21 = vmul.f32 2.0, %v2004_v54  ;;  %v2005_v24 = vfloor.f32 %v7969_v27  ;;  %v7971_v54 = vld [vmem:[#allocation17_spill] sm:$0xff]  ;;  %v6331_v20 = vld [vmem:[%s7670_s5 + $0x8] sm:$0xff]  ;;  %v7976_v27 = vld [vmem:[#allocation18_spill] sm:$0xff] }
 0x25c   : > { %v2483_v37 = vmul.f32 %v4342_v14, %v6229_v61  ;;  %v6306_v15 = vsel %vm2109_vm9, %v7967_v23, %v7966_v60  ;;  %4373 = vmatmul.msk.f32.vlgmr.msra.gmra.mxu0 %vm1501_vm1, %v6294_v17  ;;  %v4327_v53 = vadd.f32 -0.0001984127, %v2308_v22  ;;  %v4328_v7 = vadd.f32 -0.0001984127, %v2309_v56  ;;  %v7973_v36 = vld [vmem:[#allocation12_spill] sm:$0xff]  ;;  %v7974_v56 = vld [vmem:[#allocation47_spill] sm:$0xff] }
 0x25d   : > { %v4319_v62 = vadd.f32 -0.0001984127, %v2300_v2  ;;  %v6312_v26 = vmul.f32 %v6306_v15, %v6306_v15  ;;  %2717 = vmatpush.msra.mxu3 %v2573_v5  ;;  %v2068_v41 = vsub.f32 %v7968_v58, %v2036_v21  ;;  %v2014_v12 = vfloor.f32 %v7970_v35  ;;  %v7975_v23 = vld [vmem:[#allocation44_spill] sm:$0xff] }
 0x25e   : > { %v2515_v61 = vmul.f32 %v2483_v37, %v6224_v32  ;;  %v2372_v52 = vmul.f32 %v4327_v53, %v6269_v13  ;;  %v2373_v50 = vmul.f32 %v4328_v7, %v6273_v49  ;;  %v2037_v8 = vmul.f32 2.0, %v2005_v24 }
 0x25f   : > { %v2364_v46 = vmul.f32 %v4319_v62, %v6277_v44  ;;  %v2237_v34 = vmul.f32 -2.5052108e-08, %v6312_v26  ;;  %vm2100_vm10 = vcmp.gt.f32.partialorder %v2068_v41, 0.5  ;;  %v2046_v31 = vmul.f32 2.0, %v2014_v12 }
 0x260   : > { %v2547_v51 = vadd.f32 %v2515_v61, %v6224_v32  ;;  %v2404_v39 = vadd.f32 0.008333334, %v2372_v52  ;;  %v2405_v6 = vadd.f32 0.008333334, %v2373_v50  ;;  %v7972_v9 = vsub.f32 0.0, %v7971_v54 }
 0x261   : > { %v2396_v42 = vadd.f32 0.008333334, %v2364_v46  ;;  %v2269_v38 = vadd.f32 2.7557319e-06, %v2237_v34  ;;  %v2069_v22 = vsub.f32 %v7973_v36, %v2037_v8  ;;  %v2022_v2 = vfloor.f32 %v7974_v56  ;;  %v7978_v46 = vld [vmem:[#allocation20_spill] sm:$0xff] }
 0x262   : > { %v6326_v14 = vsel %vm2100_vm10, %v7972_v9, %v7971_v54  ;;  %2662 = vmatpush.msra.mxu1 %v2547_v51  ;;  %v2436_v37 = vmul.f32 %v2404_v39, %v6269_v13  ;;  %v2437_v5 = vmul.f32 %v2405_v6, %v6273_v49  ;;  %v2023_v21 = vfloor.f32 %v7975_v23 }
 0x263   : > { %v6335_v32 = vmul.f32 %v6326_v14, %v6326_v14  ;;  %4377 = vmatmul.msk.f32.vlgmr.msra.gmra.mxu1 %vm1501_vm1, %v6294_v17  ;;  %v2428_v60 = vmul.f32 %v2396_v42, %v6277_v44  ;;  %v2301_v53 = vmul.f32 %v2269_v38, %v6312_v26  ;;  %vm2101_vm11 = vcmp.gt.f32.partialorder %v2069_v22, 0.5 }
 0x264   : > { %v2054_v62 = vmul.f32 2.0, %v2022_v2  ;;  %v4359_v61 = vadd.f32 -0.16666667, %v2436_v37  ;;  %v4360_v58 = vadd.f32 -0.16666667, %v2437_v5  ;;  %4374 = vmatmul.msk.f32.gmra.mxu0 %vm1501_vm1, %v6331_v20  ;;  %v7977_v24 = vsub.f32 0.0, %v7976_v27 }
 0x265   : > { %v2228_v7 = vmul.f32 -2.5052108e-08, %v6335_v32  ;;  %v4351_v41 = vadd.f32 -0.16666667, %v2428_v60  ;;  %v4320_v12 = vadd.f32 -0.0001984127, %v2301_v53 }
 0x266   : > { %v6352_v35 = vsel %vm2101_vm11, %v7977_v24, %v7976_v27  ;;  %v2086_v34 = vsub.f32 %v7978_v46, %v2054_v62  ;;  %v2500_v51 = vmul.f32 %v4359_v61, %v6269_v13  ;;  %v2501_v8 = vmul.f32 %v4360_v58, %v6273_v49  ;;  %v7979_v37 = vld [vmem:[#allocation42_spill] sm:$0xff]  ;;  %v7980_v46 = vld [vmem:[#allocation40_spill] sm:$0xff] }
 0x267   : > { %v2260_v52 = vadd.f32 2.7557319e-06, %v2228_v7  ;;  %v6356_v50 = vmul.f32 %v6352_v35, %v6352_v35  ;;  %v2492_v39 = vmul.f32 %v4351_v41, %v6277_v44  ;;  %v2254_v6 = vmul.f32 -2.5052108e-08, %v6102_v16  ;;  %v6379_v7 = vld [vmem:[%s7670_s5 + $0x10] sm:$0xff] }
 0x268   : > { %v2365_v42 = vmul.f32 %v4320_v12, %v6312_v26  ;;  %v2255_v38 = vmul.f32 -2.5052108e-08, %v6113_v29  ;;  %v2532_v36 = vmul.f32 %v2500_v51, %v6252_v0  ;;  %v2533_v22 = vmul.f32 %v2501_v8, %v6257_v11 }
 0x269   : > { %v2292_v54 = vmul.f32 %v2260_v52, %v6335_v32  ;;  %v2229_v9 = vmul.f32 -2.5052108e-08, %v6356_v50  ;;  %v2524_v13 = vmul.f32 %v2492_v39, %v6262_v40  ;;  %v2286_v56 = vadd.f32 2.7557319e-06, %v2254_v6  ;;  %v7982_v39 = vld [vmem:[#allocation45_spill] sm:$0xff] }
 0x26a   : > { %v2397_v49 = vadd.f32 0.008333334, %v2365_v42  ;;  %v2078_v5 = vsub.f32 %v7979_v37, %v2046_v31  ;;  %v2564_v60 = vadd.f32 %v2532_v36, %v6252_v0  ;;  %v2565_v23 = vadd.f32 %v2533_v22, %v6257_v11  ;;  %v6418_v37 = vld [vmem:[%s7670_s5 + $0x18] sm:$0xff] }
 0x26b   : > { %v4311_v2 = vadd.f32 -0.0001984127, %v2292_v54  ;;  %v2261_v44 = vadd.f32 2.7557319e-06, %v2229_v9  ;;  %4378 = vmatmul.msk.f32.gmra.mxu1 %vm1501_vm1, %v6331_v20  ;;  %v2556_v53 = vadd.f32 %v2524_v13, %v6262_v40  ;;  %v2318_v62 = vmul.f32 %v2286_v56, %v6102_v16 }
 0x26c   : > { %v2429_v61 = vmul.f32 %v2397_v49, %v6312_v26  ;;  %v2287_v58 = vadd.f32 2.7557319e-06, %v2255_v38  ;;  %2689 = vmatpush.msra.mxu2 %v2564_v60  ;;  %2718 = vmatpush.msra.mxu3 %v2565_v23  ;;  %vm2118_vm12 = vcmp.gt.f32.partialorder %v2086_v34, 0.5  ;;  %v2055_v41 = vmul.f32 2.0, %v2023_v21  ;;  %v7983_v21 = vld [vmem:[#allocation13_spill] sm:$0xff]  ;;  %v7985_v23 = vld [vmem:[#allocation46_spill] sm:$0xff] }
 0x26d   : > { %v2356_v31 = vmul.f32 %v4311_v2, %v6335_v32  ;;  %v2293_v0 = vmul.f32 %v2261_v44, %v6356_v50  ;;  %v4337_v11 = vadd.f32 -0.0001984127, %v2318_v62  ;;  %vm2110_vm13 = vcmp.gt.f32.partialorder %v2078_v5, 0.5  ;;  %4375 = vmatmul.msk.f32.gmra.mxu0 %vm1501_vm1, %v6379_v7 }
 0x26e   : > { %v4352_v40 = vadd.f32 -0.16666667, %v2429_v61  ;;  %v2319_v12 = vmul.f32 %v2287_v58, %v6113_v29  ;;  %2690 = vmatpush.msra.mxu2 %v2556_v53  ;;  %v7981_v51 = vsub.f32 0.0, %v7980_v46  ;;  %v2087_v34 = vsub.f32 %v7982_v39, %v2055_v41 }
 0x26f   : > { %v2388_v27 = vadd.f32 0.008333334, %v2356_v31  ;;  %v4312_v24 = vadd.f32 -0.0001984127, %v2293_v0  ;;  %v2382_v52 = vmul.f32 %v4337_v11, %v6102_v16  ;;  %v7984_v6 = vsub.f32 0.0, %v7983_v21 }
 0x270   : > { %v6392_v8 = vsel %vm2118_vm12, %v7981_v51, %v7980_v46  ;;  %v2493_v54 = vmul.f32 %v4352_v40, %v6312_v26  ;;  %v4338_v36 = vadd.f32 -0.0001984127, %v2319_v12  ;;  %vm2119_vm14 = vcmp.gt.f32.partialorder %v2087_v34, 0.5 }
 0x271   : > { %v6398_v42 = vsel %vm2110_vm13, %v7984_v6, %v7983_v21  ;;  %v2420_v9 = vmul.f32 %v2388_v27, %v6335_v32  ;;  %v2357_v38 = vmul.f32 %v4312_v24, %v6356_v50  ;;  %v2414_v22 = vadd.f32 0.008333334, %v2382_v52 }
 0x272   : > { %v6405_v13 = vmul.f32 %v6392_v8, %v6392_v8  ;;  %v6409_v56 = vmul.f32 %v6398_v42, %v6398_v42  ;;  %v2525_v49 = vmul.f32 %v2493_v54, %v6306_v15  ;;  %v2383_v26 = vmul.f32 %v4338_v36, %v6113_v29 }
 0x273   : > { %v4343_v2 = vadd.f32 -0.16666667, %v2420_v9  ;;  %v2389_v44 = vadd.f32 0.008333334, %v2357_v38  ;;  %4379 = vmatmul.msk.f32.gmra.mxu1 %vm1501_vm1, %v6379_v7  ;;  %v2446_v5 = vmul.f32 %v2414_v22, %v6102_v16  ;;  %v7986_v53 = vsub.f32 0.0, %v7985_v23 }
 0x274   : > { %v2246_v60 = vmul.f32 -2.5052108e-08, %v6405_v13  ;;  %v2238_v61 = vmul.f32 -2.5052108e-08, %v6409_v56  ;;  %v2557_v31 = vadd.f32 %v2525_v49, %v6306_v15  ;;  %v2415_v11 = vadd.f32 0.008333334, %v2383_v26 }
 0x275   : > { %v6425_v62 = vsel %vm2119_vm14, %v7986_v53, %v7985_v23  ;;  %v2484_v0 = vmul.f32 %v4343_v2, %v6335_v32  ;;  %v2421_v58 = vmul.f32 %v2389_v44, %v6356_v50  ;;  %v4369_v41 = vadd.f32 -0.16666667, %v2446_v5  ;;  %4376 = vmatmul.msk.f32.gmra.mxu0 %vm1501_vm1, %v6418_v37  ;;  %v7987_v32 = vld [vmem:[#allocation16_spill] sm:$0xff]  ;;  %v7988_v26 = vld [vmem:[#allocation43_spill] sm:$0xff] }
 0x276   : > { %v2278_v40 = vadd.f32 2.7557319e-06, %v2246_v60  ;;  %v6433_v27 = vmul.f32 %v6425_v62, %v6425_v62  ;;  %v2270_v24 = vadd.f32 2.7557319e-06, %v2238_v61  ;;  %2719 = vmatpush.msra.mxu3 %v2557_v31  ;;  %v2447_v15 = vmul.f32 %v2415_v11, %v6113_v29  ;;  %v7989_v60 = vld [vmem:[#allocation39_spill] sm:$0xff] }
 0x277   : > { %v2516_v12 = vmul.f32 %v2484_v0, %v6326_v14  ;;  %v4344_v52 = vadd.f32 -0.16666667, %v2421_v58  ;;  %v2015_v46 = vfloor.f32 %v7987_v32  ;;  %v2510_v51 = vmul.f32 %v4369_v41, %v6102_v16  ;;  %v7990_v61 = vld [vmem:[#allocation35_spill] sm:$0xff] }
 0x278   : > { %v2310_v39 = vmul.f32 %v2278_v40, %v6405_v13  ;;  %v2247_v34 = vmul.f32 -2.5052108e-08, %v6433_v27  ;;  %v2302_v21 = vmul.f32 %v2270_v24, %v6409_v56  ;;  %v4370_v9 = vadd.f32 -0.16666667, %v2447_v15  ;;  %v7991_v40 = vld [vmem:[#allocation14_spill] sm:$0xff] }
 0x279   : > { %v2548_v6 = vadd.f32 %v2516_v12, %v6326_v14  ;;  %v2485_v54 = vmul.f32 %v4344_v52, %v6356_v50  ;;  %v2047_v38 = vmul.f32 2.0, %v2015_v46  ;;  %v2542_v36 = vmul.f32 %v2510_v51, %v6094_v48 }
 0x27a   : > { %v4329_v22 = vadd.f32 -0.0001984127, %v2310_v39  ;;  %v2279_v49 = vadd.f32 2.7557319e-06, %v2247_v34  ;;  %v4321_v2 = vadd.f32 -0.0001984127, %v2302_v21  ;;  %v2511_v44 = vmul.f32 %v4370_v9, %v6113_v29 }
 0x27b   : > { %2691 = vmatpush.msra.mxu2 %v2548_v6  ;;  %v2517_v16 = vmul.f32 %v2485_v54, %v6352_v35  ;;  %v2079_v5 = vsub.f32 %v7988_v26, %v2047_v38  ;;  %v2006_v23 = vfloor.f32 %v7989_v60  ;;  %4380 = vmatmul.msk.f32.gmra.mxu1 %vm1501_vm1, %v6418_v37  ;;  %v2574_v14 = vadd.f32 %v2542_v36, %v6094_v48  ;;  %v7993_v39 = vld [vmem:[#allocation8_spill] sm:$0xff]  ;;  %v7994_v54 = vld [vmem:[#allocation22_spill] sm:$0xff] }
 0x27c   : > { %4381 = vmatmul.msk.f32.vlgmr.msra.gmra.mxu2 %vm1501_vm1, %v6294_v17  ;;  %v2374_v50 = vmul.f32 %v4329_v22, %v6405_v13  ;;  %v2311_v53 = vmul.f32 %v2279_v49, %v6433_v27  ;;  %v2007_v31 = vfloor.f32 %v7990_v61  ;;  %v2543_v0 = vmul.f32 %v2511_v44, %v6104_v43  ;;  %v7995_v44 = vld [vmem:[#allocation41_spill] sm:$0xff] }
 0x27d   : > { %v2549_v29 = vadd.f32 %v2517_v16, %v6352_v35  ;;  %v2366_v58 = vmul.f32 %v4321_v2, %v6409_v56  ;;  %vm2111_vm15 = vcmp.gt.f32.partialorder %v2079_v5, 0.5  ;;  %2746 = vmatpush.msrb.mxu0 %v2574_v14  ;;  %v7992_v24 = vsub.f32 0.0, %v7991_v40 }
 0x27e   : > { %v2406_v11 = vadd.f32 0.008333334, %v2374_v50  ;;  %v4330_v41 = vadd.f32 -0.0001984127, %v2311_v53  ;;  %v2038_v12 = vmul.f32 2.0, %v2006_v23  ;;  %v2575_v52 = vadd.f32 %v2543_v0, %v6104_v43 }
 0x27f   : > { %v6465_v48 = vsel %vm2111_vm15, %v7992_v24, %v7991_v40  ;;  %2720 = vmatpush.msra.mxu3 %v2549_v29  ;;  %v2398_v15 = vadd.f32 0.008333334, %v2366_v58  ;;  %v2039_v32 = vmul.f32 2.0, %v2007_v31  ;;  %v2256_v21 = vmul.f32 -2.5052108e-08, %v6206_v3 }
 0x280   : > { %v6470_v35 = vmul.f32 %v6465_v48, %v6465_v48  ;;  %4385 = vmatmul.msk.f32.vlgmr.msra.gmra.mxu3 %vm1501_vm1, %v6294_v17  ;;  %v2438_v46 = vmul.f32 %v2406_v11, %v6405_v13  ;;  %v2375_v51 = vmul.f32 %v4330_v41, %v6433_v27  ;;  %v2070_v34 = vsub.f32 %v7993_v39, %v2038_v12 }
 0x281   : > { %2775 = vmatpush.msrb.mxu1 %v2575_v52  ;;  %v2430_v43 = vmul.f32 %v2398_v15, %v6409_v56  ;;  %v2071_v9 = vsub.f32 %v7994_v54, %v2039_v32  ;;  %v2257_v38 = vmul.f32 -2.5052108e-08, %v6217_v57  ;;  %v2024_v49 = vfloor.f32 %v6147_v28  ;;  %v7997_v28 = vld [vmem:[#allocation23_spill] sm:$0xff] }
 0x282   : > { %v2239_v6 = vmul.f32 -2.5052108e-08, %v6470_v35  ;;  %v4361_v36 = vadd.f32 -0.16666667, %v2438_v46  ;;  %v2407_v22 = vadd.f32 0.008333334, %v2375_v51 }
 0x283   : > { %vm2102_vm2 = vcmp.gt.f32.partialorder %v2070_v34, 0.5  ;;  %v4353_v2 = vadd.f32 -0.16666667, %v2430_v43  ;;  %v7996_v26 = vsub.f32 0.0, %v7995_v44  ;;  %vm2103_vm3 = vcmp.gt.f32.partialorder %v2071_v9, 0.5 }
 0x284   : > { %v2271_v16 = vadd.f32 2.7557319e-06, %v2239_v6  ;;  %4382 = vmatmul.msk.f32.gmra.mxu2 %vm1501_vm1, %v6331_v20  ;;  %v2502_v60 = vmul.f32 %v4361_v36, %v6405_v13  ;;  %v2439_v23 = vmul.f32 %v2407_v22, %v6433_v27  ;;  %v7998_v50 = vsub.f32 0.0, %v7997_v28 }
 0x285   : > { %v6486_v5 = vsel %vm2102_vm2, %v7996_v26, %v7995_v44  ;;  %v2494_v61 = vmul.f32 %v4353_v2, %v6409_v56  ;;  %v2288_v13 = vadd.f32 2.7557319e-06, %v2256_v21  ;;  %v2289_v41 = vadd.f32 2.7557319e-06, %v2257_v38 }
 0x286   : > { %v6494_v14 = vmul.f32 %v6486_v5, %v6486_v5  ;;  %v6499_v53 = vsel %vm2103_vm3, %v7998_v50, %v7997_v28  ;;  %v2303_v31 = vmul.f32 %v2271_v16, %v6470_v35  ;;  %v2534_v0 = vmul.f32 %v2502_v60, %v6392_v8 }
 0x287   : > { %v6505_v29 = vmul.f32 %v6499_v53, %v6499_v53  ;;  %v4362_v58 = vadd.f32 -0.16666667, %v2439_v23  ;;  %v2526_v40 = vmul.f32 %v2494_v61, %v6398_v42  ;;  %v2320_v56 = vmul.f32 %v2288_v13, %v6206_v3 }
 0x288   : > { %v2230_v11 = vmul.f32 -2.5052108e-08, %v6494_v14  ;;  %v4322_v24 = vadd.f32 -0.0001984127, %v2303_v31  ;;  %4386 = vmatmul.msk.f32.gmra.mxu3 %vm1501_vm1, %v6331_v20  ;;  %v2566_v52 = vadd.f32 %v2534_v0, %v6392_v8  ;;  %v2321_v46 = vmul.f32 %v2289_v41, %v6217_v57 }
 0x289   : > { %v2231_v12 = vmul.f32 -2.5052108e-08, %v6505_v29  ;;  %v2503_v15 = vmul.f32 %v4362_v58, %v6433_v27  ;;  %v2558_v51 = vadd.f32 %v2526_v40, %v6398_v42  ;;  %v4339_v21 = vadd.f32 -0.0001984127, %v2320_v56 }
 0x28a   : > { %v2262_v32 = vadd.f32 2.7557319e-06, %v2230_v11  ;;  %v2367_v39 = vmul.f32 %v4322_v24, %v6470_v35  ;;  %2747 = vmatpush.msrb.mxu0 %v2566_v52  ;;  %v4340_v54 = vadd.f32 -0.0001984127, %v2321_v46  ;;  %v2056_v9 = vmul.f32 2.0, %v2024_v49 }
 0x28b   : > { %v2263_v34 = vadd.f32 2.7557319e-06, %v2231_v12  ;;  %v2535_v43 = vmul.f32 %v2503_v15, %v6425_v62  ;;  %v2384_v27 = vmul.f32 %v4339_v21, %v6206_v3  ;;  %v2025_v36 = vfloor.f32 %v6158_v59 }
 0x28c   : > { %v2294_v6 = vmul.f32 %v2262_v32, %v6494_v14  ;;  %v2399_v38 = vadd.f32 0.008333334, %v2367_v39  ;;  %4383 = vmatmul.msk.f32.gmra.mxu2 %vm1501_vm1, %v6379_v7  ;;  %2748 = vmatpush.msrb.mxu0 %v2558_v51  ;;  %v2385_v2 = vmul.f32 %v4340_v54, %v6217_v57  ;;  %v2088_v16 = vsub.f32 %v6138_v10, %v2056_v9 }
 0x28d   : > { %v2295_v8 = vmul.f32 %v2263_v34, %v6505_v29  ;;  %v2567_v42 = vadd.f32 %v2535_v43, %v6425_v62  ;;  %v2416_v26 = vadd.f32 0.008333334, %v2384_v27  ;;  %v2057_v60 = vmul.f32 2.0, %v2025_v36  ;;  %v8000_v27 = vld [vmem:[#allocation28_spill] sm:$0xff] }
 0x28e   : > { %v4313_v22 = vadd.f32 -0.0001984127, %v2294_v6  ;;  %v2431_v49 = vmul.f32 %v2399_v38, %v6470_v35  ;;  %v2417_v59 = vadd.f32 0.008333334, %v2385_v2  ;;  %vm2120_vm4 = vcmp.gt.f32.partialorder %v2088_v16, 0.5  ;;  %v8001_v16 = vld [vmem:[#allocation38_spill] sm:$0xff] }
 0x28f   : > { %v4314_v44 = vadd.f32 -0.0001984127, %v2295_v8  ;;  %2776 = vmatpush.msrb.mxu1 %v2567_v42  ;;  %v2016_v62 = vfloor.f32 %v6122_v45  ;;  %v2448_v61 = vmul.f32 %v2416_v26, %v6206_v3  ;;  %v6537_v10 = vsel %vm2120_vm4, %v2152_v55, %v6163_v25 }
 0x290   : > { %v2358_v23 = vmul.f32 %v4313_v22, %v6494_v14  ;;  %v4354_v28 = vadd.f32 -0.16666667, %v2431_v49  ;;  %4387 = vmatmul.msk.f32.gmra.mxu3 %vm1501_vm1, %v6379_v7  ;;  %v2449_v13 = vmul.f32 %v2417_v59, %v6217_v57  ;;  %v6544_v0 = vmul.f32 %v6537_v10, %v6537_v10  ;;  %v8003_v59 = vld [vmem:[#allocation21_spill] sm:$0xff] }
 0x291   : > { %v2359_v50 = vmul.f32 %v4314_v44, %v6505_v29  ;;  %v2089_v45 = vsub.f32 %v6149_v4, %v2057_v60  ;;  %v4371_v41 = vadd.f32 -0.16666667, %v2448_v61  ;;  %v2048_v40 = vmul.f32 2.0, %v2016_v62  ;;  %v8002_v44 = vld [vmem:[#allocation34_spill] sm:$0xff] }
 0x292   : > { %v2390_v31 = vadd.f32 0.008333334, %v2358_v23  ;;  %v2495_v58 = vmul.f32 %v4354_v28, %v6470_v35  ;;  %v4372_v25 = vadd.f32 -0.16666667, %v2449_v13  ;;  %v2248_v24 = vmul.f32 -2.5052108e-08, %v6544_v0 }
 0x293   : > { %v2391_v11 = vadd.f32 0.008333334, %v2359_v50  ;;  %vm2121_vm5 = vcmp.gt.f32.partialorder %v2089_v45, 0.5  ;;  %v2512_v52 = vmul.f32 %v4371_v41, %v6206_v3  ;;  %v2080_v34 = vsub.f32 %v6108_v47, %v2048_v40  ;;  %v8004_v28 = vld [vmem:[#allocation33_spill] sm:$0xff] }
 0x294   : > { %v2422_v55 = vmul.f32 %v2390_v31, %v6494_v14  ;;  %v2527_v12 = vmul.f32 %v2495_v58, %v6465_v48  ;;  %v6556_v4 = vsel %vm2121_vm5, %v2153_v30, %v6169_v19  ;;  %4384 = vmatmul.msk.f32.gmra.mxu2 %vm1501_vm1, %v6418_v37  ;;  %v2513_v15 = vmul.f32 %v4372_v25, %v6217_v57  ;;  %v8005_v45 = vld [vmem:[#allocation25_spill] sm:$0xff] }
 0x295   : > { %v2423_v56 = vmul.f32 %v2391_v11, %v6505_v29  ;;  %v2280_v32 = vadd.f32 2.7557319e-06, %v2248_v24  ;;  %v6563_v46 = vmul.f32 %v6556_v4, %v6556_v4  ;;  %v2544_v3 = vmul.f32 %v2512_v52, %v6200_v33  ;;  %v8007_v40 = vld [vmem:[#allocation37_spill] sm:$0xff] }
 0x296   : > { %v4345_v35 = vadd.f32 -0.16666667, %v2422_v55  ;;  %v2559_v51 = vadd.f32 %v2527_v12, %v6465_v48  ;;  %v2545_v30 = vmul.f32 %v2513_v15, %v6213_v63  ;;  %vm2112_vm6 = vcmp.gt.f32.partialorder %v2080_v34, 0.5 }
 0x297   : > { %v4346_v39 = vadd.f32 -0.16666667, %v2423_v56  ;;  %v2312_v21 = vmul.f32 %v2280_v32, %v6544_v0  ;;  %v2249_v57 = vmul.f32 -2.5052108e-08, %v6563_v46  ;;  %v2576_v6 = vadd.f32 %v2544_v3, %v6200_v33  ;;  %v8008_v56 = vld [vmem:[#allocation32_spill] sm:$0xff] }
 0x298   : > { %v2486_v19 = vmul.f32 %v4345_v35, %v6494_v14  ;;  %2777 = vmatpush.msrb.mxu1 %v2559_v51  ;;  %v2017_v48 = vfloor.f32 %v6130_v1  ;;  %4388 = vmatmul.msk.f32.gmra.mxu3 %vm1501_vm1, %v6418_v37  ;;  %v2577_v47 = vadd.f32 %v2545_v30, %v6213_v63  ;;  %v2008_v1 = vfloor.f32 %v8000_v27 }
 0x299   : > { %v2487_v43 = vmul.f32 %v4346_v39, %v6505_v29  ;;  %v4331_v14 = vadd.f32 -0.0001984127, %v2312_v21  ;;  %v2281_v9 = vadd.f32 2.7557319e-06, %v2249_v57  ;;  %2804 = vmatpush.msrb.mxu2 %v2576_v6  ;;  %v7999_v29 = vsub.f32 0.0, %v6134_v18 }
 0x29a   : > { %v2518_v54 = vmul.f32 %v2486_v19, %v6486_v5  ;;  %v2049_v33 = vmul.f32 2.0, %v2017_v48  ;;  %2833 = vmatpush.msrb.mxu3 %v2577_v47  ;;  %v2009_v26 = vfloor.f32 %v8002_v44  ;;  %v2137_v62 = vsub.f32 0.0, %v8003_v59 }
 0x29b   : > { %v2519_v38 = vmul.f32 %v2487_v43, %v6499_v53  ;;  %v6583_v8 = vsel %vm2112_vm6, %v7999_v29, %v6134_v18  ;;  %v2376_v42 = vmul.f32 %v4331_v14, %v6544_v0  ;;  %v2313_v63 = vmul.f32 %v2281_v9, %v6563_v46 }
 0x29c   : > { %v2550_v36 = vadd.f32 %v2518_v54, %v6486_v5  ;;  %v6591_v22 = vmul.f32 %v6583_v8, %v6583_v8  ;;  %v2081_v49 = vsub.f32 %v8001_v16, %v2049_v33  ;;  %v2040_v18 = vmul.f32 2.0, %v2008_v1 }
 0x29d   : > { %v2551_v2 = vadd.f32 %v2519_v38, %v6499_v53  ;;  %v2408_v60 = vadd.f32 0.008333334, %v2376_v42  ;;  %v4332_v23 = vadd.f32 -0.0001984127, %v2313_v63  ;;  %v2041_v53 = vmul.f32 2.0, %v2009_v26 }
 0x29e   : > { %2749 = vmatpush.msrb.mxu0 %v2550_v36  ;;  %v2240_v5 = vmul.f32 -2.5052108e-08, %v6591_v22  ;;  %vm2113_vm7 = vcmp.gt.f32.partialorder %v2081_v49, 0.5  ;;  %v2072_v50 = vsub.f32 %v8004_v28, %v2040_v18  ;;  %v8006_v58 = vsub.f32 0.0, %v8005_v45 }
 0x29f   : > { %2778 = vmatpush.msrb.mxu1 %v2551_v2  ;;  %4389 = vmatmul.msk.f32.vlgmr.msrb.gmra.mxu0 %vm1501_vm1, %v6294_v17  ;;  %v2440_v61 = vmul.f32 %v2408_v60, %v6544_v0  ;;  %v2377_v31 = vmul.f32 %v4332_v23, %v6563_v46  ;;  %v2073_v55 = vsub.f32 %v8007_v40, %v2041_v53  ;;  %v8009_v52 = vsub.f32 0.0, %v8008_v56 }
 0x2a0   : > { %4393 = vmatmul.msk.f32.vlgmr.msrb.gmra.mxu1 %vm1501_vm1, %v6294_v17  ;;  %v2272_v13 = vadd.f32 2.7557319e-06, %v2240_v5  ;;  %v2177_v11 = vsel %vm2113_vm7, %v8006_v58, %v8005_v45  ;;  %vm2104_vm8 = vcmp.gt.f32.partialorder %v2072_v50, 0.5 }
 0x2a1   : > { %v2209_v41 = vmul.f32 %v2177_v11, %v2177_v11  ;;  %v4363_v25 = vadd.f32 -0.16666667, %v2440_v61  ;;  %v2409_v24 = vadd.f32 0.008333334, %v2377_v31  ;;  %v2168_v35 = vsel %vm2104_vm8, %v8009_v52, %v8008_v56 }
 0x2a2   : > { %v2304_v12 = vmul.f32 %v2272_v13, %v6591_v22  ;;  %v2200_v32 = vmul.f32 %v2168_v35, %v2168_v35  ;;  %vm2105_vm9 = vcmp.gt.f32.partialorder %v2073_v55, 0.5 }
 0x2a3   : > { %v2241_v15 = vmul.f32 -2.5052108e-08, %v2209_v41  ;;  %v2504_v51 = vmul.f32 %v4363_v25, %v6544_v0  ;;  %v2441_v39 = vmul.f32 %v2409_v24, %v6563_v46  ;;  %v2169_v34 = vsel %vm2105_vm9, %v2137_v62, %v8003_v59 }
 0x2a4   : > { %v4323_v3 = vadd.f32 -0.0001984127, %v2304_v12  ;;  %v2232_v30 = vmul.f32 -2.5052108e-08, %v2200_v32  ;;  %v2201_v21 = vmul.f32 %v2169_v34, %v2169_v34 }
 0x2a5   : > { %v2273_v19 = vadd.f32 2.7557319e-06, %v2241_v15  ;;  %v2536_v57 = vmul.f32 %v2504_v51, %v6537_v10  ;;  %v4364_v43 = vadd.f32 -0.16666667, %v2441_v39 }
 0x2a6   : > { %v2368_v6 = vmul.f32 %v4323_v3, %v6591_v22  ;;  %v2264_v54 = vadd.f32 2.7557319e-06, %v2232_v30  ;;  %v2233_v47 = vmul.f32 -2.5052108e-08, %v2201_v21 }
 0x2a7   : > { %4390 = vmatmul.msk.f32.gmra.mxu0 %vm1501_vm1, %v6331_v20  ;;  %v2305_v48 = vmul.f32 %v2273_v19, %v2209_v41  ;;  %v2568_v0 = vadd.f32 %v2536_v57, %v6537_v10  ;;  %v2505_v14 = vmul.f32 %v4364_v43, %v6563_v46 }
 0x2a8   : > { %4394 = vmatmul.msk.f32.gmra.mxu1 %vm1501_vm1, %v6331_v20  ;;  %v2400_v9 = vadd.f32 0.008333334, %v2368_v6  ;;  %v2296_v29 = vmul.f32 %v2264_v54, %v2200_v32  ;;  %v2265_v33 = vadd.f32 2.7557319e-06, %v2233_v47  ;;  %v6675_v54 = vpop.permute.xlu0 %2598 }
 0x2a9   : > { %v4324_v38 = vadd.f32 -0.0001984127, %v2305_v48  ;;  %2805 = vmatpush.msrb.mxu2 %v2568_v0  ;;  %v2537_v27 = vmul.f32 %v2505_v14, %v6556_v4 }
 0x2aa   : > { %v2432_v1 = vmul.f32 %v2400_v9, %v6591_v22  ;;  %v4315_v42 = vadd.f32 -0.0001984127, %v2296_v29  ;;  %v2297_v63 = vmul.f32 %v2265_v33, %v2201_v21 }
 0x2ab   : > { %v2369_v36 = vmul.f32 %v4324_v38, %v2209_v41  ;;  %v2569_v2 = vadd.f32 %v2537_v27, %v6556_v4 }
 0x2ac   : > { %v4355_v10 = vadd.f32 -0.16666667, %v2432_v1  ;;  %v2360_v46 = vmul.f32 %v4315_v42, %v2200_v32  ;;  %v4316_v49 = vadd.f32 -0.0001984127, %v2297_v63 }
 0x2ad   : > { %v2401_v16 = vadd.f32 0.008333334, %v2369_v36  ;;  %2834 = vmatpush.msrb.mxu3 %v2569_v2 }
 0x2ae   : > { %v2496_v18 = vmul.f32 %v4355_v10, %v6591_v22  ;;  %v2392_v26 = vadd.f32 0.008333334, %v2360_v46  ;;  %v2361_v60 = vmul.f32 %v4316_v49, %v2201_v21 }
 0x2af   : > { %v2433_v44 = vmul.f32 %v2401_v16, %v2209_v41  ;;  %4391 = vmatmul.msk.f32.gmra.mxu0 %vm1501_vm1, %v6379_v7 }
 0x2b0   : > { %v2528_v23 = vmul.f32 %v2496_v18, %v6583_v8  ;;  %4395 = vmatmul.msk.f32.gmra.mxu1 %vm1501_vm1, %v6379_v7  ;;  %v2424_v4 = vmul.f32 %v2392_v26, %v2200_v32  ;;  %v2393_v59 = vadd.f32 0.008333334, %v2361_v60 }
 0x2b1   : > { %v4356_v5 = vadd.f32 -0.16666667, %v2433_v44 }
 0x2b2   : > { %v2560_v62 = vadd.f32 %v2528_v23, %v6583_v8  ;;  %v4347_v50 = vadd.f32 -0.16666667, %v2424_v4  ;;  %v2425_v53 = vmul.f32 %v2393_v59, %v2201_v21 }
 0x2b3   : > { %v2497_v28 = vmul.f32 %v4356_v5, %v2209_v41 }
 0x2b4   : > { %2806 = vmatpush.msrb.mxu2 %v2560_v62  ;;  %v2488_v61 = vmul.f32 %v4347_v50, %v2200_v32  ;;  %v4348_v31 = vadd.f32 -0.16666667, %v2425_v53 }
 0x2b5   : > { %v2529_v22 = vmul.f32 %v2497_v28, %v2177_v11 }
 0x2b6   : > { %v2520_v45 = vmul.f32 %v2488_v61, %v2168_v35  ;;  %v2489_v58 = vmul.f32 %v4348_v31, %v2201_v21 }
 0x2b7   : > { %v2561_v13 = vadd.f32 %v2529_v22, %v2177_v11  ;;  %4392 = vmatmul.msk.f32.gmra.mxu0 %vm1501_vm1, %v6418_v37 }
 0x2b8   : > { %4396 = vmatmul.msk.f32.gmra.mxu1 %vm1501_vm1, %v6418_v37  ;;  %v2552_v40 = vadd.f32 %v2520_v45, %v2168_v35  ;;  %v2521_v55 = vmul.f32 %v2489_v58, %v2169_v34  ;;  %v6660_v35 = vpop.permute.xlu1 %2593 }
 0x2b9   : > { %2835 = vmatpush.msrb.mxu3 %v2561_v13 }
 0x2ba   : > { %2807 = vmatpush.msrb.mxu2 %v2552_v40  ;;  %v2553_v8 = vadd.f32 %v2521_v55, %v2169_v34 }
 0x2bb   : > { %4397 = vmatmul.msk.f32.vlgmr.msrb.gmra.mxu2 %vm1501_vm1, %v6294_v17 }
 0x2bc   : > { %2836 = vmatpush.msrb.mxu3 %v2553_v8 }
 0x2bd   : > { %4401 = vmatmul.msk.f32.vlgmr.msrb.gmra.mxu3 %vm1501_vm1, %v6294_v17  ;;  %v6654_v17 = vpop.permute.xlu2 %2603 }
 0x2c3   : > { %4398 = vmatmul.msk.f32.gmra.mxu2 %vm1501_vm1, %v6331_v20 }
 0x2c5   : > { %4402 = vmatmul.msk.f32.gmra.mxu3 %vm1501_vm1, %v6331_v20  ;;  %v6656_v24 = vpop.permute.xlu2 %2588 }
 0x2cb   : > { %4399 = vmatmul.msk.f32.gmra.mxu2 %vm1501_vm1, %v6379_v7 }
 0x2cd   : > { %4403 = vmatmul.msk.f32.gmra.mxu3 %vm1501_vm1, %v6379_v7 }
 0x2d3   : > { %4400 = vmatmul.msk.f32.gmra.mxu2 %vm1501_vm1, %v6418_v37 }
 0x2d5   : > { %4404 = vmatmul.msk.f32.gmra.mxu3 %vm1501_vm1, %v6418_v37 }
 0x2d9   : > { %v2635_v11 = vpop.f32.mrf.mxu0 }
 0x2da   : > { %v2636_v20 = vadd.f32 %v2635_v11, %v6656_v24 }
 0x2dc   : > { %v2850_v52 = vmul.f32 0.31830987, %v2636_v20 }
 0x2de   : > { %v2882_v37 = vadd.f32 0.5, %v2850_v52 }
 0x2e0   : > { %v2664_v41 = vpop.f32.mrf.mxu1  ;;  %v6666_v19 = vfloor.f32 %v2882_v37 }
 0x2e1   : > { %v2638_v25 = vpop.f32.mrf.mxu0  ;;  %v2665_v56 = vadd.f32 %v2664_v41, %v6656_v24 }
 0x2e2   : > { %v2639_v15 = vadd.f32 %v2638_v25, %v6660_v35  ;;  %v2946_v47 = vmul.f32 3.140625, %v6666_v19  ;;  %v3010_v16 = vmul.f32 0.0009676536, %v6666_v19  ;;  %v6719_v11 = vmul.f32 0.5, %v6666_v19 }
 0x2e3   : > { %v2851_v32 = vmul.f32 0.31830987, %v2665_v56 }
 0x2e4   : > { %v2858_v39 = vmul.f32 0.31830987, %v2639_v15  ;;  %v2978_v36 = vsub.f32 %v2636_v20, %v2946_v47 }
 0x2e5   : > { %v2883_v3 = vadd.f32 0.5, %v2851_v32 }
 0x2e6   : > { %v2890_v57 = vadd.f32 0.5, %v2858_v39  ;;  %v6699_v60 = vsub.f32 %v2978_v36, %v3010_v16 }
 0x2e7   : > { %v6671_v43 = vfloor.f32 %v2883_v3 }
 0x2e8   : > { %v2667_v12 = vpop.f32.mrf.mxu1  ;;  %v6684_v29 = vfloor.f32 %v2890_v57 }
 0x2e9   : > { %v6664_v34 = vadd.f32 %v2667_v12, %v6660_v35  ;;  %v2947_v33 = vmul.f32 3.140625, %v6671_v43  ;;  %v3011_v4 = vmul.f32 0.0009676536, %v6671_v43  ;;  %v6727_v12 = vmul.f32 0.5, %v6671_v43 }
 0x2ea   : > { %v2641_v7 = vpop.f32.mrf.mxu0  ;;  %v2954_v46 = vmul.f32 3.140625, %v6684_v29  ;;  %v3018_v61 = vmul.f32 0.0009676536, %v6684_v29  ;;  %v6735_v32 = vmul.f32 0.5, %v6684_v29 }
 0x2eb   : > { %v2859_v6 = vmul.f32 0.31830987, %v6664_v34  ;;  %v6679_v0 = vadd.f32 %v2641_v7, %v6675_v54  ;;  %v2979_v49 = vsub.f32 %v2665_v56, %v2947_v33 }
 0x2ec   : > { %v2986_v50 = vsub.f32 %v2639_v15, %v2954_v46 }
 0x2ed   : > { %v2891_v27 = vadd.f32 0.5, %v2859_v6  ;;  %v2866_v63 = vmul.f32 0.31830987, %v6679_v0  ;;  %v6709_v22 = vsub.f32 %v2979_v49, %v3011_v4 }
 0x2ee   : > { %v6729_v56 = vsub.f32 %v2986_v50, %v3018_v61 }
 0x2ef   : > { %v6697_v18 = vfloor.f32 %v2891_v27  ;;  %v2898_v59 = vadd.f32 0.5, %v2866_v63 }
 0x2f0   : > { %v2670_v51 = vpop.f32.mrf.mxu1 }
 0x2f1   : > { %v6682_v14 = vadd.f32 %v2670_v51, %v6675_v54  ;;  %v2955_v31 = vmul.f32 3.140625, %v6697_v18  ;;  %v6722_v25 = vfloor.f32 %v2898_v59  ;;  %v6753_v36 = vmul.f32 0.5, %v6697_v18 }
 0x2f2   : > { %v2644_v30 = vpop.f32.mrf.mxu0 }
 0x2f3   : > { %v6669_v21 = vadd.f32 %v2644_v30, %v6654_v17  ;;  %v2867_v2 = vmul.f32 0.31830987, %v6682_v14  ;;  %v2987_v3 = vsub.f32 %v6664_v34, %v2955_v31 }
 0x2f5   : > { %v2874_v48 = vmul.f32 0.31830987, %v6669_v21  ;;  %v2899_v62 = vadd.f32 0.5, %v2867_v2 }
 0x2f7   : > { %v2906_v9 = vadd.f32 0.5, %v2874_v48  ;;  %v6724_v20 = vfloor.f32 %v2899_v62  ;;  %v2962_v48 = vmul.f32 3.140625, %v6722_v25  ;;  %v3026_v62 = vmul.f32 0.0009676536, %v6722_v25 }
 0x2f8   : > { %v2673_v38 = vpop.f32.mrf.mxu1 }
 0x2f9   : > { %v6688_v1 = vadd.f32 %v2673_v38, %v6654_v17  ;;  %v6690_v42 = vfloor.f32 %v2906_v9  ;;  %v2963_v47 = vmul.f32 3.140625, %v6724_v20  ;;  %v3027_v50 = vmul.f32 0.0009676536, %v6724_v20 }
 0x2fb   : > { %v2875_v10 = vmul.f32 0.31830987, %v6688_v1  ;;  %v3098_v5 = vmul.f32 0.5, %v6690_v42  ;;  %v2970_v45 = vmul.f32 3.140625, %v6690_v42  ;;  %v3034_v9 = vmul.f32 0.0009676536, %v6690_v42 }
 0x2fd   : > { %v2907_v26 = vadd.f32 0.5, %v2875_v10  ;;  %v3130_v55 = vfloor.f32 %v3098_v5  ;;  %v3002_v37 = vsub.f32 %v6669_v21, %v2970_v45  ;;  %v3019_v21 = vmul.f32 0.0009676536, %v6697_v18 }
 0x2fe   : > { %v2994_v5 = vsub.f32 %v6679_v0, %v2962_v48 }
 0x2ff   : > { %v2693_v44 = vpop.f32.mrf.mxu2  ;;  %v6706_v28 = vfloor.f32 %v2907_v26  ;;  %v3162_v6 = vmul.f32 2.0, %v3130_v55  ;;  %v3066_v63 = vsub.f32 %v3002_v37, %v3034_v9  ;;  %v6756_v46 = vsub.f32 %v2987_v3, %v3019_v21 }
 0x300   : > { %v6702_v23 = vadd.f32 %v2693_v44, %v6656_v24 }
 0x301   : > { %v3099_v8 = vmul.f32 0.5, %v6706_v28  ;;  %v2971_v7 = vmul.f32 3.140625, %v6706_v28  ;;  %v3194_v44 = vsub.f32 %v6690_v42, %v3162_v6  ;;  %v3035_v26 = vmul.f32 0.0009676536, %v6706_v28 }
 0x302   : > { %v2852_v53 = vmul.f32 0.31830987, %v6702_v23  ;;  %v3258_v31 = vsub.f32 0.0, %v3066_v63 }
 0x303   : > { %v2722_v13 = vpop.f32.mrf.mxu3  ;;  %v3131_v51 = vfloor.f32 %v3099_v8  ;;  %v3003_v34 = vsub.f32 %v6688_v1, %v2971_v7  ;;  %v2995_v1 = vsub.f32 %v6682_v14, %v2963_v47  ;;  %v6774_v14 = vmul.f32 0.5, %v6722_v25 }
 0x304   : > { %v2884_v58 = vadd.f32 0.5, %v2852_v53  ;;  %v6715_v40 = vadd.f32 %v2722_v13, %v6656_v24  ;;  %vm3226_vm10 = vcmp.gt.f32.partialorder %v3194_v44, 0.5 }
 0x305   : > { %v3163_v2 = vmul.f32 2.0, %v3131_v51  ;;  %v3067_v61 = vsub.f32 %v3003_v34, %v3035_v26  ;;  %v6781_v7 = vsub.f32 %v2995_v1, %v3027_v50 }
 0x306   : > { %v2853_v52 = vmul.f32 0.31830987, %v6715_v40  ;;  %v6739_v30 = vfloor.f32 %v2884_v58 }
 0x307   : > { %v2696_v39 = vpop.f32.mrf.mxu2  ;;  %v3195_v42 = vsub.f32 %v6706_v28, %v3163_v2 }
 0x308   : > { %8010 = vst [vmem:[#allocation24_spill] sm:$0xff] %v6739_v30  ;;  %v2885_v57 = vadd.f32 0.5, %v2853_v52  ;;  %v6745_v38 = vadd.f32 %v2696_v39, %v6660_v35  ;;  %v2948_v49 = vmul.f32 3.140625, %v6739_v30  ;;  %v6779_v52 = vsub.f32 %v2994_v5, %v3026_v62 }
 0x309   : > { %v3012_v37 = vmul.f32 0.0009676536, %v6739_v30  ;;  %v3259_v39 = vsub.f32 0.0, %v3067_v61  ;;  %vm3227_vm11 = vcmp.gt.f32.partialorder %v3195_v42, 0.5  ;;  %v6807_v5 = vmul.f32 0.5, %v6739_v30 }
 0x30a   : > { %v6749_v27 = vfloor.f32 %v2885_v57  ;;  %v2860_v10 = vmul.f32 0.31830987, %v6745_v38  ;;  %v2980_v58 = vsub.f32 %v6702_v23, %v2948_v49  ;;  %v6785_v57 = vsel %vm3226_vm10, %v3258_v31, %v3066_v63 }
 0x30b   : > { %v2725_v16 = vpop.f32.mrf.mxu3  ;;  %v6802_v49 = vsel %vm3227_vm11, %v3259_v39, %v3067_v61  ;;  %8016 = vst [vmem:[#allocation27_spill] sm:$0xff] %v6807_v5 }
 0x30c   : > { %8011 = vst [vmem:[#allocation26_spill] sm:$0xff] %v6749_v27  ;;  %v2892_v4 = vadd.f32 0.5, %v2860_v10  ;;  %v6764_v59 = vadd.f32 %v2725_v16, %v6660_v35  ;;  %v2949_v53 = vmul.f32 3.140625, %v6749_v27  ;;  %v6790_v47 = vsub.f32 %v2980_v58, %v3012_v37 }
 0x30d   : > { %v3013_v9 = vmul.f32 0.0009676536, %v6749_v27  ;;  %v6810_v1 = vmul.f32 0.5, %v6749_v27 }
 0x30e   : > { %v6770_v13 = vfloor.f32 %v2892_v4  ;;  %v2861_v0 = vmul.f32 0.31830987, %v6764_v59  ;;  %v2981_v51 = vsub.f32 %v6715_v40, %v2949_v53  ;;  %8014 = vst [vmem:[#allocation10_spill] sm:$0xff] %v6790_v47  ;;  %v6796_v40 = vmul.f32 0.5, %v6724_v20 }
 0x30f   : > { %v2699_v45 = vpop.f32.mrf.mxu2  ;;  %8017 = vst [vmem:[#allocation36_spill] sm:$0xff] %v6810_v1  ;;  %v6814_v4 = vmul.f32 %v6785_v57, %v6785_v57 }
 0x310   : > { %8012 = vst [vmem:[#allocation15_spill] sm:$0xff] %v6770_v13  ;;  %v2700_v55 = vadd.f32 %v2699_v45, %v6675_v54  ;;  %v2893_v28 = vadd.f32 0.5, %v2861_v0  ;;  %v2956_v23 = vmul.f32 3.140625, %v6770_v13  ;;  %v6800_v16 = vsub.f32 %v2981_v51, %v3013_v9 }
 0x311   : > { %v6822_v0 = vmul.f32 %v6802_v49, %v6802_v49  ;;  %v3020_v45 = vmul.f32 0.0009676536, %v6770_v13  ;;  %v6826_v58 = vmul.f32 0.5, %v6770_v13 }
 0x312   : > { %v2868_v3 = vmul.f32 0.31830987, %v2700_v55  ;;  %v6788_v6 = vfloor.f32 %v2893_v28  ;;  %8015 = vst [vmem:[#allocation7_spill] sm:$0xff] %v6800_v16  ;;  %v2988_v62 = vsub.f32 %v6745_v38, %v2956_v23 }
 0x313   : > { %v2728_v48 = vpop.f32.mrf.mxu3 }
 0x314   : > { %8013 = vst [vmem:[#allocation19_spill] sm:$0xff] %v6788_v6  ;;  %v2900_v21 = vadd.f32 0.5, %v2868_v3  ;;  %v2729_v34 = vadd.f32 %v2728_v48, %v6675_v54  ;;  %v2957_v10 = vmul.f32 3.140625, %v6788_v6  ;;  %v3021_v37 = vmul.f32 0.0009676536, %v6788_v6 }
 0x315   : > { %v6833_v3 = vsub.f32 %v2988_v62, %v3020_v45 }
 0x316   : > { %v6804_v44 = vfloor.f32 %v2900_v21  ;;  %v2869_v26 = vmul.f32 0.31830987, %v2729_v34  ;;  %v2989_v61 = vsub.f32 %v6764_v59, %v2957_v10 }
 0x317   : > { %v2702_v50 = vpop.f32.mrf.mxu2  ;;  %8018 = vst [vmem:[#allocation9_spill] sm:$0xff] %v6833_v3 }
 0x318   : > { %v2964_v31 = vmul.f32 3.140625, %v6804_v44  ;;  %v2901_v42 = vadd.f32 0.5, %v2869_v26  ;;  %v2703_v28 = vadd.f32 %v2702_v50, %v6654_v17  ;;  %v3028_v9 = vmul.f32 0.0009676536, %v6804_v44 }
 0x319   : > { %v6837_v26 = vsub.f32 %v2989_v61, %v3021_v37  ;;  %v6840_v50 = vmul.f32 0.5, %v6788_v6  ;;  %v3114_v61 = vfloor.f32 %v6735_v32 }
 0x31a   : > { %v2996_v59 = vsub.f32 %v2700_v55, %v2964_v31  ;;  %v6831_v39 = vfloor.f32 %v2901_v42  ;;  %v2876_v21 = vmul.f32 0.31830987, %v2703_v28 }
 0x31b   : > { %v2731_v10 = vpop.f32.mrf.mxu3  ;;  %8019 = vst [vmem:[#allocation31_spill] sm:$0xff] %v6837_v26 }
 0x31c   : > { %v2751_v51 = vpop.f32.mrf.mxu0  ;;  %8020 = vst [vmem:[#allocation30_spill] sm:$0xff] %v6840_v50  ;;  %v2965_v55 = vmul.f32 3.140625, %v6831_v39  ;;  %v6844_v42 = vsub.f32 %v2996_v59, %v3028_v9  ;;  %v2908_v62 = vadd.f32 0.5, %v2876_v21  ;;  %v6847_v45 = vadd.f32 %v2731_v10, %v6654_v17 }
 0x31d   : > { %v2752_v23 = vadd.f32 %v2751_v51, %v6656_v24  ;;  %v2780_v48 = vpop.f32.mrf.mxu1  ;;  %v3029_v15 = vmul.f32 0.0009676536, %v6831_v39  ;;  %v6854_v59 = vmul.f32 0.5, %v6804_v44  ;;  %v6858_v21 = vmul.f32 2.0, %v3114_v61 }
 0x31e   : > { %v2781_v38 = vadd.f32 %v2780_v48, %v6656_v24  ;;  %v2997_v53 = vsub.f32 %v2729_v34, %v2965_v55  ;;  %v2940_v8 = vfloor.f32 %v2908_v62  ;;  %v2877_v48 = vmul.f32 0.31830987, %v6847_v45 }
 0x31f   : > { %v2854_v31 = vmul.f32 0.31830987, %v2752_v23  ;;  %v6867_v62 = vmul.f32 0.5, %v6831_v39 }
 0x320   : > { %v2855_v51 = vmul.f32 0.31830987, %v2781_v38  ;;  %v6856_v9 = vsub.f32 %v2997_v53, %v3029_v15  ;;  %v2972_v55 = vmul.f32 3.140625, %v2940_v8  ;;  %v3100_v32 = vmul.f32 0.5, %v2940_v8 }
 0x321   : > { %v2886_v41 = vadd.f32 0.5, %v2854_v31  ;;  %v2909_v37 = vadd.f32 0.5, %v2877_v48 }
 0x322   : > { %v2887_v33 = vadd.f32 0.5, %v2855_v51  ;;  %v3004_v48 = vsub.f32 %v2703_v28, %v2972_v55  ;;  %v3132_v26 = vfloor.f32 %v3100_v32 }
 0x323   : > { %v6861_v10 = vfloor.f32 %v2886_v41  ;;  %v3036_v41 = vmul.f32 0.0009676536, %v2940_v8 }
 0x324   : > { %v6863_v63 = vfloor.f32 %v2887_v33  ;;  %v2754_v51 = vpop.f32.mrf.mxu0  ;;  %v3164_v50 = vmul.f32 2.0, %v3132_v26 }
 0x325   : > { %8021 = vst [vmem:[#allocation11_spill] sm:$0xff] %v6861_v10  ;;  %v2950_v15 = vmul.f32 3.140625, %v6861_v10  ;;  %v2755_v61 = vadd.f32 %v2754_v51, %v6660_v35  ;;  %v2783_v34 = vpop.f32.mrf.mxu1  ;;  %v3014_v2 = vmul.f32 0.0009676536, %v6861_v10  ;;  %v2941_v51 = vfloor.f32 %v2909_v37 }
 0x326   : > { %8022 = vst [vmem:[#allocation6_spill] sm:$0xff] %v6863_v63  ;;  %v2951_v33 = vmul.f32 3.140625, %v6863_v63  ;;  %v2784_v16 = vadd.f32 %v2783_v34, %v6660_v35  ;;  %v3015_v53 = vmul.f32 0.0009676536, %v6863_v63  ;;  %v3068_v5 = vsub.f32 %v3004_v48, %v3036_v41 }
 0x327   : > { %v2982_v27 = vsub.f32 %v2752_v23, %v2950_v15  ;;  %v2862_v47 = vmul.f32 0.31830987, %v2755_v61  ;;  %v6881_v13 = vmul.f32 0.5, %v6861_v10  ;;  %v2973_v23 = vmul.f32 3.140625, %v2941_v51 }
 0x328   : > { %v2983_v1 = vsub.f32 %v2781_v38, %v2951_v33  ;;  %v2863_v30 = vmul.f32 0.31830987, %v2784_v16  ;;  %v6886_v28 = vmul.f32 0.5, %v6863_v63  ;;  %v3196_v55 = vsub.f32 %v2940_v8, %v3164_v50 }
 0x329   : > { %v6878_v6 = vsub.f32 %v2982_v27, %v3014_v2  ;;  %v2894_v3 = vadd.f32 0.5, %v2862_v47  ;;  %8024 = vst [vmem:[#allocation17_spill] sm:$0xff] %v6881_v13  ;;  %v3122_v37 = vfloor.f32 %v6774_v14  ;;  %v3005_v47 = vsub.f32 %v6847_v45, %v2973_v23 }
 0x32a   : > { %v6883_v34 = vsub.f32 %v2983_v1, %v3015_v53  ;;  %v2895_v31 = vadd.f32 0.5, %v2863_v30  ;;  %8026 = vst [vmem:[#allocation47_spill] sm:$0xff] %v6886_v28  ;;  %v3037_v2 = vmul.f32 0.0009676536, %v2941_v51  ;;  %v3101_v26 = vmul.f32 0.5, %v2941_v51 }
 0x32b   : > { %8023 = vst [vmem:[#allocation29_spill] sm:$0xff] %v6878_v6  ;;  %v6888_v38 = vfloor.f32 %v2894_v3  ;;  %v3260_v53 = vsub.f32 0.0, %v3068_v5  ;;  %vm3228_vm12 = vcmp.gt.f32.partialorder %v3196_v55, 0.5  ;;  %v3154_v1 = vmul.f32 2.0, %v3122_v37 }
 0x32c   : > { %8025 = vst [vmem:[#allocation12_spill] sm:$0xff] %v6883_v34  ;;  %v6891_v27 = vfloor.f32 %v2895_v31  ;;  %v2757_v32 = vpop.f32.mrf.mxu0  ;;  %v3069_v31 = vsub.f32 %v3005_v47, %v3037_v2  ;;  %v3133_v33 = vfloor.f32 %v3101_v26  ;;  %v3123_v10 = vfloor.f32 %v6796_v40 }
 0x32d   : > { %8027 = vst [vmem:[#allocation44_spill] sm:$0xff] %v6888_v38  ;;  %v2958_v15 = vmul.f32 3.140625, %v6888_v38  ;;  %v2786_v41 = vpop.f32.mrf.mxu1  ;;  %v3022_v3 = vmul.f32 0.0009676536, %v6888_v38  ;;  %v6899_v8 = vmul.f32 0.5, %v6888_v38  ;;  %v2758_v23 = vadd.f32 %v2757_v32, %v6675_v54 }
 0x32e   : > { %8028 = vst [vmem:[#allocation18_spill] sm:$0xff] %v6891_v27  ;;  %v2959_v14 = vmul.f32 3.140625, %v6891_v27  ;;  %v3023_v45 = vmul.f32 0.0009676536, %v6891_v27  ;;  %v2787_v30 = vadd.f32 %v2786_v41, %v6675_v54  ;;  %v6906_v34 = vmul.f32 0.5, %v6891_v27 }
 0x32f   : > { %8029 = vst [vmem:[#allocation20_spill] sm:$0xff] %v6899_v8  ;;  %v2990_v50 = vsub.f32 %v2755_v61, %v2958_v15  ;;  %v6908_v6 = vsel %vm3228_vm12, %v3260_v53, %v3068_v5  ;;  %v3165_v63 = vmul.f32 2.0, %v3133_v33  ;;  %v3261_v55 = vsub.f32 0.0, %v3069_v31 }
 0x330   : > { %v2991_v48 = vsub.f32 %v2784_v16, %v2959_v14  ;;  %8030 = vst [vmem:[#allocation42_spill] sm:$0xff] %v6906_v34  ;;  %v2870_v61 = vmul.f32 0.31830987, %v2758_v23  ;;  %v2871_v15 = vmul.f32 0.31830987, %v2787_v30  ;;  %v3186_v47 = vsub.f32 %v6722_v25, %v3154_v1 }
 0x331   : > { %8031 = vst [vmem:[#allocation40_spill] sm:$0xff] %v6908_v6  ;;  %v6912_v2 = vsub.f32 %v2990_v50, %v3022_v3  ;;  %v3197_v26 = vsub.f32 %v2941_v51, %v3165_v63  ;;  %v3155_v32 = vmul.f32 2.0, %v3123_v10  ;;  %v6918_v37 = vmul.f32 %v6908_v6, %v6908_v6 }
 0x332   : > { %v6914_v16 = vsub.f32 %v2991_v48, %v3023_v45  ;;  %v2902_v5 = vadd.f32 0.5, %v2870_v61  ;;  %v2903_v53 = vadd.f32 0.5, %v2871_v15  ;;  %vm3218_vm13 = vcmp.gt.f32.partialorder %v3186_v47, 0.5 }
 0x333   : > { %8032 = vst [vmem:[#allocation45_spill] sm:$0xff] %v6912_v2  ;;  %vm3229_vm14 = vcmp.gt.f32.partialorder %v3197_v26, 0.5  ;;  %v8034_v25 = vsub.f32 0.0, %v6779_v52  ;;  %v3187_v63 = vsub.f32 %v6724_v20, %v3155_v32 }
 0x334   : > { %8033 = vst [vmem:[#allocation13_spill] sm:$0xff] %v6914_v16  ;;  %v2760_v41 = vpop.f32.mrf.mxu0  ;;  %v6927_v10 = vsel %vm3229_vm14, %v3261_v55, %v3069_v31  ;;  %v6929_v51 = vfloor.f32 %v2902_v5  ;;  %v6931_v3 = vfloor.f32 %v2903_v53 }
 0x335   : > { %v2761_v40 = vadd.f32 %v2760_v41, %v6654_v17  ;;  %v2789_v14 = vpop.f32.mrf.mxu1  ;;  %v6924_v1 = vsel %vm3218_vm13, %v8034_v25, %v6779_v52  ;;  %8035 = vst [vmem:[#allocation46_spill] sm:$0xff] %v6927_v10  ;;  %v6938_v48 = vmul.f32 %v6927_v10, %v6927_v10  ;;  %vm6946_vm15 = vcmp.gt.f32.partialorder %v3187_v63, 0.5 }
 0x336   : > { %8036 = vst [vmem:[#allocation16_spill] sm:$0xff] %v6929_v51  ;;  %v2790_v50 = vadd.f32 %v2789_v14, %v6654_v17  ;;  %v2966_v61 = vmul.f32 3.140625, %v6929_v51  ;;  %v2967_v20 = vmul.f32 3.140625, %v6931_v3  ;;  %v6944_v31 = vmul.f32 %v6924_v1, %v6924_v1 }
 0x337   : > { %8037 = vst [vmem:[#allocation43_spill] sm:$0xff] %v6931_v3  ;;  %v2878_v52 = vmul.f32 0.31830987, %v2761_v40  ;;  %v3030_v15 = vmul.f32 0.0009676536, %v6929_v51  ;;  %v6952_v47 = vmul.f32 0.5, %v6929_v51 }
 0x338   : > { %v2879_v32 = vmul.f32 0.31830987, %v2790_v50  ;;  %v2998_v5 = vsub.f32 %v2758_v23, %v2966_v61  ;;  %v2999_v53 = vsub.f32 %v2787_v30, %v2967_v20  ;;  %v3354_v41 = vmul.f32 -2.5052108e-08, %v6814_v4 }
 0x339   : > { %8040 = vst [vmem:[#allocation39_spill] sm:$0xff] %v6952_v47  ;;  %v2910_v26 = vadd.f32 0.5, %v2878_v52  ;;  %v3355_v14 = vmul.f32 -2.5052108e-08, %v6822_v0  ;;  %v3031_v25 = vmul.f32 0.0009676536, %v6931_v3 }
 0x33a   : > { %v6958_v63 = vmul.f32 0.5, %v6931_v3  ;;  %v2911_v45 = vadd.f32 0.5, %v2879_v32  ;;  %v3386_v16 = vadd.f32 2.7557319e-06, %v3354_v41  ;;  %v3346_v2 = vmul.f32 -2.5052108e-08, %v6944_v31 }
 0x33b   : > { %v2942_v33 = vfloor.f32 %v2910_v26  ;;  %v3387_v27 = vadd.f32 2.7557319e-06, %v3355_v14  ;;  %v8042_v52 = vsub.f32 0.0, %v6781_v7  ;;  %v6968_v23 = vsub.f32 %v2998_v5, %v3030_v15 }
 0x33c   : > { %8041 = vst [vmem:[#allocation35_spill] sm:$0xff] %v6958_v63  ;;  %v2943_v28 = vfloor.f32 %v2911_v45  ;;  %v6970_v13 = vsub.f32 %v2999_v53, %v3031_v25  ;;  %v3418_v32 = vmul.f32 %v3386_v16, %v6814_v4  ;;  %v3378_v25 = vadd.f32 2.7557319e-06, %v3346_v2 }
 0x33d   : > { %v6966_v30 = vsel %vm6946_vm15, %v8042_v52, %v6781_v7  ;;  %v2974_v61 = vmul.f32 3.140625, %v2942_v33  ;;  %v3102_v20 = vmul.f32 0.5, %v2942_v33  ;;  %v3038_v26 = vmul.f32 0.0009676536, %v2942_v33 }
 0x33e   : > { %v3419_v41 = vmul.f32 %v3387_v27, %v6822_v0  ;;  %v2809_v14 = vpop.f32.mrf.mxu2  ;;  %v2975_v8 = vmul.f32 3.140625, %v2943_v28  ;;  %v3039_v3 = vmul.f32 0.0009676536, %v2943_v28  ;;  %v3103_v55 = vmul.f32 0.5, %v2943_v28 }
 0x33f   : > { %v3006_v34 = vsub.f32 %v2761_v40, %v2974_v61  ;;  %v3134_v38 = vfloor.f32 %v3102_v20  ;;  %v2810_v7 = vadd.f32 %v2809_v14, %v6656_v24  ;;  %v4429_v15 = vadd.f32 -0.0001984127, %v3418_v32 }
 0x340   : > { %v4430_v5 = vadd.f32 -0.0001984127, %v3419_v41  ;;  %v2838_v52 = vpop.f32.mrf.mxu3  ;;  %v3007_v53 = vsub.f32 %v2790_v50, %v2975_v8  ;;  %v3135_v47 = vfloor.f32 %v3103_v55  ;;  %v3410_v8 = vmul.f32 %v3378_v25, %v6944_v31 }
 0x341   : > { %v3070_v63 = vsub.f32 %v3006_v34, %v3038_v26  ;;  %v3166_v45 = vmul.f32 2.0, %v3134_v38  ;;  %v2856_v51 = vmul.f32 0.31830987, %v2810_v7  ;;  %v2839_v16 = vadd.f32 %v2838_v52, %v6656_v24 }
 0x342   : > { %v3482_v27 = vmul.f32 %v4429_v15, %v6814_v4  ;;  %v3071_v20 = vsub.f32 %v3007_v53, %v3039_v3  ;;  %v3483_v10 = vmul.f32 %v4430_v5, %v6822_v0  ;;  %v3167_v32 = vmul.f32 2.0, %v3135_v47 }
 0x343   : > { %v3198_v40 = vsub.f32 %v2942_v33, %v3166_v45  ;;  %v3262_v61 = vsub.f32 0.0, %v3070_v63  ;;  %v2888_v14 = vadd.f32 0.5, %v2856_v51  ;;  %v2857_v6 = vmul.f32 0.31830987, %v2839_v16 }
 0x344   : > { %v3514_v41 = vadd.f32 0.008333334, %v3482_v27  ;;  %v3515_v38 = vadd.f32 0.008333334, %v3483_v10  ;;  %v3199_v33 = vsub.f32 %v2943_v28, %v3167_v32  ;;  %v3263_v26 = vsub.f32 0.0, %v3071_v20 }
 0x345   : > { %vm3230_vm2 = vcmp.gt.f32.partialorder %v3198_v40, 0.5  ;;  %v6980_v2 = vfloor.f32 %v2888_v14  ;;  %v2889_v24 = vadd.f32 0.5, %v2857_v6  ;;  %v4421_v6 = vadd.f32 -0.0001984127, %v3410_v8 }
 0x346   : > { %v6982_v50 = vsel %vm3230_vm2, %v3262_v61, %v3070_v63  ;;  %v2812_v55 = vpop.f32.mrf.mxu2  ;;  %v3546_v51 = vmul.f32 %v3514_v41, %v6814_v4  ;;  %v3547_v47 = vmul.f32 %v3515_v38, %v6822_v0  ;;  %vm3231_vm3 = vcmp.gt.f32.partialorder %v3199_v33, 0.5 }
 0x347   : > { %8043 = vst [vmem:[#allocation14_spill] sm:$0xff] %v6980_v2  ;;  %v2952_v15 = vmul.f32 3.140625, %v6980_v2  ;;  %v6988_v5 = vfloor.f32 %v2889_v24  ;;  %v6992_v10 = vmul.f32 %v6982_v50, %v6982_v50  ;;  %v2813_v28 = vadd.f32 %v2812_v55, %v6660_v35 }
 0x348   : > { %v2841_v63 = vpop.f32.mrf.mxu3  ;;  %v4461_v52 = vadd.f32 -0.16666667, %v3546_v51  ;;  %v4462_v45 = vadd.f32 -0.16666667, %v3547_v47  ;;  %v3016_v25 = vmul.f32 0.0009676536, %v6980_v2  ;;  %v8045_v61 = vsub.f32 %v6684_v29, %v6858_v21 }
 0x349   : > { %8044 = vst [vmem:[#allocation8_spill] sm:$0xff] %v6988_v5  ;;  %v2984_v53 = vsub.f32 %v2810_v7, %v2952_v15  ;;  %v6997_v27 = vmul.f32 0.5, %v6980_v2  ;;  %v2953_v40 = vmul.f32 3.140625, %v6988_v5  ;;  %v7007_v32 = vsel %vm3231_vm3, %v3263_v26, %v3071_v20 }
 0x34a   : > { %vm7003_vm4 = vcmp.gt.f32.partialorder %v8045_v61, 0.5  ;;  %v2864_v41 = vmul.f32 0.31830987, %v2813_v28  ;;  %v2842_v38 = vadd.f32 %v2841_v63, %v6660_v35  ;;  %v3610_v7 = vmul.f32 %v4461_v52, %v6814_v4 }
 0x34b   : > { %v2985_v8 = vsub.f32 %v2839_v16, %v2953_v40  ;;  %v3017_v24 = vmul.f32 0.0009676536, %v6988_v5  ;;  %v7013_v33 = vmul.f32 0.5, %v6988_v5  ;;  %v3611_v55 = vmul.f32 %v4462_v45, %v6822_v0 }
 0x34c   : > { %v2896_v29 = vadd.f32 0.5, %v2864_v41  ;;  %v2865_v21 = vmul.f32 0.31830987, %v2842_v38  ;;  %v3642_v51 = vmul.f32 %v3610_v7, %v6785_v57  ;;  %v3474_v20 = vmul.f32 %v4421_v6, %v6944_v31 }
 0x34d   : > { %v7018_v26 = vsub.f32 %v2984_v53, %v3016_v25  ;;  %v7022_v35 = vmul.f32 %v7007_v32, %v7007_v32  ;;  %v3643_v4 = vmul.f32 %v3611_v55, %v6802_v49  ;;  %v7027_v16 = vmul.f32 %v6966_v30, %v6966_v30 }
 0x34e   : > { %v7029_v47 = vfloor.f32 %v2896_v29  ;;  %v2897_v0 = vadd.f32 0.5, %v2865_v21  ;;  %v2815_v15 = vpop.f32.mrf.mxu2  ;;  %v3674_v63 = vadd.f32 %v3642_v51, %v6785_v57  ;;  %v3506_v52 = vadd.f32 0.008333334, %v3474_v20 }
 0x34f   : > { %v7032_v6 = vsub.f32 %v2985_v8, %v3017_v24  ;;  %v2816_v45 = vadd.f32 %v2815_v15, %v6675_v54  ;;  %v3675_v53 = vadd.f32 %v3643_v4, %v6802_v49  ;;  %v3347_v25 = vmul.f32 -2.5052108e-08, %v7027_v16 }
 0x350   : > { %v2960_v40 = vmul.f32 3.140625, %v7029_v47  ;;  %v3024_v61 = vmul.f32 0.0009676536, %v7029_v47  ;;  %v7040_v41 = vmul.f32 0.5, %v7029_v47  ;;  %v7042_v7 = vfloor.f32 %v2897_v0  ;;  %v2844_v55 = vpop.f32.mrf.mxu3  ;;  %3705 = vmatpush.msra.mxu0 %v3674_v63 }
 0x351   : > { %8048 = vst [vmem:[#allocation22_spill] sm:$0xff] %v7032_v6  ;;  %v2872_v57 = vmul.f32 0.31830987, %v2816_v45  ;;  %v2845_v8 = vadd.f32 %v2844_v55, %v6675_v54  ;;  %3725 = vmatpush.msra.mxu1 %v3675_v53  ;;  %v3538_v24 = vmul.f32 %v3506_v52, %v6944_v31  ;;  %v3379_v49 = vadd.f32 2.7557319e-06, %v3347_v25 }
 0x352   : > { %v2992_v29 = vsub.f32 %v2813_v28, %v2960_v40  ;;  %v2961_v21 = vmul.f32 3.140625, %v7042_v7  ;;  %v3025_v51 = vmul.f32 0.0009676536, %v7042_v7  ;;  %v7049_v20 = vmul.f32 0.5, %v7042_v7 }
 0x353   : > { %v2904_v4 = vadd.f32 0.5, %v2872_v57  ;;  %v2873_v0 = vmul.f32 0.31830987, %v2845_v8  ;;  %v4453_v15 = vadd.f32 -0.16666667, %v3538_v24  ;;  %v3411_v63 = vmul.f32 %v3379_v49, %v7027_v16 }
 0x354   : > { %v7052_v3 = vsub.f32 %v2992_v29, %v3024_v61  ;;  %v2993_v54 = vsub.f32 %v2842_v38, %v2961_v21  ;;  %v8050_v52 = vsub.f32 0.0, %v6729_v56  ;;  %v3115_v53 = vfloor.f32 %v6753_v36 }
 0x355   : > { %v7062_v25 = vfloor.f32 %v2904_v4  ;;  %v2905_v40 = vadd.f32 0.5, %v2873_v0  ;;  %v3602_v55 = vmul.f32 %v4453_v15, %v6944_v31  ;;  %v4422_v57 = vadd.f32 -0.0001984127, %v3411_v63 }
 0x356   : > { %8049 = vst [vmem:[#allocation41_spill] sm:$0xff] %v7052_v3  ;;  %v7059_v28 = vsel %vm7003_vm4, %v8050_v52, %v6729_v56  ;;  %v7066_v61 = vsub.f32 %v2993_v54, %v3025_v51  ;;  %v3147_v49 = vmul.f32 2.0, %v3115_v53 }
 0x357   : > { %v7070_v38 = vmul.f32 %v7059_v28, %v7059_v28  ;;  %v2968_v56 = vmul.f32 3.140625, %v7062_v25  ;;  %v3032_v14 = vmul.f32 0.0009676536, %v7062_v25  ;;  %v7075_v36 = vmul.f32 0.5, %v7062_v25 }
 0x358   : > { %8051 = vst [vmem:[#allocation23_spill] sm:$0xff] %v7066_v61  ;;  %v7077_v29 = vfloor.f32 %v2905_v40  ;;  %v3634_v21 = vmul.f32 %v3602_v55, %v6924_v1  ;;  %v3475_v51 = vmul.f32 %v4422_v57, %v7027_v16  ;;  %v3179_v31 = vsub.f32 %v6697_v18, %v3147_v49  ;;  %v2818_v49 = vpop.f32.mrf.mxu2 }
 0x359   : > { %v3338_v4 = vmul.f32 -2.5052108e-08, %v7070_v38  ;;  %v3000_v0 = vsub.f32 %v2816_v45, %v2968_v56  ;;  %v3106_v57 = vfloor.f32 %v6719_v11  ;;  %v3107_v45 = vfloor.f32 %v6727_v12  ;;  %v2847_v12 = vpop.f32.mrf.mxu3 }
 0x35a   : > { %v2969_v15 = vmul.f32 3.140625, %v7077_v29  ;;  %v3033_v63 = vmul.f32 0.0009676536, %v7077_v29  ;;  %v7086_v54 = vmul.f32 0.5, %v7077_v29  ;;  %v3666_v52 = vadd.f32 %v3634_v21, %v6924_v1 }
 0x35b   : > { %v3507_v53 = vadd.f32 0.008333334, %v3475_v51  ;;  %v3370_v40 = vadd.f32 2.7557319e-06, %v3338_v4  ;;  %v7090_v24 = vsub.f32 %v3000_v0, %v3032_v14  ;;  %vm3211_vm5 = vcmp.gt.f32.partialorder %v3179_v31, 0.5 }
 0x35c   : > { %v3001_v55 = vsub.f32 %v2845_v8, %v2969_v15  ;;  %3706 = vmatpush.msra.mxu0 %v3666_v52  ;;  %v8052_v18 = vsub.f32 0.0, %v6756_v46  ;;  %v3138_v11 = vmul.f32 2.0, %v3106_v57  ;;  %v3139_v31 = vmul.f32 2.0, %v3107_v45 }
 0x35d   : > { %v3539_v56 = vmul.f32 %v3507_v53, %v7027_v16  ;;  %v3402_v34 = vmul.f32 %v3370_v40, %v7070_v38  ;;  %v2848_v52 = vadd.f32 %v2847_v12, %v6654_v17 }
 0x35e   : > { %v7098_v21 = vsub.f32 %v3001_v55, %v3033_v63  ;;  %v7103_v8 = vsel %vm3211_vm5, %v8052_v18, %v6756_v46  ;;  %v3170_v15 = vsub.f32 %v6666_v19, %v3138_v11  ;;  %v2819_v63 = vadd.f32 %v2818_v49, %v6654_v17 }
 0x35f   : > { %v4454_v14 = vadd.f32 -0.16666667, %v3539_v56  ;;  %v4413_v51 = vadd.f32 -0.0001984127, %v3402_v34  ;;  %v7107_v4 = vmul.f32 %v7103_v8, %v7103_v8  ;;  %v3171_v34 = vsub.f32 %v6671_v43, %v3139_v31 }
 0x360   : > { %vm3202_vm6 = vcmp.gt.f32.partialorder %v3170_v15, 0.5  ;;  %v2880_v55 = vmul.f32 0.31830987, %v2819_v63  ;;  %v2881_v57 = vmul.f32 0.31830987, %v2848_v52  ;;  %v8053_v17 = vsub.f32 0.0, %v6699_v60 }
 0x361   : > { %v3603_v46 = vmul.f32 %v4454_v14, %v7027_v16  ;;  %v3466_v53 = vmul.f32 %v4413_v51, %v7070_v38  ;;  %v3339_v40 = vmul.f32 -2.5052108e-08, %v7107_v4  ;;  %vm3203_vm7 = vcmp.gt.f32.partialorder %v3171_v34, 0.5 }
 0x362   : > { %v7122_v11 = vsel %vm3202_vm6, %v8053_v17, %v6699_v60  ;;  %v2912_v43 = vadd.f32 0.5, %v2880_v55  ;;  %v2913_v49 = vadd.f32 0.5, %v2881_v57  ;;  %v8054_v31 = vsub.f32 0.0, %v6709_v22 }
 0x363   : > { %v3635_v56 = vmul.f32 %v3603_v46, %v6966_v30  ;;  %v3498_v19 = vadd.f32 0.008333334, %v3466_v53  ;;  %v3371_v18 = vadd.f32 2.7557319e-06, %v3339_v40  ;;  %v7126_v16 = vmul.f32 %v7122_v11, %v7122_v11 }
 0x364   : > { %v7134_v15 = vsel %vm3203_vm7, %v8054_v31, %v6709_v22  ;;  %v2944_v53 = vfloor.f32 %v2912_v43  ;;  %v2945_v40 = vfloor.f32 %v2913_v49  ;;  %v3356_v55 = vmul.f32 -2.5052108e-08, %v6918_v37 }
 0x365   : > { %v3667_v12 = vadd.f32 %v3635_v56, %v6966_v30  ;;  %v3530_v14 = vmul.f32 %v3498_v19, %v7070_v38  ;;  %v3403_v51 = vmul.f32 %v3371_v18, %v7107_v4  ;;  %v3330_v60 = vmul.f32 -2.5052108e-08, %v7126_v16 }
 0x366   : > { %v7139_v46 = vmul.f32 %v7134_v15, %v7134_v15  ;;  %v3125_v57 = vfloor.f32 %v6867_v62  ;;  %v2976_v22 = vmul.f32 3.140625, %v2944_v53  ;;  %v3104_v18 = vmul.f32 0.5, %v2944_v53 }
 0x367   : > { %3726 = vmatpush.msra.mxu1 %v3667_v12  ;;  %v4445_v34 = vadd.f32 -0.16666667, %v3530_v14  ;;  %v4414_v30 = vadd.f32 -0.0001984127, %v3403_v51  ;;  %v3362_v56 = vadd.f32 2.7557319e-06, %v3330_v60 }
 0x368   : > { %v3331_v19 = vmul.f32 -2.5052108e-08, %v7139_v46  ;;  %v3040_v0 = vmul.f32 0.0009676536, %v2944_v53  ;;  %v2977_v1 = vmul.f32 3.140625, %v2945_v40  ;;  %v3008_v12 = vsub.f32 %v2819_v63, %v2976_v22 }
 0x369   : > { %v3594_v17 = vmul.f32 %v4445_v34, %v7070_v38  ;;  %v3467_v31 = vmul.f32 %v4414_v30, %v7107_v4  ;;  %v3394_v43 = vmul.f32 %v3362_v56, %v7126_v16  ;;  %v3136_v14 = vfloor.f32 %v3104_v18 }
 0x36a   : > { %v3363_v49 = vadd.f32 2.7557319e-06, %v3331_v19  ;;  %v3009_v62 = vsub.f32 %v2848_v52, %v2977_v1  ;;  %v3041_v60 = vmul.f32 0.0009676536, %v2945_v40  ;;  %v3072_v2 = vsub.f32 %v3008_v12, %v3040_v0 }
 0x36b   : > { %v3626_v51 = vmul.f32 %v3594_v17, %v7059_v28  ;;  %v3499_v5 = vadd.f32 0.008333334, %v3467_v31  ;;  %v4405_v45 = vadd.f32 -0.0001984127, %v3394_v43  ;;  %v3168_v61 = vmul.f32 2.0, %v3136_v14 }
 0x36c   : > { %v3395_v6 = vmul.f32 %v3363_v49, %v7139_v46  ;;  %v3073_v30 = vsub.f32 %v3009_v62, %v3041_v60  ;;  %v3105_v3 = vmul.f32 0.5, %v2945_v40  ;;  %v3264_v22 = vsub.f32 0.0, %v3072_v2 }
 0x36d   : > { %v3658_v38 = vadd.f32 %v3626_v51, %v7059_v28  ;;  %v3531_v34 = vmul.f32 %v3499_v5, %v7107_v4  ;;  %v3458_v56 = vmul.f32 %v4405_v45, %v7126_v16  ;;  %v3200_v19 = vsub.f32 %v2944_v53, %v3168_v61 }
 0x36e   : > { %v4406_v63 = vadd.f32 -0.0001984127, %v3395_v6  ;;  %v3137_v1 = vfloor.f32 %v3105_v3  ;;  %v3265_v52 = vsub.f32 0.0, %v3073_v30  ;;  %v3388_v17 = vadd.f32 2.7557319e-06, %v3356_v55 }
 0x36f   : > { %3707 = vmatpush.msra.mxu0 %v3658_v38  ;;  %v4446_v18 = vadd.f32 -0.16666667, %v3531_v34  ;;  %v3490_v31 = vadd.f32 0.008333334, %v3458_v56  ;;  %vm3232_vm8 = vcmp.gt.f32.partialorder %v3200_v19, 0.5  ;;  %v8055_v51 = vfloor.f32 %v6854_v59 }
 0x370   : > { %v3459_v0 = vmul.f32 %v4406_v63, %v7139_v46  ;;  %v3357_v28 = vmul.f32 -2.5052108e-08, %v6938_v48  ;;  %v7155_v43 = vsel %vm3232_vm8, %v3264_v22, %v3072_v2  ;;  %v3169_v49 = vmul.f32 2.0, %v3137_v1 }
 0x371   : > { %v3595_v5 = vmul.f32 %v4446_v18, %v7107_v4  ;;  %v3420_v6 = vmul.f32 %v3388_v17, %v6918_v37  ;;  %v3522_v61 = vmul.f32 %v3490_v31, %v7126_v16  ;;  %v7161_v3 = vmul.f32 %v7155_v43, %v7155_v43 }
 0x372   : > { %v3491_v45 = vadd.f32 0.008333334, %v3459_v0  ;;  %v3389_v53 = vadd.f32 2.7557319e-06, %v3357_v28  ;;  %v3201_v12 = vsub.f32 %v2945_v40, %v3169_v49  ;;  %v3156_v4 = vmul.f32 2.0, %v8055_v51 }
 0x373   : > { %v3627_v55 = vmul.f32 %v3595_v5, %v7103_v8  ;;  %v4431_v14 = vadd.f32 -0.0001984127, %v3420_v6  ;;  %v4437_v2 = vadd.f32 -0.16666667, %v3522_v61  ;;  %v3157_v38 = vmul.f32 2.0, %v3125_v57 }
 0x374   : > { %v3523_v62 = vmul.f32 %v3491_v45, %v7139_v46  ;;  %v3421_v60 = vmul.f32 %v3389_v53, %v6938_v48  ;;  %vm3233_vm9 = vcmp.gt.f32.partialorder %v3201_v12, 0.5  ;;  %v3188_v63 = vsub.f32 %v6804_v44, %v3156_v4  ;;  %v7199_v5 = vld [vmem:[%s7672_s7] sm:$0x1]  ;;  %v8061_v4 = vld [vmem:[#allocation27_spill] sm:$0xff] }
 0x375   : > { %v3659_v34 = vadd.f32 %v3627_v55, %v7103_v8  ;;  %v3484_v56 = vmul.f32 %v4431_v14, %v6918_v37  ;;  %v3586_v19 = vmul.f32 %v4437_v2, %v7126_v16  ;;  %v7172_v22 = vsel %vm3233_vm9, %v3265_v52, %v3073_v30  ;;  %v8060_v14 = vld [vmem:[#allocation30_spill] sm:$0xff] }
 0x376   : > { %v4438_v40 = vadd.f32 -0.16666667, %v3523_v62  ;;  %v4432_v59 = vadd.f32 -0.0001984127, %v3421_v60  ;;  %v7176_v18 = vmul.f32 %v7172_v22, %v7172_v22  ;;  %vm3220_vm10 = vcmp.gt.f32.partialorder %v3188_v63, 0.5 }
 0x377   : > { %3727 = vmatpush.msra.mxu1 %v3659_v34  ;;  %v3516_v1 = vadd.f32 0.008333334, %v3484_v56  ;;  %v3189_v8 = vsub.f32 %v6831_v39, %v3157_v38  ;;  %v3618_v57 = vmul.f32 %v3586_v19, %v7122_v11  ;;  %v8056_v16 = vsub.f32 0.0, %v6844_v42  ;;  %v8062_v34 = vld [vmem:[#allocation9_spill] sm:$0xff] }
 0x378   : > { %v3587_v17 = vmul.f32 %v4438_v40, %v7139_v46  ;;  %v3485_v44 = vmul.f32 %v4432_v59, %v6938_v48  ;;  %v8057_v39 = vfloor.f32 %v6826_v58  ;;  %v8058_v49 = vsub.f32 0.0, %v6856_v9  ;;  %v8064_v40 = vld [vmem:[#allocation40_spill] sm:$0xff] }
 0x379   : > { %v7185_v30 = vsel %vm3220_vm10, %v8056_v16, %v6844_v42  ;;  %v3548_v52 = vmul.f32 %v3516_v1, %v6918_v37  ;;  %vm3221_vm11 = vcmp.gt.f32.partialorder %v3189_v8, 0.5  ;;  %v3650_v28 = vadd.f32 %v3618_v57, %v7122_v11  ;;  %v8059_v11 = vld [vmem:[#allocation15_spill] sm:$0xff]  ;;  %v8066_v16 = vld [vmem:[#allocation24_spill] sm:$0xff] }
 0x37a   : > { %v7190_v31 = vmul.f32 %v7185_v30, %v7185_v30  ;;  %v3148_v0 = vmul.f32 2.0, %v8057_v39  ;;  %v3619_v46 = vmul.f32 %v3587_v17, %v7134_v15  ;;  %v3517_v42 = vadd.f32 0.008333334, %v3485_v44  ;;  %v8065_v17 = vld [vmem:[#allocation19_spill] sm:$0xff]  ;;  %v8067_v39 = vld [vmem:[#allocation36_spill] sm:$0xff] }
 0x37b   : > { %v7204_v6 = vsel %vm3221_vm11, %v8058_v49, %v6856_v9  ;;  %v4463_v61 = vadd.f32 -0.16666667, %v3548_v52  ;;  %3708 = vmatpush.msra.mxu0 %v3650_v28  ;;  %v3117_v51 = vfloor.f32 %v8060_v14  ;;  %v3108_v2 = vfloor.f32 %v8061_v4 }
 0x37c   : > { %v3348_v45 = vmul.f32 -2.5052108e-08, %v7190_v31  ;;  %v7209_v58 = vmul.f32 %v7204_v6, %v7204_v6  ;;  %v3180_v53 = vsub.f32 %v8059_v11, %v3148_v0  ;;  %v3651_v55 = vadd.f32 %v3619_v46, %v7134_v15  ;;  %4469 = vmatmul.msk.f32.vlgmr.msra.gmra.mxu0 %vm1501_vm1, %v7199_v5 }
 0x37d   : > { %v3549_v12 = vmul.f32 %v3517_v42, %v6938_v48  ;;  %v3612_v9 = vmul.f32 %v4463_v61, %v6918_v37  ;;  %v8063_v15 = vsub.f32 0.0, %v8062_v34  ;;  %v3149_v63 = vmul.f32 2.0, %v3117_v51  ;;  %v8068_v61 = vld [vmem:[#allocation46_spill] sm:$0xff] }
 0x37e   : > { %v3380_v62 = vadd.f32 2.7557319e-06, %v3348_v45  ;;  %v3349_v60 = vmul.f32 -2.5052108e-08, %v7209_v58  ;;  %vm3212_vm12 = vcmp.gt.f32.partialorder %v3180_v53, 0.5  ;;  %3728 = vmatpush.msra.mxu1 %v3651_v55  ;;  %v3140_v19 = vmul.f32 2.0, %v3108_v2 }
 0x37f   : > { %v4464_v38 = vadd.f32 -0.16666667, %v3549_v12  ;;  %v7223_v56 = vsel %vm3212_vm12, %v8063_v15, %v8062_v34  ;;  %4470 = vmatmul.msk.f32.vlgmr.msra.gmra.mxu1 %vm1501_vm1, %v7199_v5  ;;  %v3644_v59 = vmul.f32 %v3612_v9, %v8064_v40  ;;  %v3181_v44 = vsub.f32 %v8065_v17, %v3149_v63  ;;  %v8069_v12 = vld [vmem:[#allocation31_spill] sm:$0xff]  ;;  %v8071_v9 = vld [vmem:[#allocation10_spill] sm:$0xff] }
 0x380   : > { %v3412_v37 = vmul.f32 %v3380_v62, %v7190_v31  ;;  %v3381_v1 = vadd.f32 2.7557319e-06, %v3349_v60  ;;  %v7231_v8 = vmul.f32 %v7223_v56, %v7223_v56  ;;  %v3172_v52 = vsub.f32 %v8066_v16, %v3140_v19 }
 0x381   : > { %v3613_v57 = vmul.f32 %v4464_v38, %v6938_v48  ;;  %v3109_v0 = vfloor.f32 %v8067_v39  ;;  %v3676_v28 = vadd.f32 %v3644_v59, %v8064_v40  ;;  %vm3213_vm13 = vcmp.gt.f32.partialorder %v3181_v44, 0.5  ;;  %v8073_v38 = vld [vmem:[#allocation26_spill] sm:$0xff] }
 0x382   : > { %v4423_v46 = vadd.f32 -0.0001984127, %v3412_v37  ;;  %v3413_v42 = vmul.f32 %v3381_v1, %v7209_v58  ;;  %v3340_v49 = vmul.f32 -2.5052108e-08, %v7231_v8  ;;  %vm3204_vm14 = vcmp.gt.f32.partialorder %v3172_v52, 0.5  ;;  %v8074_v1 = vld [vmem:[#allocation39_spill] sm:$0xff] }
 0x383   : > { %v3645_v45 = vmul.f32 %v3613_v57, %v8068_v61  ;;  %v3141_v11 = vmul.f32 2.0, %v3109_v0  ;;  %3745 = vmatpush.msra.mxu2 %v3676_v28  ;;  %v8070_v14 = vsub.f32 0.0, %v8069_v12  ;;  %v8072_v62 = vsub.f32 0.0, %v8071_v9  ;;  %v8075_v0 = vld [vmem:[#allocation7_spill] sm:$0xff] }
 0x384   : > { %v3476_v48 = vmul.f32 %v4423_v46, %v7190_v31  ;;  %v4424_v53 = vadd.f32 -0.0001984127, %v3413_v42  ;;  %v3372_v55 = vadd.f32 2.7557319e-06, %v3340_v49  ;;  %v3358_v37 = vmul.f32 -2.5052108e-08, %v6992_v10 }
 0x385   : > { %v7245_v51 = vsel %vm3213_vm13, %v8070_v14, %v8069_v12  ;;  %v3677_v4 = vadd.f32 %v3645_v45, %v8068_v61  ;;  %v7255_v60 = vsel %vm3204_vm14, %v8072_v62, %v8071_v9  ;;  %v3173_v34 = vsub.f32 %v8073_v38, %v3141_v11 }
 0x386   : > { %v7250_v2 = vmul.f32 %v7245_v51, %v7245_v51  ;;  %v3508_v15 = vadd.f32 0.008333334, %v3476_v48  ;;  %v3477_v63 = vmul.f32 %v4424_v53, %v7209_v58  ;;  %v3404_v19 = vmul.f32 %v3372_v55, %v7231_v8 }
 0x387   : > { %v7262_v40 = vmul.f32 %v7255_v60, %v7255_v60  ;;  %3765 = vmatpush.msra.mxu3 %v3677_v4  ;;  %vm3205_vm15 = vcmp.gt.f32.partialorder %v3173_v34, 0.5  ;;  %v3126_v57 = vfloor.f32 %v8074_v1  ;;  %v8076_v28 = vsub.f32 0.0, %v8075_v0 }
 0x388   : > { %v3341_v59 = vmul.f32 -2.5052108e-08, %v7250_v2  ;;  %v3540_v17 = vmul.f32 %v3508_v15, %v7190_v31  ;;  %v3509_v44 = vadd.f32 0.008333334, %v3477_v63  ;;  %v4415_v16 = vadd.f32 -0.0001984127, %v3404_v19 }
 0x389   : > { %v3332_v52 = vmul.f32 -2.5052108e-08, %v7262_v40  ;;  %v7272_v46 = vsel %vm3205_vm15, %v8076_v28, %v8075_v0  ;;  %v3390_v42 = vadd.f32 2.7557319e-06, %v3358_v37  ;;  %v3359_v49 = vmul.f32 -2.5052108e-08, %v7022_v35 }
 0x38a   : > { %v3373_v39 = vadd.f32 2.7557319e-06, %v3341_v59  ;;  %v4455_v61 = vadd.f32 -0.16666667, %v3540_v17  ;;  %v3541_v45 = vmul.f32 %v3509_v44, %v7209_v58  ;;  %v3468_v11 = vmul.f32 %v4415_v16, %v7231_v8 }
 0x38b   : > { %v3364_v48 = vadd.f32 2.7557319e-06, %v3332_v52  ;;  %v7280_v55 = vmul.f32 %v7272_v46, %v7272_v46  ;;  %v3422_v12 = vmul.f32 %v3390_v42, %v6992_v10  ;;  %v3391_v14 = vadd.f32 2.7557319e-06, %v3359_v49 }
 0x38c   : > { %v3405_v53 = vmul.f32 %v3373_v39, %v7250_v2  ;;  %v3604_v4 = vmul.f32 %v4455_v61, %v7190_v31  ;;  %v4456_v9 = vadd.f32 -0.16666667, %v3541_v45  ;;  %v3500_v62 = vadd.f32 0.008333334, %v3468_v11 }
 0x38d   : > { %v3396_v38 = vmul.f32 %v3364_v48, %v7262_v40  ;;  %v3333_v15 = vmul.f32 -2.5052108e-08, %v7280_v55  ;;  %v4433_v63 = vadd.f32 -0.0001984127, %v3422_v12  ;;  %v3423_v19 = vmul.f32 %v3391_v14, %v7022_v35 }
 0x38e   : > { %v4416_v34 = vadd.f32 -0.0001984127, %v3405_v53  ;;  %v3636_v59 = vmul.f32 %v3604_v4, %v7185_v30  ;;  %v3605_v37 = vmul.f32 %v4456_v9, %v7209_v58  ;;  %v3532_v1 = vmul.f32 %v3500_v62, %v7231_v8 }
 0x38f   : > { %v4407_v17 = vadd.f32 -0.0001984127, %v3396_v38  ;;  %v3365_v31 = vadd.f32 2.7557319e-06, %v3333_v15  ;;  %v3486_v16 = vmul.f32 %v4433_v63, %v6992_v10  ;;  %v4434_v52 = vadd.f32 -0.0001984127, %v3423_v19 }
 0x390   : > { %v3469_v44 = vmul.f32 %v4416_v34, %v7250_v2  ;;  %v3668_v39 = vadd.f32 %v3636_v59, %v7185_v30  ;;  %v3637_v0 = vmul.f32 %v3605_v37, %v7204_v6  ;;  %v4447_v28 = vadd.f32 -0.16666667, %v3532_v1  ;;  %v8077_v34 = vld [vmem:[#allocation16_spill] sm:$0xff]  ;;  %v8078_v63 = vld [vmem:[#allocation35_spill] sm:$0xff] }
 0x391   : > { %v3460_v42 = vmul.f32 %v4407_v17, %v7262_v40  ;;  %v3397_v61 = vmul.f32 %v3365_v31, %v7280_v55  ;;  %v3518_v58 = vadd.f32 0.008333334, %v3486_v16  ;;  %v3487_v45 = vmul.f32 %v4434_v52, %v7022_v35 }
 0x392   : > { %v3501_v49 = vadd.f32 0.008333334, %v3469_v44  ;;  %3746 = vmatpush.msra.mxu2 %v3668_v39  ;;  %v3669_v11 = vadd.f32 %v3637_v0, %v7204_v6  ;;  %v3596_v48 = vmul.f32 %v4447_v28, %v7231_v8  ;;  %v3158_v12 = vmul.f32 2.0, %v3126_v57 }
 0x393   : > { %v3492_v53 = vadd.f32 0.008333334, %v3460_v42  ;;  %v4408_v14 = vadd.f32 -0.0001984127, %v3397_v61  ;;  %v3550_v4 = vmul.f32 %v3518_v58, %v6992_v10  ;;  %v3519_v9 = vadd.f32 0.008333334, %v3487_v45 }
 0x394   : > { %v3533_v30 = vmul.f32 %v3501_v49, %v7250_v2  ;;  %3766 = vmatpush.msra.mxu3 %v3669_v11  ;;  %v3628_v62 = vmul.f32 %v3596_v48, %v7223_v56  ;;  %v3190_v15 = vsub.f32 %v8077_v34, %v3158_v12  ;;  %v3127_v19 = vfloor.f32 %v8078_v63  ;;  %v8080_v42 = vld [vmem:[#allocation43_spill] sm:$0xff] }
 0x395   : > { %v3524_v38 = vmul.f32 %v3492_v53, %v7262_v40  ;;  %v3461_v8 = vmul.f32 %v4408_v14, %v7280_v55  ;;  %v4465_v59 = vadd.f32 -0.16666667, %v3550_v4  ;;  %v3551_v57 = vmul.f32 %v3519_v9, %v7022_v35 }
 0x396   : > { %v4448_v6 = vadd.f32 -0.16666667, %v3533_v30  ;;  %v3660_v37 = vadd.f32 %v3628_v62, %v7223_v56  ;;  %vm3222_vm2 = vcmp.gt.f32.partialorder %v3190_v15, 0.5  ;;  %v3159_v17 = vmul.f32 2.0, %v3127_v19  ;;  %v8081_v56 = vld [vmem:[#allocation20_spill] sm:$0xff]  ;;  %v8085_v19 = vld [vmem:[#allocation17_spill] sm:$0xff] }
 0x397   : > { %v4439_v1 = vadd.f32 -0.16666667, %v3524_v38  ;;  %v3493_v31 = vadd.f32 0.008333334, %v3461_v8  ;;  %v3614_v16 = vmul.f32 %v4465_v59, %v6992_v10  ;;  %v4466_v52 = vadd.f32 -0.16666667, %v3551_v57 }
 0x398   : > { %v3597_v44 = vmul.f32 %v4448_v6, %v7250_v2  ;;  %3747 = vmatpush.msra.mxu2 %v3660_v37  ;;  %v8079_v0 = vsub.f32 0.0, %v6968_v23  ;;  %v3191_v49 = vsub.f32 %v8080_v42, %v3159_v17  ;;  %v3118_v61 = vfloor.f32 %v8081_v56  ;;  %v8083_v62 = vld [vmem:[#allocation44_spill] sm:$0xff]  ;;  %v8086_v6 = vld [vmem:[#allocation47_spill] sm:$0xff] }
 0x399   : > { %v3588_v39 = vmul.f32 %v4439_v1, %v7262_v40  ;;  %v3525_v2 = vmul.f32 %v3493_v31, %v7280_v55  ;;  %v3646_v45 = vmul.f32 %v3614_v16, %v6982_v50  ;;  %v3615_v10 = vmul.f32 %v4466_v52, %v7022_v35 }
 0x39a   : > { %v7314_v28 = vsel %vm3222_vm2, %v8079_v0, %v6968_v23  ;;  %v3629_v58 = vmul.f32 %v3597_v44, %v7245_v51  ;;  %vm3223_vm3 = vcmp.gt.f32.partialorder %v3191_v49, 0.5  ;;  %v3150_v23 = vmul.f32 2.0, %v3118_v61  ;;  %v8089_v0 = vld [vmem:[#allocation18_spill] sm:$0xff] }
 0x39b   : > { %v3620_v11 = vmul.f32 %v3588_v39, %v7255_v60  ;;  %v7325_v40 = vmul.f32 %v7314_v28, %v7314_v28  ;;  %v4440_v53 = vadd.f32 -0.16666667, %v3525_v2  ;;  %v3678_v12 = vadd.f32 %v3646_v45, %v6982_v50  ;;  %v8091_v45 = vld [vmem:[#allocation6_spill] sm:$0xff] }
 0x39c   : > { %v3661_v48 = vadd.f32 %v3629_v58, %v7245_v51  ;;  %v3647_v30 = vmul.f32 %v3615_v10, %v7007_v32  ;;  %v8082_v35 = vsub.f32 0.0, %v6970_v13  ;;  %v3182_v38 = vsub.f32 %v8083_v62, %v3150_v23  ;;  %v8090_v58 = vld [vmem:[#allocation11_spill] sm:$0xff]  ;;  %v8094_v62 = vld [vmem:[#allocation29_spill] sm:$0xff] }
 0x39d   : > { %v3652_v14 = vadd.f32 %v3620_v11, %v7255_v60  ;;  %v3350_v4 = vmul.f32 -2.5052108e-08, %v7325_v40  ;;  %v3589_v34 = vmul.f32 %v4440_v53, %v7280_v55  ;;  %3785 = vmatpush.msrb.mxu0 %v3678_v12  ;;  %v8084_v60 = vld [vmem:[#allocation42_spill] sm:$0xff]  ;;  %v3111_v8 = vfloor.f32 %v8086_v6  ;;  %v8087_v55 = vld [vmem:[#allocation45_spill] sm:$0xff] }
 0x39e   : > { %v7335_v9 = vsel %vm3223_vm3, %v8082_v35, %v6970_v13  ;;  %3767 = vmatpush.msra.mxu3 %v3661_v48  ;;  %v3679_v51 = vadd.f32 %v3647_v30, %v7007_v32  ;;  %v3119_v15 = vfloor.f32 %v8084_v60  ;;  %vm3214_vm4 = vcmp.gt.f32.partialorder %v3182_v38, 0.5  ;;  %v8092_v12 = vld [vmem:[#allocation13_spill] sm:$0xff] }
 0x39f   : > { %v7342_v50 = vmul.f32 %v7335_v9, %v7335_v9  ;;  %3748 = vmatpush.msra.mxu2 %v3652_v14  ;;  %v3382_v63 = vadd.f32 2.7557319e-06, %v3350_v4  ;;  %v3110_v13 = vfloor.f32 %v8085_v19  ;;  %v3621_v59 = vmul.f32 %v3589_v34, %v7272_v46 }
 0x3a0   : > { %4471 = vmatmul.msk.f32.vlgmr.msra.gmra.mxu2 %vm1501_vm1, %v7199_v5  ;;  %3805 = vmatpush.msrb.mxu1 %v3679_v51  ;;  %v8088_v57 = vsub.f32 0.0, %v8087_v55  ;;  %v3151_v1 = vmul.f32 2.0, %v3119_v15  ;;  %v3143_v16 = vmul.f32 2.0, %v3111_v8  ;;  %v3360_v49 = vmul.f32 -2.5052108e-08, %v7161_v3 }
 0x3a1   : > { %v3351_v32 = vmul.f32 -2.5052108e-08, %v7342_v50  ;;  %v3414_v17 = vmul.f32 %v3382_v63, %v7325_v40  ;;  %v3142_v31 = vmul.f32 2.0, %v3110_v13  ;;  %v3653_v52 = vadd.f32 %v3621_v59, %v7272_v46  ;;  %v8096_v63 = vld [vmem:[#allocation12_spill] sm:$0xff] }
 0x3a2   : > { %v7354_v37 = vsel %vm3214_vm4, %v8088_v57, %v8087_v55  ;;  %v3183_v42 = vsub.f32 %v8089_v0, %v3151_v1  ;;  %v3175_v10 = vsub.f32 %v8091_v45, %v3143_v16  ;;  %v3392_v23 = vadd.f32 2.7557319e-06, %v3360_v49 }
 0x3a3   : > { %v7359_v44 = vmul.f32 %v7354_v37, %v7354_v37  ;;  %v3383_v39 = vadd.f32 2.7557319e-06, %v3351_v32  ;;  %v4425_v56 = vadd.f32 -0.0001984127, %v3414_v17  ;;  %v3174_v2 = vsub.f32 %v8090_v58, %v3142_v31  ;;  %3768 = vmatpush.msra.mxu3 %v3653_v52 }
 0x3a4   : > { %vm3215_vm5 = vcmp.gt.f32.partialorder %v3183_v42, 0.5  ;;  %v3361_v48 = vmul.f32 -2.5052108e-08, %v7176_v18  ;;  %4472 = vmatmul.msk.f32.vlgmr.msra.gmra.mxu3 %vm1501_vm1, %v7199_v5  ;;  %v8093_v30 = vsub.f32 0.0, %v8092_v12  ;;  %v8095_v38 = vsub.f32 0.0, %v8094_v62 }
 0x3a5   : > { %v3342_v61 = vmul.f32 -2.5052108e-08, %v7359_v44  ;;  %v3415_v11 = vmul.f32 %v3383_v39, %v7342_v50  ;;  %v3478_v46 = vmul.f32 %v4425_v56, %v7325_v40  ;;  %vm3206_vm6 = vcmp.gt.f32.partialorder %v3174_v2, 0.5 }
 0x3a6   : > { %v7375_v14 = vsel %vm3215_vm5, %v8093_v30, %v8092_v12  ;;  %v7384_v34 = vsel %vm3206_vm6, %v8095_v38, %v8094_v62  ;;  %vm3207_vm7 = vcmp.gt.f32.partialorder %v3175_v10, 0.5  ;;  %v8097_v19 = vsub.f32 0.0, %v8096_v63 }
 0x3a7   : > { %v3374_v53 = vadd.f32 2.7557319e-06, %v3342_v61  ;;  %v4426_v4 = vadd.f32 -0.0001984127, %v3415_v11  ;;  %v7379_v35 = vmul.f32 %v7375_v14, %v7375_v14  ;;  %v3510_v51 = vadd.f32 0.008333334, %v3478_v46 }
 0x3a8   : > { %v7389_v15 = vmul.f32 %v7384_v34, %v7384_v34  ;;  %v7394_v13 = vsel %vm3207_vm7, %v8097_v19, %v8096_v63  ;;  %v3424_v32 = vmul.f32 %v3392_v23, %v7161_v3  ;;  %v3393_v17 = vadd.f32 2.7557319e-06, %v3361_v48 }
 0x3a9   : > { %v3406_v60 = vmul.f32 %v3374_v53, %v7359_v44  ;;  %v3479_v6 = vmul.f32 %v4426_v4, %v7342_v50  ;;  %v3343_v8 = vmul.f32 -2.5052108e-08, %v7379_v35  ;;  %v7400_v59 = vmul.f32 %v7394_v13, %v7394_v13 }
 0x3aa   : > { %v3542_v55 = vmul.f32 %v3510_v51, %v7325_v40  ;;  %v3334_v1 = vmul.f32 -2.5052108e-08, %v7389_v15  ;;  %v3128_v39 = vfloor.f32 %v7075_v36  ;;  %v4435_v56 = vadd.f32 -0.0001984127, %v3424_v32 }
 0x3ab   : > { %v4417_v57 = vadd.f32 -0.0001984127, %v3406_v60  ;;  %v3511_v31 = vadd.f32 0.008333334, %v3479_v6  ;;  %v3375_v16 = vadd.f32 2.7557319e-06, %v3343_v8  ;;  %v3425_v45 = vmul.f32 %v3393_v17, %v7176_v18 }
 0x3ac   : > { %v3335_v52 = vmul.f32 -2.5052108e-08, %v7400_v59  ;;  %v4457_v0 = vadd.f32 -0.16666667, %v3542_v55  ;;  %v3366_v49 = vadd.f32 2.7557319e-06, %v3334_v1  ;;  %v3488_v48 = vmul.f32 %v4435_v56, %v7161_v3 }
 0x3ad   : > { %v3470_v42 = vmul.f32 %v4417_v57, %v7359_v44  ;;  %v3543_v61 = vmul.f32 %v3511_v31, %v7342_v50  ;;  %v3407_v58 = vmul.f32 %v3375_v16, %v7379_v35  ;;  %v4436_v12 = vadd.f32 -0.0001984127, %v3425_v45 }
 0x3ae   : > { %v3367_v2 = vadd.f32 2.7557319e-06, %v3335_v52  ;;  %v3606_v10 = vmul.f32 %v4457_v0, %v7325_v40  ;;  %v3398_v23 = vmul.f32 %v3366_v49, %v7389_v15  ;;  %v3520_v38 = vadd.f32 0.008333334, %v3488_v48 }
 0x3af   : > { %v3502_v11 = vadd.f32 0.008333334, %v3470_v42  ;;  %v4458_v36 = vadd.f32 -0.16666667, %v3543_v61  ;;  %v4418_v46 = vadd.f32 -0.0001984127, %v3407_v58  ;;  %v3489_v63 = vmul.f32 %v4436_v12, %v7176_v18 }
 0x3b0   : > { %v3399_v53 = vmul.f32 %v3367_v2, %v7400_v59  ;;  %v3638_v30 = vmul.f32 %v3606_v10, %v7314_v28  ;;  %v4409_v62 = vadd.f32 -0.0001984127, %v3398_v23  ;;  %v3552_v32 = vmul.f32 %v3520_v38, %v7161_v3 }
 0x3b1   : > { %v3534_v4 = vmul.f32 %v3502_v11, %v7359_v44  ;;  %v3607_v51 = vmul.f32 %v4458_v36, %v7342_v50  ;;  %v3471_v40 = vmul.f32 %v4418_v46, %v7379_v35  ;;  %v3521_v17 = vadd.f32 0.008333334, %v3489_v63 }
 0x3b2   : > { %v4410_v60 = vadd.f32 -0.0001984127, %v3399_v53  ;;  %v3670_v19 = vadd.f32 %v3638_v30, %v7314_v28  ;;  %v3462_v8 = vmul.f32 %v4409_v62, %v7389_v15  ;;  %v4467_v16 = vadd.f32 -0.16666667, %v3552_v32 }
 0x3b3   : > { %v4449_v6 = vadd.f32 -0.16666667, %v3534_v4  ;;  %v3639_v55 = vmul.f32 %v3607_v51, %v7335_v9  ;;  %v3503_v57 = vadd.f32 0.008333334, %v3471_v40  ;;  %v3160_v52 = vmul.f32 2.0, %v3128_v39 }
 0x3b4   : > { %v3463_v1 = vmul.f32 %v4410_v60, %v7400_v59  ;;  %3786 = vmatpush.msrb.mxu0 %v3670_v19  ;;  %v3494_v31 = vadd.f32 0.008333334, %v3462_v8  ;;  %v3553_v49 = vmul.f32 %v3521_v17, %v7176_v18  ;;  %v3616_v58 = vmul.f32 %v4467_v16, %v7161_v3 }
 0x3b5   : > { %v3598_v50 = vmul.f32 %v4449_v6, %v7359_v44  ;;  %v3671_v0 = vadd.f32 %v3639_v55, %v7335_v9  ;;  %v3535_v28 = vmul.f32 %v3503_v57, %v7379_v35  ;;  %v3192_v2 = vsub.f32 %v7062_v25, %v3160_v52  ;;  %v8100_v55 = vld [vmem:[#allocation41_spill] sm:$0xff] }
 0x3b6   : > { %v3495_v42 = vadd.f32 0.008333334, %v3463_v1  ;;  %v3526_v61 = vmul.f32 %v3494_v31, %v7389_v15  ;;  %v4468_v39 = vadd.f32 -0.16666667, %v3553_v49  ;;  %v3129_v9 = vfloor.f32 %v7086_v54  ;;  %v8102_v1 = vld [vmem:[#allocation23_spill] sm:$0xff]  ;;  %v8104_v31 = vld [vmem:[#allocation14_spill] sm:$0xff] }
 0x3b7   : > { %v3630_v56 = vmul.f32 %v3598_v50, %v7354_v37  ;;  %3806 = vmatpush.msrb.mxu1 %v3671_v0  ;;  %v4450_v44 = vadd.f32 -0.16666667, %v3535_v28  ;;  %v3648_v23 = vmul.f32 %v3616_v58, %v7155_v43  ;;  %vm3224_vm8 = vcmp.gt.f32.partialorder %v3192_v2, 0.5  ;;  %v8105_v0 = vld [vmem:[#allocation22_spill] sm:$0xff]  ;;  %v8106_v58 = vld [vmem:[#allocation8_spill] sm:$0xff] }
 0x3b8   : > { %v3527_v45 = vmul.f32 %v3495_v42, %v7400_v59  ;;  %v4441_v11 = vadd.f32 -0.16666667, %v3526_v61  ;;  %v3617_v3 = vmul.f32 %v4468_v39, %v7176_v18  ;;  %v8098_v25 = vsub.f32 0.0, %v7090_v24 }
 0x3b9   : > { %v3662_v10 = vadd.f32 %v3630_v56, %v7354_v37  ;;  %v3599_v48 = vmul.f32 %v4450_v44, %v7379_v35  ;;  %v3680_v54 = vadd.f32 %v3648_v23, %v7155_v43  ;;  %v3161_v12 = vmul.f32 2.0, %v3129_v9 }
 0x3ba   : > { %v4442_v36 = vadd.f32 -0.16666667, %v3527_v45  ;;  %v7442_v46 = vsel %vm3224_vm8, %v8098_v25, %v7090_v24  ;;  %v3590_v53 = vmul.f32 %v4441_v11, %v7389_v15  ;;  %v3649_v18 = vmul.f32 %v3617_v3, %v7172_v22 }
 0x3bb   : > { %3787 = vmatpush.msrb.mxu0 %v3662_v10  ;;  %v7448_v37 = vmul.f32 %v7442_v46, %v7442_v46  ;;  %v3631_v35 = vmul.f32 %v3599_v48, %v7375_v14  ;;  %v3120_v4 = vfloor.f32 %v7040_v41  ;;  %3825 = vmatpush.msrb.mxu2 %v3680_v54  ;;  %v3193_v43 = vsub.f32 %v7077_v29, %v3161_v12 }
 0x3bc   : > { %v3591_v30 = vmul.f32 %v4442_v36, %v7400_v59  ;;  %v3622_v24 = vmul.f32 %v3590_v53, %v7384_v34  ;;  %v3121_v62 = vfloor.f32 %v7049_v20  ;;  %v3681_v40 = vadd.f32 %v3649_v18, %v7172_v22 }
 0x3bd   : > { %v3352_v15 = vmul.f32 -2.5052108e-08, %v7448_v37  ;;  %v3663_v38 = vadd.f32 %v3631_v35, %v7375_v14  ;;  %v3152_v59 = vmul.f32 2.0, %v3120_v4  ;;  %vm3225_vm9 = vcmp.gt.f32.partialorder %v3193_v43, 0.5 }
 0x3be   : > { %v3623_v51 = vmul.f32 %v3591_v30, %v7394_v13  ;;  %v3654_v60 = vadd.f32 %v3622_v24, %v7384_v34  ;;  %v3153_v41 = vmul.f32 2.0, %v3121_v62  ;;  %3845 = vmatpush.msrb.mxu3 %v3681_v40  ;;  %v8099_v29 = vsub.f32 0.0, %v7098_v21 }
 0x3bf   : > { %v3384_v63 = vadd.f32 2.7557319e-06, %v3352_v15  ;;  %3807 = vmatpush.msrb.mxu1 %v3663_v38  ;;  %v3184_v14 = vsub.f32 %v7029_v47, %v3152_v59  ;;  %v3112_v6 = vfloor.f32 %v6997_v27  ;;  %v3240_v32 = vsub.f32 0.0, %v7018_v26 }
 0x3c0   : > { %v3655_v19 = vadd.f32 %v3623_v51, %v7394_v13  ;;  %v7466_v20 = vsel %vm3225_vm9, %v8099_v29, %v7098_v21  ;;  %3788 = vmatpush.msrb.mxu0 %v3654_v60  ;;  %v3185_v8 = vsub.f32 %v7042_v7, %v3153_v41  ;;  %v3113_v13 = vfloor.f32 %v7013_v33 }
 0x3c1   : > { %v3416_v22 = vmul.f32 %v3384_v63, %v7448_v37  ;;  %v7473_v34 = vmul.f32 %v7466_v20, %v7466_v20  ;;  %4473 = vmatmul.msk.f32.vlgmr.msrb.gmra.mxu0 %vm1501_vm1, %v7199_v5  ;;  %vm3216_vm10 = vcmp.gt.f32.partialorder %v3184_v14, 0.5  ;;  %v3144_v47 = vmul.f32 2.0, %v3112_v6 }
 0x3c2   : > { %3808 = vmatpush.msrb.mxu1 %v3655_v19  ;;  %v8101_v57 = vsub.f32 0.0, %v8100_v55  ;;  %vm3217_vm11 = vcmp.gt.f32.partialorder %v3185_v8, 0.5  ;;  %v8103_v17 = vsub.f32 0.0, %v8102_v1  ;;  %v3145_v52 = vmul.f32 2.0, %v3113_v13 }
 0x3c3   : > { %4474 = vmatmul.msk.f32.vlgmr.msrb.gmra.mxu1 %vm1501_vm1, %v7199_v5  ;;  %v4427_v27 = vadd.f32 -0.0001984127, %v3416_v22  ;;  %v3353_v21 = vmul.f32 -2.5052108e-08, %v7473_v34  ;;  %v3176_v16 = vsub.f32 %v8104_v31, %v3144_v47  ;;  %v3241_v28 = vsub.f32 0.0, %v8105_v0 }
 0x3c4   : > { %v7486_v7 = vsel %vm3216_vm10, %v8101_v57, %v8100_v55  ;;  %v7493_v50 = vsel %vm3217_vm11, %v8103_v17, %v8102_v1  ;;  %v3177_v2 = vsub.f32 %v8106_v58, %v3145_v52  ;;  %vm4078_vm7 = vcmask 1042434  }
 0x3c5   : > { %v3312_v33 = vmul.f32 %v7486_v7, %v7486_v7  ;;  %v3480_v42 = vmul.f32 %v4427_v27, %v7448_v37  ;;  %v3385_v49 = vadd.f32 2.7557319e-06, %v3353_v21  ;;  %v3313_v56 = vmul.f32 %v7493_v50, %v7493_v50 }
 0x3c6   : > { %vm3208_vm12 = vcmp.gt.f32.partialorder %v3176_v16, 0.5  ;;  %vm3209_vm13 = vcmp.gt.f32.partialorder %v3177_v2, 0.5  ;;  %vm4076_vm8 = vcmask 1040384   ;;  %vm4081_vm9 = vcmask 1044484  }
 0x3c7   : > { %v3344_v61 = vmul.f32 -2.5052108e-08, %v3312_v33  ;;  %v3512_v44 = vadd.f32 0.008333334, %v3480_v42  ;;  %v3417_v45 = vmul.f32 %v3385_v49, %v7473_v34  ;;  %v3345_v39 = vmul.f32 -2.5052108e-08, %v3313_v56 }
 0x3c8   : > { %v3272_v9 = vsel %vm3208_vm12, %v3240_v32, %v7018_v26  ;;  %v3273_v3 = vsel %vm3209_vm13, %v3241_v28, %v8105_v0  ;;  %vm4083_vm10 = vcmask 1046534   ;;  %vm4085_vm11 = vcmask 1045508  }
 0x3c9   : > { %v3376_v10 = vadd.f32 2.7557319e-06, %v3344_v61  ;;  %v3304_v11 = vmul.f32 %v3272_v9, %v3272_v9  ;;  %v3544_v23 = vmul.f32 %v3512_v44, %v7448_v37  ;;  %v4428_v48 = vadd.f32 -0.0001984127, %v3417_v45 }
 0x3ca   : > { %v3377_v36 = vadd.f32 2.7557319e-06, %v3345_v39  ;;  %v3305_v54 = vmul.f32 %v3273_v3, %v3273_v3  ;;  %vm4087_vm12 = vcmask 1043456  }
 0x3cb   : > { %v3408_v25 = vmul.f32 %v3376_v10, %v3312_v33  ;;  %v3336_v53 = vmul.f32 -2.5052108e-08, %v3304_v11  ;;  %v4459_v12 = vadd.f32 -0.16666667, %v3544_v23  ;;  %v3481_v35 = vmul.f32 %v4428_v48, %v7473_v34 }
 0x3cc   : > { %v3409_v30 = vmul.f32 %v3377_v36, %v3313_v56  ;;  %v3337_v24 = vmul.f32 -2.5052108e-08, %v3305_v54 }
 0x3cd   : > { %v4419_v18 = vadd.f32 -0.0001984127, %v3408_v25  ;;  %v3368_v4 = vadd.f32 2.7557319e-06, %v3336_v53  ;;  %v3608_v26 = vmul.f32 %v4459_v12, %v7448_v37  ;;  %v3513_v15 = vadd.f32 0.008333334, %v3481_v35 }
 0x3ce   : > { %v4420_v43 = vadd.f32 -0.0001984127, %v3409_v30  ;;  %v3369_v51 = vadd.f32 2.7557319e-06, %v3337_v24 }
 0x3cf   : > { %v3472_v62 = vmul.f32 %v4419_v18, %v3312_v33  ;;  %v3400_v38 = vmul.f32 %v3368_v4, %v3304_v11  ;;  %v3640_v40 = vmul.f32 %v3608_v26, %v7442_v46  ;;  %v3545_v59 = vmul.f32 %v3513_v15, %v7473_v34 }
 0x3d0   : > { %v3473_v60 = vmul.f32 %v4420_v43, %v3313_v56  ;;  %v3401_v19 = vmul.f32 %v3369_v51, %v3305_v54 }
 0x3d1   : > { %v3504_v63 = vadd.f32 0.008333334, %v3472_v62  ;;  %v4411_v41 = vadd.f32 -0.0001984127, %v3400_v38  ;;  %v3672_v29 = vadd.f32 %v3640_v40, %v7442_v46  ;;  %v4460_v14 = vadd.f32 -0.16666667, %v3545_v59 }
 0x3d2   : > { %v3505_v6 = vadd.f32 0.008333334, %v3473_v60  ;;  %v4412_v37 = vadd.f32 -0.0001984127, %v3401_v19 }
 0x3d3   : > { %v3536_v22 = vmul.f32 %v3504_v63, %v3312_v33  ;;  %v3464_v8 = vmul.f32 %v4411_v41, %v3304_v11  ;;  %3826 = vmatpush.msrb.mxu2 %v3672_v29  ;;  %v3609_v13 = vmul.f32 %v4460_v14, %v7473_v34 }
 0x3d4   : > { %v3537_v32 = vmul.f32 %v3505_v6, %v3313_v56  ;;  %v3465_v21 = vmul.f32 %v4412_v37, %v3305_v54 }
 0x3d5   : > { %v4451_v47 = vadd.f32 -0.16666667, %v3536_v22  ;;  %v3496_v27 = vadd.f32 0.008333334, %v3464_v8  ;;  %v3641_v55 = vmul.f32 %v3609_v13, %v7466_v20 }
 0x3d6   : > { %v4452_v57 = vadd.f32 -0.16666667, %v3537_v32  ;;  %v3497_v31 = vadd.f32 0.008333334, %v3465_v21 }
 0x3d7   : > { %v3600_v1 = vmul.f32 %v4451_v47, %v3312_v33  ;;  %v3528_v17 = vmul.f32 %v3496_v27, %v3304_v11  ;;  %v3673_v46 = vadd.f32 %v3641_v55, %v7466_v20 }
 0x3d8   : > { %v3601_v16 = vmul.f32 %v4452_v57, %v3313_v56  ;;  %v3529_v28 = vmul.f32 %v3497_v31, %v3305_v54 }
 0x3d9   : > { %v3632_v52 = vmul.f32 %v3600_v1, %v7486_v7  ;;  %v4443_v0 = vadd.f32 -0.16666667, %v3528_v17  ;;  %3846 = vmatpush.msrb.mxu3 %v3673_v46 }
 0x3da   : > { %v3633_v34 = vmul.f32 %v3601_v16, %v7493_v50  ;;  %v4444_v61 = vadd.f32 -0.16666667, %v3529_v28 }
 0x3db   : > { %v3664_v42 = vadd.f32 %v3632_v52, %v7486_v7  ;;  %v3592_v49 = vmul.f32 %v4443_v0, %v3304_v11  ;;  %v3687_v7 = vpop.permute.xlu0 %3686 }
 0x3dc   : > { %v3665_v58 = vadd.f32 %v3633_v34, %v7493_v50  ;;  %v3593_v2 = vmul.f32 %v4444_v61, %v3305_v54  ;;  %v7521_v39 = vperm.slane %v3687_v7, 0 }
 0x3dd   : > { %3827 = vmatpush.msrb.mxu2 %v3664_v42  ;;  %v3624_v33 = vmul.f32 %v3592_v49, %v3272_v9 }
 0x3de   : > { %3847 = vmatpush.msrb.mxu3 %v3665_v58  ;;  %v3625_v20 = vmul.f32 %v3593_v2, %v3273_v3 }
 0x3df   : > { %v3656_v44 = vadd.f32 %v3624_v33, %v3272_v9 }
 0x3e0   : > { %v3657_v56 = vadd.f32 %v3625_v20, %v3273_v3 }
 0x3e1   : > { %3828 = vmatpush.msrb.mxu2 %v3656_v44 }
 0x3e2   : > { %4475 = vmatmul.msk.f32.vlgmr.msrb.gmra.mxu2 %vm1501_vm1, %v7199_v5  ;;  %3848 = vmatpush.msrb.mxu3 %v3657_v56 }
 0x3e3   : > { %4476 = vmatmul.msk.f32.vlgmr.msrb.gmra.mxu3 %vm1501_vm1, %v7199_v5 }
 0x3f9   : > { %v3710_v23 = vpop.f32.mrf.mxu0 }
 0x3fa   : > { %v7527_v53 = vadd.f32 %v3710_v23, %v7521_v39 }
 0x3fc   : > { %v3730_v50 = vpop.f32.mrf.mxu1  ;;  %v3853_v18 = vmul.f32 0.31830987, %v7527_v53 }
 0x3fd   : > { %v3731_v9 = vadd.f32 %v3730_v50, %v7521_v39 }
 0x3fe   : > { %v3861_v62 = vadd.f32 0.5, %v3853_v18 }
 0x3ff   : > { %v3854_v3 = vmul.f32 0.31830987, %v3731_v9 }
 0x400   : > { %v7533_v60 = vfloor.f32 %v3861_v62 }
 0x401   : > { %v3862_v12 = vadd.f32 0.5, %v3854_v3 }
 0x402   : > { %v3909_v13 = vmul.f32 0.5, %v7533_v60  ;;  %v3877_v57 = vmul.f32 3.140625, %v7533_v60 }
 0x403   : > { %v3870_v26 = vfloor.f32 %v3862_v12 }
 0x404   : > { %v3917_v0 = vfloor.f32 %v3909_v13 }
 0x405   : > { %v3910_v40 = vmul.f32 0.5, %v3870_v26  ;;  %v3878_v22 = vmul.f32 3.140625, %v3870_v26  ;;  %v3894_v49 = vmul.f32 0.0009676536, %v3870_v26 }
 0x407   : > { %v3918_v8 = vfloor.f32 %v3910_v40  ;;  %v3886_v31 = vsub.f32 %v3731_v9, %v3878_v22 }
 0x409   : > { %v3926_v46 = vmul.f32 2.0, %v3918_v8  ;;  %v3902_v7 = vsub.f32 %v3886_v31, %v3894_v49 }
 0x423   : > { %v3750_v45 = vpop.f32.mrf.mxu2 }
 0x424   : > { %v3751_v11 = vadd.f32 %v3750_v45, %v7521_v39  ;;  %v3934_v45 = vsub.f32 %v3870_v26, %v3926_v46 }
 0x426   : > { %v3855_v36 = vmul.f32 0.31830987, %v3751_v11  ;;  %vm3942_vm15 = vcmp.gt.f32.partialorder %v3934_v45, 0.5 }
 0x427   : > { %v3770_v10 = vpop.f32.mrf.mxu3 }
 0x428   : > { %v3771_v48 = vadd.f32 %v3770_v10, %v7521_v39  ;;  %v3863_v5 = vadd.f32 0.5, %v3855_v36  ;;  %v3925_v36 = vmul.f32 2.0, %v3917_v0 }
 0x42a   : > { %v3856_v25 = vmul.f32 0.31830987, %v3771_v48  ;;  %v3871_v4 = vfloor.f32 %v3863_v5 }
 0x42c   : > { %v3864_v35 = vadd.f32 0.5, %v3856_v25  ;;  %v3911_v38 = vmul.f32 0.5, %v3871_v4  ;;  %v3879_v63 = vmul.f32 3.140625, %v3871_v4  ;;  %v3895_v16 = vmul.f32 0.0009676536, %v3871_v4 }
 0x42e   : > { %v3872_v15 = vfloor.f32 %v3864_v35  ;;  %v3919_v41 = vfloor.f32 %v3911_v38  ;;  %v3887_v27 = vsub.f32 %v3751_v11, %v3879_v63  ;;  %v3893_v35 = vmul.f32 0.0009676536, %v7533_v60 }
 0x430   : > { %v3912_v59 = vmul.f32 0.5, %v3872_v15  ;;  %v3880_v14 = vmul.f32 3.140625, %v3872_v15  ;;  %v3927_v21 = vmul.f32 2.0, %v3919_v41  ;;  %v3896_v28 = vmul.f32 0.0009676536, %v3872_v15 }
 0x431   : > { %v3903_v61 = vsub.f32 %v3887_v27, %v3895_v16 }
 0x432   : > { %v3920_v37 = vfloor.f32 %v3912_v59  ;;  %v3888_v1 = vsub.f32 %v3771_v48, %v3880_v14  ;;  %v3935_v58 = vsub.f32 %v3871_v4, %v3927_v21  ;;  %v3885_v48 = vsub.f32 %v7527_v53, %v3877_v57 }
 0x433   : > { %v3951_v3 = vsub.f32 0.0, %v3903_v61  ;;  %v3933_v53 = vsub.f32 %v7533_v60, %v3925_v36 }
 0x434   : > { %v3928_v52 = vmul.f32 2.0, %v3920_v37  ;;  %v3904_v2 = vsub.f32 %v3888_v1, %v3896_v28  ;;  %vm3943_vm1 = vcmp.gt.f32.partialorder %v3935_v58, 0.5  ;;  %v3901_v26 = vsub.f32 %v3885_v48, %v3893_v35 }
 0x435   : > { %vm3941_vm4 = vcmp.gt.f32.partialorder %v3933_v53, 0.5 }
 0x436   : > { %v3936_v50 = vsub.f32 %v3872_v15, %v3928_v52  ;;  %v3952_v5 = vsub.f32 0.0, %v3904_v2  ;;  %v7544_v15 = vsel %vm3943_vm1, %v3951_v3, %v3903_v61  ;;  %v3949_v59 = vsub.f32 0.0, %v3901_v26 }
 0x437   : > { %v7553_v38 = vmul.f32 %v7544_v15, %v7544_v15 }
 0x438   : > { %vm3944_vm14 = vcmp.gt.f32.partialorder %v3936_v50, 0.5  ;;  %v7576_v14 = vsel %vm3941_vm4, %v3949_v59, %v3901_v26 }
 0x43e   : > { %v3790_v54 = vpop.f32.mrf.mxu0 }
 0x43f   : > { %v3791_v30 = vadd.f32 %v3790_v54, %v7521_v39 }
 0x440   : > { %v3810_v29 = vpop.f32.mrf.mxu1 }
 0x441   : > { %v3857_v24 = vmul.f32 0.31830987, %v3791_v30  ;;  %v3811_v6 = vadd.f32 %v3810_v29, %v7521_v39  ;;  %v3975_v29 = vmul.f32 -2.5052108e-08, %v7553_v38 }
 0x443   : > { %v3865_v43 = vadd.f32 0.5, %v3857_v24  ;;  %v3858_v47 = vmul.f32 0.31830987, %v3811_v6 }
 0x445   : > { %v7531_v51 = vfloor.f32 %v3865_v43  ;;  %v3866_v17 = vadd.f32 0.5, %v3858_v47  ;;  %v7547_v43 = vsel %vm3944_vm14, %v3952_v5, %v3904_v2  ;;  %v3983_v47 = vadd.f32 2.7557319e-06, %v3975_v29 }
 0x446   : > { %v7561_v63 = vmul.f32 %v7547_v43, %v7547_v43 }
 0x447   : > { %v3913_v19 = vmul.f32 0.5, %v7531_v51  ;;  %v3881_v32 = vmul.f32 3.140625, %v7531_v51  ;;  %v3874_v42 = vfloor.f32 %v3866_v17  ;;  %v3897_v44 = vmul.f32 0.0009676536, %v7531_v51 }
 0x448   : > { %v3991_v52 = vmul.f32 %v3983_v47, %v7553_v38 }
 0x449   : > { %v3921_v55 = vfloor.f32 %v3913_v19  ;;  %v3889_v34 = vsub.f32 %v3791_v30, %v3881_v32  ;;  %v3882_v20 = vmul.f32 3.140625, %v3874_v42  ;;  %v3914_v56 = vmul.f32 0.5, %v3874_v42 }
 0x44a   : > { %v3898_v23 = vmul.f32 0.0009676536, %v3874_v42  ;;  %v3950_v30 = vsub.f32 0.0, %v3902_v7  ;;  %v7584_v32 = vmul.f32 %v7576_v14, %v7576_v14 }
 0x44b   : > { %v3929_v33 = vmul.f32 2.0, %v3921_v55  ;;  %v3905_v10 = vsub.f32 %v3889_v34, %v3897_v44  ;;  %v3890_v11 = vsub.f32 %v3811_v6, %v3882_v20  ;;  %v3922_v9 = vfloor.f32 %v3914_v56 }
 0x44c   : > { %v7549_v62 = vsel %vm3942_vm15, %v3950_v30, %v3902_v7  ;;  %v3976_v6 = vmul.f32 -2.5052108e-08, %v7561_v63  ;;  %v3973_v16 = vmul.f32 -2.5052108e-08, %v7584_v32 }
 0x44d   : > { %v3937_v25 = vsub.f32 %v7531_v51, %v3929_v33  ;;  %v3906_v54 = vsub.f32 %v3890_v11, %v3898_v23  ;;  %v3930_v12 = vmul.f32 2.0, %v3922_v9  ;;  %v3953_v18 = vsub.f32 0.0, %v3905_v10 }
 0x44e   : > { %v7565_v60 = vmul.f32 %v7549_v62, %v7549_v62  ;;  %v3984_v21 = vadd.f32 2.7557319e-06, %v3976_v6  ;;  %v3981_v2 = vadd.f32 2.7557319e-06, %v3973_v16 }
 0x44f   : > { %v3938_v4 = vsub.f32 %v3874_v42, %v3930_v12  ;;  %v3954_v24 = vsub.f32 0.0, %v3906_v54  ;;  %vm3945_vm2 = vcmp.gt.f32.partialorder %v3937_v25, 0.5 }
 0x450   : > { %v7555_v51 = vsel %vm3945_vm2, %v3953_v18, %v3905_v10  ;;  %v3974_v22 = vmul.f32 -2.5052108e-08, %v7565_v60  ;;  %v3992_v34 = vmul.f32 %v3984_v21, %v7561_v63  ;;  %v3989_v3 = vmul.f32 %v3981_v2, %v7584_v32 }
 0x451   : > { %vm3946_vm3 = vcmp.gt.f32.partialorder %v3938_v4, 0.5  ;;  %v7569_v41 = vmul.f32 %v7555_v51, %v7555_v51 }
 0x452   : > { %v7557_v40 = vsel %vm3946_vm3, %v3954_v24, %v3906_v54  ;;  %v3982_v57 = vadd.f32 2.7557319e-06, %v3974_v22  ;;  %v4480_v56 = vadd.f32 -0.0001984127, %v3992_v34  ;;  %v4477_v22 = vadd.f32 -0.0001984127, %v3989_v3 }
 0x453   : > { %v7573_v19 = vmul.f32 %v7557_v40, %v7557_v40  ;;  %v3977_v8 = vmul.f32 -2.5052108e-08, %v7569_v41 }
 0x454   : > { %v3990_v42 = vmul.f32 %v3982_v57, %v7565_v60  ;;  %v4008_v12 = vmul.f32 %v4480_v56, %v7561_v63 }
 0x455   : > { %v3978_v37 = vmul.f32 -2.5052108e-08, %v7573_v19  ;;  %v3985_v31 = vadd.f32 2.7557319e-06, %v3977_v8 }
 0x456   : > { %v4478_v45 = vadd.f32 -0.0001984127, %v3990_v42 }
 0x457   : > { %v3986_v46 = vadd.f32 2.7557319e-06, %v3978_v37  ;;  %v3993_v58 = vmul.f32 %v3985_v31, %v7569_v41  ;;  %v4016_v37 = vadd.f32 0.008333334, %v4008_v12 }
 0x458   : > { %v4006_v4 = vmul.f32 %v4478_v45, %v7565_v60 }
 0x459   : > { %v3994_v33 = vmul.f32 %v3986_v46, %v7573_v19  ;;  %v4481_v23 = vadd.f32 -0.0001984127, %v3993_v58 }
 0x45a   : > { %v4014_v21 = vadd.f32 0.008333334, %v4006_v4 }
 0x45b   : > { %v4482_v9 = vadd.f32 -0.0001984127, %v3994_v33  ;;  %v4009_v53 = vmul.f32 %v4481_v23, %v7569_v41 }
 0x45d   : > { %v4010_v59 = vmul.f32 %v4482_v9, %v7573_v19  ;;  %v4017_v57 = vadd.f32 0.008333334, %v4009_v53 }
 0x45f   : > { %v4025_v42 = vmul.f32 %v4017_v57, %v7569_v41 }
 0x465   : > { %v3830_v13 = vpop.f32.mrf.mxu2 }
 0x466   : > { %v3831_v27 = vadd.f32 %v3830_v13, %v7521_v39  ;;  %v3850_v55 = vpop.f32.mrf.mxu3 }
 0x467   : > { %v3851_v17 = vadd.f32 %v3850_v55, %v7521_v39  ;;  %v4479_v39 = vadd.f32 -0.0001984127, %v3991_v52  ;;  %v4024_v52 = vmul.f32 %v4016_v37, %v7561_v63 }
 0x468   : > { %v3859_v1 = vmul.f32 0.31830987, %v3831_v27 }
 0x469   : > { %v3860_v28 = vmul.f32 0.31830987, %v3851_v17  ;;  %v4007_v25 = vmul.f32 %v4479_v39, %v7553_v38  ;;  %v4488_v39 = vadd.f32 -0.16666667, %v4024_v52 }
 0x46a   : > { %v3867_v0 = vadd.f32 0.5, %v3859_v1  ;;  %v4018_v1 = vadd.f32 0.008333334, %v4010_v59 }
 0x46b   : > { %v3868_v61 = vadd.f32 0.5, %v3860_v28  ;;  %v4015_v8 = vadd.f32 0.008333334, %v4007_v25  ;;  %v4022_v28 = vmul.f32 %v4014_v21, %v7565_v60  ;;  %v4040_v9 = vmul.f32 %v4488_v39, %v7561_v63 }
 0x46c   : > { %v3875_v49 = vfloor.f32 %v3867_v0 }
 0x46d   : > { %v3876_v7 = vfloor.f32 %v3868_v61  ;;  %v4023_v16 = vmul.f32 %v4015_v8, %v7553_v38 }
 0x46e   : > { %v3883_v44 = vmul.f32 3.140625, %v3875_v49  ;;  %v3915_v20 = vmul.f32 0.5, %v3875_v49  ;;  %v3899_v10 = vmul.f32 0.0009676536, %v3875_v49 }
 0x46f   : > { %v3884_v48 = vmul.f32 3.140625, %v3876_v7  ;;  %v3916_v36 = vmul.f32 0.5, %v3876_v7  ;;  %v3900_v30 = vmul.f32 0.0009676536, %v3876_v7  ;;  %v4487_v2 = vadd.f32 -0.16666667, %v4023_v16 }
 0x470   : > { %v3891_v50 = vsub.f32 %v3831_v27, %v3883_v44  ;;  %v3923_v11 = vfloor.f32 %v3915_v20  ;;  %v4486_v20 = vadd.f32 -0.16666667, %v4022_v28 }
 0x471   : > { %v3892_v35 = vsub.f32 %v3851_v17, %v3884_v48  ;;  %v3924_v18 = vfloor.f32 %v3916_v36  ;;  %v4005_v17 = vmul.f32 %v4477_v22, %v7584_v32  ;;  %v4039_v23 = vmul.f32 %v4487_v2, %v7553_v38 }
 0x472   : > { %v3907_v5 = vsub.f32 %v3891_v50, %v3899_v10  ;;  %v3931_v54 = vmul.f32 2.0, %v3923_v11  ;;  %v4038_v36 = vmul.f32 %v4486_v20, %v7565_v60 }
 0x473   : > { %v3908_v29 = vsub.f32 %v3892_v35, %v3900_v30  ;;  %v3932_v6 = vmul.f32 2.0, %v3924_v18  ;;  %v4013_v58 = vadd.f32 0.008333334, %v4005_v17  ;;  %v4047_v30 = vmul.f32 %v4039_v23, %v7544_v15 }
 0x474   : > { %v3939_v24 = vsub.f32 %v3875_v49, %v3931_v54  ;;  %v3955_v26 = vsub.f32 0.0, %v3907_v5  ;;  %v4026_v49 = vmul.f32 %v4018_v1, %v7573_v19  ;;  %v4048_v18 = vmul.f32 %v4040_v9, %v7547_v43 }
 0x475   : > { %v3940_v47 = vsub.f32 %v3876_v7, %v3932_v6  ;;  %v3956_v27 = vsub.f32 0.0, %v3908_v29  ;;  %v4489_v7 = vadd.f32 -0.16666667, %v4025_v42  ;;  %v4021_v11 = vmul.f32 %v4013_v58, %v7584_v32 }
 0x476   : > { %vm3947_vm5 = vcmp.gt.f32.partialorder %v3939_v24, 0.5  ;;  %v4490_v45 = vadd.f32 -0.16666667, %v4026_v49  ;;  %v4046_v38 = vmul.f32 %v4038_v36, %v7549_v62  ;;  %v4055_v53 = vadd.f32 %v4047_v30, %v7544_v15 }
 0x477   : > { %v3963_v13 = vsel %vm3947_vm5, %v3955_v26, %v3907_v5  ;;  %vm3948_vm6 = vcmp.gt.f32.partialorder %v3940_v47, 0.5  ;;  %v4041_v25 = vmul.f32 %v4489_v7, %v7569_v41  ;;  %v4485_v35 = vadd.f32 -0.16666667, %v4021_v11 }
 0x478   : > { %v3971_v55 = vmul.f32 %v3963_v13, %v3963_v13  ;;  %v3964_v46 = vsel %vm3948_vm6, %v3956_v27, %v3908_v29  ;;  %v4042_v5 = vmul.f32 %v4490_v45, %v7573_v19  ;;  %v4056_v59 = vadd.f32 %v4048_v18, %v7547_v43 }
 0x479   : > { %v3972_v0 = vmul.f32 %v3964_v46, %v3964_v46  ;;  %v4049_v60 = vmul.f32 %v4041_v25, %v7555_v51  ;;  %v4037_v19 = vmul.f32 %v4485_v35, %v7584_v32  ;;  %v4054_v6 = vadd.f32 %v4046_v38, %v7549_v62 }
 0x47a   : > { %v3979_v31 = vmul.f32 -2.5052108e-08, %v3971_v55  ;;  %v4050_v24 = vmul.f32 %v4042_v5, %v7557_v40  ;;  %v4070_v21 = vrot.slane %v4055_v53, 6  ;;  %v4071_v15 = vrot.slane %v4056_v59, 5 }
 0x47b   : > { %v3980_v61 = vmul.f32 -2.5052108e-08, %v3972_v0  ;;  %v4057_v8 = vadd.f32 %v4049_v60, %v7555_v51  ;;  %v4045_v32 = vmul.f32 %v4037_v19, %v7576_v14  ;;  %v4069_v43 = vrot.slane %v4054_v6, 7 }
 0x47c   : > { %v3987_v34 = vadd.f32 2.7557319e-06, %v3979_v31  ;;  %v4058_v37 = vadd.f32 %v4050_v24, %v7557_v40  ;;  %v4079_v17 = vsel %vm4078_vm7, %v4070_v21, %v4071_v15 }
 0x47d   : > { %v3988_v44 = vadd.f32 2.7557319e-06, %v3980_v61  ;;  %v4072_v62 = vrot.slane %v4057_v8, 4 }
 0x47e   : > { %v3995_v33 = vmul.f32 %v3987_v34, %v3971_v55  ;;  %v4073_v51 = vrot.slane %v4058_v37, 3 }
 0x47f   : > { %v3996_v50 = vmul.f32 %v3988_v44, %v3972_v0 }
 0x480   : > { %v4483_v56 = vadd.f32 -0.0001984127, %v3995_v33  ;;  %v4082_v16 = vsel %vm4081_vm9, %v4072_v62, %v4073_v51 }
 0x481   : > { %v4484_v48 = vadd.f32 -0.0001984127, %v3996_v50 }
 0x482   : > { %v4011_v10 = vmul.f32 %v4483_v56, %v3971_v55 }
 0x483   : > { %v4012_v54 = vmul.f32 %v4484_v48, %v3972_v0 }
 0x484   : > { %v4019_v3 = vadd.f32 0.008333334, %v4011_v10 }
 0x485   : > { %v4020_v4 = vadd.f32 0.008333334, %v4012_v54 }
 0x486   : > { %v4027_v12 = vmul.f32 %v4019_v3, %v3971_v55 }
 0x487   : > { %v4028_v26 = vmul.f32 %v4020_v4, %v3972_v0 }
 0x488   : > { %v4491_v63 = vadd.f32 -0.16666667, %v4027_v12 }
 0x489   : > { %v4492_v29 = vadd.f32 -0.16666667, %v4028_v26 }
 0x48a   : > { %v4043_v41 = vmul.f32 %v4491_v63, %v3971_v55 }
 0x48b   : > { %v4044_v47 = vmul.f32 %v4492_v29, %v3972_v0 }
 0x48c   : > { %v4051_v22 = vmul.f32 %v4043_v41, %v3963_v13 }
 0x48d   : > { %v4052_v55 = vmul.f32 %v4044_v47, %v3964_v46 }
 0x48e   : > { %v4059_v27 = vadd.f32 %v4051_v22, %v3963_v13  ;;  %v4053_v13 = vadd.f32 %v4045_v32, %v7576_v14 }
 0x48f   : > { %v4060_v57 = vadd.f32 %v4052_v55, %v3964_v46 }
 0x490   : > { %v4074_v40 = vrot.slane %v4059_v27, 2  ;;  %v4077_v31 = vsel %vm4076_vm8, %v4053_v13, %v4069_v43 }
 0x491   : > { %v4075_v1 = vrot.slane %v4060_v57, 1  ;;  %v4080_v0 = vsel %vm392_vm0, %v4077_v31, %v4079_v17 }
 0x493   : > { %v4084_v52 = vsel %vm4083_vm10, %v4074_v40, %v4075_v1 }
 0x494   : > { %v4086_v46 = vsel %vm4085_vm11, %v4082_v16, %v4084_v52 }
 0x495   : > { %v4088_v28 = vsel %vm4087_vm12, %v4080_v0, %v4086_v46 }
 0x496   : > { %4090 = vst [vmem:[%s328_s10] sm:$0xff] %v4088_v28 }
 0x497   : > { %4567 = shalt.err (!%p4564_p3)
}
 0x498   : > { %4497 = dma.vmem_to_hbm [thread:$0]  (%p4693_p5), %s4105_s8, 128, %s4107_s15, %s4092_s22  }
 0x499 PF: > { %p4503_p4 = scmp.ge.s32.totalorder %s4602_s14, 2  ;;  %s4118_s26 = sand.u32 1, %s4590_s11  }
 0x49a   : > { %s4119_s29 = scalar_lea.sflag [#allocation4], %s4118_s26 }
 0x49b   : > { %p4500_p7 = pnand %p4503_p4, %p4697_p6 }
 0x49d   : > { %p4501_p8 = pneg %p4500_p7 }
 0x49f   : > { %4585 = dma.done.wait (%p4501_p8), %s4119_s29, 128  }
 0x4a0   : > { %4587 = vsyncadd (%p4501_p8), %s4119_s29, 4294967168  ;;  %p21_p9 = scmp.ge.s32.totalorder %s4681_s16, 4   ;;  %s8107_s11 = smov %s4594_s12 }
 0x4a1   : > { %s8108_s12 = smov %s4598_s13  ;;  %s8109_s13 = smov %s4691_s19 }
 0x4a2   : > { %s8110_s14 = smov %s4681_s16  ;;  %23 = sbr.rel (!%p21_p9) target bundleno = 6 (0x6), region = 92 }
 0x4a7   :  { %4125 = vsyncpa [#allocation4], 1 }
 0x4a8   :  { %4127 = vsyncpa [#allocation4 + $0x1], 1 }

</bundles_post_ra>
